<compile_context>
chip_gen: v7x
topology: tpu7x:2x2x1
jax: 0.10.0
libtpu: 0.0.40
codegen_flags: <defaults>
</compile_context>

<pallas_src>
import numpy as np
import jax
import jax.numpy as jnp
from jax import lax
from jax.experimental import pallas as pl
from jax.experimental.pallas import tpu as pltpu

EPS = 1e-5


def _round_up(x, m):
    return ((x + m - 1) // m) * m


def _row_tile(H, W, target=256):
    """Input-rows per tile, targeting ~256 matmul rows; must divide H."""
    ht = max(1, min(H, target // W)) if W <= target else 1
    while H % ht:
        ht -= 1
    return ht


def _clamp_vmem(nbytes):
    """Per-call VMEM limit: headroom over the computed footprint, floored at
    16 MiB and capped at 48 MiB so the request is valid on v7x (64 MiB
    physical VMEM) as well as v5e/v6e (128 MiB)."""
    return int(max(16 << 20, min(nbytes * 3 // 2 + (2 << 20), 48 << 20)))


# ----------------------------------------------------------------------------
# Kernel 1: Linear (no bias, bf16 MXU) + BatchNorm1d (batch stats, f32) + ReLU.
# ----------------------------------------------------------------------------
def _linear_bn_relu_kernel(x_ref, w_ref, g_ref, b_ref, o_ref):
    y = jnp.dot(x_ref[...], w_ref[...], preferred_element_type=jnp.float32)
    mean = jnp.mean(y, axis=0, keepdims=True)
    var = jnp.mean((y - mean) ** 2, axis=0, keepdims=True)   # biased var (training BN)
    yhat = (y - mean) * lax.rsqrt(var + EPS)
    o_ref[...] = jnp.maximum(yhat * g_ref[...] + b_ref[...], 0.0).astype(o_ref.dtype)


def linear_bn_relu(x, w, gamma, beta):
    B = x.shape[0]
    in_dim, F = w.shape
    need = 2 * (B * in_dim + in_dim * F + B * F) * 2 + 2 * 8 * F * 4 + B * F * 4
    return pl.pallas_call(
        _linear_bn_relu_kernel,
        out_shape=jax.ShapeDtypeStruct((B, F), jnp.bfloat16),
        compiler_params=pltpu.CompilerParams(vmem_limit_bytes=_clamp_vmem(need)),
    )(x.astype(jnp.bfloat16), w, gamma, beta)


# ----------------------------------------------------------------------------
# Shared: 9-tap transposed-conv contribution for `ht` rows starting at m0.
# ----------------------------------------------------------------------------
def _tap_matmul(x_ref, taps_ref, m0, ht, W, cin, n4):
    """x_ref: (1, Hp, Wp, cin) bf16 block (1-px zero-padded input, one batch
    element); taps_ref: (9, cin, n4) bf16.  Returns (ht*W, n4) f32."""
    mt = ht * W

    def win(t):
        dy, dx = divmod(t, 3)
        return x_ref[0, pl.ds(m0 + dy, ht), dx:dx + W, :].reshape(mt, cin)

    if cin % 128 == 0:
        # K-fused path: one (mt, 9*cin) @ (9*cin, n4) dot.  The lane concat of
        # 128-aligned pieces is a free vreg placement (no lane shuffles).
        lhs = jnp.concatenate([win(t) for t in range(9)], axis=-1)
        return jnp.dot(lhs, taps_ref[...].reshape(9 * cin, n4),
                       preferred_element_type=jnp.float32)

    # Unaligned small-cin path (HBM-bound regime): 9 small dots; a lane concat
    # of <128-wide bf16 pieces would cost relayout shuffles for no MXU benefit.
    acc = None
    for t in range(9):
        d = jnp.dot(win(t), taps_ref[t], preferred_element_type=jnp.float32)
        acc = d if acc is None else acc + d
    return acc


# ----------------------------------------------------------------------------
# Kernel 2: fused ConvTranspose2d + BatchNorm2d (batch stats) + ReLU, gridded
# as (phase, batch, row-tile).  Phase 0: conv tiles -> bf16 VMEM accumulator +
# running f32 column stats.  Phase 1: finalize stats once, then normalize.
# ----------------------------------------------------------------------------
def _make_deconv_bn_kernel(B, H, W, cin, cp, ht):
    n4 = 4 * cp
    mt = ht * W
    HW = H * W

    def kernel(xp_ref, taps_ref, g_ref, bt_ref, o_ref,
               acc_ref, sum_ref, sq_ref, sc_ref, sh_ref):
        p = pl.program_id(0)
        b = pl.program_id(1)
        m = pl.program_id(2)
        m0 = pl.multiple_of(m * ht, ht)
        r0 = pl.multiple_of(b * HW + m0 * W, mt)

        # ---- phase 0: convolution tile -> bf16 acc scratch + f32 column stats
        @pl.when(p == 0)
        def _():
            @pl.when((b == 0) & (m == 0))
            def _():
                sum_ref[...] = jnp.zeros_like(sum_ref)
                sq_ref[...] = jnp.zeros_like(sq_ref)

            acc = _tap_matmul(xp_ref, taps_ref, m0, ht, W, cin, n4)
            acc_ref[pl.ds(r0, mt), :] = acc.astype(acc_ref.dtype)
            sum_ref[...] += jnp.sum(acc, axis=0, keepdims=True)
            sq_ref[...] += jnp.sum(acc * acc, axis=0, keepdims=True)

        # ---- phase 1: finalize batch stats once, then normalize + ReLU
        @pl.when(p == 1)
        def _():
            @pl.when((b == 0) & (m == 0))
            def _():
                # Combine the 4 parity groups per channel (exact, f32).
                def combine(v):
                    t = v
                    for k in range(1, 4):
                        t = t + pltpu.roll(v, shift=k * cp, axis=1)
                    return t

                inv_n = 1.0 / float(4 * B * HW)          # B * (2H) * (2W)
                mean_t = combine(sum_ref[...]) * inv_n
                msq_t = combine(sq_ref[...]) * inv_n
                # Single-pass variance (E[x^2]-E[x]^2) in f32, guarded at 0;
                # documented tolerance for WGAN training.
                var_t = jnp.maximum(msq_t - mean_t * mean_t, 0.0)
                scale = g_ref[...] * lax.rsqrt(var_t + EPS)
                sc_ref[...] = scale
                sh_ref[...] = bt_ref[...] - mean_t * scale

            a = acc_ref[pl.ds(r0, mt), :].astype(jnp.float32)
            o_ref[...] = jnp.maximum(
                a * sc_ref[...] + sh_ref[...], 0.0).astype(o_ref.dtype)

    return kernel


def deconv_bn_relu(xp, taps, gamma_t, beta_t, H, W):
    B, Hp, Wp, cin = xp.shape
    n4 = taps.shape[2]
    cp = n4 // 4
    M = B * H * W
    ht = _row_tile(H, W)
    mt = ht * W
    nm = H // ht
    kernel = _make_deconv_bn_kernel(B, H, W, cin, cp, ht)
    need = (2 * Hp * Wp * cin * 2          # xp block (double-buffered, bf16)
            + 2 * 9 * cin * n4 * 2         # taps (bf16)
            + 2 * mt * n4 * 2              # output block (bf16)
            + M * n4 * 2                   # bf16 acc scratch
            + 6 * 8 * n4 * 4)              # gamma/beta/stat scratches (padded)
    return pl.pallas_call(
        kernel,
        grid=(2, B, nm),
        in_specs=[
            # During phase 1 the input is unused; keep the index at the last
            # fetched block so no extra DMAs are issued.
            pl.BlockSpec((1, Hp, Wp, cin),
                         lambda p, b, m: (b * (1 - p) + (B - 1) * p, 0, 0, 0)),
            pl.BlockSpec((9, cin, n4), lambda p, b, m: (0, 0, 0)),
            pl.BlockSpec((1, n4), lambda p, b, m: (0, 0)),
            pl.BlockSpec((1, n4), lambda p, b, m: (0, 0)),
        ],
        # Output blocks are written (and streamed out) only during phase 1.
        out_specs=pl.BlockSpec((mt, n4), lambda p, b, m: (p * (b * nm + m), 0)),
        out_shape=jax.ShapeDtypeStruct((M, n4), jnp.bfloat16),
        scratch_shapes=[
            pltpu.VMEM((M, n4), jnp.bfloat16),   # conv accumulator (pass1->pass2)
            pltpu.VMEM((1, n4), jnp.float32),    # running column sum
            pltpu.VMEM((1, n4), jnp.float32),    # running column sum of squares
            pltpu.VMEM((1, n4), jnp.float32),    # BN scale
            pltpu.VMEM((1, n4), jnp.float32),    # BN shift
        ],
        compiler_params=pltpu.CompilerParams(
            # All axes "arbitrary": the stat accumulation / finalize ordering
            # must stay sequential.  TODO(synk): v7x two-core split.
            dimension_semantics=("arbitrary", "arbitrary", "arbitrary"),
            vmem_limit_bytes=_clamp_vmem(need),
        ),
    )(xp, taps, gamma_t, beta_t)


# ----------------------------------------------------------------------------
# Kernel 3: final ConvTranspose2d + bias + tanh, gridded (B, row-tiles) with
# "parallel" semantics; bf16 stores (real channels sliced in the wrapper).
# ----------------------------------------------------------------------------
def _make_deconv_tanh_kernel(H, W, cin, ht, n4):
    def kernel(x_ref, w_ref, bt_ref, o_ref):
        m0 = pl.multiple_of(pl.program_id(1) * ht, ht)
        acc = _tap_matmul(x_ref, w_ref, m0, ht, W, cin, n4)
        o_ref[...] = jnp.tanh(acc + bt_ref[...]).astype(o_ref.dtype)

    return kernel


def deconv_bias_tanh(xp, taps, bias_t, H, W):
    B, Hp, Wp, cin = xp.shape
    n4 = taps.shape[2]
    M = B * H * W
    ht = _row_tile(H, W)
    mt = ht * W
    nm = H // ht
    kernel = _make_deconv_tanh_kernel(H, W, cin, ht, n4)
    need = (2 * Hp * Wp * cin * 2 + 2 * 9 * cin * n4 * 2
            + 2 * mt * n4 * 2 + 2 * 8 * n4 * 4)
    # NOTE: pipeline_mode=pl.Buffered(3) on the out_spec was considered but the
    # 256-row tiles already keep stores hidden at these sizes.
    return pl.pallas_call(
        kernel,
        grid=(B, nm),
        in_specs=[
            pl.BlockSpec((1, Hp, Wp, cin), lambda b, m: (b, 0, 0, 0)),
            pl.BlockSpec((9, cin, n4), lambda b, m: (0, 0, 0)),
            pl.BlockSpec((1, n4), lambda b, m: (0, 0)),
        ],
        out_specs=pl.BlockSpec((mt, n4), lambda b, m: (b * nm + m, 0)),
        out_shape=jax.ShapeDtypeStruct((M, n4), jnp.bfloat16),
        compiler_params=pltpu.CompilerParams(
            dimension_semantics=("parallel", "parallel"),
            vmem_limit_bytes=_clamp_vmem(need),
        ),
    )(xp, taps, bias_t)


# ----------------------------------------------------------------------------
# Parameter construction (deterministic; PyTorch-default BN affine gamma=1,
# beta=0).  ConvTranspose2d weights are re-laid-out into per-tap matrices with
# the 4 output parities stacked on the lane axis and channels zero-padded.
# ----------------------------------------------------------------------------
_KMAP = {0: {0: 4, 1: 2, 2: 0}, 1: {1: 3, 2: 1}}   # (parity, dy/dx) -> kernel idx


def _build_taps(w, cin_carry, cp):
    """(cin, cout, 5, 5) torch weight -> (9, cin_carry, 4*cp) bf16 tap matrices.

    out[2m+p, 2n+q, c] = sum_{dy,dx} x_pad[m+dy, n+dx, :] @ taps[3*dy+dx][:, (2p+q)*cp + c]
    with x_pad zero-padded by 1 pixel; taps a parity does not use are zero.
    """
    w = np.asarray(w, np.float32)
    cin, cout = w.shape[0], w.shape[1]
    taps = np.zeros((3, 3, cin_carry, 4, cp), np.float32)
    for p in (0, 1):
        for q in (0, 1):
            g = 2 * p + q
            for dy, ky in _KMAP[p].items():
                for dx, kx in _KMAP[q].items():
                    taps[dy, dx, :cin, g, :cout] = w[:, :, ky, kx]
    return jnp.asarray(taps.reshape(9, cin_carry, 4 * cp), jnp.bfloat16)


def init_params(key, in_dim, dim):
    F = dim * 8 * 4 * 4
    C0 = dim * 8
    ks = jax.random.split(key, 6)
    chans = [dim * 8, dim * 4, dim * 2, dim, 3]

    # Linear weight generated in the PyTorch feature order (c, h, w), then
    # permuted to (h, w, c) so the kernel output reshapes straight to NHWC.
    w1 = np.asarray(jax.random.normal(ks[0], (in_dim, F), jnp.float32)) * 0.05
    perm = np.arange(F).reshape(C0, 4, 4).transpose(1, 2, 0).reshape(F)
    w1 = w1[:, perm]
    g1 = np.ones((F,), np.float32)[perm]
    b1 = np.zeros((F,), np.float32)[perm]

    taps, gamma_t, beta_t = [], [], []
    cin_carry = C0
    for i in range(4):
        cin, cout = chans[i], chans[i + 1]
        cp = _round_up(cout, 32)                 # 4*cp is a multiple of 128
        w = jax.random.normal(ks[1 + i], (cin, cout, 5, 5), jnp.float32) * 0.05
        taps.append(_build_taps(w, cin_carry, cp))
        if i < 3:
            g = np.ones((cp,), np.float32)       # padded gamma (value irrelevant)
            b = np.zeros((cp,), np.float32)      # padded beta must stay exactly 0
            gamma_t.append(jnp.asarray(np.tile(g, 4)[None, :]))
            beta_t.append(jnp.asarray(np.tile(b, 4)[None, :]))
        cin_carry = cp

    cp4 = _round_up(3, 32)
    bias = np.asarray(jax.random.normal(ks[5], (3,), jnp.float32)) * 0.05
    bias_pad = np.zeros((cp4,), np.float32)
    bias_pad[:3] = bias
    bias_t = jnp.asarray(np.tile(bias_pad, 4)[None, :])

    return {
        "w1": jnp.asarray(w1, jnp.bfloat16),
        "g1": jnp.asarray(g1[None, :]),
        "b1": jnp.asarray(b1[None, :]),
        "taps": taps,
        "gamma_t": gamma_t,
        "beta_t": beta_t,
        "bias_t": bias_t,
    }


# ----------------------------------------------------------------------------
# Full forward pass (returns a tuple, like the PyTorch module).
# ----------------------------------------------------------------------------
def generator_forward(params, x):
    B = x.shape[0]
    F = params["w1"].shape[1]
    C0 = F // 16

    y = linear_bn_relu(x, params["w1"], params["g1"], params["b1"])   # (B, F) bf16
    y = y.reshape(B, 4, 4, C0)                                        # NHWC
    H = W = 4

    n_layers = len(params["taps"])
    for i in range(n_layers):
        taps = params["taps"][i]
        cp = taps.shape[2] // 4
        # 1-px spatial zero-pad; stays bf16 (fused by XLA with the previous
        # layer's parity interleave).
        xp = jnp.pad(y, ((0, 0), (1, 1), (1, 1), (0, 0)))
        if i < n_layers - 1:
            flat = deconv_bn_relu(xp, taps, params["gamma_t"][i],
                                  params["beta_t"][i], H, W)
        else:
            flat = deconv_bias_tanh(xp, taps, params["bias_t"], H, W)
        # parity interleave: (B*H*W, 4*cp) -> (B, 2H, 2W, cp), still bf16
        y = (flat.reshape(B, H, W, 2, 2, cp)
                 .transpose(0, 1, 3, 2, 4, 5)
                 .reshape(B, 2 * H, 2 * W, cp))
        H, W = 2 * H, 2 * W

    y = y[..., :3]                                      # drop padded channels
    return (jnp.transpose(y, (0, 3, 1, 2)).astype(jnp.float32),)   # NCHW f32


if __name__ == "__main__":
    B, in_dim, dim = 2, 32, 8
    key = jax.random.PRNGKey(0)
    pkey, xkey = jax.random.split(key)
    params = init_params(pkey, in_dim, dim)
    x = jax.random.normal(xkey, (B, in_dim), jnp.float32)

    fwd = jax.jit(generator_forward)
    out = fwd(params, x)
    y = jax.block_until_ready(out[0])

    assert y.shape == (B, 3, 64, 64), y.shape
    assert bool(jnp.all(jnp.isfinite(y)))
    assert bool(jnp.all(jnp.abs(y) <= 1.0 + 1e-5))      # tanh range
    print("KERNEL_OK")
</pallas_src>

<mosaic_0001>
module attributes {stable_mosaic.version = 11 : i64} {
  func.func @_linear_bn_relu_kernel(%arg0: memref<2x32xbf16, #tpu.memory_space<vmem>>, %arg1: memref<32x1024xbf16, #tpu.memory_space<vmem>>, %arg2: memref<1x1024xf32, #tpu.memory_space<vmem>>, %arg3: memref<1x1024xf32, #tpu.memory_space<vmem>>, %arg4: memref<2x1024xbf16, #tpu.memory_space<vmem>>) attributes {dimension_semantics = [], scalar_prefetch = 0 : i64, scratch_operands = 0 : i64, tpu.core_type = #tpu.core_type<tc>} {
    %c0 = arith.constant 0 : index
    %c0_0 = arith.constant 0 : index
    %0 = vector.load %arg0[%c0, %c0_0] : memref<2x32xbf16, #tpu.memory_space<vmem>>, vector<2x32xbf16>
    %c0_1 = arith.constant 0 : index
    %c0_2 = arith.constant 0 : index
    %1 = vector.load %arg1[%c0_1, %c0_2] : memref<32x1024xbf16, #tpu.memory_space<vmem>>, vector<32x1024xbf16>
    %cst = arith.constant dense<0.000000e+00> : vector<2x1024xf32>
    %2 = tpu.matmul %0, %1, %cst {dimension_numbers = #tpu.dot_dimension_numbers<[1], [0], [0], [1], [0, 0, 1, 1], [], []>} : vector<2x32xbf16>, vector<32x1024xbf16>, vector<2x1024xf32> -> vector<2x1024xf32>
    %cst_3 = arith.constant dense<0.000000e+00> : vector<1024xf32>
    %3 = vector.multi_reduction <add>, %2, %cst_3 [0] : vector<2x1024xf32> to vector<1024xf32>
    %4 = vector.shape_cast %3 : vector<1024xf32> to vector<1x1024xf32>
    %cst_4 = arith.constant 2.000000e+00 : f32
    %5 = vector.broadcast %cst_4 : f32 to vector<1x1024xf32>
    %6 = arith.divf %4, %5 : vector<1x1024xf32>
    %7 = vector.broadcast %6 : vector<1x1024xf32> to vector<2x1024xf32>
    %8 = arith.subf %2, %7 : vector<2x1024xf32>
    %9 = arith.mulf %8, %8 : vector<2x1024xf32>
    %cst_5 = arith.constant dense<0.000000e+00> : vector<1024xf32>
    %10 = vector.multi_reduction <add>, %9, %cst_5 [0] : vector<2x1024xf32> to vector<1024xf32>
    %11 = vector.shape_cast %10 : vector<1024xf32> to vector<1x1024xf32>
    %cst_6 = arith.constant 2.000000e+00 : f32
    %12 = vector.broadcast %cst_6 : f32 to vector<1x1024xf32>
    %13 = arith.divf %11, %12 : vector<1x1024xf32>
    %14 = vector.broadcast %6 : vector<1x1024xf32> to vector<2x1024xf32>
    %15 = arith.subf %2, %14 : vector<2x1024xf32>
    %cst_7 = arith.constant 9.99999974E-6 : f32
    %16 = vector.broadcast %cst_7 : f32 to vector<1x1024xf32>
    %17 = arith.addf %13, %16 : vector<1x1024xf32>
    %18 = math.rsqrt %17 : vector<1x1024xf32>
    %19 = vector.broadcast %18 : vector<1x1024xf32> to vector<2x1024xf32>
    %20 = arith.mulf %15, %19 : vector<2x1024xf32>
    %c0_8 = arith.constant 0 : index
    %c0_9 = arith.constant 0 : index
    %21 = vector.load %arg2[%c0_8, %c0_9] : memref<1x1024xf32, #tpu.memory_space<vmem>>, vector<1x1024xf32>
    %22 = vector.broadcast %21 : vector<1x1024xf32> to vector<2x1024xf32>
    %23 = arith.mulf %20, %22 : vector<2x1024xf32>
    %c0_10 = arith.constant 0 : index
    %c0_11 = arith.constant 0 : index
    %24 = vector.load %arg3[%c0_10, %c0_11] : memref<1x1024xf32, #tpu.memory_space<vmem>>, vector<1x1024xf32>
    %25 = vector.broadcast %24 : vector<1x1024xf32> to vector<2x1024xf32>
    %26 = arith.addf %23, %25 : vector<2x1024xf32>
    %cst_12 = arith.constant 0.000000e+00 : f32
    %27 = vector.broadcast %cst_12 : f32 to vector<2x1024xf32>
    %28 = arith.maximumf %26, %27 : vector<2x1024xf32>
    %29 = arith.truncf %28 : vector<2x1024xf32> to vector<2x1024xbf16>
    %c0_13 = arith.constant 0 : index
    %c0_14 = arith.constant 0 : index
    %30 = vector.load %arg4[%c0_13, %c0_14] : memref<2x1024xbf16, #tpu.memory_space<vmem>>, vector<2x1024xbf16>
    tpu.vector_store %arg4[%c0_13, %c0_14], %29 {strides = array<i32>} : memref<2x1024xbf16, #tpu.memory_space<vmem>>, vector<2x1024xbf16>,
    return
  }
}

module attributes {stable_mosaic.version = 11 : i64} {
  func.func @kernel(%arg0: i32, %arg1: i32, %arg2: i32, %arg3: memref<1x6x6x64xbf16, #tpu.memory_space<vmem>>, %arg4: memref<9x64x128xbf16, #tpu.memory_space<vmem>>, %arg5: memref<1x128xf32, #tpu.memory_space<vmem>>, %arg6: memref<1x128xf32, #tpu.memory_space<vmem>>, %arg7: memref<16x128xbf16, #tpu.memory_space<vmem>>, %arg8: memref<32x128xbf16, #tpu.memory_space<vmem>>, %arg9: memref<1x128xf32, #tpu.memory_space<vmem>>, %arg10: memref<1x128xf32, #tpu.memory_space<vmem>>, %arg11: memref<1x128xf32, #tpu.memory_space<vmem>>, %arg12: memref<1x128xf32, #tpu.memory_space<vmem>>) attributes {dimension_semantics = [#tpu.dimension_semantics<arbitrary>, #tpu.dimension_semantics<arbitrary>, #tpu.dimension_semantics<arbitrary>], iteration_bounds = array<i64: 2, 2, 1>, scalar_prefetch = 0 : i64, scratch_operands = 5 : i64, tpu.core_type = #tpu.core_type<tc>, window_params = [{transform_indices = @transform_0, window_bounds = array<i64: 1, 6, 6, 64>}, {pipeline_mode = #tpu.pipeline_mode<synchronous>, transform_indices = @transform_1, window_bounds = array<i64: 9, 64, 128>}, {pipeline_mode = #tpu.pipeline_mode<synchronous>, transform_indices = @transform_2, window_bounds = array<i64: 1, 128>}, {pipeline_mode = #tpu.pipeline_mode<synchronous>, transform_indices = @transform_3, window_bounds = array<i64: 1, 128>}, {transform_indices = @transform_4, window_bounds = array<i64: 16, 128>}]} {
    %c4_i32 = arith.constant 4 : i32
    %0 = arith.muli %arg2, %c4_i32 : i32
    %1 = tpu.assume_multiple %0, 4 : i32
    %c16_i32 = arith.constant 16 : i32
    %2 = arith.muli %arg1, %c16_i32 : i32
    %c4_i32_0 = arith.constant 4 : i32
    %3 = arith.muli %1, %c4_i32_0 : i32
    %4 = arith.addi %2, %3 : i32
    %5 = tpu.assume_multiple %4, 16 : i32
    %c0_i32 = arith.constant 0 : i32
    %6 = arith.cmpi eq, %arg0, %c0_i32 : i32
    %7 = arith.extui %6 : i1 to i32
    %c0_i32_1 = arith.constant 0 : i32
    %8 = arith.cmpi ne, %7, %c0_i32_1 : i32
    scf.if %8 {
      %c0_i32_3 = arith.constant 0 : i32
      %12 = arith.cmpi eq, %arg1, %c0_i32_3 : i32
      %c0_i32_4 = arith.constant 0 : i32
      %13 = arith.cmpi eq, %arg2, %c0_i32_4 : i32
      %14 = arith.andi %12, %13 : i1
      %15 = arith.extui %14 : i1 to i32
      %c0_i32_5 = arith.constant 0 : i32
      %16 = arith.cmpi ne, %15, %c0_i32_5 : i32
      scf.if %16 {
        %cst_78 = arith.constant 0.000000e+00 : f32
        %111 = vector.broadcast %cst_78 : f32 to vector<1x128xf32>
        %c0_79 = arith.constant 0 : index
        %c0_80 = arith.constant 0 : index
        %112 = vector.load %arg9[%c0_79, %c0_80] : memref<1x128xf32, #tpu.memory_space<vmem>>, vector<1x128xf32>
        tpu.vector_store %arg9[%c0_79, %c0_80], %111 {strides = array<i32>} : memref<1x128xf32, #tpu.memory_space<vmem>>, vector<1x128xf32>,
        %cst_81 = arith.constant 0.000000e+00 : f32
        %113 = vector.broadcast %cst_81 : f32 to vector<1x128xf32>
        %c0_82 = arith.constant 0 : index
        %c0_83 = arith.constant 0 : index
        %114 = vector.load %arg10[%c0_82, %c0_83] : memref<1x128xf32, #tpu.memory_space<vmem>>, vector<1x128xf32>
        tpu.vector_store %arg10[%c0_82, %c0_83], %113 {strides = array<i32>} : memref<1x128xf32, #tpu.memory_space<vmem>>, vector<1x128xf32>,
      } else {
      }
      %c0_i32_6 = arith.constant 0 : i32
      %17 = arith.addi %1, %c0_i32_6 : i32
      %c0 = arith.constant 0 : index
      %18 = arith.index_cast %17 : i32 to index
      %c0_7 = arith.constant 0 : index
      %c0_8 = arith.constant 0 : index
      %19 = vector.load %arg3[%c0, %18, %c0_7, %c0_8] : memref<1x6x6x64xbf16, #tpu.memory_space<vmem>>, vector<1x4x4x64xbf16>
      %20 = vector.shape_cast %19 : vector<1x4x4x64xbf16> to vector<4x4x64xbf16>
      %21 = vector.shape_cast %20 : vector<4x4x64xbf16> to vector<16x64xbf16>
      %c0_9 = arith.constant 0 : index
      %c0_10 = arith.constant 0 : index
      %c0_11 = arith.constant 0 : index
      %22 = vector.load %arg4[%c0_9, %c0_10, %c0_11] : memref<9x64x128xbf16, #tpu.memory_space<vmem>>, vector<1x64x128xbf16>
      %23 = vector.shape_cast %22 : vector<1x64x128xbf16> to vector<64x128xbf16>
      %cst = arith.constant dense<0.000000e+00> : vector<16x128xf32>
      %24 = tpu.matmul %21, %23, %cst {dimension_numbers = #tpu.dot_dimension_numbers<[1], [0], [0], [1], [0, 0, 1, 1], [], []>} : vector<16x64xbf16>, vector<64x128xbf16>, vector<16x128xf32> -> vector<16x128xf32>
      %c0_i32_12 = arith.constant 0 : i32
      %25 = arith.addi %1, %c0_i32_12 : i32
      %c0_13 = arith.constant 0 : index
      %26 = arith.index_cast %25 : i32 to index
      %c1 = arith.constant 1 : index
      %c0_14 = arith.constant 0 : index
      %27 = vector.load %arg3[%c0_13, %26, %c1, %c0_14] : memref<1x6x6x64xbf16, #tpu.memory_space<vmem>>, vector<1x4x4x64xbf16>
      %28 = vector.shape_cast %27 : vector<1x4x4x64xbf16> to vector<4x4x64xbf16>
      %29 = vector.shape_cast %28 : vector<4x4x64xbf16> to vector<16x64xbf16>
      %c1_15 = arith.constant 1 : index
      %c0_16 = arith.constant 0 : index
      %c0_17 = arith.constant 0 : index
      %30 = vector.load %arg4[%c1_15, %c0_16, %c0_17] : memref<9x64x128xbf16, #tpu.memory_space<vmem>>, vector<1x64x128xbf16>
      %31 = vector.shape_cast %30 : vector<1x64x128xbf16> to vector<64x128xbf16>
      %cst_18 = arith.constant dense<0.000000e+00> : vector<16x128xf32>
      %32 = tpu.matmul %29, %31, %cst_18 {dimension_numbers = #tpu.dot_dimension_numbers<[1], [0], [0], [1], [0, 0, 1, 1], [], []>} : vector<16x64xbf16>, vector<64x128xbf16>, vector<16x128xf32> -> vector<16x128xf32>
      %33 = arith.addf %24, %32 : vector<16x128xf32>
      %c0_i32_19 = arith.constant 0 : i32
      %34 = arith.addi %1, %c0_i32_19 : i32
      %c0_20 = arith.constant 0 : index
      %35 = arith.index_cast %34 : i32 to index
      %c2 = arith.constant 2 : index
      %c0_21 = arith.constant 0 : index
      %36 = vector.load %arg3[%c0_20, %35, %c2, %c0_21] : memref<1x6x6x64xbf16, #tpu.memory_space<vmem>>, vector<1x4x4x64xbf16>
      %37 = vector.shape_cast %36 : vector<1x4x4x64xbf16> to vector<4x4x64xbf16>
      %38 = vector.shape_cast %37 : vector<4x4x64xbf16> to vector<16x64xbf16>
      %c2_22 = arith.constant 2 : index
      %c0_23 = arith.constant 0 : index
      %c0_24 = arith.constant 0 : index
      %39 = vector.load %arg4[%c2_22, %c0_23, %c0_24] : memref<9x64x128xbf16, #tpu.memory_space<vmem>>, vector<1x64x128xbf16>
      %40 = vector.shape_cast %39 : vector<1x64x128xbf16> to vector<64x128xbf16>
      %cst_25 = arith.constant dense<0.000000e+00> : vector<16x128xf32>
      %41 = tpu.matmul %38, %40, %cst_25 {dimension_numbers = #tpu.dot_dimension_numbers<[1], [0], [0], [1], [0, 0, 1, 1], [], []>} : vector<16x64xbf16>, vector<64x128xbf16>, vector<16x128xf32> -> vector<16x128xf32>
      %42 = arith.addf %33, %41 : vector<16x128xf32>
      %c1_i32_26 = arith.constant 1 : i32
      %43 = arith.addi %1, %c1_i32_26 : i32
      %c0_27 = arith.constant 0 : index
      %44 = arith.index_cast %43 : i32 to index
      %c0_28 = arith.constant 0 : index
      %c0_29 = arith.constant 0 : index
      %45 = vector.load %arg3[%c0_27, %44, %c0_28, %c0_29] : memref<1x6x6x64xbf16, #tpu.memory_space<vmem>>, vector<1x4x4x64xbf16>
      %46 = vector.shape_cast %45 : vector<1x4x4x64xbf16> to vector<4x4x64xbf16>
      %47 = vector.shape_cast %46 : vector<4x4x64xbf16> to vector<16x64xbf16>
      %c3 = arith.constant 3 : index
      %c0_30 = arith.constant 0 : index
      %c0_31 = arith.constant 0 : index
      %48 = vector.load %arg4[%c3, %c0_30, %c0_31] : memref<9x64x128xbf16, #tpu.memory_space<vmem>>, vector<1x64x128xbf16>
      %49 = vector.shape_cast %48 : vector<1x64x128xbf16> to vector<64x128xbf16>
      %cst_32 = arith.constant dense<0.000000e+00> : vector<16x128xf32>
      %50 = tpu.matmul %47, %49, %cst_32 {dimension_numbers = #tpu.dot_dimension_numbers<[1], [0], [0], [1], [0, 0, 1, 1], [], []>} : vector<16x64xbf16>, vector<64x128xbf16>, vector<16x128xf32> -> vector<16x128xf32>
      %51 = arith.addf %42, %50 : vector<16x128xf32>
      %c1_i32_33 = arith.constant 1 : i32
      %52 = arith.addi %1, %c1_i32_33 : i32
      %c0_34 = arith.constant 0 : index
      %53 = arith.index_cast %52 : i32 to index
      %c1_35 = arith.constant 1 : index
      %c0_36 = arith.constant 0 : index
      %54 = vector.load %arg3[%c0_34, %53, %c1_35, %c0_36] : memref<1x6x6x64xbf16, #tpu.memory_space<vmem>>, vector<1x4x4x64xbf16>
      %55 = vector.shape_cast %54 : vector<1x4x4x64xbf16> to vector<4x4x64xbf16>
      %56 = vector.shape_cast %55 : vector<4x4x64xbf16> to vector<16x64xbf16>
      %c4 = arith.constant 4 : index
      %c0_37 = arith.constant 0 : index
      %c0_38 = arith.constant 0 : index
      %57 = vector.load %arg4[%c4, %c0_37, %c0_38] : memref<9x64x128xbf16, #tpu.memory_space<vmem>>, vector<1x64x128xbf16>
      %58 = vector.shape_cast %57 : vector<1x64x128xbf16> to vector<64x128xbf16>
      %cst_39 = arith.constant dense<0.000000e+00> : vector<16x128xf32>
      %59 = tpu.matmul %56, %58, %cst_39 {dimension_numbers = #tpu.dot_dimension_numbers<[1], [0], [0], [1], [0, 0, 1, 1], [], []>} : vector<16x64xbf16>, vector<64x128xbf16>, vector<16x128xf32> -> vector<16x128xf32>
      %60 = arith.addf %51, %59 : vector<16x128xf32>
      %c1_i32_40 = arith.constant 1 : i32
      %61 = arith.addi %1, %c1_i32_40 : i32
      %c0_41 = arith.constant 0 : index
      %62 = arith.index_cast %61 : i32 to index
      %c2_42 = arith.constant 2 : index
      %c0_43 = arith.constant 0 : index
      %63 = vector.load %arg3[%c0_41, %62, %c2_42, %c0_43] : memref<1x6x6x64xbf16, #tpu.memory_space<vmem>>, vector<1x4x4x64xbf16>
      %64 = vector.shape_cast %63 : vector<1x4x4x64xbf16> to vector<4x4x64xbf16>
      %65 = vector.shape_cast %64 : vector<4x4x64xbf16> to vector<16x64xbf16>
      %c5 = arith.constant 5 : index
      %c0_44 = arith.constant 0 : index
      %c0_45 = arith.constant 0 : index
      %66 = vector.load %arg4[%c5, %c0_44, %c0_45] : memref<9x64x128xbf16, #tpu.memory_space<vmem>>, vector<1x64x128xbf16>
      %67 = vector.shape_cast %66 : vector<1x64x128xbf16> to vector<64x128xbf16>
      %cst_46 = arith.constant dense<0.000000e+00> : vector<16x128xf32>
      %68 = tpu.matmul %65, %67, %cst_46 {dimension_numbers = #tpu.dot_dimension_numbers<[1], [0], [0], [1], [0, 0, 1, 1], [], []>} : vector<16x64xbf16>, vector<64x128xbf16>, vector<16x128xf32> -> vector<16x128xf32>
      %69 = arith.addf %60, %68 : vector<16x128xf32>
      %c2_i32 = arith.constant 2 : i32
      %70 = arith.addi %1, %c2_i32 : i32
      %c0_47 = arith.constant 0 : index
      %71 = arith.index_cast %70 : i32 to index
      %c0_48 = arith.constant 0 : index
      %c0_49 = arith.constant 0 : index
      %72 = vector.load %arg3[%c0_47, %71, %c0_48, %c0_49] : memref<1x6x6x64xbf16, #tpu.memory_space<vmem>>, vector<1x4x4x64xbf16>
      %73 = vector.shape_cast %72 : vector<1x4x4x64xbf16> to vector<4x4x64xbf16>
      %74 = vector.shape_cast %73 : vector<4x4x64xbf16> to vector<16x64xbf16>
      %c6 = arith.constant 6 : index
      %c0_50 = arith.constant 0 : index
      %c0_51 = arith.constant 0 : index
      %75 = vector.load %arg4[%c6, %c0_50, %c0_51] : memref<9x64x128xbf16, #tpu.memory_space<vmem>>, vector<1x64x128xbf16>
      %76 = vector.shape_cast %75 : vector<1x64x128xbf16> to vector<64x128xbf16>
      %cst_52 = arith.constant dense<0.000000e+00> : vector<16x128xf32>
      %77 = tpu.matmul %74, %76, %cst_52 {dimension_numbers = #tpu.dot_dimension_numbers<[1], [0], [0], [1], [0, 0, 1, 1], [], []>} : vector<16x64xbf16>, vector<64x128xbf16>, vector<16x128xf32> -> vector<16x128xf32>
      %78 = arith.addf %69, %77 : vector<16x128xf32>
      %c2_i32_53 = arith.constant 2 : i32
      %79 = arith.addi %1, %c2_i32_53 : i32
      %c0_54 = arith.constant 0 : index
      %80 = arith.index_cast %79 : i32 to index
      %c1_55 = arith.constant 1 : index
      %c0_56 = arith.constant 0 : index
      %81 = vector.load %arg3[%c0_54, %80, %c1_55, %c0_56] : memref<1x6x6x64xbf16, #tpu.memory_space<vmem>>, vector<1x4x4x64xbf16>
      %82 = vector.shape_cast %81 : vector<1x4x4x64xbf16> to vector<4x4x64xbf16>
      %83 = vector.shape_cast %82 : vector<4x4x64xbf16> to vector<16x64xbf16>
      %c7 = arith.constant 7 : index
      %c0_57 = arith.constant 0 : index
      %c0_58 = arith.constant 0 : index
      %84 = vector.load %arg4[%c7, %c0_57, %c0_58] : memref<9x64x128xbf16, #tpu.memory_space<vmem>>, vector<1x64x128xbf16>
      %85 = vector.shape_cast %84 : vector<1x64x128xbf16> to vector<64x128xbf16>
      %cst_59 = arith.constant dense<0.000000e+00> : vector<16x128xf32>
      %86 = tpu.matmul %83, %85, %cst_59 {dimension_numbers = #tpu.dot_dimension_numbers<[1], [0], [0], [1], [0, 0, 1, 1], [], []>} : vector<16x64xbf16>, vector<64x128xbf16>, vector<16x128xf32> -> vector<16x128xf32>
      %87 = arith.addf %78, %86 : vector<16x128xf32>
      %c2_i32_60 = arith.constant 2 : i32
      %88 = arith.addi %1, %c2_i32_60 : i32
      %c0_61 = arith.constant 0 : index
      %89 = arith.index_cast %88 : i32 to index
      %c2_62 = arith.constant 2 : index
      %c0_63 = arith.constant 0 : index
      %90 = vector.load %arg3[%c0_61, %89, %c2_62, %c0_63] : memref<1x6x6x64xbf16, #tpu.memory_space<vmem>>, vector<1x4x4x64xbf16>
      %91 = vector.shape_cast %90 : vector<1x4x4x64xbf16> to vector<4x4x64xbf16>
      %92 = vector.shape_cast %91 : vector<4x4x64xbf16> to vector<16x64xbf16>
      %c8 = arith.constant 8 : index
      %c0_64 = arith.constant 0 : index
      %c0_65 = arith.constant 0 : index
      %93 = vector.load %arg4[%c8, %c0_64, %c0_65] : memref<9x64x128xbf16, #tpu.memory_space<vmem>>, vector<1x64x128xbf16>
      %94 = vector.shape_cast %93 : vector<1x64x128xbf16> to vector<64x128xbf16>
      %cst_66 = arith.constant dense<0.000000e+00> : vector<16x128xf32>
      %95 = tpu.matmul %92, %94, %cst_66 {dimension_numbers = #tpu.dot_dimension_numbers<[1], [0], [0], [1], [0, 0, 1, 1], [], []>} : vector<16x64xbf16>, vector<64x128xbf16>, vector<16x128xf32> -> vector<16x128xf32>
      %96 = arith.addf %87, %95 : vector<16x128xf32>
      %97 = arith.truncf %96 : vector<16x128xf32> to vector<16x128xbf16>
      %98 = arith.index_cast %5 : i32 to index
      %c0_67 = arith.constant 0 : index
      %99 = vector.load %arg8[%98, %c0_67] : memref<32x128xbf16, #tpu.memory_space<vmem>>, vector<16x128xbf16>
      tpu.vector_store %arg8[%98, %c0_67], %97 {strides = array<i32>} : memref<32x128xbf16, #tpu.memory_space<vmem>>, vector<16x128xbf16>,
      %c0_68 = arith.constant 0 : index
      %c0_69 = arith.constant 0 : index
      %100 = vector.load %arg9[%c0_68, %c0_69] : memref<1x128xf32, #tpu.memory_space<vmem>>, vector<1x128xf32>
      %cst_70 = arith.constant dense<0.000000e+00> : vector<128xf32>
      %101 = vector.multi_reduction <add>, %96, %cst_70 [0] : vector<16x128xf32> to vector<128xf32>
      %102 = vector.shape_cast %101 : vector<128xf32> to vector<1x128xf32>
      %103 = arith.addf %100, %102 : vector<1x128xf32>
      %c0_71 = arith.constant 0 : index
      %c0_72 = arith.constant 0 : index
      %104 = vector.load %arg9[%c0_71, %c0_72] : memref<1x128xf32, #tpu.memory_space<vmem>>, vector<1x128xf32>
      tpu.vector_store %arg9[%c0_71, %c0_72], %103 {strides = array<i32>} : memref<1x128xf32, #tpu.memory_space<vmem>>, vector<1x128xf32>,
      %c0_73 = arith.constant 0 : index
      %c0_74 = arith.constant 0 : index
      %105 = vector.load %arg10[%c0_73, %c0_74] : memref<1x128xf32, #tpu.memory_space<vmem>>, vector<1x128xf32>
      %106 = arith.mulf %96, %96 : vector<16x128xf32>
      %cst_75 = arith.constant dense<0.000000e+00> : vector<128xf32>
      %107 = vector.multi_reduction <add>, %106, %cst_75 [0] : vector<16x128xf32> to vector<128xf32>
      %108 = vector.shape_cast %107 : vector<128xf32> to vector<1x128xf32>
      %109 = arith.addf %105, %108 : vector<1x128xf32>
      %c0_76 = arith.constant 0 : index
      %c0_77 = arith.constant 0 : index
      %110 = vector.load %arg10[%c0_76, %c0_77] : memref<1x128xf32, #tpu.memory_space<vmem>>, vector<1x128xf32>
      tpu.vector_store %arg10[%c0_76, %c0_77], %109 {strides = array<i32>} : memref<1x128xf32, #tpu.memory_space<vmem>>, vector<1x128xf32>,
    } else {
    }
    %c1_i32 = arith.constant 1 : i32
    %9 = arith.cmpi eq, %arg0, %c1_i32 : i32
    %10 = arith.extui %9 : i1 to i32
    %c0_i32_2 = arith.constant 0 : i32
    %11 = arith.cmpi ne, %10, %c0_i32_2 : i32
    scf.if %11 {
      %c0_i32_3 = arith.constant 0 : i32
      %12 = arith.cmpi eq, %arg1, %c0_i32_3 : i32
      %c0_i32_4 = arith.constant 0 : i32
      %13 = arith.cmpi eq, %arg2, %c0_i32_4 : i32
      %14 = arith.andi %12, %13 : i1
      %15 = arith.extui %14 : i1 to i32
      %c0_i32_5 = arith.constant 0 : i32
      %16 = arith.cmpi ne, %15, %c0_i32_5 : i32
      scf.if %16 {
        %c0_12 = arith.constant 0 : index
        %c0_13 = arith.constant 0 : index
        %30 = vector.load %arg9[%c0_12, %c0_13] : memref<1x128xf32, #tpu.memory_space<vmem>>, vector<1x128xf32>
        %c32_i32 = arith.constant 32 : i32
        %31 = tpu.dynamic_rotate %30 by %c32_i32 dim 1 : vector<1x128xf32>, i32 -> vector<1x128xf32>
        %32 = arith.addf %30, %31 : vector<1x128xf32>
        %c64_i32 = arith.constant 64 : i32
        %33 = tpu.dynamic_rotate %30 by %c64_i32 dim 1 : vector<1x128xf32>, i32 -> vector<1x128xf32>
        %34 = arith.addf %32, %33 : vector<1x128xf32>
        %c96_i32 = arith.constant 96 : i32
        %35 = tpu.dynamic_rotate %30 by %c96_i32 dim 1 : vector<1x128xf32>, i32 -> vector<1x128xf32>
        %36 = arith.addf %34, %35 : vector<1x128xf32>
        %cst_14 = arith.constant 7.812500e-03 : f32
        %37 = vector.broadcast %cst_14 : f32 to vector<1x128xf32>
        %38 = arith.mulf %36, %37 : vector<1x128xf32>
        %c0_15 = arith.constant 0 : index
        %c0_16 = arith.constant 0 : index
        %39 = vector.load %arg10[%c0_15, %c0_16] : memref<1x128xf32, #tpu.memory_space<vmem>>, vector<1x128xf32>
        %c32_i32_17 = arith.constant 32 : i32
        %40 = tpu.dynamic_rotate %39 by %c32_i32_17 dim 1 : vector<1x128xf32>, i32 -> vector<1x128xf32>
        %41 = arith.addf %39, %40 : vector<1x128xf32>
        %c64_i32_18 = arith.constant 64 : i32
        %42 = tpu.dynamic_rotate %39 by %c64_i32_18 dim 1 : vector<1x128xf32>, i32 -> vector<1x128xf32>
        %43 = arith.addf %41, %42 : vector<1x128xf32>
        %c96_i32_19 = arith.constant 96 : i32
        %44 = tpu.dynamic_rotate %39 by %c96_i32_19 dim 1 : vector<1x128xf32>, i32 -> vector<1x128xf32>
        %45 = arith.addf %43, %44 : vector<1x128xf32>
        %cst_20 = arith.constant 7.812500e-03 : f32
        %46 = vector.broadcast %cst_20 : f32 to vector<1x128xf32>
        %47 = arith.mulf %45, %46 : vector<1x128xf32>
        %48 = arith.mulf %38, %38 : vector<1x128xf32>
        %49 = arith.subf %47, %48 : vector<1x128xf32>
        %cst_21 = arith.constant 0.000000e+00 : f32
        %50 = vector.broadcast %cst_21 : f32 to vector<1x128xf32>
        %51 = arith.maximumf %49, %50 : vector<1x128xf32>
        %c0_22 = arith.constant 0 : index
        %c0_23 = arith.constant 0 : index
        %52 = vector.load %arg5[%c0_22, %c0_23] : memref<1x128xf32, #tpu.memory_space<vmem>>, vector<1x128xf32>
        %cst_24 = arith.constant 9.99999974E-6 : f32
        %53 = vector.broadcast %cst_24 : f32 to vector<1x128xf32>
        %54 = arith.addf %51, %53 : vector<1x128xf32>
        %55 = math.rsqrt %54 : vector<1x128xf32>
        %56 = arith.mulf %52, %55 : vector<1x128xf32>
        %c0_25 = arith.constant 0 : index
        %c0_26 = arith.constant 0 : index
        %57 = vector.load %arg11[%c0_25, %c0_26] : memref<1x128xf32, #tpu.memory_space<vmem>>, vector<1x128xf32>
        tpu.vector_store %arg11[%c0_25, %c0_26], %56 {strides = array<i32>} : memref<1x128xf32, #tpu.memory_space<vmem>>, vector<1x128xf32>,
        %c0_27 = arith.constant 0 : index
        %c0_28 = arith.constant 0 : index
        %58 = vector.load %arg6[%c0_27, %c0_28] : memref<1x128xf32, #tpu.memory_space<vmem>>, vector<1x128xf32>
        %59 = arith.mulf %38, %56 : vector<1x128xf32>
        %60 = arith.subf %58, %59 : vector<1x128xf32>
        %c0_29 = arith.constant 0 : index
        %c0_30 = arith.constant 0 : index
        %61 = vector.load %arg12[%c0_29, %c0_30] : memref<1x128xf32, #tpu.memory_space<vmem>>, vector<1x128xf32>
        tpu.vector_store %arg12[%c0_29, %c0_30], %60 {strides = array<i32>} : memref<1x128xf32, #tpu.memory_space<vmem>>, vector<1x128xf32>,
      } else {
      }
      %17 = arith.index_cast %5 : i32 to index
      %c0 = arith.constant 0 : index
      %18 = vector.load %arg8[%17, %c0] : memref<32x128xbf16, #tpu.memory_space<vmem>>, vector<16x128xbf16>
      %19 = arith.extf %18 : vector<16x128xbf16> to vector<16x128xf32>
      %c0_6 = arith.constant 0 : index
      %c0_7 = arith.constant 0 : index
      %20 = vector.load %arg11[%c0_6, %c0_7] : memref<1x128xf32, #tpu.memory_space<vmem>>, vector<1x128xf32>
      %21 = vector.broadcast %20 : vector<1x128xf32> to vector<16x128xf32>
      %22 = arith.mulf %19, %21 : vector<16x128xf32>
      %c0_8 = arith.constant 0 : index
      %c0_9 = arith.constant 0 : index
      %23 = vector.load %arg12[%c0_8, %c0_9] : memref<1x128xf32, #tpu.memory_space<vmem>>, vector<1x128xf32>
      %24 = vector.broadcast %23 : vector<1x128xf32> to vector<16x128xf32>
      %25 = arith.addf %22, %24 : vector<16x128xf32>
      %cst = arith.constant 0.000000e+00 : f32
      %26 = vector.broadcast %cst : f32 to vector<16x128xf32>
      %27 = arith.maximumf %25, %26 : vector<16x128xf32>
      %28 = arith.truncf %27 : vector<16x128xf32> to vector<16x128xbf16>
      %c0_10 = arith.constant 0 : index
      %c0_11 = arith.constant 0 : index
      %29 = vector.load %arg7[%c0_10, %c0_11] : memref<16x128xbf16, #tpu.memory_space<vmem>>, vector<16x128xbf16>
      tpu.vector_store %arg7[%c0_10, %c0_11], %28 {strides = array<i32>} : memref<16x128xbf16, #tpu.memory_space<vmem>>, vector<16x128xbf16>,
    } else {
    }
    return
  }
  func.func @transform_0(%arg0: i32, %arg1: i32, %arg2: i32) -> (i32, i32, i32, i32) {
    %c1_i32 = arith.constant 1 : i32
    %0 = arith.subi %c1_i32, %arg0 : i32
    %1 = arith.muli %arg1, %0 : i32
    %c1_i32_0 = arith.constant 1 : i32
    %2 = arith.muli %c1_i32_0, %arg0 : i32
    %3 = arith.addi %1, %2 : i32
    %c0_i32 = arith.constant 0 : i32
    %c0_i32_1 = arith.constant 0 : i32
    %c0_i32_2 = arith.constant 0 : i32
    %c0_i32_3 = arith.constant 0 : i32
    return %3, %c0_i32, %c0_i32_1, %c0_i32_2 : i32, i32, i32, i32
  }
  func.func @transform_1(%arg0: i32, %arg1: i32, %arg2: i32) -> (i32, i32, i32) {
    %c0_i32 = arith.constant 0 : i32
    %c0_i32_0 = arith.constant 0 : i32
    %c0_i32_1 = arith.constant 0 : i32
    %c0_i32_2 = arith.constant 0 : i32
    return %c0_i32, %c0_i32_0, %c0_i32_1 : i32, i32, i32
  }
  func.func @transform_2(%arg0: i32, %arg1: i32, %arg2: i32) -> (i32, i32) {
    %c0_i32 = arith.constant 0 : i32
    %c0_i32_0 = arith.constant 0 : i32
    %c0_i32_1 = arith.constant 0 : i32
    return %c0_i32, %c0_i32_0 : i32, i32
  }
  func.func @transform_3(%arg0: i32, %arg1: i32, %arg2: i32) -> (i32, i32) {
    %c0_i32 = arith.constant 0 : i32
    %c0_i32_0 = arith.constant 0 : i32
    %c0_i32_1 = arith.constant 0 : i32
    return %c0_i32, %c0_i32_0 : i32, i32
  }
  func.func @transform_4(%arg0: i32, %arg1: i32, %arg2: i32) -> (i32, i32) {
    %c1_i32 = arith.constant 1 : i32
    %0 = arith.muli %arg1, %c1_i32 : i32
    %1 = arith.addi %0, %arg2 : i32
    %2 = arith.muli %arg0, %1 : i32
    %c0_i32 = arith.constant 0 : i32
    %c0_i32_0 = arith.constant 0 : i32
    return %2, %c0_i32 : i32, i32
  }
}

module attributes {stable_mosaic.version = 11 : i64} {
  func.func @kernel(%arg0: i32, %arg1: i32, %arg2: i32, %arg3: memref<1x10x10x32xbf16, #tpu.memory_space<vmem>>, %arg4: memref<9x32x128xbf16, #tpu.memory_space<vmem>>, %arg5: memref<1x128xf32, #tpu.memory_space<vmem>>, %arg6: memref<1x128xf32, #tpu.memory_space<vmem>>, %arg7: memref<64x128xbf16, #tpu.memory_space<vmem>>, %arg8: memref<128x128xbf16, #tpu.memory_space<vmem>>, %arg9: memref<1x128xf32, #tpu.memory_space<vmem>>, %arg10: memref<1x128xf32, #tpu.memory_space<vmem>>, %arg11: memref<1x128xf32, #tpu.memory_space<vmem>>, %arg12: memref<1x128xf32, #tpu.memory_space<vmem>>) attributes {dimension_semantics = [#tpu.dimension_semantics<arbitrary>, #tpu.dimension_semantics<arbitrary>, #tpu.dimension_semantics<arbitrary>], iteration_bounds = array<i64: 2, 2, 1>, scalar_prefetch = 0 : i64, scratch_operands = 5 : i64, tpu.core_type = #tpu.core_type<tc>, window_params = [{transform_indices = @transform_0, window_bounds = array<i64: 1, 10, 10, 32>}, {pipeline_mode = #tpu.pipeline_mode<synchronous>, transform_indices = @transform_1, window_bounds = array<i64: 9, 32, 128>}, {pipeline_mode = #tpu.pipeline_mode<synchronous>, transform_indices = @transform_2, window_bounds = array<i64: 1, 128>}, {pipeline_mode = #tpu.pipeline_mode<synchronous>, transform_indices = @transform_3, window_bounds = array<i64: 1, 128>}, {transform_indices = @transform_4, window_bounds = array<i64: 64, 128>}]} {
    %c8_i32 = arith.constant 8 : i32
    %0 = arith.muli %arg2, %c8_i32 : i32
    %1 = tpu.assume_multiple %0, 8 : i32
    %c64_i32 = arith.constant 64 : i32
    %2 = arith.muli %arg1, %c64_i32 : i32
    %c8_i32_0 = arith.constant 8 : i32
    %3 = arith.muli %1, %c8_i32_0 : i32
    %4 = arith.addi %2, %3 : i32
    %5 = tpu.assume_multiple %4, 64 : i32
    %c0_i32 = arith.constant 0 : i32
    %6 = arith.cmpi eq, %arg0, %c0_i32 : i32
    %7 = arith.extui %6 : i1 to i32
    %c0_i32_1 = arith.constant 0 : i32
    %8 = arith.cmpi ne, %7, %c0_i32_1 : i32
    scf.if %8 {
      %c0_i32_3 = arith.constant 0 : i32
      %12 = arith.cmpi eq, %arg1, %c0_i32_3 : i32
      %c0_i32_4 = arith.constant 0 : i32
      %13 = arith.cmpi eq, %arg2, %c0_i32_4 : i32
      %14 = arith.andi %12, %13 : i1
      %15 = arith.extui %14 : i1 to i32
      %c0_i32_5 = arith.constant 0 : i32
      %16 = arith.cmpi ne, %15, %c0_i32_5 : i32
      scf.if %16 {
        %cst_78 = arith.constant 0.000000e+00 : f32
        %111 = vector.broadcast %cst_78 : f32 to vector<1x128xf32>
        %c0_79 = arith.constant 0 : index
        %c0_80 = arith.constant 0 : index
        %112 = vector.load %arg9[%c0_79, %c0_80] : memref<1x128xf32, #tpu.memory_space<vmem>>, vector<1x128xf32>
        tpu.vector_store %arg9[%c0_79, %c0_80], %111 {strides = array<i32>} : memref<1x128xf32, #tpu.memory_space<vmem>>, vector<1x128xf32>,
        %cst_81 = arith.constant 0.000000e+00 : f32
        %113 = vector.broadcast %cst_81 : f32 to vector<1x128xf32>
        %c0_82 = arith.constant 0 : index
        %c0_83 = arith.constant 0 : index
        %114 = vector.load %arg10[%c0_82, %c0_83] : memref<1x128xf32, #tpu.memory_space<vmem>>, vector<1x128xf32>
        tpu.vector_store %arg10[%c0_82, %c0_83], %113 {strides = array<i32>} : memref<1x128xf32, #tpu.memory_space<vmem>>, vector<1x128xf32>,
      } else {
      }
      %c0_i32_6 = arith.constant 0 : i32
      %17 = arith.addi %1, %c0_i32_6 : i32
      %c0 = arith.constant 0 : index
      %18 = arith.index_cast %17 : i32 to index
      %c0_7 = arith.constant 0 : index
      %c0_8 = arith.constant 0 : index
      %19 = vector.load %arg3[%c0, %18, %c0_7, %c0_8] : memref<1x10x10x32xbf16, #tpu.memory_space<vmem>>, vector<1x8x8x32xbf16>
      %20 = vector.shape_cast %19 : vector<1x8x8x32xbf16> to vector<8x8x32xbf16>
      %21 = vector.shape_cast %20 : vector<8x8x32xbf16> to vector<64x32xbf16>
      %c0_9 = arith.constant 0 : index
      %c0_10 = arith.constant 0 : index
      %c0_11 = arith.constant 0 : index
      %22 = vector.load %arg4[%c0_9, %c0_10, %c0_11] : memref<9x32x128xbf16, #tpu.memory_space<vmem>>, vector<1x32x128xbf16>
      %23 = vector.shape_cast %22 : vector<1x32x128xbf16> to vector<32x128xbf16>
      %cst = arith.constant dense<0.000000e+00> : vector<64x128xf32>
      %24 = tpu.matmul %21, %23, %cst {dimension_numbers = #tpu.dot_dimension_numbers<[1], [0], [0], [1], [0, 0, 1, 1], [], []>} : vector<64x32xbf16>, vector<32x128xbf16>, vector<64x128xf32> -> vector<64x128xf32>
      %c0_i32_12 = arith.constant 0 : i32
      %25 = arith.addi %1, %c0_i32_12 : i32
      %c0_13 = arith.constant 0 : index
      %26 = arith.index_cast %25 : i32 to index
      %c1 = arith.constant 1 : index
      %c0_14 = arith.constant 0 : index
      %27 = vector.load %arg3[%c0_13, %26, %c1, %c0_14] : memref<1x10x10x32xbf16, #tpu.memory_space<vmem>>, vector<1x8x8x32xbf16>
      %28 = vector.shape_cast %27 : vector<1x8x8x32xbf16> to vector<8x8x32xbf16>
      %29 = vector.shape_cast %28 : vector<8x8x32xbf16> to vector<64x32xbf16>
      %c1_15 = arith.constant 1 : index
      %c0_16 = arith.constant 0 : index
      %c0_17 = arith.constant 0 : index
      %30 = vector.load %arg4[%c1_15, %c0_16, %c0_17] : memref<9x32x128xbf16, #tpu.memory_space<vmem>>, vector<1x32x128xbf16>
      %31 = vector.shape_cast %30 : vector<1x32x128xbf16> to vector<32x128xbf16>
      %cst_18 = arith.constant dense<0.000000e+00> : vector<64x128xf32>
      %32 = tpu.matmul %29, %31, %cst_18 {dimension_numbers = #tpu.dot_dimension_numbers<[1], [0], [0], [1], [0, 0, 1, 1], [], []>} : vector<64x32xbf16>, vector<32x128xbf16>, vector<64x128xf32> -> vector<64x128xf32>
      %33 = arith.addf %24, %32 : vector<64x128xf32>
      %c0_i32_19 = arith.constant 0 : i32
      %34 = arith.addi %1, %c0_i32_19 : i32
      %c0_20 = arith.constant 0 : index
      %35 = arith.index_cast %34 : i32 to index
      %c2 = arith.constant 2 : index
      %c0_21 = arith.constant 0 : index
      %36 = vector.load %arg3[%c0_20, %35, %c2, %c0_21] : memref<1x10x10x32xbf16, #tpu.memory_space<vmem>>, vector<1x8x8x32xbf16>
      %37 = vector.shape_cast %36 : vector<1x8x8x32xbf16> to vector<8x8x32xbf16>
      %38 = vector.shape_cast %37 : vector<8x8x32xbf16> to vector<64x32xbf16>
      %c2_22 = arith.constant 2 : index
      %c0_23 = arith.constant 0 : index
      %c0_24 = arith.constant 0 : index
      %39 = vector.load %arg4[%c2_22, %c0_23, %c0_24] : memref<9x32x128xbf16, #tpu.memory_space<vmem>>, vector<1x32x128xbf16>
      %40 = vector.shape_cast %39 : vector<1x32x128xbf16> to vector<32x128xbf16>
      %cst_25 = arith.constant dense<0.000000e+00> : vector<64x128xf32>
      %41 = tpu.matmul %38, %40, %cst_25 {dimension_numbers = #tpu.dot_dimension_numbers<[1], [0], [0], [1], [0, 0, 1, 1], [], []>} : vector<64x32xbf16>, vector<32x128xbf16>, vector<64x128xf32> -> vector<64x128xf32>
      %42 = arith.addf %33, %41 : vector<64x128xf32>
      %c1_i32_26 = arith.constant 1 : i32
      %43 = arith.addi %1, %c1_i32_26 : i32
      %c0_27 = arith.constant 0 : index
      %44 = arith.index_cast %43 : i32 to index
      %c0_28 = arith.constant 0 : index
      %c0_29 = arith.constant 0 : index
      %45 = vector.load %arg3[%c0_27, %44, %c0_28, %c0_29] : memref<1x10x10x32xbf16, #tpu.memory_space<vmem>>, vector<1x8x8x32xbf16>
      %46 = vector.shape_cast %45 : vector<1x8x8x32xbf16> to vector<8x8x32xbf16>
      %47 = vector.shape_cast %46 : vector<8x8x32xbf16> to vector<64x32xbf16>
      %c3 = arith.constant 3 : index
      %c0_30 = arith.constant 0 : index
      %c0_31 = arith.constant 0 : index
      %48 = vector.load %arg4[%c3, %c0_30, %c0_31] : memref<9x32x128xbf16, #tpu.memory_space<vmem>>, vector<1x32x128xbf16>
      %49 = vector.shape_cast %48 : vector<1x32x128xbf16> to vector<32x128xbf16>
      %cst_32 = arith.constant dense<0.000000e+00> : vector<64x128xf32>
      %50 = tpu.matmul %47, %49, %cst_32 {dimension_numbers = #tpu.dot_dimension_numbers<[1], [0], [0], [1], [0, 0, 1, 1], [], []>} : vector<64x32xbf16>, vector<32x128xbf16>, vector<64x128xf32> -> vector<64x128xf32>
      %51 = arith.addf %42, %50 : vector<64x128xf32>
      %c1_i32_33 = arith.constant 1 : i32
      %52 = arith.addi %1, %c1_i32_33 : i32
      %c0_34 = arith.constant 0 : index
      %53 = arith.index_cast %52 : i32 to index
      %c1_35 = arith.constant 1 : index
      %c0_36 = arith.constant 0 : index
      %54 = vector.load %arg3[%c0_34, %53, %c1_35, %c0_36] : memref<1x10x10x32xbf16, #tpu.memory_space<vmem>>, vector<1x8x8x32xbf16>
      %55 = vector.shape_cast %54 : vector<1x8x8x32xbf16> to vector<8x8x32xbf16>
      %56 = vector.shape_cast %55 : vector<8x8x32xbf16> to vector<64x32xbf16>
      %c4 = arith.constant 4 : index
      %c0_37 = arith.constant 0 : index
      %c0_38 = arith.constant 0 : index
      %57 = vector.load %arg4[%c4, %c0_37, %c0_38] : memref<9x32x128xbf16, #tpu.memory_space<vmem>>, vector<1x32x128xbf16>
      %58 = vector.shape_cast %57 : vector<1x32x128xbf16> to vector<32x128xbf16>
      %cst_39 = arith.constant dense<0.000000e+00> : vector<64x128xf32>
      %59 = tpu.matmul %56, %58, %cst_39 {dimension_numbers = #tpu.dot_dimension_numbers<[1], [0], [0], [1], [0, 0, 1, 1], [], []>} : vector<64x32xbf16>, vector<32x128xbf16>, vector<64x128xf32> -> vector<64x128xf32>
      %60 = arith.addf %51, %59 : vector<64x128xf32>
      %c1_i32_40 = arith.constant 1 : i32
      %61 = arith.addi %1, %c1_i32_40 : i32
      %c0_41 = arith.constant 0 : index
      %62 = arith.index_cast %61 : i32 to index
      %c2_42 = arith.constant 2 : index
      %c0_43 = arith.constant 0 : index
      %63 = vector.load %arg3[%c0_41, %62, %c2_42, %c0_43] : memref<1x10x10x32xbf16, #tpu.memory_space<vmem>>, vector<1x8x8x32xbf16>
      %64 = vector.shape_cast %63 : vector<1x8x8x32xbf16> to vector<8x8x32xbf16>
      %65 = vector.shape_cast %64 : vector<8x8x32xbf16> to vector<64x32xbf16>
      %c5 = arith.constant 5 : index
      %c0_44 = arith.constant 0 : index
      %c0_45 = arith.constant 0 : index
      %66 = vector.load %arg4[%c5, %c0_44, %c0_45] : memref<9x32x128xbf16, #tpu.memory_space<vmem>>, vector<1x32x128xbf16>
      %67 = vector.shape_cast %66 : vector<1x32x128xbf16> to vector<32x128xbf16>
      %cst_46 = arith.constant dense<0.000000e+00> : vector<64x128xf32>
      %68 = tpu.matmul %65, %67, %cst_46 {dimension_numbers = #tpu.dot_dimension_numbers<[1], [0], [0], [1], [0, 0, 1, 1], [], []>} : vector<64x32xbf16>, vector<32x128xbf16>, vector<64x128xf32> -> vector<64x128xf32>
      %69 = arith.addf %60, %68 : vector<64x128xf32>
      %c2_i32 = arith.constant 2 : i32
      %70 = arith.addi %1, %c2_i32 : i32
      %c0_47 = arith.constant 0 : index
      %71 = arith.index_cast %70 : i32 to index
      %c0_48 = arith.constant 0 : index
      %c0_49 = arith.constant 0 : index
      %72 = vector.load %arg3[%c0_47, %71, %c0_48, %c0_49] : memref<1x10x10x32xbf16, #tpu.memory_space<vmem>>, vector<1x8x8x32xbf16>
      %73 = vector.shape_cast %72 : vector<1x8x8x32xbf16> to vector<8x8x32xbf16>
      %74 = vector.shape_cast %73 : vector<8x8x32xbf16> to vector<64x32xbf16>
      %c6 = arith.constant 6 : index
      %c0_50 = arith.constant 0 : index
      %c0_51 = arith.constant 0 : index
      %75 = vector.load %arg4[%c6, %c0_50, %c0_51] : memref<9x32x128xbf16, #tpu.memory_space<vmem>>, vector<1x32x128xbf16>
      %76 = vector.shape_cast %75 : vector<1x32x128xbf16> to vector<32x128xbf16>
      %cst_52 = arith.constant dense<0.000000e+00> : vector<64x128xf32>
      %77 = tpu.matmul %74, %76, %cst_52 {dimension_numbers = #tpu.dot_dimension_numbers<[1], [0], [0], [1], [0, 0, 1, 1], [], []>} : vector<64x32xbf16>, vector<32x128xbf16>, vector<64x128xf32> -> vector<64x128xf32>
      %78 = arith.addf %69, %77 : vector<64x128xf32>
      %c2_i32_53 = arith.constant 2 : i32
      %79 = arith.addi %1, %c2_i32_53 : i32
      %c0_54 = arith.constant 0 : index
      %80 = arith.index_cast %79 : i32 to index
      %c1_55 = arith.constant 1 : index
      %c0_56 = arith.constant 0 : index
      %81 = vector.load %arg3[%c0_54, %80, %c1_55, %c0_56] : memref<1x10x10x32xbf16, #tpu.memory_space<vmem>>, vector<1x8x8x32xbf16>
      %82 = vector.shape_cast %81 : vector<1x8x8x32xbf16> to vector<8x8x32xbf16>
      %83 = vector.shape_cast %82 : vector<8x8x32xbf16> to vector<64x32xbf16>
      %c7 = arith.constant 7 : index
      %c0_57 = arith.constant 0 : index
      %c0_58 = arith.constant 0 : index
      %84 = vector.load %arg4[%c7, %c0_57, %c0_58] : memref<9x32x128xbf16, #tpu.memory_space<vmem>>, vector<1x32x128xbf16>
      %85 = vector.shape_cast %84 : vector<1x32x128xbf16> to vector<32x128xbf16>
      %cst_59 = arith.constant dense<0.000000e+00> : vector<64x128xf32>
      %86 = tpu.matmul %83, %85, %cst_59 {dimension_numbers = #tpu.dot_dimension_numbers<[1], [0], [0], [1], [0, 0, 1, 1], [], []>} : vector<64x32xbf16>, vector<32x128xbf16>, vector<64x128xf32> -> vector<64x128xf32>
      %87 = arith.addf %78, %86 : vector<64x128xf32>
      %c2_i32_60 = arith.constant 2 : i32
      %88 = arith.addi %1, %c2_i32_60 : i32
      %c0_61 = arith.constant 0 : index
      %89 = arith.index_cast %88 : i32 to index
      %c2_62 = arith.constant 2 : index
      %c0_63 = arith.constant 0 : index
      %90 = vector.load %arg3[%c0_61, %89, %c2_62, %c0_63] : memref<1x10x10x32xbf16, #tpu.memory_space<vmem>>, vector<1x8x8x32xbf16>
      %91 = vector.shape_cast %90 : vector<1x8x8x32xbf16> to vector<8x8x32xbf16>
      %92 = vector.shape_cast %91 : vector<8x8x32xbf16> to vector<64x32xbf16>
      %c8 = arith.constant 8 : index
      %c0_64 = arith.constant 0 : index
      %c0_65 = arith.constant 0 : index
      %93 = vector.load %arg4[%c8, %c0_64, %c0_65] : memref<9x32x128xbf16, #tpu.memory_space<vmem>>, vector<1x32x128xbf16>
      %94 = vector.shape_cast %93 : vector<1x32x128xbf16> to vector<32x128xbf16>
      %cst_66 = arith.constant dense<0.000000e+00> : vector<64x128xf32>
      %95 = tpu.matmul %92, %94, %cst_66 {dimension_numbers = #tpu.dot_dimension_numbers<[1], [0], [0], [1], [0, 0, 1, 1], [], []>} : vector<64x32xbf16>, vector<32x128xbf16>, vector<64x128xf32> -> vector<64x128xf32>
      %96 = arith.addf %87, %95 : vector<64x128xf32>
      %97 = arith.truncf %96 : vector<64x128xf32> to vector<64x128xbf16>
      %98 = arith.index_cast %5 : i32 to index
      %c0_67 = arith.constant 0 : index
      %99 = vector.load %arg8[%98, %c0_67] : memref<128x128xbf16, #tpu.memory_space<vmem>>, vector<64x128xbf16>
      tpu.vector_store %arg8[%98, %c0_67], %97 {strides = array<i32>} : memref<128x128xbf16, #tpu.memory_space<vmem>>, vector<64x128xbf16>,
      %c0_68 = arith.constant 0 : index
      %c0_69 = arith.constant 0 : index
      %100 = vector.load %arg9[%c0_68, %c0_69] : memref<1x128xf32, #tpu.memory_space<vmem>>, vector<1x128xf32>
      %cst_70 = arith.constant dense<0.000000e+00> : vector<128xf32>
      %101 = vector.multi_reduction <add>, %96, %cst_70 [0] : vector<64x128xf32> to vector<128xf32>
      %102 = vector.shape_cast %101 : vector<128xf32> to vector<1x128xf32>
      %103 = arith.addf %100, %102 : vector<1x128xf32>
      %c0_71 = arith.constant 0 : index
      %c0_72 = arith.constant 0 : index
      %104 = vector.load %arg9[%c0_71, %c0_72] : memref<1x128xf32, #tpu.memory_space<vmem>>, vector<1x128xf32>
      tpu.vector_store %arg9[%c0_71, %c0_72], %103 {strides = array<i32>} : memref<1x128xf32, #tpu.memory_space<vmem>>, vector<1x128xf32>,
      %c0_73 = arith.constant 0 : index
      %c0_74 = arith.constant 0 : index
      %105 = vector.load %arg10[%c0_73, %c0_74] : memref<1x128xf32, #tpu.memory_space<vmem>>, vector<1x128xf32>
      %106 = arith.mulf %96, %96 : vector<64x128xf32>
      %cst_75 = arith.constant dense<0.000000e+00> : vector<128xf32>
      %107 = vector.multi_reduction <add>, %106, %cst_75 [0] : vector<64x128xf32> to vector<128xf32>
      %108 = vector.shape_cast %107 : vector<128xf32> to vector<1x128xf32>
      %109 = arith.addf %105, %108 : vector<1x128xf32>
      %c0_76 = arith.constant 0 : index
      %c0_77 = arith.constant 0 : index
      %110 = vector.load %arg10[%c0_76, %c0_77] : memref<1x128xf32, #tpu.memory_space<vmem>>, vector<1x128xf32>
      tpu.vector_store %arg10[%c0_76, %c0_77], %109 {strides = array<i32>} : memref<1x128xf32, #tpu.memory_space<vmem>>, vector<1x128xf32>,
    } else {
    }
    %c1_i32 = arith.constant 1 : i32
    %9 = arith.cmpi eq, %arg0, %c1_i32 : i32
    %10 = arith.extui %9 : i1 to i32
    %c0_i32_2 = arith.constant 0 : i32
    %11 = arith.cmpi ne, %10, %c0_i32_2 : i32
    scf.if %11 {
      %c0_i32_3 = arith.constant 0 : i32
      %12 = arith.cmpi eq, %arg1, %c0_i32_3 : i32
      %c0_i32_4 = arith.constant 0 : i32
      %13 = arith.cmpi eq, %arg2, %c0_i32_4 : i32
      %14 = arith.andi %12, %13 : i1
      %15 = arith.extui %14 : i1 to i32
      %c0_i32_5 = arith.constant 0 : i32
      %16 = arith.cmpi ne, %15, %c0_i32_5 : i32
      scf.if %16 {
        %c0_12 = arith.constant 0 : index
        %c0_13 = arith.constant 0 : index
        %30 = vector.load %arg9[%c0_12, %c0_13] : memref<1x128xf32, #tpu.memory_space<vmem>>, vector<1x128xf32>
        %c32_i32 = arith.constant 32 : i32
        %31 = tpu.dynamic_rotate %30 by %c32_i32 dim 1 : vector<1x128xf32>, i32 -> vector<1x128xf32>
        %32 = arith.addf %30, %31 : vector<1x128xf32>
        %c64_i32_14 = arith.constant 64 : i32
        %33 = tpu.dynamic_rotate %30 by %c64_i32_14 dim 1 : vector<1x128xf32>, i32 -> vector<1x128xf32>
        %34 = arith.addf %32, %33 : vector<1x128xf32>
        %c96_i32 = arith.constant 96 : i32
        %35 = tpu.dynamic_rotate %30 by %c96_i32 dim 1 : vector<1x128xf32>, i32 -> vector<1x128xf32>
        %36 = arith.addf %34, %35 : vector<1x128xf32>
        %cst_15 = arith.constant 0.001953125 : f32
        %37 = vector.broadcast %cst_15 : f32 to vector<1x128xf32>
        %38 = arith.mulf %36, %37 : vector<1x128xf32>
        %c0_16 = arith.constant 0 : index
        %c0_17 = arith.constant 0 : index
        %39 = vector.load %arg10[%c0_16, %c0_17] : memref<1x128xf32, #tpu.memory_space<vmem>>, vector<1x128xf32>
        %c32_i32_18 = arith.constant 32 : i32
        %40 = tpu.dynamic_rotate %39 by %c32_i32_18 dim 1 : vector<1x128xf32>, i32 -> vector<1x128xf32>
        %41 = arith.addf %39, %40 : vector<1x128xf32>
        %c64_i32_19 = arith.constant 64 : i32
        %42 = tpu.dynamic_rotate %39 by %c64_i32_19 dim 1 : vector<1x128xf32>, i32 -> vector<1x128xf32>
        %43 = arith.addf %41, %42 : vector<1x128xf32>
        %c96_i32_20 = arith.constant 96 : i32
        %44 = tpu.dynamic_rotate %39 by %c96_i32_20 dim 1 : vector<1x128xf32>, i32 -> vector<1x128xf32>
        %45 = arith.addf %43, %44 : vector<1x128xf32>
        %cst_21 = arith.constant 0.001953125 : f32
        %46 = vector.broadcast %cst_21 : f32 to vector<1x128xf32>
        %47 = arith.mulf %45, %46 : vector<1x128xf32>
        %48 = arith.mulf %38, %38 : vector<1x128xf32>
        %49 = arith.subf %47, %48 : vector<1x128xf32>
        %cst_22 = arith.constant 0.000000e+00 : f32
        %50 = vector.broadcast %cst_22 : f32 to vector<1x128xf32>
        %51 = arith.maximumf %49, %50 : vector<1x128xf32>
        %c0_23 = arith.constant 0 : index
        %c0_24 = arith.constant 0 : index
        %52 = vector.load %arg5[%c0_23, %c0_24] : memref<1x128xf32, #tpu.memory_space<vmem>>, vector<1x128xf32>
        %cst_25 = arith.constant 9.99999974E-6 : f32
        %53 = vector.broadcast %cst_25 : f32 to vector<1x128xf32>
        %54 = arith.addf %51, %53 : vector<1x128xf32>
        %55 = math.rsqrt %54 : vector<1x128xf32>
        %56 = arith.mulf %52, %55 : vector<1x128xf32>
        %c0_26 = arith.constant 0 : index
        %c0_27 = arith.constant 0 : index
        %57 = vector.load %arg11[%c0_26, %c0_27] : memref<1x128xf32, #tpu.memory_space<vmem>>, vector<1x128xf32>
        tpu.vector_store %arg11[%c0_26, %c0_27], %56 {strides = array<i32>} : memref<1x128xf32, #tpu.memory_space<vmem>>, vector<1x128xf32>,
        %c0_28 = arith.constant 0 : index
        %c0_29 = arith.constant 0 : index
        %58 = vector.load %arg6[%c0_28, %c0_29] : memref<1x128xf32, #tpu.memory_space<vmem>>, vector<1x128xf32>
        %59 = arith.mulf %38, %56 : vector<1x128xf32>
        %60 = arith.subf %58, %59 : vector<1x128xf32>
        %c0_30 = arith.constant 0 : index
        %c0_31 = arith.constant 0 : index
        %61 = vector.load %arg12[%c0_30, %c0_31] : memref<1x128xf32, #tpu.memory_space<vmem>>, vector<1x128xf32>
        tpu.vector_store %arg12[%c0_30, %c0_31], %60 {strides = array<i32>} : memref<1x128xf32, #tpu.memory_space<vmem>>, vector<1x128xf32>,
      } else {
      }
      %17 = arith.index_cast %5 : i32 to index
      %c0 = arith.constant 0 : index
      %18 = vector.load %arg8[%17, %c0] : memref<128x128xbf16, #tpu.memory_space<vmem>>, vector<64x128xbf16>
      %19 = arith.extf %18 : vector<64x128xbf16> to vector<64x128xf32>
      %c0_6 = arith.constant 0 : index
      %c0_7 = arith.constant 0 : index
      %20 = vector.load %arg11[%c0_6, %c0_7] : memref<1x128xf32, #tpu.memory_space<vmem>>, vector<1x128xf32>
      %21 = vector.broadcast %20 : vector<1x128xf32> to vector<64x128xf32>
      %22 = arith.mulf %19, %21 : vector<64x128xf32>
      %c0_8 = arith.constant 0 : index
      %c0_9 = arith.constant 0 : index
      %23 = vector.load %arg12[%c0_8, %c0_9] : memref<1x128xf32, #tpu.memory_space<vmem>>, vector<1x128xf32>
      %24 = vector.broadcast %23 : vector<1x128xf32> to vector<64x128xf32>
      %25 = arith.addf %22, %24 : vector<64x128xf32>
      %cst = arith.constant 0.000000e+00 : f32
      %26 = vector.broadcast %cst : f32 to vector<64x128xf32>
      %27 = arith.maximumf %25, %26 : vector<64x128xf32>
      %28 = arith.truncf %27 : vector<64x128xf32> to vector<64x128xbf16>
      %c0_10 = arith.constant 0 : index
      %c0_11 = arith.constant 0 : index
      %29 = vector.load %arg7[%c0_10, %c0_11] : memref<64x128xbf16, #tpu.memory_space<vmem>>, vector<64x128xbf16>
      tpu.vector_store %arg7[%c0_10, %c0_11], %28 {strides = array<i32>} : memref<64x128xbf16, #tpu.memory_space<vmem>>, vector<64x128xbf16>,
    } else {
    }
    return
  }
  func.func @transform_0(%arg0: i32, %arg1: i32, %arg2: i32) -> (i32, i32, i32, i32) {
    %c1_i32 = arith.constant 1 : i32
    %0 = arith.subi %c1_i32, %arg0 : i32
    %1 = arith.muli %arg1, %0 : i32
    %c1_i32_0 = arith.constant 1 : i32
    %2 = arith.muli %c1_i32_0, %arg0 : i32
    %3 = arith.addi %1, %2 : i32
    %c0_i32 = arith.constant 0 : i32
    %c0_i32_1 = arith.constant 0 : i32
    %c0_i32_2 = arith.constant 0 : i32
    %c0_i32_3 = arith.constant 0 : i32
    return %3, %c0_i32, %c0_i32_1, %c0_i32_2 : i32, i32, i32, i32
  }
  func.func @transform_1(%arg0: i32, %arg1: i32, %arg2: i32) -> (i32, i32, i32) {
    %c0_i32 = arith.constant 0 : i32
    %c0_i32_0 = arith.constant 0 : i32
    %c0_i32_1 = arith.constant 0 : i32
    %c0_i32_2 = arith.constant 0 : i32
    return %c0_i32, %c0_i32_0, %c0_i32_1 : i32, i32, i32
  }
  func.func @transform_2(%arg0: i32, %arg1: i32, %arg2: i32) -> (i32, i32) {
    %c0_i32 = arith.constant 0 : i32
    %c0_i32_0 = arith.constant 0 : i32
    %c0_i32_1 = arith.constant 0 : i32
    return %c0_i32, %c0_i32_0 : i32, i32
  }
  func.func @transform_3(%arg0: i32, %arg1: i32, %arg2: i32) -> (i32, i32) {
    %c0_i32 = arith.constant 0 : i32
    %c0_i32_0 = arith.constant 0 : i32
    %c0_i32_1 = arith.constant 0 : i32
    return %c0_i32, %c0_i32_0 : i32, i32
  }
  func.func @transform_4(%arg0: i32, %arg1: i32, %arg2: i32) -> (i32, i32) {
    %c1_i32 = arith.constant 1 : i32
    %0 = arith.muli %arg1, %c1_i32 : i32
    %1 = arith.addi %0, %arg2 : i32
    %2 = arith.muli %arg0, %1 : i32
    %c0_i32 = arith.constant 0 : i32
    %c0_i32_0 = arith.constant 0 : i32
    return %2, %c0_i32 : i32, i32
  }
}

module attributes {stable_mosaic.version = 11 : i64} {
  func.func @kernel(%arg0: i32, %arg1: i32, %arg2: i32, %arg3: memref<1x18x18x32xbf16, #tpu.memory_space<vmem>>, %arg4: memref<9x32x128xbf16, #tpu.memory_space<vmem>>, %arg5: memref<1x128xf32, #tpu.memory_space<vmem>>, %arg6: memref<1x128xf32, #tpu.memory_space<vmem>>, %arg7: memref<256x128xbf16, #tpu.memory_space<vmem>>, %arg8: memref<512x128xbf16, #tpu.memory_space<vmem>>, %arg9: memref<1x128xf32, #tpu.memory_space<vmem>>, %arg10: memref<1x128xf32, #tpu.memory_space<vmem>>, %arg11: memref<1x128xf32, #tpu.memory_space<vmem>>, %arg12: memref<1x128xf32, #tpu.memory_space<vmem>>) attributes {dimension_semantics = [#tpu.dimension_semantics<arbitrary>, #tpu.dimension_semantics<arbitrary>, #tpu.dimension_semantics<arbitrary>], iteration_bounds = array<i64: 2, 2, 1>, scalar_prefetch = 0 : i64, scratch_operands = 5 : i64, tpu.core_type = #tpu.core_type<tc>, window_params = [{transform_indices = @transform_0, window_bounds = array<i64: 1, 18, 18, 32>}, {pipeline_mode = #tpu.pipeline_mode<synchronous>, transform_indices = @transform_1, window_bounds = array<i64: 9, 32, 128>}, {pipeline_mode = #tpu.pipeline_mode<synchronous>, transform_indices = @transform_2, window_bounds = array<i64: 1, 128>}, {pipeline_mode = #tpu.pipeline_mode<synchronous>, transform_indices = @transform_3, window_bounds = array<i64: 1, 128>}, {transform_indices = @transform_4, window_bounds = array<i64: 256, 128>}]} {
    %c16_i32 = arith.constant 16 : i32
    %0 = arith.muli %arg2, %c16_i32 : i32
    %1 = tpu.assume_multiple %0, 16 : i32
    %c256_i32 = arith.constant 256 : i32
    %2 = arith.muli %arg1, %c256_i32 : i32
    %c16_i32_0 = arith.constant 16 : i32
    %3 = arith.muli %1, %c16_i32_0 : i32
    %4 = arith.addi %2, %3 : i32
    %5 = tpu.assume_multiple %4, 256 : i32
    %c0_i32 = arith.constant 0 : i32
    %6 = arith.cmpi eq, %arg0, %c0_i32 : i32
    %7 = arith.extui %6 : i1 to i32
    %c0_i32_1 = arith.constant 0 : i32
    %8 = arith.cmpi ne, %7, %c0_i32_1 : i32
    scf.if %8 {
      %c0_i32_3 = arith.constant 0 : i32
      %12 = arith.cmpi eq, %arg1, %c0_i32_3 : i32
      %c0_i32_4 = arith.constant 0 : i32
      %13 = arith.cmpi eq, %arg2, %c0_i32_4 : i32
      %14 = arith.andi %12, %13 : i1
      %15 = arith.extui %14 : i1 to i32
      %c0_i32_5 = arith.constant 0 : i32
      %16 = arith.cmpi ne, %15, %c0_i32_5 : i32
      scf.if %16 {
        %cst_78 = arith.constant 0.000000e+00 : f32
        %111 = vector.broadcast %cst_78 : f32 to vector<1x128xf32>
        %c0_79 = arith.constant 0 : index
        %c0_80 = arith.constant 0 : index
        %112 = vector.load %arg9[%c0_79, %c0_80] : memref<1x128xf32, #tpu.memory_space<vmem>>, vector<1x128xf32>
        tpu.vector_store %arg9[%c0_79, %c0_80], %111 {strides = array<i32>} : memref<1x128xf32, #tpu.memory_space<vmem>>, vector<1x128xf32>,
        %cst_81 = arith.constant 0.000000e+00 : f32
        %113 = vector.broadcast %cst_81 : f32 to vector<1x128xf32>
        %c0_82 = arith.constant 0 : index
        %c0_83 = arith.constant 0 : index
        %114 = vector.load %arg10[%c0_82, %c0_83] : memref<1x128xf32, #tpu.memory_space<vmem>>, vector<1x128xf32>
        tpu.vector_store %arg10[%c0_82, %c0_83], %113 {strides = array<i32>} : memref<1x128xf32, #tpu.memory_space<vmem>>, vector<1x128xf32>,
      } else {
      }
      %c0_i32_6 = arith.constant 0 : i32
      %17 = arith.addi %1, %c0_i32_6 : i32
      %c0 = arith.constant 0 : index
      %18 = arith.index_cast %17 : i32 to index
      %c0_7 = arith.constant 0 : index
      %c0_8 = arith.constant 0 : index
      %19 = vector.load %arg3[%c0, %18, %c0_7, %c0_8] : memref<1x18x18x32xbf16, #tpu.memory_space<vmem>>, vector<1x16x16x32xbf16>
      %20 = vector.shape_cast %19 : vector<1x16x16x32xbf16> to vector<16x16x32xbf16>
      %21 = vector.shape_cast %20 : vector<16x16x32xbf16> to vector<256x32xbf16>
      %c0_9 = arith.constant 0 : index
      %c0_10 = arith.constant 0 : index
      %c0_11 = arith.constant 0 : index
      %22 = vector.load %arg4[%c0_9, %c0_10, %c0_11] : memref<9x32x128xbf16, #tpu.memory_space<vmem>>, vector<1x32x128xbf16>
      %23 = vector.shape_cast %22 : vector<1x32x128xbf16> to vector<32x128xbf16>
      %cst = arith.constant dense<0.000000e+00> : vector<256x128xf32>
      %24 = tpu.matmul %21, %23, %cst {dimension_numbers = #tpu.dot_dimension_numbers<[1], [0], [0], [1], [0, 0, 1, 1], [], []>} : vector<256x32xbf16>, vector<32x128xbf16>, vector<256x128xf32> -> vector<256x128xf32>
      %c0_i32_12 = arith.constant 0 : i32
      %25 = arith.addi %1, %c0_i32_12 : i32
      %c0_13 = arith.constant 0 : index
      %26 = arith.index_cast %25 : i32 to index
      %c1 = arith.constant 1 : index
      %c0_14 = arith.constant 0 : index
      %27 = vector.load %arg3[%c0_13, %26, %c1, %c0_14] : memref<1x18x18x32xbf16, #tpu.memory_space<vmem>>, vector<1x16x16x32xbf16>
      %28 = vector.shape_cast %27 : vector<1x16x16x32xbf16> to vector<16x16x32xbf16>
      %29 = vector.shape_cast %28 : vector<16x16x32xbf16> to vector<256x32xbf16>
      %c1_15 = arith.constant 1 : index
      %c0_16 = arith.constant 0 : index
      %c0_17 = arith.constant 0 : index
      %30 = vector.load %arg4[%c1_15, %c0_16, %c0_17] : memref<9x32x128xbf16, #tpu.memory_space<vmem>>, vector<1x32x128xbf16>
      %31 = vector.shape_cast %30 : vector<1x32x128xbf16> to vector<32x128xbf16>
      %cst_18 = arith.constant dense<0.000000e+00> : vector<256x128xf32>
      %32 = tpu.matmul %29, %31, %cst_18 {dimension_numbers = #tpu.dot_dimension_numbers<[1], [0], [0], [1], [0, 0, 1, 1], [], []>} : vector<256x32xbf16>, vector<32x128xbf16>, vector<256x128xf32> -> vector<256x128xf32>
      %33 = arith.addf %24, %32 : vector<256x128xf32>
      %c0_i32_19 = arith.constant 0 : i32
      %34 = arith.addi %1, %c0_i32_19 : i32
      %c0_20 = arith.constant 0 : index
      %35 = arith.index_cast %34 : i32 to index
      %c2 = arith.constant 2 : index
      %c0_21 = arith.constant 0 : index
      %36 = vector.load %arg3[%c0_20, %35, %c2, %c0_21] : memref<1x18x18x32xbf16, #tpu.memory_space<vmem>>, vector<1x16x16x32xbf16>
      %37 = vector.shape_cast %36 : vector<1x16x16x32xbf16> to vector<16x16x32xbf16>
      %38 = vector.shape_cast %37 : vector<16x16x32xbf16> to vector<256x32xbf16>
      %c2_22 = arith.constant 2 : index
      %c0_23 = arith.constant 0 : index
      %c0_24 = arith.constant 0 : index
      %39 = vector.load %arg4[%c2_22, %c0_23, %c0_24] : memref<9x32x128xbf16, #tpu.memory_space<vmem>>, vector<1x32x128xbf16>
      %40 = vector.shape_cast %39 : vector<1x32x128xbf16> to vector<32x128xbf16>
      %cst_25 = arith.constant dense<0.000000e+00> : vector<256x128xf32>
      %41 = tpu.matmul %38, %40, %cst_25 {dimension_numbers = #tpu.dot_dimension_numbers<[1], [0], [0], [1], [0, 0, 1, 1], [], []>} : vector<256x32xbf16>, vector<32x128xbf16>, vector<256x128xf32> -> vector<256x128xf32>
      %42 = arith.addf %33, %41 : vector<256x128xf32>
      %c1_i32_26 = arith.constant 1 : i32
      %43 = arith.addi %1, %c1_i32_26 : i32
      %c0_27 = arith.constant 0 : index
      %44 = arith.index_cast %43 : i32 to index
      %c0_28 = arith.constant 0 : index
      %c0_29 = arith.constant 0 : index
      %45 = vector.load %arg3[%c0_27, %44, %c0_28, %c0_29] : memref<1x18x18x32xbf16, #tpu.memory_space<vmem>>, vector<1x16x16x32xbf16>
      %46 = vector.shape_cast %45 : vector<1x16x16x32xbf16> to vector<16x16x32xbf16>
      %47 = vector.shape_cast %46 : vector<16x16x32xbf16> to vector<256x32xbf16>
      %c3 = arith.constant 3 : index
      %c0_30 = arith.constant 0 : index
      %c0_31 = arith.constant 0 : index
      %48 = vector.load %arg4[%c3, %c0_30, %c0_31] : memref<9x32x128xbf16, #tpu.memory_space<vmem>>, vector<1x32x128xbf16>
      %49 = vector.shape_cast %48 : vector<1x32x128xbf16> to vector<32x128xbf16>
      %cst_32 = arith.constant dense<0.000000e+00> : vector<256x128xf32>
      %50 = tpu.matmul %47, %49, %cst_32 {dimension_numbers = #tpu.dot_dimension_numbers<[1], [0], [0], [1], [0, 0, 1, 1], [], []>} : vector<256x32xbf16>, vector<32x128xbf16>, vector<256x128xf32> -> vector<256x128xf32>
      %51 = arith.addf %42, %50 : vector<256x128xf32>
      %c1_i32_33 = arith.constant 1 : i32
      %52 = arith.addi %1, %c1_i32_33 : i32
      %c0_34 = arith.constant 0 : index
      %53 = arith.index_cast %52 : i32 to index
      %c1_35 = arith.constant 1 : index
      %c0_36 = arith.constant 0 : index
      %54 = vector.load %arg3[%c0_34, %53, %c1_35, %c0_36] : memref<1x18x18x32xbf16, #tpu.memory_space<vmem>>, vector<1x16x16x32xbf16>
      %55 = vector.shape_cast %54 : vector<1x16x16x32xbf16> to vector<16x16x32xbf16>
      %56 = vector.shape_cast %55 : vector<16x16x32xbf16> to vector<256x32xbf16>
      %c4 = arith.constant 4 : index
      %c0_37 = arith.constant 0 : index
      %c0_38 = arith.constant 0 : index
      %57 = vector.load %arg4[%c4, %c0_37, %c0_38] : memref<9x32x128xbf16, #tpu.memory_space<vmem>>, vector<1x32x128xbf16>
      %58 = vector.shape_cast %57 : vector<1x32x128xbf16> to vector<32x128xbf16>
      %cst_39 = arith.constant dense<0.000000e+00> : vector<256x128xf32>
      %59 = tpu.matmul %56, %58, %cst_39 {dimension_numbers = #tpu.dot_dimension_numbers<[1], [0], [0], [1], [0, 0, 1, 1], [], []>} : vector<256x32xbf16>, vector<32x128xbf16>, vector<256x128xf32> -> vector<256x128xf32>
      %60 = arith.addf %51, %59 : vector<256x128xf32>
      %c1_i32_40 = arith.constant 1 : i32
      %61 = arith.addi %1, %c1_i32_40 : i32
      %c0_41 = arith.constant 0 : index
      %62 = arith.index_cast %61 : i32 to index
      %c2_42 = arith.constant 2 : index
      %c0_43 = arith.constant 0 : index
      %63 = vector.load %arg3[%c0_41, %62, %c2_42, %c0_43] : memref<1x18x18x32xbf16, #tpu.memory_space<vmem>>, vector<1x16x16x32xbf16>
      %64 = vector.shape_cast %63 : vector<1x16x16x32xbf16> to vector<16x16x32xbf16>
      %65 = vector.shape_cast %64 : vector<16x16x32xbf16> to vector<256x32xbf16>
      %c5 = arith.constant 5 : index
      %c0_44 = arith.constant 0 : index
      %c0_45 = arith.constant 0 : index
      %66 = vector.load %arg4[%c5, %c0_44, %c0_45] : memref<9x32x128xbf16, #tpu.memory_space<vmem>>, vector<1x32x128xbf16>
      %67 = vector.shape_cast %66 : vector<1x32x128xbf16> to vector<32x128xbf16>
      %cst_46 = arith.constant dense<0.000000e+00> : vector<256x128xf32>
      %68 = tpu.matmul %65, %67, %cst_46 {dimension_numbers = #tpu.dot_dimension_numbers<[1], [0], [0], [1], [0, 0, 1, 1], [], []>} : vector<256x32xbf16>, vector<32x128xbf16>, vector<256x128xf32> -> vector<256x128xf32>
      %69 = arith.addf %60, %68 : vector<256x128xf32>
      %c2_i32 = arith.constant 2 : i32
      %70 = arith.addi %1, %c2_i32 : i32
      %c0_47 = arith.constant 0 : index
      %71 = arith.index_cast %70 : i32 to index
      %c0_48 = arith.constant 0 : index
      %c0_49 = arith.constant 0 : index
      %72 = vector.load %arg3[%c0_47, %71, %c0_48, %c0_49] : memref<1x18x18x32xbf16, #tpu.memory_space<vmem>>, vector<1x16x16x32xbf16>
      %73 = vector.shape_cast %72 : vector<1x16x16x32xbf16> to vector<16x16x32xbf16>
      %74 = vector.shape_cast %73 : vector<16x16x32xbf16> to vector<256x32xbf16>
      %c6 = arith.constant 6 : index
      %c0_50 = arith.constant 0 : index
      %c0_51 = arith.constant 0 : index
      %75 = vector.load %arg4[%c6, %c0_50, %c0_51] : memref<9x32x128xbf16, #tpu.memory_space<vmem>>, vector<1x32x128xbf16>
      %76 = vector.shape_cast %75 : vector<1x32x128xbf16> to vector<32x128xbf16>
      %cst_52 = arith.constant dense<0.000000e+00> : vector<256x128xf32>
      %77 = tpu.matmul %74, %76, %cst_52 {dimension_numbers = #tpu.dot_dimension_numbers<[1], [0], [0], [1], [0, 0, 1, 1], [], []>} : vector<256x32xbf16>, vector<32x128xbf16>, vector<256x128xf32> -> vector<256x128xf32>
      %78 = arith.addf %69, %77 : vector<256x128xf32>
      %c2_i32_53 = arith.constant 2 : i32
      %79 = arith.addi %1, %c2_i32_53 : i32
      %c0_54 = arith.constant 0 : index
      %80 = arith.index_cast %79 : i32 to index
      %c1_55 = arith.constant 1 : index
      %c0_56 = arith.constant 0 : index
      %81 = vector.load %arg3[%c0_54, %80, %c1_55, %c0_56] : memref<1x18x18x32xbf16, #tpu.memory_space<vmem>>, vector<1x16x16x32xbf16>
      %82 = vector.shape_cast %81 : vector<1x16x16x32xbf16> to vector<16x16x32xbf16>
      %83 = vector.shape_cast %82 : vector<16x16x32xbf16> to vector<256x32xbf16>
      %c7 = arith.constant 7 : index
      %c0_57 = arith.constant 0 : index
      %c0_58 = arith.constant 0 : index
      %84 = vector.load %arg4[%c7, %c0_57, %c0_58] : memref<9x32x128xbf16, #tpu.memory_space<vmem>>, vector<1x32x128xbf16>
      %85 = vector.shape_cast %84 : vector<1x32x128xbf16> to vector<32x128xbf16>
      %cst_59 = arith.constant dense<0.000000e+00> : vector<256x128xf32>
      %86 = tpu.matmul %83, %85, %cst_59 {dimension_numbers = #tpu.dot_dimension_numbers<[1], [0], [0], [1], [0, 0, 1, 1], [], []>} : vector<256x32xbf16>, vector<32x128xbf16>, vector<256x128xf32> -> vector<256x128xf32>
      %87 = arith.addf %78, %86 : vector<256x128xf32>
      %c2_i32_60 = arith.constant 2 : i32
      %88 = arith.addi %1, %c2_i32_60 : i32
      %c0_61 = arith.constant 0 : index
      %89 = arith.index_cast %88 : i32 to index
      %c2_62 = arith.constant 2 : index
      %c0_63 = arith.constant 0 : index
      %90 = vector.load %arg3[%c0_61, %89, %c2_62, %c0_63] : memref<1x18x18x32xbf16, #tpu.memory_space<vmem>>, vector<1x16x16x32xbf16>
      %91 = vector.shape_cast %90 : vector<1x16x16x32xbf16> to vector<16x16x32xbf16>
      %92 = vector.shape_cast %91 : vector<16x16x32xbf16> to vector<256x32xbf16>
      %c8 = arith.constant 8 : index
      %c0_64 = arith.constant 0 : index
      %c0_65 = arith.constant 0 : index
      %93 = vector.load %arg4[%c8, %c0_64, %c0_65] : memref<9x32x128xbf16, #tpu.memory_space<vmem>>, vector<1x32x128xbf16>
      %94 = vector.shape_cast %93 : vector<1x32x128xbf16> to vector<32x128xbf16>
      %cst_66 = arith.constant dense<0.000000e+00> : vector<256x128xf32>
      %95 = tpu.matmul %92, %94, %cst_66 {dimension_numbers = #tpu.dot_dimension_numbers<[1], [0], [0], [1], [0, 0, 1, 1], [], []>} : vector<256x32xbf16>, vector<32x128xbf16>, vector<256x128xf32> -> vector<256x128xf32>
      %96 = arith.addf %87, %95 : vector<256x128xf32>
      %97 = arith.truncf %96 : vector<256x128xf32> to vector<256x128xbf16>
      %98 = arith.index_cast %5 : i32 to index
      %c0_67 = arith.constant 0 : index
      %99 = vector.load %arg8[%98, %c0_67] : memref<512x128xbf16, #tpu.memory_space<vmem>>, vector<256x128xbf16>
      tpu.vector_store %arg8[%98, %c0_67], %97 {strides = array<i32>} : memref<512x128xbf16, #tpu.memory_space<vmem>>, vector<256x128xbf16>,
      %c0_68 = arith.constant 0 : index
      %c0_69 = arith.constant 0 : index
      %100 = vector.load %arg9[%c0_68, %c0_69] : memref<1x128xf32, #tpu.memory_space<vmem>>, vector<1x128xf32>
      %cst_70 = arith.constant dense<0.000000e+00> : vector<128xf32>
      %101 = vector.multi_reduction <add>, %96, %cst_70 [0] : vector<256x128xf32> to vector<128xf32>
      %102 = vector.shape_cast %101 : vector<128xf32> to vector<1x128xf32>
      %103 = arith.addf %100, %102 : vector<1x128xf32>
      %c0_71 = arith.constant 0 : index
      %c0_72 = arith.constant 0 : index
      %104 = vector.load %arg9[%c0_71, %c0_72] : memref<1x128xf32, #tpu.memory_space<vmem>>, vector<1x128xf32>
      tpu.vector_store %arg9[%c0_71, %c0_72], %103 {strides = array<i32>} : memref<1x128xf32, #tpu.memory_space<vmem>>, vector<1x128xf32>,
      %c0_73 = arith.constant 0 : index
      %c0_74 = arith.constant 0 : index
      %105 = vector.load %arg10[%c0_73, %c0_74] : memref<1x128xf32, #tpu.memory_space<vmem>>, vector<1x128xf32>
      %106 = arith.mulf %96, %96 : vector<256x128xf32>
      %cst_75 = arith.constant dense<0.000000e+00> : vector<128xf32>
      %107 = vector.multi_reduction <add>, %106, %cst_75 [0] : vector<256x128xf32> to vector<128xf32>
      %108 = vector.shape_cast %107 : vector<128xf32> to vector<1x128xf32>
      %109 = arith.addf %105, %108 : vector<1x128xf32>
      %c0_76 = arith.constant 0 : index
      %c0_77 = arith.constant 0 : index
      %110 = vector.load %arg10[%c0_76, %c0_77] : memref<1x128xf32, #tpu.memory_space<vmem>>, vector<1x128xf32>
      tpu.vector_store %arg10[%c0_76, %c0_77], %109 {strides = array<i32>} : memref<1x128xf32, #tpu.memory_space<vmem>>, vector<1x128xf32>,
    } else {
    }
    %c1_i32 = arith.constant 1 : i32
    %9 = arith.cmpi eq, %arg0, %c1_i32 : i32
    %10 = arith.extui %9 : i1 to i32
    %c0_i32_2 = arith.constant 0 : i32
    %11 = arith.cmpi ne, %10, %c0_i32_2 : i32
    scf.if %11 {
      %c0_i32_3 = arith.constant 0 : i32
      %12 = arith.cmpi eq, %arg1, %c0_i32_3 : i32
      %c0_i32_4 = arith.constant 0 : i32
      %13 = arith.cmpi eq, %arg2, %c0_i32_4 : i32
      %14 = arith.andi %12, %13 : i1
      %15 = arith.extui %14 : i1 to i32
      %c0_i32_5 = arith.constant 0 : i32
      %16 = arith.cmpi ne, %15, %c0_i32_5 : i32
      scf.if %16 {
        %c0_12 = arith.constant 0 : index
        %c0_13 = arith.constant 0 : index
        %30 = vector.load %arg9[%c0_12, %c0_13] : memref<1x128xf32, #tpu.memory_space<vmem>>, vector<1x128xf32>
        %c32_i32 = arith.constant 32 : i32
        %31 = tpu.dynamic_rotate %30 by %c32_i32 dim 1 : vector<1x128xf32>, i32 -> vector<1x128xf32>
        %32 = arith.addf %30, %31 : vector<1x128xf32>
        %c64_i32 = arith.constant 64 : i32
        %33 = tpu.dynamic_rotate %30 by %c64_i32 dim 1 : vector<1x128xf32>, i32 -> vector<1x128xf32>
        %34 = arith.addf %32, %33 : vector<1x128xf32>
        %c96_i32 = arith.constant 96 : i32
        %35 = tpu.dynamic_rotate %30 by %c96_i32 dim 1 : vector<1x128xf32>, i32 -> vector<1x128xf32>
        %36 = arith.addf %34, %35 : vector<1x128xf32>
        %cst_14 = arith.constant 4.8828125E-4 : f32
        %37 = vector.broadcast %cst_14 : f32 to vector<1x128xf32>
        %38 = arith.mulf %36, %37 : vector<1x128xf32>
        %c0_15 = arith.constant 0 : index
        %c0_16 = arith.constant 0 : index
        %39 = vector.load %arg10[%c0_15, %c0_16] : memref<1x128xf32, #tpu.memory_space<vmem>>, vector<1x128xf32>
        %c32_i32_17 = arith.constant 32 : i32
        %40 = tpu.dynamic_rotate %39 by %c32_i32_17 dim 1 : vector<1x128xf32>, i32 -> vector<1x128xf32>
        %41 = arith.addf %39, %40 : vector<1x128xf32>
        %c64_i32_18 = arith.constant 64 : i32
        %42 = tpu.dynamic_rotate %39 by %c64_i32_18 dim 1 : vector<1x128xf32>, i32 -> vector<1x128xf32>
        %43 = arith.addf %41, %42 : vector<1x128xf32>
        %c96_i32_19 = arith.constant 96 : i32
        %44 = tpu.dynamic_rotate %39 by %c96_i32_19 dim 1 : vector<1x128xf32>, i32 -> vector<1x128xf32>
        %45 = arith.addf %43, %44 : vector<1x128xf32>
        %cst_20 = arith.constant 4.8828125E-4 : f32
        %46 = vector.broadcast %cst_20 : f32 to vector<1x128xf32>
        %47 = arith.mulf %45, %46 : vector<1x128xf32>
        %48 = arith.mulf %38, %38 : vector<1x128xf32>
        %49 = arith.subf %47, %48 : vector<1x128xf32>
        %cst_21 = arith.constant 0.000000e+00 : f32
        %50 = vector.broadcast %cst_21 : f32 to vector<1x128xf32>
        %51 = arith.maximumf %49, %50 : vector<1x128xf32>
        %c0_22 = arith.constant 0 : index
        %c0_23 = arith.constant 0 : index
        %52 = vector.load %arg5[%c0_22, %c0_23] : memref<1x128xf32, #tpu.memory_space<vmem>>, vector<1x128xf32>
        %cst_24 = arith.constant 9.99999974E-6 : f32
        %53 = vector.broadcast %cst_24 : f32 to vector<1x128xf32>
        %54 = arith.addf %51, %53 : vector<1x128xf32>
        %55 = math.rsqrt %54 : vector<1x128xf32>
        %56 = arith.mulf %52, %55 : vector<1x128xf32>
        %c0_25 = arith.constant 0 : index
        %c0_26 = arith.constant 0 : index
        %57 = vector.load %arg11[%c0_25, %c0_26] : memref<1x128xf32, #tpu.memory_space<vmem>>, vector<1x128xf32>
        tpu.vector_store %arg11[%c0_25, %c0_26], %56 {strides = array<i32>} : memref<1x128xf32, #tpu.memory_space<vmem>>, vector<1x128xf32>,
        %c0_27 = arith.constant 0 : index
        %c0_28 = arith.constant 0 : index
        %58 = vector.load %arg6[%c0_27, %c0_28] : memref<1x128xf32, #tpu.memory_space<vmem>>, vector<1x128xf32>
        %59 = arith.mulf %38, %56 : vector<1x128xf32>
        %60 = arith.subf %58, %59 : vector<1x128xf32>
        %c0_29 = arith.constant 0 : index
        %c0_30 = arith.constant 0 : index
        %61 = vector.load %arg12[%c0_29, %c0_30] : memref<1x128xf32, #tpu.memory_space<vmem>>, vector<1x128xf32>
        tpu.vector_store %arg12[%c0_29, %c0_30], %60 {strides = array<i32>} : memref<1x128xf32, #tpu.memory_space<vmem>>, vector<1x128xf32>,
      } else {
      }
      %17 = arith.index_cast %5 : i32 to index
      %c0 = arith.constant 0 : index
      %18 = vector.load %arg8[%17, %c0] : memref<512x128xbf16, #tpu.memory_space<vmem>>, vector<256x128xbf16>
      %19 = arith.extf %18 : vector<256x128xbf16> to vector<256x128xf32>
      %c0_6 = arith.constant 0 : index
      %c0_7 = arith.constant 0 : index
      %20 = vector.load %arg11[%c0_6, %c0_7] : memref<1x128xf32, #tpu.memory_space<vmem>>, vector<1x128xf32>
      %21 = vector.broadcast %20 : vector<1x128xf32> to vector<256x128xf32>
      %22 = arith.mulf %19, %21 : vector<256x128xf32>
      %c0_8 = arith.constant 0 : index
      %c0_9 = arith.constant 0 : index
      %23 = vector.load %arg12[%c0_8, %c0_9] : memref<1x128xf32, #tpu.memory_space<vmem>>, vector<1x128xf32>
      %24 = vector.broadcast %23 : vector<1x128xf32> to vector<256x128xf32>
      %25 = arith.addf %22, %24 : vector<256x128xf32>
      %cst = arith.constant 0.000000e+00 : f32
      %26 = vector.broadcast %cst : f32 to vector<256x128xf32>
      %27 = arith.maximumf %25, %26 : vector<256x128xf32>
      %28 = arith.truncf %27 : vector<256x128xf32> to vector<256x128xbf16>
      %c0_10 = arith.constant 0 : index
      %c0_11 = arith.constant 0 : index
      %29 = vector.load %arg7[%c0_10, %c0_11] : memref<256x128xbf16, #tpu.memory_space<vmem>>, vector<256x128xbf16>
      tpu.vector_store %arg7[%c0_10, %c0_11], %28 {strides = array<i32>} : memref<256x128xbf16, #tpu.memory_space<vmem>>, vector<256x128xbf16>,
    } else {
    }
    return
  }
  func.func @transform_0(%arg0: i32, %arg1: i32, %arg2: i32) -> (i32, i32, i32, i32) {
    %c1_i32 = arith.constant 1 : i32
    %0 = arith.subi %c1_i32, %arg0 : i32
    %1 = arith.muli %arg1, %0 : i32
    %c1_i32_0 = arith.constant 1 : i32
    %2 = arith.muli %c1_i32_0, %arg0 : i32
    %3 = arith.addi %1, %2 : i32
    %c0_i32 = arith.constant 0 : i32
    %c0_i32_1 = arith.constant 0 : i32
    %c0_i32_2 = arith.constant 0 : i32
    %c0_i32_3 = arith.constant 0 : i32
    return %3, %c0_i32, %c0_i32_1, %c0_i32_2 : i32, i32, i32, i32
  }
  func.func @transform_1(%arg0: i32, %arg1: i32, %arg2: i32) -> (i32, i32, i32) {
    %c0_i32 = arith.constant 0 : i32
    %c0_i32_0 = arith.constant 0 : i32
    %c0_i32_1 = arith.constant 0 : i32
    %c0_i32_2 = arith.constant 0 : i32
    return %c0_i32, %c0_i32_0, %c0_i32_1 : i32, i32, i32
  }
  func.func @transform_2(%arg0: i32, %arg1: i32, %arg2: i32) -> (i32, i32) {
    %c0_i32 = arith.constant 0 : i32
    %c0_i32_0 = arith.constant 0 : i32
    %c0_i32_1 = arith.constant 0 : i32
    return %c0_i32, %c0_i32_0 : i32, i32
  }
  func.func @transform_3(%arg0: i32, %arg1: i32, %arg2: i32) -> (i32, i32) {
    %c0_i32 = arith.constant 0 : i32
    %c0_i32_0 = arith.constant 0 : i32
    %c0_i32_1 = arith.constant 0 : i32
    return %c0_i32, %c0_i32_0 : i32, i32
  }
  func.func @transform_4(%arg0: i32, %arg1: i32, %arg2: i32) -> (i32, i32) {
    %c1_i32 = arith.constant 1 : i32
    %0 = arith.muli %arg1, %c1_i32 : i32
    %1 = arith.addi %0, %arg2 : i32
    %2 = arith.muli %arg0, %1 : i32
    %c0_i32 = arith.constant 0 : i32
    %c0_i32_0 = arith.constant 0 : i32
    return %2, %c0_i32 : i32, i32
  }
}

module attributes {stable_mosaic.version = 11 : i64} {
  func.func @kernel(%arg0: i32, %arg1: i32, %arg2: memref<1x34x34x32xbf16, #tpu.memory_space<vmem>>, %arg3: memref<9x32x128xbf16, #tpu.memory_space<vmem>>, %arg4: memref<1x128xf32, #tpu.memory_space<vmem>>, %arg5: memref<256x128xbf16, #tpu.memory_space<vmem>>) attributes {dimension_semantics = [#tpu.dimension_semantics<parallel>, #tpu.dimension_semantics<parallel>], iteration_bounds = array<i64: 2, 4>, scalar_prefetch = 0 : i64, scratch_operands = 0 : i64, tpu.core_type = #tpu.core_type<tc>, window_params = [{transform_indices = @transform_0, window_bounds = array<i64: 1, 34, 34, 32>}, {pipeline_mode = #tpu.pipeline_mode<synchronous>, transform_indices = @transform_1, window_bounds = array<i64: 9, 32, 128>}, {pipeline_mode = #tpu.pipeline_mode<synchronous>, transform_indices = @transform_2, window_bounds = array<i64: 1, 128>}, {transform_indices = @transform_3, window_bounds = array<i64: 256, 128>}]} {
    %c8_i32 = arith.constant 8 : i32
    %0 = arith.muli %arg1, %c8_i32 : i32
    %1 = tpu.assume_multiple %0, 8 : i32
    %c0_i32 = arith.constant 0 : i32
    %2 = arith.addi %1, %c0_i32 : i32
    %c0 = arith.constant 0 : index
    %3 = arith.index_cast %2 : i32 to index
    %c0_0 = arith.constant 0 : index
    %c0_1 = arith.constant 0 : index
    %4 = vector.load %arg2[%c0, %3, %c0_0, %c0_1] : memref<1x34x34x32xbf16, #tpu.memory_space<vmem>>, vector<1x8x32x32xbf16>
    %5 = vector.shape_cast %4 : vector<1x8x32x32xbf16> to vector<8x32x32xbf16>
    %6 = vector.shape_cast %5 : vector<8x32x32xbf16> to vector<256x32xbf16>
    %c0_2 = arith.constant 0 : index
    %c0_3 = arith.constant 0 : index
    %c0_4 = arith.constant 0 : index
    %7 = vector.load %arg3[%c0_2, %c0_3, %c0_4] : memref<9x32x128xbf16, #tpu.memory_space<vmem>>, vector<1x32x128xbf16>
    %8 = vector.shape_cast %7 : vector<1x32x128xbf16> to vector<32x128xbf16>
    %cst = arith.constant dense<0.000000e+00> : vector<256x128xf32>
    %9 = tpu.matmul %6, %8, %cst {dimension_numbers = #tpu.dot_dimension_numbers<[1], [0], [0], [1], [0, 0, 1, 1], [], []>} : vector<256x32xbf16>, vector<32x128xbf16>, vector<256x128xf32> -> vector<256x128xf32>
    %c0_i32_5 = arith.constant 0 : i32
    %10 = arith.addi %1, %c0_i32_5 : i32
    %c0_6 = arith.constant 0 : index
    %11 = arith.index_cast %10 : i32 to index
    %c1 = arith.constant 1 : index
    %c0_7 = arith.constant 0 : index
    %12 = vector.load %arg2[%c0_6, %11, %c1, %c0_7] : memref<1x34x34x32xbf16, #tpu.memory_space<vmem>>, vector<1x8x32x32xbf16>
    %13 = vector.shape_cast %12 : vector<1x8x32x32xbf16> to vector<8x32x32xbf16>
    %14 = vector.shape_cast %13 : vector<8x32x32xbf16> to vector<256x32xbf16>
    %c1_8 = arith.constant 1 : index
    %c0_9 = arith.constant 0 : index
    %c0_10 = arith.constant 0 : index
    %15 = vector.load %arg3[%c1_8, %c0_9, %c0_10] : memref<9x32x128xbf16, #tpu.memory_space<vmem>>, vector<1x32x128xbf16>
    %16 = vector.shape_cast %15 : vector<1x32x128xbf16> to vector<32x128xbf16>
    %cst_11 = arith.constant dense<0.000000e+00> : vector<256x128xf32>
    %17 = tpu.matmul %14, %16, %cst_11 {dimension_numbers = #tpu.dot_dimension_numbers<[1], [0], [0], [1], [0, 0, 1, 1], [], []>} : vector<256x32xbf16>, vector<32x128xbf16>, vector<256x128xf32> -> vector<256x128xf32>
    %18 = arith.addf %9, %17 : vector<256x128xf32>
    %c0_i32_12 = arith.constant 0 : i32
    %19 = arith.addi %1, %c0_i32_12 : i32
    %c0_13 = arith.constant 0 : index
    %20 = arith.index_cast %19 : i32 to index
    %c2 = arith.constant 2 : index
    %c0_14 = arith.constant 0 : index
    %21 = vector.load %arg2[%c0_13, %20, %c2, %c0_14] : memref<1x34x34x32xbf16, #tpu.memory_space<vmem>>, vector<1x8x32x32xbf16>
    %22 = vector.shape_cast %21 : vector<1x8x32x32xbf16> to vector<8x32x32xbf16>
    %23 = vector.shape_cast %22 : vector<8x32x32xbf16> to vector<256x32xbf16>
    %c2_15 = arith.constant 2 : index
    %c0_16 = arith.constant 0 : index
    %c0_17 = arith.constant 0 : index
    %24 = vector.load %arg3[%c2_15, %c0_16, %c0_17] : memref<9x32x128xbf16, #tpu.memory_space<vmem>>, vector<1x32x128xbf16>
    %25 = vector.shape_cast %24 : vector<1x32x128xbf16> to vector<32x128xbf16>
    %cst_18 = arith.constant dense<0.000000e+00> : vector<256x128xf32>
    %26 = tpu.matmul %23, %25, %cst_18 {dimension_numbers = #tpu.dot_dimension_numbers<[1], [0], [0], [1], [0, 0, 1, 1], [], []>} : vector<256x32xbf16>, vector<32x128xbf16>, vector<256x128xf32> -> vector<256x128xf32>
    %27 = arith.addf %18, %26 : vector<256x128xf32>
    %c1_i32 = arith.constant 1 : i32
    %28 = arith.addi %1, %c1_i32 : i32
    %c0_19 = arith.constant 0 : index
    %29 = arith.index_cast %28 : i32 to index
    %c0_20 = arith.constant 0 : index
    %c0_21 = arith.constant 0 : index
    %30 = vector.load %arg2[%c0_19, %29, %c0_20, %c0_21] : memref<1x34x34x32xbf16, #tpu.memory_space<vmem>>, vector<1x8x32x32xbf16>
    %31 = vector.shape_cast %30 : vector<1x8x32x32xbf16> to vector<8x32x32xbf16>
    %32 = vector.shape_cast %31 : vector<8x32x32xbf16> to vector<256x32xbf16>
    %c3 = arith.constant 3 : index
    %c0_22 = arith.constant 0 : index
    %c0_23 = arith.constant 0 : index
    %33 = vector.load %arg3[%c3, %c0_22, %c0_23] : memref<9x32x128xbf16, #tpu.memory_space<vmem>>, vector<1x32x128xbf16>
    %34 = vector.shape_cast %33 : vector<1x32x128xbf16> to vector<32x128xbf16>
    %cst_24 = arith.constant dense<0.000000e+00> : vector<256x128xf32>
    %35 = tpu.matmul %32, %34, %cst_24 {dimension_numbers = #tpu.dot_dimension_numbers<[1], [0], [0], [1], [0, 0, 1, 1], [], []>} : vector<256x32xbf16>, vector<32x128xbf16>, vector<256x128xf32> -> vector<256x128xf32>
    %36 = arith.addf %27, %35 : vector<256x128xf32>
    %c1_i32_25 = arith.constant 1 : i32
    %37 = arith.addi %1, %c1_i32_25 : i32
    %c0_26 = arith.constant 0 : index
    %38 = arith.index_cast %37 : i32 to index
    %c1_27 = arith.constant 1 : index
    %c0_28 = arith.constant 0 : index
    %39 = vector.load %arg2[%c0_26, %38, %c1_27, %c0_28] : memref<1x34x34x32xbf16, #tpu.memory_space<vmem>>, vector<1x8x32x32xbf16>
    %40 = vector.shape_cast %39 : vector<1x8x32x32xbf16> to vector<8x32x32xbf16>
    %41 = vector.shape_cast %40 : vector<8x32x32xbf16> to vector<256x32xbf16>
    %c4 = arith.constant 4 : index
    %c0_29 = arith.constant 0 : index
    %c0_30 = arith.constant 0 : index
    %42 = vector.load %arg3[%c4, %c0_29, %c0_30] : memref<9x32x128xbf16, #tpu.memory_space<vmem>>, vector<1x32x128xbf16>
    %43 = vector.shape_cast %42 : vector<1x32x128xbf16> to vector<32x128xbf16>
    %cst_31 = arith.constant dense<0.000000e+00> : vector<256x128xf32>
    %44 = tpu.matmul %41, %43, %cst_31 {dimension_numbers = #tpu.dot_dimension_numbers<[1], [0], [0], [1], [0, 0, 1, 1], [], []>} : vector<256x32xbf16>, vector<32x128xbf16>, vector<256x128xf32> -> vector<256x128xf32>
    %45 = arith.addf %36, %44 : vector<256x128xf32>
    %c1_i32_32 = arith.constant 1 : i32
    %46 = arith.addi %1, %c1_i32_32 : i32
    %c0_33 = arith.constant 0 : index
    %47 = arith.index_cast %46 : i32 to index
    %c2_34 = arith.constant 2 : index
    %c0_35 = arith.constant 0 : index
    %48 = vector.load %arg2[%c0_33, %47, %c2_34, %c0_35] : memref<1x34x34x32xbf16, #tpu.memory_space<vmem>>, vector<1x8x32x32xbf16>
    %49 = vector.shape_cast %48 : vector<1x8x32x32xbf16> to vector<8x32x32xbf16>
    %50 = vector.shape_cast %49 : vector<8x32x32xbf16> to vector<256x32xbf16>
    %c5 = arith.constant 5 : index
    %c0_36 = arith.constant 0 : index
    %c0_37 = arith.constant 0 : index
    %51 = vector.load %arg3[%c5, %c0_36, %c0_37] : memref<9x32x128xbf16, #tpu.memory_space<vmem>>, vector<1x32x128xbf16>
    %52 = vector.shape_cast %51 : vector<1x32x128xbf16> to vector<32x128xbf16>
    %cst_38 = arith.constant dense<0.000000e+00> : vector<256x128xf32>
    %53 = tpu.matmul %50, %52, %cst_38 {dimension_numbers = #tpu.dot_dimension_numbers<[1], [0], [0], [1], [0, 0, 1, 1], [], []>} : vector<256x32xbf16>, vector<32x128xbf16>, vector<256x128xf32> -> vector<256x128xf32>
    %54 = arith.addf %45, %53 : vector<256x128xf32>
    %c2_i32 = arith.constant 2 : i32
    %55 = arith.addi %1, %c2_i32 : i32
    %c0_39 = arith.constant 0 : index
    %56 = arith.index_cast %55 : i32 to index
    %c0_40 = arith.constant 0 : index
    %c0_41 = arith.constant 0 : index
    %57 = vector.load %arg2[%c0_39, %56, %c0_40, %c0_41] : memref<1x34x34x32xbf16, #tpu.memory_space<vmem>>, vector<1x8x32x32xbf16>
    %58 = vector.shape_cast %57 : vector<1x8x32x32xbf16> to vector<8x32x32xbf16>
    %59 = vector.shape_cast %58 : vector<8x32x32xbf16> to vector<256x32xbf16>
    %c6 = arith.constant 6 : index
    %c0_42 = arith.constant 0 : index
    %c0_43 = arith.constant 0 : index
    %60 = vector.load %arg3[%c6, %c0_42, %c0_43] : memref<9x32x128xbf16, #tpu.memory_space<vmem>>, vector<1x32x128xbf16>
    %61 = vector.shape_cast %60 : vector<1x32x128xbf16> to vector<32x128xbf16>
    %cst_44 = arith.constant dense<0.000000e+00> : vector<256x128xf32>
    %62 = tpu.matmul %59, %61, %cst_44 {dimension_numbers = #tpu.dot_dimension_numbers<[1], [0], [0], [1], [0, 0, 1, 1], [], []>} : vector<256x32xbf16>, vector<32x128xbf16>, vector<256x128xf32> -> vector<256x128xf32>
    %63 = arith.addf %54, %62 : vector<256x128xf32>
    %c2_i32_45 = arith.constant 2 : i32
    %64 = arith.addi %1, %c2_i32_45 : i32
    %c0_46 = arith.constant 0 : index
    %65 = arith.index_cast %64 : i32 to index
    %c1_47 = arith.constant 1 : index
    %c0_48 = arith.constant 0 : index
    %66 = vector.load %arg2[%c0_46, %65, %c1_47, %c0_48] : memref<1x34x34x32xbf16, #tpu.memory_space<vmem>>, vector<1x8x32x32xbf16>
    %67 = vector.shape_cast %66 : vector<1x8x32x32xbf16> to vector<8x32x32xbf16>
    %68 = vector.shape_cast %67 : vector<8x32x32xbf16> to vector<256x32xbf16>
    %c7 = arith.constant 7 : index
    %c0_49 = arith.constant 0 : index
    %c0_50 = arith.constant 0 : index
    %69 = vector.load %arg3[%c7, %c0_49, %c0_50] : memref<9x32x128xbf16, #tpu.memory_space<vmem>>, vector<1x32x128xbf16>
    %70 = vector.shape_cast %69 : vector<1x32x128xbf16> to vector<32x128xbf16>
    %cst_51 = arith.constant dense<0.000000e+00> : vector<256x128xf32>
    %71 = tpu.matmul %68, %70, %cst_51 {dimension_numbers = #tpu.dot_dimension_numbers<[1], [0], [0], [1], [0, 0, 1, 1], [], []>} : vector<256x32xbf16>, vector<32x128xbf16>, vector<256x128xf32> -> vector<256x128xf32>
    %72 = arith.addf %63, %71 : vector<256x128xf32>
    %c2_i32_52 = arith.constant 2 : i32
    %73 = arith.addi %1, %c2_i32_52 : i32
    %c0_53 = arith.constant 0 : index
    %74 = arith.index_cast %73 : i32 to index
    %c2_54 = arith.constant 2 : index
    %c0_55 = arith.constant 0 : index
    %75 = vector.load %arg2[%c0_53, %74, %c2_54, %c0_55] : memref<1x34x34x32xbf16, #tpu.memory_space<vmem>>, vector<1x8x32x32xbf16>
    %76 = vector.shape_cast %75 : vector<1x8x32x32xbf16> to vector<8x32x32xbf16>
    %77 = vector.shape_cast %76 : vector<8x32x32xbf16> to vector<256x32xbf16>
    %c8 = arith.constant 8 : index
    %c0_56 = arith.constant 0 : index
    %c0_57 = arith.constant 0 : index
    %78 = vector.load %arg3[%c8, %c0_56, %c0_57] : memref<9x32x128xbf16, #tpu.memory_space<vmem>>, vector<1x32x128xbf16>
    %79 = vector.shape_cast %78 : vector<1x32x128xbf16> to vector<32x128xbf16>
    %cst_58 = arith.constant dense<0.000000e+00> : vector<256x128xf32>
    %80 = tpu.matmul %77, %79, %cst_58 {dimension_numbers = #tpu.dot_dimension_numbers<[1], [0], [0], [1], [0, 0, 1, 1], [], []>} : vector<256x32xbf16>, vector<32x128xbf16>, vector<256x128xf32> -> vector<256x128xf32>
    %81 = arith.addf %72, %80 : vector<256x128xf32>
    %c0_59 = arith.constant 0 : index
    %c0_60 = arith.constant 0 : index
    %82 = vector.load %arg4[%c0_59, %c0_60] : memref<1x128xf32, #tpu.memory_space<vmem>>, vector<1x128xf32>
    %83 = vector.broadcast %82 : vector<1x128xf32> to vector<256x128xf32>
    %84 = arith.addf %81, %83 : vector<256x128xf32>
    %85 = math.tanh %84 : vector<256x128xf32>
    %86 = arith.truncf %85 : vector<256x128xf32> to vector<256x128xbf16>
    %c0_61 = arith.constant 0 : index
    %c0_62 = arith.constant 0 : index
    %87 = vector.load %arg5[%c0_61, %c0_62] : memref<256x128xbf16, #tpu.memory_space<vmem>>, vector<256x128xbf16>
    tpu.vector_store %arg5[%c0_61, %c0_62], %86 {strides = array<i32>} : memref<256x128xbf16, #tpu.memory_space<vmem>>, vector<256x128xbf16>,
    return
  }
  func.func @transform_0(%arg0: i32, %arg1: i32) -> (i32, i32, i32, i32) {
    %c0_i32 = arith.constant 0 : i32
    %c0_i32_0 = arith.constant 0 : i32
    %c0_i32_1 = arith.constant 0 : i32
    %c0_i32_2 = arith.constant 0 : i32
    return %arg0, %c0_i32, %c0_i32_0, %c0_i32_1 : i32, i32, i32, i32
  }
  func.func @transform_1(%arg0: i32, %arg1: i32) -> (i32, i32, i32) {
    %c0_i32 = arith.constant 0 : i32
    %c0_i32_0 = arith.constant 0 : i32
    %c0_i32_1 = arith.constant 0 : i32
    %c0_i32_2 = arith.constant 0 : i32
    return %c0_i32, %c0_i32_0, %c0_i32_1 : i32, i32, i32
  }
  func.func @transform_2(%arg0: i32, %arg1: i32) -> (i32, i32) {
    %c0_i32 = arith.constant 0 : i32
    %c0_i32_0 = arith.constant 0 : i32
    %c0_i32_1 = arith.constant 0 : i32
    return %c0_i32, %c0_i32_0 : i32, i32
  }
  func.func @transform_3(%arg0: i32, %arg1: i32) -> (i32, i32) {
    %c4_i32 = arith.constant 4 : i32
    %0 = arith.muli %arg0, %c4_i32 : i32
    %1 = arith.addi %0, %arg1 : i32
    %c0_i32 = arith.constant 0 : i32
    %c0_i32_0 = arith.constant 0 : i32
    return %1, %c0_i32 : i32, i32
  }
}

</mosaic_0001>

<bundles_post_ra>
// kernel: generator_forward.5
= control target key start
LH: loop header
LB: loop body
LE: loop exit
PB: predicated region body
PF: predicated region fallthrough
CT: control target
= control target key end

     0   :  { %9 = vsyncpa [#allocation3], 0  ;;  %s989_s0 = inlined_call_operand.vmem [shape: bf16[2,32], index: 0, kind: input, shape index: {}]   ;;  %s990_s1 = inlined_call_operand.hbm [shape: bf16[32,1024], index: 1, kind: input, shape index: {}]   ;;  %s991_s2 = inlined_call_operand.hbm [shape: f32[1,1024], index: 2, kind: input, shape index: {}]   ;;  %s992_s3 = inlined_call_operand.hbm [shape: f32[1,1024], index: 3, kind: input, shape index: {}]   ;;  %s993_s4 = inlined_call_operand.vmem [shape: bf16[2,1024], index: 4, kind: output, shape index: {}]  }
   0x1   :  { %10 = vsyncpa [#allocation5], 0  ;;  %s788_s15 = smov [#allocation4]   ;;  %s789_s17 = smov [#allocation2]  }
   0x2   :  { %s31_s16 = sshll.u32 %s788_s15, 4  ;;  %s18_s18 = sshll.u32 %s789_s17, 4  ;;  %s32_s16 = int_to_ptr.vmem [resolvable:$true] %s31_s16  ;;  %s820_s18 = int_to_ptr.vmem [resolvable:$true] %s18_s18 }
   0x3   :  { %s718_s21 = scalar_lea.hbm %s991_s2, 128 }
   0x4   :  { %p719_p0 = scmp.ne.s32.totalorder %s991_s2, %s718_s21  ;;  %p722_p1 = scmp.lt.u32.totalorder %s718_s21, %s991_s2 }
   0x6   :  { %p724_p2 = pnand %p722_p1, %p719_p0 }
   0x8   :  { %727 = shalt.err (!%p724_p2)
}
   0x9   :  { %s728_s26 = scalar_lea.vmem %s32_s16, 128  ;;  %p733_p4 = scmp.lt.s32.totalorder %s32_s16, %s32_s16 }
   0xa   :  { %p729_p3 = scmp.ne.s32.totalorder %s32_s16, %s728_s26  ;;  %p734_p5 = scmp.lt.s32.totalorder %s728_s26, %s728_s26 }
   0xc   :  { %p735_p6 = por %p734_p5, %p733_p4 }
   0xe   :  { %p736_p7 = pnand %p735_p6, %p729_p3 }
  0x10   :  { %739 = shalt.err (!%p736_p7)
}
  0x11   :  { %34 = dma.hbm_to_vmem [thread:$0]  %s991_s2, 128, %s32_s16, [#allocation5]  }
  0x12   :  { %s740_s5 = scalar_lea.hbm %s990_s1, 2048 }
  0x13   :  { %p741_p8 = scmp.ne.s32.totalorder %s990_s1, %s740_s5  ;;  %p744_p9 = scmp.lt.u32.totalorder %s740_s5, %s990_s1 }
  0x15   :  { %p746_p10 = pnand %p744_p9, %p741_p8 }
  0x17   :  { %749 = shalt.err (!%p746_p10)
}
  0x18   :  { %s750_s10 = scalar_lea.vmem %s820_s18, 2048  ;;  %p755_p12 = scmp.lt.s32.totalorder %s820_s18, %s820_s18 }
  0x19   :  { %p751_p11 = scmp.ne.s32.totalorder %s820_s18, %s750_s10  ;;  %p756_p13 = scmp.lt.s32.totalorder %s750_s10, %s750_s10 }
  0x1b   :  { %p757_p0 = por %p756_p13, %p755_p12 }
  0x1d   :  { %p758_p1 = pnand %p757_p0, %p751_p11 }
  0x1f   :  { %761 = shalt.err (!%p758_p1)
}
  0x20   :  { %s790_s2 = smov 512   ;;  %s791_s11 = smov 32  }
  0x21   :  { %24 = dma.hbm_to_vmem [thread:$0]  %s990_s1, 2048, %s820_s18, [#allocation3], %s790_s2, %s790_s2, %s791_s11  }
  0x22   :  { %s792_s14 = smov [#allocation6]   ;;  %s762_s19 = scalar_lea.hbm %s992_s3, 128 }
  0x23   :  { %s41_s15 = sshll.u32 %s792_s14, 4  ;;  %p763_p2 = scmp.ne.s32.totalorder %s992_s3, %s762_s19  ;;  %s42_s15 = int_to_ptr.vmem [resolvable:$true] %s41_s15 }
  0x24   :  { %p766_p3 = scmp.lt.u32.totalorder %s762_s19, %s992_s3 }
  0x26   :  { %p768_p4 = pnand %p766_p3, %p763_p2 }
  0x28   :  { %771 = shalt.err (!%p768_p4)
}
  0x29   :  { %s772_s24 = scalar_lea.vmem %s42_s15, 128  ;;  %p777_p6 = scmp.lt.s32.totalorder %s42_s15, %s42_s15 }
  0x2a   :  { %p773_p5 = scmp.ne.s32.totalorder %s42_s15, %s772_s24  ;;  %p778_p7 = scmp.lt.s32.totalorder %s772_s24, %s772_s24 }
  0x2c   :  { %p779_p8 = por %p778_p7, %p777_p6 }
  0x2e   :  { %p780_p9 = pnand %p779_p8, %p773_p5 }
  0x30   :  { %783 = shalt.err (!%p780_p9)
}
  0x31   :  { %44 = dma.hbm_to_vmem [thread:$0]  %s992_s3, 128, %s42_s15, [#allocation5]  }
  0x32   :  { %784 = dma.done.wait [#allocation3], 2048  }
  0x33   :  { %785 = vsyncadd [#allocation3], 4294965248 }
  0x34   :  { %786 = dma.done.wait [#allocation5], 256  }
  0x35   :  { %787 = vsyncadd [#allocation5], 4294967040  ;;  %v793_v0 = vmov 0   ;;  %v56_v1 = vld [vmem:[#allocation2] sm:$0xff]  ;;  %v57_v3 = vld [vmem:[#allocation2 + $0x8] sm:$0xff]  ;;  %vm152_vm0 = vcmask 261120   ;;  %v492_v60 = vlaneseq }
  0x36   :  { %188 = vmatprep.mubr.bf16.mxu0 %v793_v0  ;;  %229 = vmatprep.mubr.bf16.mxu1 %v793_v0  ;;  %v60_v2 = vld [vmem:[#allocation2 + $0x20] sm:$0xff]  ;;  %v61_v5 = vld [vmem:[#allocation2 + $0x28] sm:$0xff]  ;;  %v58_v15 = vld [vmem:[#allocation2 + $0x10] sm:$0xff]  ;;  %vm320_vm1 = vcmask 1041408  }
  0x37   :  { %v672_v4 = vcombine.high %v56_v1, %v60_v2  ;;  %v671_v6 = vcombine.low %v56_v1, %v60_v2  ;;  %v64_v7 = vld [vmem:[#allocation2 + $0x40] sm:$0xff]  ;;  %v674_v9 = vcombine.high %v57_v3, %v61_v5  ;;  %v673_v10 = vcombine.low %v57_v3, %v61_v5  ;;  %v65_v12 = vld [vmem:[#allocation2 + $0x48] sm:$0xff]  ;;  %v62_v16 = vld [vmem:[#allocation2 + $0x30] sm:$0xff] }
  0x38   :  { %v68_v8 = vld [vmem:[#allocation2 + $0x60] sm:$0xff]  ;;  %v69_v13 = vld [vmem:[#allocation2 + $0x68] sm:$0xff]  ;;  %v59_v17 = vld [vmem:[#allocation2 + $0x18] sm:$0xff]  ;;  %v676_v21 = vcombine.high %v58_v15, %v62_v16  ;;  %v675_v28 = vcombine.low %v58_v15, %v62_v16 }
  0x39   :  { %v680_v11 = vcombine.high %v64_v7, %v68_v8  ;;  %156 = vmatprep.subr.bf16.mxu0 %v672_v4  ;;  %v682_v14 = vcombine.high %v65_v12, %v69_v13  ;;  %197 = vmatprep.subr.bf16.mxu1 %v674_v9  ;;  %v679_v18 = vcombine.low %v64_v7, %v68_v8  ;;  %v63_v19 = vld [vmem:[#allocation2 + $0x38] sm:$0xff]  ;;  %v66_v23 = vld [vmem:[#allocation2 + $0x50] sm:$0xff]  ;;  %v55_v27 = vld [vmem:[%s989_s0] sm:$0x1] }
  0x3a   :  { %157 = vmatpush1.bf16.msra.mxu0 %v671_v6  ;;  %198 = vmatpush1.bf16.msra.mxu1 %v673_v10  ;;  %v681_v20 = vcombine.low %v65_v12, %v69_v13  ;;  %v678_v22 = vcombine.high %v59_v17, %v63_v19  ;;  %v70_v24 = vld [vmem:[#allocation2 + $0x70] sm:$0xff]  ;;  %v67_v25 = vld [vmem:[#allocation2 + $0x58] sm:$0xff]  ;;  %v677_v29 = vcombine.low %v59_v17, %v63_v19 }
  0x3b   :  { %158 = vmatprep.subr.bf16.mxu0 %v680_v11  ;;  %199 = vmatprep.subr.bf16.mxu1 %v682_v14  ;;  %v71_v26 = vld [vmem:[#allocation2 + $0x78] sm:$0xff]  ;;  %v684_v30 = vcombine.high %v66_v23, %v70_v24  ;;  %v683_v32 = vcombine.low %v66_v23, %v70_v24 }
  0x3c   :  { %v686_v31 = vcombine.high %v67_v25, %v71_v26  ;;  %v685_v33 = vcombine.low %v67_v25, %v71_v26 }
  0x3e   :  { %159 = vmatpush1.bf16.msra.mxu0 %v679_v18  ;;  %200 = vmatpush1.bf16.msra.mxu1 %v681_v20 }
  0x3f   :  { %238 = vmatprep.subr.bf16.mxu0 %v676_v21  ;;  %279 = vmatprep.subr.bf16.mxu1 %v678_v22 }
  0x41   :  { %687 = vmatmul.mubr.msk.bf16.vlgmr.msra.gmra.mrb[0].mxu0 %vm152_vm0, %v55_v27  ;;  %688 = vmatmul.mubr.msk.bf16.vlgmr.msra.gmra.mrb[0].mxu1 %vm152_vm0, %v55_v27 }
  0x42   :  { %239 = vmatpush1.bf16.msra.mxu0 %v675_v28  ;;  %280 = vmatpush1.bf16.msra.mxu1 %v677_v29 }
  0x43   :  { %240 = vmatprep.subr.bf16.mxu0 %v684_v30  ;;  %281 = vmatprep.subr.bf16.mxu1 %v686_v31 }
  0x44   :  { %270 = vmatprep.mubr.bf16.mxu0 %v793_v0  ;;  %311 = vmatprep.mubr.bf16.mxu1 %v793_v0 }
  0x46   :  { %241 = vmatpush1.bf16.msra.mxu0 %v683_v32  ;;  %282 = vmatpush1.bf16.msra.mxu1 %v685_v33 }
  0x49   :  { %689 = vmatmul.mubr.msk.bf16.vlgmr.msra.gmra.mrb[4].mxu0 %vm152_vm0, %v55_v27  ;;  %690 = vmatmul.mubr.msk.bf16.vlgmr.msra.gmra.mrb[4].mxu1 %vm152_vm0, %v55_v27 }
 0x114   :  { %v190_v34 = vpop.f32.mrb[0].mxu0  ;;  %v871_v36 = vpop.f32.mrb[0].mxu1 }
 0x115   :  { %v321_v35 = vsel %vm320_vm1, %v190_v34, 0.0  ;;  %v873_v37 = vpop.f32.mrb[1].mxu0  ;;  %v335_v39 = vsel %vm320_vm1, %v871_v36, 0.0  ;;  %v879_v41 = vpop.f32.mrb[1].mxu1 }
 0x116   :  { %v322_v38 = vrot.slane %v321_v35, 4  ;;  %v328_v40 = vsel %vm320_vm1, %v873_v37, 0.0  ;;  %v194_v42 = vpop.f32.mrb[2].mxu0  ;;  %v336_v43 = vrot.slane %v335_v39, 4  ;;  %v342_v45 = vsel %vm320_vm1, %v879_v41, 0.0  ;;  %v235_v46 = vpop.f32.mrb[2].mxu1 }
 0x117   :  { %v329_v44 = vrot.slane %v328_v40, 4  ;;  %v195_v47 = vpop.f32.mrb[3].mxu0  ;;  %v343_v49 = vrot.slane %v342_v45, 4  ;;  %v236_v50 = vpop.f32.mrb[3].mxu1 }
 0x118   :  { %v323_v48 = vadd.f32 %v322_v38, %v321_v35  ;;  %v337_v51 = vadd.f32 %v336_v43, %v335_v39 }
 0x119   :  { %v330_v52 = vadd.f32 %v329_v44, %v328_v40  ;;  %v344_v54 = vadd.f32 %v343_v49, %v342_v45 }
 0x11a   :  { %v324_v53 = vrot.slane %v323_v48, 2  ;;  %v338_v55 = vrot.slane %v337_v51, 2 }
 0x11b   :  { %v331_v56 = vrot.slane %v330_v52, 2  ;;  %v345_v58 = vrot.slane %v344_v54, 2 }
 0x11c   :  { %v325_v57 = vadd.f32 %v324_v53, %v323_v48  ;;  %v883_v59 = vpop.f32.mrb[4].mxu0  ;;  %v339_v61 = vadd.f32 %v338_v55, %v337_v51  ;;  %v887_v0 = vpop.f32.mrb[4].mxu1 }
 0x11d   :  { %v332_v62 = vadd.f32 %v331_v56, %v330_v52  ;;  %v349_v63 = vsel %vm320_vm1, %v883_v59, 0.0  ;;  %v889_v1 = vpop.f32.mrb[5].mxu0  ;;  %v346_v3 = vadd.f32 %v345_v58, %v344_v54  ;;  %v363_v5 = vsel %vm320_vm1, %v887_v0, 0.0  ;;  %v893_v6 = vpop.f32.mrb[5].mxu1 }
 0x11e   :  { %v326_v2 = vrot.slane %v325_v57, 1  ;;  %v350_v4 = vrot.slane %v349_v63, 4  ;;  %v276_v7 = vpop.f32.mrb[6].mxu0  ;;  %v340_v8 = vrot.slane %v339_v61, 1  ;;  %v364_v10 = vrot.slane %v363_v5, 4  ;;  %v317_v12 = vpop.f32.mrb[6].mxu1 }
 0x11f   :  { %v333_v9 = vrot.slane %v332_v62, 1  ;;  %v356_v11 = vsel %vm320_vm1, %v889_v1, 0.0  ;;  %v277_v13 = vpop.f32.mrb[7].mxu0  ;;  %v347_v15 = vrot.slane %v346_v3, 1  ;;  %v318_v18 = vpop.f32.mrb[7].mxu1  ;;  %v370_v22 = vsel %vm320_vm1, %v893_v6, 0.0 }
 0x120   :  { %v327_v14 = vadd.f32 %v326_v2, %v325_v57  ;;  %v351_v16 = vadd.f32 %v350_v4, %v349_v63  ;;  %v357_v17 = vrot.slane %v356_v11, 4  ;;  %v341_v19 = vadd.f32 %v340_v8, %v339_v61 }
 0x121   :  { %v334_v20 = vadd.f32 %v333_v9, %v332_v62  ;;  %v365_v21 = vadd.f32 %v364_v10, %v363_v5  ;;  %v348_v24 = vadd.f32 %v347_v15, %v346_v3  ;;  %v371_v30 = vrot.slane %v370_v22, 4 }
 0x122   :  { %v378_v23 = vmul.f32 0.5, %v327_v14  ;;  %v352_v25 = vrot.slane %v351_v16, 2  ;;  %v358_v26 = vadd.f32 %v357_v17, %v356_v11  ;;  %v380_v27 = vmul.f32 0.5, %v341_v19 }
 0x123   :  { %v379_v28 = vmul.f32 0.5, %v334_v20  ;;  %v366_v29 = vrot.slane %v365_v21, 2  ;;  %v381_v32 = vmul.f32 0.5, %v348_v24  ;;  %v372_v42 = vadd.f32 %v371_v30, %v370_v22 }
 0x124   :  { %v899_v31 = vsub.f32 %v190_v34, %v378_v23  ;;  %v353_v33 = vadd.f32 %v352_v25, %v351_v16  ;;  %v359_v35 = vrot.slane %v358_v26, 2  ;;  %v902_v38 = vsub.f32 %v871_v36, %v380_v27 }
 0x125   :  { %v905_v39 = vsub.f32 %v873_v37, %v379_v28  ;;  %v367_v40 = vadd.f32 %v366_v29, %v365_v21  ;;  %v910_v44 = vsub.f32 %v879_v41, %v381_v32  ;;  %v373_v48 = vrot.slane %v372_v42, 2 }
 0x126   :  { %v394_v43 = vmul.f32 %v899_v31, %v899_v31  ;;  %v354_v45 = vrot.slane %v353_v33, 1  ;;  %v360_v34 = vadd.f32 %v359_v35, %v358_v26  ;;  %v396_v46 = vmul.f32 %v902_v38, %v902_v38 }
 0x127   :  { %v395_v36 = vmul.f32 %v905_v39, %v905_v39  ;;  %v368_v47 = vrot.slane %v367_v40, 1  ;;  %v397_v49 = vmul.f32 %v910_v44, %v910_v44  ;;  %v374_v7 = vadd.f32 %v373_v48, %v372_v42 }
 0x128   :  { %v402_v37 = vsel %vm320_vm1, %v394_v43, 0.0  ;;  %v355_v50 = vadd.f32 %v354_v45, %v353_v33  ;;  %v361_v51 = vrot.slane %v360_v34, 1  ;;  %v416_v41 = vsel %vm320_vm1, %v396_v46, 0.0 }
 0x129   :  { %v403_v52 = vrot.slane %v402_v37, 4  ;;  %v409_v53 = vsel %vm320_vm1, %v395_v36, 0.0  ;;  %v369_v54 = vadd.f32 %v368_v47, %v367_v40  ;;  %v417_v55 = vrot.slane %v416_v41, 4 }
 0x12a   :  { %v410_v56 = vrot.slane %v409_v53, 4  ;;  %v423_v57 = vsel %vm320_vm1, %v397_v49, 0.0  ;;  %v382_v58 = vmul.f32 0.5, %v355_v50  ;;  %v362_v2 = vadd.f32 %v361_v51, %v360_v34 }
 0x12b   :  { %v404_v61 = vadd.f32 %v403_v52, %v402_v37  ;;  %v424_v62 = vrot.slane %v423_v57, 4  ;;  %v384_v63 = vmul.f32 0.5, %v369_v54  ;;  %v418_v3 = vadd.f32 %v417_v55, %v416_v41 }
 0x12c   :  { %v411_v4 = vadd.f32 %v410_v56, %v409_v53  ;;  %v923_v5 = vsub.f32 %v883_v59, %v382_v58  ;;  %v383_v11 = vmul.f32 0.5, %v362_v2  ;;  %v375_v15 = vrot.slane %v374_v7, 1 }
 0x12d   :  { %v405_v8 = vrot.slane %v404_v61, 2  ;;  %v425_v9 = vadd.f32 %v424_v62, %v423_v57  ;;  %v926_v10 = vsub.f32 %v887_v0, %v384_v63  ;;  %v419_v12 = vrot.slane %v418_v3, 2 }
 0x12e   :  { %v412_v13 = vrot.slane %v411_v4, 2  ;;  %v398_v14 = vmul.f32 %v923_v5, %v923_v5  ;;  %v933_v59 = vsub.f32 %v889_v1, %v383_v11  ;;  %v376_v21 = vadd.f32 %v375_v15, %v374_v7 }
 0x12f   :  { %v406_v16 = vadd.f32 %v405_v8, %v404_v61  ;;  %v426_v17 = vrot.slane %v425_v9, 2  ;;  %v400_v18 = vmul.f32 %v926_v10, %v926_v10  ;;  %v420_v19 = vadd.f32 %v419_v12, %v418_v3 }
 0x130   :  { %v413_v20 = vadd.f32 %v412_v13, %v411_v4  ;;  %v430_v0 = vsel %vm320_vm1, %v398_v14, 0.0  ;;  %v399_v29 = vmul.f32 %v933_v59, %v933_v59  ;;  %v385_v33 = vmul.f32 0.5, %v376_v21 }
 0x131   :  { %v407_v22 = vrot.slane %v406_v16, 1  ;;  %v427_v23 = vadd.f32 %v426_v17, %v425_v9  ;;  %v431_v24 = vrot.slane %v430_v0, 4  ;;  %v444_v25 = vsel %vm320_vm1, %v400_v18, 0.0 }
 0x132   :  { %v421_v26 = vrot.slane %v420_v19, 1  ;;  %v414_v27 = vrot.slane %v413_v20, 1  ;;  %v445_v28 = vrot.slane %v444_v25, 4  ;;  %v437_v43 = vsel %vm320_vm1, %v399_v29, 0.0 }
 0x133   :  { %v408_v30 = vadd.f32 %v407_v22, %v406_v16  ;;  %v428_v32 = vrot.slane %v427_v23, 1  ;;  %v432_v1 = vadd.f32 %v431_v24, %v430_v0  ;;  %v438_v36 = vrot.slane %v437_v43, 4  ;;  %v955_v0 = vld [vmem:[#allocation6] sm:$0xff] }
 0x134   :  { %v422_v35 = vadd.f32 %v421_v26, %v420_v19  ;;  %v415_v40 = vadd.f32 %v414_v27, %v413_v20  ;;  %v446_v42 = vadd.f32 %v445_v28, %v444_v25  ;;  %v941_v49 = vsub.f32 %v893_v6, %v385_v33 }
 0x135   :  { %v458_v45 = vmul.f32 0.5, %v408_v30  ;;  %v429_v34 = vadd.f32 %v428_v32, %v427_v23  ;;  %v433_v46 = vrot.slane %v432_v1, 2  ;;  %v439_v41 = vadd.f32 %v438_v36, %v437_v43 }
 0x136   :  { %v460_v47 = vmul.f32 0.5, %v422_v35  ;;  %v459_v48 = vmul.f32 0.5, %v415_v40  ;;  %v447_v37 = vrot.slane %v446_v42, 2  ;;  %v401_v56 = vmul.f32 %v941_v49, %v941_v49 }
 0x137   :  { %v466_v50 = vadd.f32 1e-05, %v458_v45  ;;  %v461_v51 = vmul.f32 0.5, %v429_v34  ;;  %v434_v52 = vadd.f32 %v433_v46, %v432_v1  ;;  %v440_v61 = vrot.slane %v439_v41, 2 }
 0x138   :  { %v468_v53 = vadd.f32 1e-05, %v460_v47  ;;  %v467_v54 = vadd.f32 1e-05, %v459_v48  ;;  %v448_v55 = vadd.f32 %v447_v37, %v446_v42  ;;  %v946_v62 = vshrl.u32 %v492_v60, 7  ;;  %v951_v60 = vld [vmem:[#allocation4] sm:$0xff] }
 0x139   :  { %702 = vrsqrt.f32 %v466_v50  ;;  %v469_v57 = vadd.f32 1e-05, %v461_v51  ;;  %v435_v58 = vrot.slane %v434_v52, 1  ;;  %v451_v63 = vsel %vm320_vm1, %v401_v56, 0.0 }
 0x13a   :  { %704 = vrsqrt.f32 %v468_v53  ;;  %v449_v6 = vrot.slane %v448_v55, 1  ;;  %v441_v3 = vadd.f32 %v440_v61, %v439_v41  ;;  %v452_v4 = vrot.slane %v451_v63, 4 }
 0x13b   :  { %706 = vrsqrt.f32 %v467_v54  ;;  %v436_v2 = vadd.f32 %v435_v58, %v434_v52  ;;  %v494_v12 = vsub.s32 0, %v946_v62  ;;  %v502_v13 = vsub.s32 2, %v946_v62 }
 0x13c   :  { %708 = vrsqrt.f32 %v469_v57  ;;  %v450_v7 = vadd.f32 %v449_v6, %v448_v55  ;;  %v442_v9 = vrot.slane %v441_v3, 1  ;;  %v453_v11 = vadd.f32 %v452_v4, %v451_v63 }
 0x13d   :  { %v462_v8 = vmul.f32 0.5, %v436_v2  ;;  %v498_v15 = vsub.s32 1, %v946_v62  ;;  %v506_v19 = vsub.s32 3, %v946_v62  ;;  %v495_v23 = vrot.slane %v951_v60, %v494_v12 }
 0x13e   :  { %v464_v14 = vmul.f32 0.5, %v450_v7  ;;  %v443_v17 = vadd.f32 %v442_v9, %v441_v3  ;;  %v454_v18 = vrot.slane %v453_v11, 2  ;;  %v503_v25 = vrot.slane %v951_v60, %v502_v13 }
 0x13f   :  { %v470_v16 = vadd.f32 1e-05, %v462_v8  ;;  %v499_v26 = vrot.slane %v951_v60, %v498_v15  ;;  %v545_v32 = vrot.slane %v955_v0, %v494_v12  ;;  %v553_v1 = vrot.slane %v955_v0, %v502_v13 }
 0x140   :  { %v472_v20 = vadd.f32 1e-05, %v464_v14  ;;  %v463_v21 = vmul.f32 0.5, %v443_v17  ;;  %v455_v22 = vadd.f32 %v454_v18, %v453_v11  ;;  %v794_v33 = vmov 1966171168  }
 0x141   :  { %710 = vrsqrt.f32 %v470_v16  ;;  %v619_v35 = vunpack.c.l.s4 %v794_v33  ;;  %v507_v43 = vrot.slane %v951_v60, %v506_v19  ;;  %v549_v47 = vrot.slane %v955_v0, %v498_v15 }
 0x142   :  { %712 = vrsqrt.f32 %v472_v20  ;;  %v471_v27 = vadd.f32 1e-05, %v463_v21  ;;  %v456_v28 = vrot.slane %v455_v22, 1  ;;  %v557_v50 = vrot.slane %v955_v0, %v506_v19 }
 0x143   :  { %v703_v24 = vpop.eup %702  ;;  %v620_v41 = vunpack.c.0.s8 %v619_v35  ;;  %v518_v55 = vsub.s32 6, %v946_v62  ;;  %v514_v61 = vsub.s32 5, %v946_v62 }
 0x144   :  { %v705_v29 = vpop.eup %704  ;;  %v482_v30 = vmul.f32 %v703_v24, %v899_v31  ;;  %714 = vrsqrt.f32 %v471_v27  ;;  %v457_v45 = vadd.f32 %v456_v28, %v455_v22  ;;  %v510_v31 = vsub.s32 4, %v946_v62 }
 0x145   :  { %v707_v40 = vpop.eup %706  ;;  %v484_v42 = vmul.f32 %v705_v29, %v902_v38  ;;  %v623_v4 = vsub.s32 %v620_v41, %v946_v62  ;;  %v519_v11 = vrot.slane %v951_v60, %v518_v55  ;;  %v515_v15 = vrot.slane %v951_v60, %v514_v61 }
 0x146   :  { %v709_v34 = vpop.eup %708  ;;  %v532_v46 = vmul.f32 %v495_v23, %v482_v30  ;;  %v483_v36 = vmul.f32 %v707_v40, %v905_v39  ;;  %v465_v51 = vmul.f32 0.5, %v457_v45  ;;  %v511_v58 = vrot.slane %v951_v60, %v510_v31 }
 0x147   :  { %v534_v48 = vmul.f32 %v503_v25, %v484_v42  ;;  %v485_v37 = vmul.f32 %v709_v34, %v910_v44  ;;  %v561_v8 = vrot.slane %v955_v0, %v510_v31  ;;  %v565_v18 = vrot.slane %v955_v0, %v514_v61 }
 0x148   :  { %v582_v52 = vadd.f32 %v545_v32, %v532_v46  ;;  %v533_v38 = vmul.f32 %v499_v26, %v483_v36  ;;  %v473_v56 = vadd.f32 1e-05, %v465_v51  ;;  %v569_v24 = vrot.slane %v955_v0, %v518_v55 }
 0x149   :  { %v584_v53 = vadd.f32 %v553_v1, %v534_v48  ;;  %v535_v54 = vmul.f32 %v507_v43, %v485_v37 }
 0x14a   :  { %v590_v57 = vmax.f32 %v582_v52, 0.0  ;;  %v583_v39 = vadd.f32 %v549_v47, %v533_v38  ;;  %716 = vrsqrt.f32 %v473_v56 }
 0x14b   :  { %v711_v6 = vpop.eup %710  ;;  %v592_v63 = vmax.f32 %v584_v53, 0.0  ;;  %v585_v44 = vadd.f32 %v557_v50, %v535_v54 }
 0x14c   :  { %v713_v2 = vpop.eup %712  ;;  %v591_v3 = vmax.f32 %v583_v39, 0.0  ;;  %v486_v7 = vmul.f32 %v711_v6, %v923_v5  ;;  %v522_v5 = vsub.s32 7, %v946_v62 }
 0x14d   :  { %v593_v9 = vmax.f32 %v585_v44, 0.0  ;;  %v488_v14 = vmul.f32 %v713_v2, %v926_v10 }
 0x14e   :  { %v691_v12 = vpack.c.bf16 %v591_v3, %v590_v57  ;;  %v536_v13 = vmul.f32 %v511_v58, %v486_v7  ;;  %v715_v16 = vpop.eup %714  ;;  %v523_v28 = vrot.slane %v951_v60, %v522_v5  ;;  %v573_v33 = vrot.slane %v955_v0, %v522_v5 }
 0x14f   :  { %v692_v17 = vpack.c.bf16 %v593_v9, %v592_v63  ;;  %v487_v21 = vmul.f32 %v715_v16, %v933_v59  ;;  %v538_v23 = vmul.f32 %v519_v11, %v488_v14 }
 0x150   :  { %v624_v19 = vrot.slane %v691_v12, %v623_v4  ;;  %v586_v20 = vadd.f32 %v561_v8, %v536_v13 }
 0x151   :  { %v631_v22 = vrot.slane %v692_v17, %v623_v4  ;;  %v537_v25 = vmul.f32 %v515_v15, %v487_v21  ;;  %v588_v30 = vadd.f32 %v569_v24, %v538_v23 }
 0x152   :  { %v594_v27 = vmax.f32 %v586_v20, 0.0 }
 0x153   :  { %v646_v26 = vcombine.low %v624_v19, %v631_v22  ;;  %v587_v10 = vadd.f32 %v565_v18, %v537_v25  ;;  %v596_v62 = vmax.f32 %v588_v30, 0.0 }
 0x154   :  { %v717_v29 = vpop.eup %716 }
 0x155   :  { %v595_v32 = vmax.f32 %v587_v10, 0.0  ;;  %v489_v1 = vmul.f32 %v717_v29, %v941_v49  ;;  %v654_v36 = vrot.slane %v646_v26, %v623_v4 }
 0x157   :  { %v693_v59 = vpack.c.bf16 %v595_v32, %v594_v27  ;;  %v539_v35 = vmul.f32 %v523_v28, %v489_v1 }
 0x159   :  { %v589_v40 = vadd.f32 %v573_v33, %v539_v35  ;;  %v638_v43 = vrot.slane %v693_v59, %v623_v4 }
 0x15b   :  { %v597_v42 = vmax.f32 %v589_v40, 0.0 }
 0x15d   :  { %v694_v45 = vpack.c.bf16 %v597_v42, %v596_v62 }
 0x15f   :  { %v645_v34 = vrot.slane %v694_v45, %v623_v4 }
 0x161   :  { %v647_v46 = vcombine.low %v638_v43, %v645_v34 }
 0x163   :  { %v661_v47 = vrot.slane %v647_v46, %v623_v4 }
 0x165   :  { %v662_v31 = vcombine.low %v654_v36, %v661_v47 }
 0x167   :  { %664 = vst [vmem:[%s993_s4] sm:$0xff] %v662_v31 }
 0x168   :  { %669 = vsyncpa [#allocation3], 1 }
 0x169   :  { %670 = vsyncpa [#allocation5], 1 }

// kernel: generator_forward.6
= control target key start
LH: loop header
LB: loop body
LE: loop exit
PB: predicated region body
PF: predicated region fallthrough
CT: control target
= control target key end

     0   :  { %9 = vsyncpa [#allocation8], 0  ;;  %s2848_s0 = inlined_call_operand.vmem [shape: bf16[2,6,6,64], index: 0, kind: input, shape index: {}]   ;;  %s2849_s1 = inlined_call_operand.hbm [shape: bf16[9,64,128], index: 1, kind: input, shape index: {}]   ;;  %s2850_s2 = inlined_call_operand.hbm [shape: f32[1,128], index: 2, kind: input, shape index: {}]   ;;  %s2851_s3 = inlined_call_operand.hbm [shape: f32[1,128], index: 3, kind: input, shape index: {}]   ;;  %s2852_s4 = inlined_call_operand.vmem [shape: bf16[32,128], index: 4, kind: output, shape index: {}]  }
   0x1   :  { %10 = vsyncpa [#allocation10], 0  ;;  %s2523_s15 = smov 0   ;;  %s2525_s16 = smov 0  }
   0x2   :  { %s2527_s17 = smov 0   ;;  %s2529_s18 = smov 0  }
   0x3   :  { %s2531_s19 = smov 0  }
   0x4 LB: > { %s2486_s20 = smov [#allocation9]   ;;  %s1899_s22 = sadd.s32 4294967295, %s2484_s19   ;;  %s2484_s19 = sphi %s2531_s19, %s16_s19   ;;  %s2480_s18 = sphi %s2529_s18, %s2876_s18   ;;  %s2476_s17 = sphi %s2527_s17, %s2875_s17   ;;  %s2472_s16 = sphi %s2525_s16, %s2874_s16   ;;  %s2468_s15 = sphi %s2523_s15, %s2873_s15  }
   0x5   : > { %s191_s21 = sshll.u32 %s2486_s20, 4  ;;  %p1901_p0 = scmp.ge.s32.totalorder %s2484_s19, 1  ;;  %s192_s21 = int_to_ptr.vmem [resolvable:$true] %s191_s21 }
   0x6   : > { %p165_p1 = scmp.lt.s32.totalorder %s2484_s19, 5  ;;  %p2551_p2 = scmp.eq.s32.totalorder %s1899_s22, 0 }
   0x7   : > { %s31_s26 = sadd.s32 1, %s2476_s17  ;;  %s2354_s30 = scalar_lea.hbm %s2850_s2, 16 }
   0x8   : > { %s2857_s23 = scalar_select %p2551_p2, 1, 0 }
   0x9   : > { %p2555_p3 = pnand %p1901_p0, %p165_p1  ;;  %p2568_p6 = scmp.ge.s32.totalorder %s31_s26, 2 }
   0xa   : > { %p2355_p7 = scmp.ne.s32.totalorder %s2850_s2, %s2354_s30  ;;  %p2361_p11 = scmp.lt.u32.totalorder %s2354_s30, %s2850_s2 }
   0xb   : > { %s2858_s24 = scalar_select %p2555_p3, 1, 0 }
   0xc   : > { %p2236_p4 = pneg %p2555_p3 }
   0xd   : > { %s2860_s27 = scalar_select %p2568_p6, 1, 0 }
   0xe   : > { %p2563_p5 = pnand %p2551_p2, %p2236_p4 }
  0x10   : > { %p2580_p8 = pneg %p2563_p5 }
  0x12   : > { %p2357_p9 = pnand %p2580_p8, %p2355_p7 }
  0x14   : > { %p2358_p10 = pneg %p2357_p9 }
  0x16   : > { %p2363_p12 = pnand %p2361_p11, %p2358_p10 }
  0x18   : > { %2366 = shalt.err (!%p2363_p12)
}
  0x19   : > { %s2367_s10 = scalar_lea.vmem %s192_s21, 16  ;;  %s2374_s11 = scalar_lea.vmem %s192_s21, 32 }
  0x1a   : > { %p2368_p13 = scmp.ne.s32.totalorder %s192_s21, %s2367_s10  ;;  %p2375_p4 = scmp.lt.s32.totalorder %s192_s21, %s192_s21 }
  0x1b   : > { %p2376_p2 = scmp.lt.s32.totalorder %s2374_s11, %s2367_s10 }
  0x1c   : > { %p2370_p0 = pnand %p2368_p13, %p2580_p8 }
  0x1d   : > { %p2377_p3 = por %p2376_p2, %p2375_p4 }
  0x1e   : > { %p2371_p1 = pneg %p2370_p0 }
  0x20   : > { %p2378_p6 = pnand %p2377_p3, %p2371_p1 }
  0x22   : > { %2381 = shalt.err (!%p2378_p6)
}
  0x23   : > { %2242 = dma.hbm_to_vmem [thread:$0]  (!%p2563_p5), %s2850_s2, 16, %s192_s21, [#allocation10]  }
  0x24   : > { %p2862_p7 = scmp.ne.s32.totalorder %s2860_s27, 0  ;;  %s35_s14 = sadd.s32 1, %s2480_s18 }
  0x25   : > { %s2487_s20 = smov [#allocation7]   ;;  %s2382_s30 = scalar_lea.hbm %s2849_s1, 4608 }
  0x26   : > { %s2878_s26 = smov (%p2862_p7, %s31_s26), 0  ;;  %s2880_s14 = smov (!%p2862_p7, %s35_s14), %s2480_s18 }
  0x27   : > { %s177_s22 = sshll.u32 %s2487_s20, 4  ;;  %p37_p2 = scmp.ge.s32.totalorder %s2880_s14, 2  ;;  %s178_s22 = int_to_ptr.vmem [resolvable:$true] %s177_s22 }
  0x28   : > { %p2383_p3 = scmp.ne.s32.totalorder %s2849_s1, %s2382_s30  ;;  %p2389_p10 = scmp.lt.u32.totalorder %s2382_s30, %s2849_s1 }
  0x29   : > { %s2882_s14 = smov (%p37_p2, %s2880_s14), 0 }
  0x2a   : > { %p2385_p6 = pnand %p2383_p3, %p2580_p8 }
  0x2c   : > { %p2386_p9 = pneg %p2385_p6 }
  0x2e   : > { %p2391_p11 = pnand %p2389_p10, %p2386_p9 }
  0x30   : > { %2394 = shalt.err (!%p2391_p11)
}
  0x31   : > { %s2395_s8 = scalar_lea.vmem %s178_s22, 4608  ;;  %p2403_p1 = scmp.lt.s32.totalorder %s178_s22, %s178_s22 }
  0x32   : > { %p2396_p12 = scmp.ne.s32.totalorder %s178_s22, %s2395_s8  ;;  %p2404_p4 = scmp.lt.s32.totalorder %s2395_s8, %s2395_s8 }
  0x34   : > { %p2398_p13 = pnand %p2396_p12, %p2580_p8  ;;  %p2405_p7 = por %p2404_p4, %p2403_p1 }
  0x36   : > { %p2399_p0 = pneg %p2398_p13 }
  0x38   : > { %p2406_p2 = pnand %p2405_p7, %p2399_p0 }
  0x3a   : > { %2409 = shalt.err (!%p2406_p2)
}
  0x3b   : > { %s2488_s9 = smov 64   ;;  %s2489_s10 = smov 4  }
  0x3c   : > { %2239 = dma.hbm_to_vmem [thread:$0]  (!%p2563_p5), %s2849_s1, 4608, %s178_s22, [#allocation8], %s2488_s9, %s2488_s9, %s2489_s10  }
  0x3d   : > { %s2490_s13 = smov [#allocation11]   ;;  %s2410_s30 = scalar_lea.hbm %s2851_s3, 16 }
  0x3e   : > { %s202_s20 = sshll.u32 %s2490_s13, 4  ;;  %p2411_p3 = scmp.ne.s32.totalorder %s2851_s3, %s2410_s30  ;;  %s203_s20 = int_to_ptr.vmem [resolvable:$true] %s202_s20 }
  0x3f   : > { %p2417_p10 = scmp.lt.u32.totalorder %s2410_s30, %s2851_s3 }
  0x40   : > { %p2413_p6 = pnand %p2411_p3, %p2580_p8 }
  0x42   : > { %p2414_p9 = pneg %p2413_p6 }
  0x44   : > { %p2419_p11 = pnand %p2417_p10, %p2414_p9 }
  0x46   : > { %2422 = shalt.err (!%p2419_p11)
}
  0x47   : > { %s2423_s22 = scalar_lea.vmem %s203_s20, 16  ;;  %s2430_s8 = scalar_lea.vmem %s203_s20, 32 }
  0x48   : > { %p2424_p12 = scmp.ne.s32.totalorder %s203_s20, %s2423_s22  ;;  %p2431_p1 = scmp.lt.s32.totalorder %s203_s20, %s203_s20 }
  0x49   : > { %p2432_p4 = scmp.lt.s32.totalorder %s2430_s8, %s2423_s22 }
  0x4a   : > { %p2426_p13 = pnand %p2424_p12, %p2580_p8 }
  0x4b   : > { %p2433_p7 = por %p2432_p4, %p2431_p1 }
  0x4c   : > { %p2427_p0 = pneg %p2426_p13 }
  0x4e   : > { %p2434_p2 = pnand %p2433_p7, %p2427_p0 }
  0x50   : > { %2437 = shalt.err (!%p2434_p2)
}
  0x51   : > { %2245 = dma.hbm_to_vmem [thread:$0]  (!%p2563_p5), %s2851_s3, 16, %s203_s20, [#allocation10]  }
  0x52   : > { %p2863_p3 = scmp.ne.s32.totalorder %s2858_s24, 0 }
  0x53   : > { %p2864_p6 = scmp.ne.s32.totalorder (!%p2863_p3), %s2857_s23, 0 }
  0x54   : > { %229 = sbr.rel (%p2863_p3) target bundleno = 620 (0x26c), region = 36 }
  0x5b   : > { %2459 = dma.done.wait (%p2864_p6), [#allocation8], 4608  }
  0x5c   : > { %2461 = vsyncadd (%p2864_p6), [#allocation8], 4294962688 }
  0x5d   : > { %2463 = dma.done.wait (%p2864_p6), [#allocation10], 32  }
  0x5e   : > { %2465 = vsyncadd (%p2864_p6), [#allocation10], 4294967264  ;;  %s268_s24 = ssub.s32 1, %s2472_s16  ;;  %s280_s25 = smul.u32 %s2468_s15, %s2472_s16 }
  0x5f   : > { %s269_s7 = smul.u32 %s2468_s15, %s268_s24  ;;  %s1913_s11 = sshll.u32 %s2468_s15, 4 }
  0x60   : > { %s1911_s12 = sshll.u32 %s280_s25, 1  ;;  %p1914_p9 = scmp.ne.s32.totalorder %s2472_s16, 0 }
  0x61   : > { %s270_s13 = sadd.s32 %s2472_s16, %s269_s7  ;;  %p282_p5 = scmp.lt.s32.totalorder %s1911_s12, 3 }
  0x62   : > { %p271_p8 = scmp.lt.s32.totalorder %s270_s13, 1  ;;  %297 = sbr.rel (%p1914_p9) target bundleno = 442 (0x1ba), region = 52 }
  0x63   : > { %s2884_s12 = smov (!%p282_p5, %s1911_s12), 3  ;;  %p298_p10 = scmp.eq.s32.totalorder (!%p1914_p9), %s2468_s15, 0 }
  0x64   : > { %s2886_s13 = smov (!%p271_p8, %s270_s13), 1  ;;  %s1912_s20 = sshll.u32 %s2884_s12, 2 }
  0x65   : > { %s2223_s28 = smul.u32 24, %s2886_s13  ;;  %s2661_s30 = scalar_lea.vmem %s2852_s4, %s1912_s20 }
  0x67   : > { %s2666_s21 = scalar_lea.vmem %s2848_s0, %s2223_s28 }
  0x69   : > { %303 = sbr.rel (!%p298_p10) target bundleno = 112 (0x70), region = 56  ;;  %v2491_v0 = vmov (%p298_p10), 0.0  }
  0x6a   : > { %304 = vst [vmem:[#allocation3] sm:$0x1] (%p298_p10), %v2491_v0  ;;  %305 = vst [vmem:[#allocation4] sm:$0x1] (%p298_p10), %v2491_v0 }
  0x70 PF: > { %v2304_v1 = vld [vmem:[#allocation7 + $0x20] sm:$0xff]   ;;  %v2492_v2 = vmov 0.0   ;;  %v2306_v4 = vld [vmem:[#allocation7 + $0x28] sm:$0xff]   ;;  %vm2493_vm0 = vmmov 0   ;;  %v2308_v6 = vld [vmem:[#allocation7 + $0x30] sm:$0xff]   ;;  %v437_v17 = vlaneseq  ;;  %vm647_vm8 = vcmask 1040384  }
  0x71   : > { %2085 = vmatprep.subr.bf16.mxu1 %v2492_v2  ;;  %2133 = vmatprep.subr.bf16.mxu0 %v2492_v2  ;;  %v2305_v3 = vld [vmem:[#allocation7 + $0x80] sm:$0xff]   ;;  %v2307_v5 = vld [vmem:[#allocation7 + $0x88] sm:$0xff]   ;;  %v2309_v7 = vld [vmem:[#allocation7 + $0x90] sm:$0xff]   ;;  %vm360_vm1 = vsmask.f32 1280  ;;  %vm648_vm9 = vcmask 1042434  }
  0x72   : > { %2086 = vmatpush3.bf16.msra.mxu1 %v2304_v1  ;;  %2093 = vmatprep.mubr.msk.bf16.mxu1 %vm2493_vm0, %v2492_v2  ;;  %v2310_v8 = vld [vmem:[#allocation7 + $0x38] sm:$0xff]   ;;  %v1916_v9 = vld.sshfl [vmem:[%s2666_s21] sm:$0x13 pattern:$0x76325410]  ;;  %v438_v46 = vshrl.u32 %v437_v17, 7  ;;  %vm649_vm10 = vmor %vm647_vm8, %vm648_vm9 }
  0x73   : > { %2134 = vmatpush3.bf16.msra.mxu0 %v2305_v3  ;;  %2087 = vmatprep.subr.bf16.mxu1 %v2492_v2  ;;  %v2311_v10 = vld [vmem:[#allocation7 + $0x98] sm:$0xff]   ;;  %v1917_v11 = vld.sshfl [vmem:[%s2666_s21 + $0x4] sm:$0x13 pattern:$0x76325410]  ;;  %v335_v12 = vcombine.high %v1916_v9, %v1916_v9  ;;  %v368_v19 = vshrl.u32 %v1916_v9, 16 }
  0x74   : > { %2135 = vmatprep.subr.bf16.mxu0 %v2492_v2  ;;  %2141 = vmatprep.mubr.msk.bf16.mxu0 %vm2493_vm0, %v2492_v2  ;;  %vm361_vm2 = vsmask.f32 3336  ;;  %v1918_v13 = vld.sshfl [vmem:[%s2666_s21 + $0x8] sm:$0x13 pattern:$0x76325410]  ;;  %v343_v14 = vcombine.high %v1917_v11, %v1917_v11 }
  0x75   : > { %vm363_vm3 = vsmask.f32 5392  ;;  %v1919_v15 = vld.sshfl [vmem:[%s2666_s21 + $0xc] sm:$0x13 pattern:$0x76325410]  ;;  %v351_v16 = vcombine.high %v1918_v13, %v1918_v13  ;;  %vm362_vm4 = vmor %vm360_vm1, %vm361_vm2 }
  0x76   : > { %2088 = vmatpush3.bf16.msra.mxu1 %v2306_v4  ;;  %vm365_vm5 = vsmask.f32 7448  ;;  %v359_v18 = vcombine.high %v1919_v15, %v1919_v15  ;;  %v371_v20 = vshll.u32 %v1916_v9, 16  ;;  %v377_v21 = vshll.u32 %v335_v12, 16  ;;  %vm2687_vm6 = vmor %vm362_vm4, %vm363_vm3  ;;  %s1669_s27 = sshra.s32 %s1913_s11, 4 }
  0x77   : > { %2136 = vmatpush3.bf16.msra.mxu0 %v2307_v5  ;;  %2089 = vmatprep.subr.bf16.mxu1 %v2492_v2  ;;  %v382_v22 = vshrl.u32 %v1917_v11, 16  ;;  %v385_v23 = vshll.u32 %v1917_v11, 16  ;;  %v391_v24 = vshll.u32 %v343_v14, 16  ;;  %v396_v25 = vshrl.u32 %v1918_v13, 16  ;;  %vm2696_vm7 = vmor %vm2687_vm6, %vm365_vm5  ;;  %s2021_s22 = sshll.u32 %s1669_s27, 3 }
  0x78   : > { %2137 = vmatprep.subr.bf16.mxu0 %v2492_v2  ;;  %v370_v27 = vrot.slane %v368_v19, 6  ;;  %v373_v28 = vrot.slane %v371_v20, 7  ;;  %v379_v29 = vrot.slane %v377_v21, 7  ;;  %v399_v30 = vshll.u32 %v1918_v13, 16  ;;  %s1672_s8 = scalar_lea.vmem [#allocation2], %s2021_s22 }
  0x79   : > { %v384_v31 = vrot.slane %v382_v22, 6  ;;  %v387_v32 = vrot.slane %v385_v23, 7  ;;  %v393_v33 = vrot.slane %v391_v24, 7  ;;  %v398_v34 = vrot.slane %v396_v25, 6  ;;  %v2330_v24 = vld [vmem:[#allocation7 + $0x60] sm:$0xff]  }
  0x7a   : > { %2090 = vmatpush3.bf16.msra.mxu1 %v2308_v6  ;;  %v374_v35 = vor.u32 %v373_v28, %v370_v27  ;;  %v401_v36 = vrot.slane %v399_v30, 7  ;;  %v405_v37 = vshll.u32 %v351_v16, 16  ;;  %v410_v38 = vshrl.u32 %v1919_v15, 16  ;;  %v2313_v28 = vld [vmem:[#allocation7 + $0xa0] sm:$0xff]  }
  0x7b   : > { %2138 = vmatpush3.bf16.msra.mxu0 %v2309_v7  ;;  %2091 = vmatprep.subr.bf16.mxu1 %v2492_v2  ;;  %v388_v40 = vor.u32 %v387_v32, %v384_v31  ;;  %v413_v41 = vshll.u32 %v1919_v15, 16  ;;  %v419_v42 = vshll.u32 %v359_v18, 16  ;;  %v2494_v50 = vmov 1983009808   ;;  %v2312_v15 = vld [vmem:[#allocation7] sm:$0xff]  }
  0x7c   : > { %2139 = vmatprep.subr.bf16.mxu0 %v2492_v2  ;;  %v375_v43 = vrot.slane %v374_v35, 2  ;;  %v402_v44 = vor.u32 %v401_v36, %v398_v34  ;;  %v412_v45 = vrot.slane %v410_v38, 6  ;;  %v407_v48 = vrot.slane %v405_v37, 7 }
  0x7d   : > { %v389_v47 = vrot.slane %v388_v40, 2  ;;  %v415_v49 = vrot.slane %v413_v41, 7  ;;  %v435_v51 = vunpack.c.l.s4 %v2494_v50  ;;  %v421_v54 = vrot.slane %v419_v42, 7 }
  0x7e   : > { %2092 = vmatpush3.bf16.msra.mxu1 %v2310_v8  ;;  %v380_v52 = vsel %vm2696_vm7, %v375_v43, %v379_v29  ;;  %v403_v53 = vrot.slane %v402_v44, 2  ;;  %v1959_v55 = vld.sshfl [vmem:[%s2666_s21 + $0x10] sm:$0x13 pattern:$0x76325410]  ;;  %vm650_vm11 = vcmask 1044484  }
  0x7f   : > { %2140 = vmatpush3.bf16.msra.mxu0 %v2311_v10  ;;  %2097 = vmatprep.subr.bf16.mxu1 %v2492_v2  ;;  %v394_v56 = vsel %vm2696_vm7, %v389_v47, %v393_v33  ;;  %v416_v57 = vor.u32 %v415_v49, %v412_v45  ;;  %v436_v58 = vunpack.c.0.s8 %v435_v51  ;;  %v912_v59 = vcombine.high %v1959_v55, %v1959_v55  ;;  %v1969_v14 = vld.sshfl [vmem:[%s2666_s21 + $0x4] sm:$0x12 pattern:$0x76325410]  ;;  %vm2725_vm14 = vmor %vm649_vm10, %vm650_vm11  ;;  %v2314_v29 = vld [vmem:[#allocation7 + $0x8] sm:$0xff]  }
  0x80   : > { %2145 = vmatprep.subr.bf16.mxu0 %v2492_v2  ;;  %v432_v60 = vcombine.low %v380_v52, %v394_v56  ;;  %v956_v61 = vshrl.u32 %v1959_v55, 16  ;;  %v959_v62 = vshll.u32 %v1959_v55, 16  ;;  %v408_v63 = vsel %vm2696_vm7, %v403_v53, %v407_v48  ;;  %v1970_v16 = vld.sshfl [vmem:[%s2666_s21 + $0x8] sm:$0x12 pattern:$0x76325410] }
  0x81   : > { %v417_v0 = vrot.slane %v416_v57, 2  ;;  %v2707_v1 = vsub.s32 %v436_v58, %v438_v46  ;;  %v965_v3 = vshll.u32 %v912_v59, 16  ;;  %v978_v11 = vcombine.low %v394_v56, %v408_v63  ;;  %v1971_v20 = vld.sshfl [vmem:[%s2666_s21 + $0xc] sm:$0x12 pattern:$0x76325410] }
  0x82   : > { %v958_v4 = vrot.slane %v956_v61, 6  ;;  %v961_v5 = vrot.slane %v959_v62, 7  ;;  %vm473_vm12 = vcmask 523264   ;;  %v1080_v17 = vcombine.high %v1969_v14, %v1969_v14  ;;  %v2316_v44 = vld [vmem:[#allocation7 + $0x10] sm:$0xff]   ;;  %v2315_v46 = vld [vmem:[#allocation7 + $0xa8] sm:$0xff]   ;;  %v2318_v51 = vld [vmem:[#allocation7 + $0x18] sm:$0xff]  }
  0x83   : > { %v422_v6 = vsel %vm2696_vm7, %v417_v0, %v421_v54  ;;  %v440_v8 = vrot.slane %v432_v60, %v2707_v1  ;;  %v967_v10 = vrot.slane %v965_v3, 7  ;;  %vm652_vm13 = vcmask 1046534   ;;  %v1972_v25 = vld.sshfl [vmem:[%s2666_s21 + $0x10] sm:$0x12 pattern:$0x76325410] }
  0x84   : > { %v433_v7 = vcombine.low %v408_v63, %v422_v6  ;;  %v962_v9 = vor.u32 %v961_v5, %v958_v4  ;;  %v1088_v21 = vcombine.high %v1970_v16, %v1970_v16  ;;  %v986_v23 = vrot.slane %v978_v11, %v2707_v1  ;;  %v2348_v37 = vld.sshfl [vmem:[%s2666_s21] sm:$0xf pattern:$0x76325410]  ;;  %vm2740_vm15 = vmor %vm2725_vm14, %vm652_vm13  ;;  %v2322_v57 = vld [vmem:[#allocation7 + $0x40] sm:$0xff]  }
  0x85   : > { %v1096_v26 = vcombine.high %v1971_v20, %v1971_v20  ;;  %v1973_v27 = vrot.slane %v1969_v14, 9  ;;  %v1104_v30 = vcombine.high %v1972_v25, %v1972_v25  ;;  %v1107_v31 = vrot.slane %v1080_v17, 7  ;;  %v2349_v38 = vld.sshfl [vmem:[%s2666_s21 + $0x8] sm:$0xf pattern:$0x76325410] }
  0x86   : > { %v2713_v12 = vrot.slane %v433_v7, %v2707_v1  ;;  %v963_v13 = vrot.slane %v962_v9, 2  ;;  %v1974_v32 = vrot.slane %v1970_v16, 9  ;;  %v1111_v33 = vrot.slane %v1088_v21, 7  ;;  %v2317_v55 = vld [vmem:[#allocation7 + $0xb0] sm:$0xff]   ;;  %v2319_v62 = vld [vmem:[#allocation7 + $0xb8] sm:$0xff]   ;;  %v2324_v63 = vld [vmem:[#allocation7 + $0x48] sm:$0xff]  }
  0x87   : > { %v1975_v35 = vrot.slane %v1971_v20, 9  ;;  %v1976_v36 = vrot.slane %v1972_v25, 9  ;;  %v1115_v41 = vrot.slane %v1096_v26, 7  ;;  %v1119_v42 = vrot.slane %v1104_v30, 7  ;;  %v2323_v4 = vld [vmem:[#allocation7 + $0xc0] sm:$0xff]   ;;  %v2325_v9 = vld [vmem:[#allocation7 + $0xc8] sm:$0xff]  }
  0x88   : > { %v448_v18 = vcombine.low %v440_v8, %v2713_v12  ;;  %v2720_v19 = vsel %vm2696_vm7, %v963_v13, %v967_v10  ;;  %v1108_v45 = vsel %vm2740_vm15, %v1973_v27, %v1107_v31  ;;  %v1112_v47 = vsel %vm2740_vm15, %v1974_v32, %v1111_v33  ;;  %v1930_v50 = vld.sshfl [vmem:[%s2666_s21] sm:$0x12 pattern:$0x76325410]  ;;  %v2326_v8 = vld [vmem:[#allocation7 + $0x50] sm:$0xff]   ;;  %v2329_v25 = vld [vmem:[#allocation7 + $0xd8] sm:$0xff]  }
  0x89   : > { %v979_v22 = vcombine.low %v422_v6, %v2720_v19  ;;  %v1116_v48 = vsel %vm2740_vm15, %v1975_v35, %v1115_v41  ;;  %v2754_v49 = vsel %vm2740_vm15, %v1976_v36, %v1119_v42  ;;  %v1130_v52 = vcombine.low %v1108_v45, %v1112_v47  ;;  %v1998_v5 = vld.sshfl [vmem:[%s2666_s21 + $0x14] sm:$0x13 pattern:$0x76325410]  ;;  %v2336_v35 = vld [vmem:[#allocation7 + $0x70] sm:$0xff]   ;;  %v2335_v36 = vld [vmem:[#allocation7 + $0xe8] sm:$0xff]  }
  0x8a   : > { %2094 = vmatmul.mubr.msk.bf16.vlgmr.msra.gmra.mrb[0].mxu1 %vm473_vm12, %v448_v18  ;;  %v1131_v53 = vcombine.low %v1116_v48, %v2754_v49  ;;  %v622_v54 = vcombine.high %v1930_v50, %v1930_v50  ;;  %v538_v56 = vcombine.low %v2348_v37, %v2349_v38  ;;  %v1934_v60 = vrot.slane %v1930_v50, 9  ;;  %v2350_v16 = vld.sshfl [vmem:[%s2666_s21 + $0x8] sm:$0xf pattern:$0x76325410]  ;;  %v2333_v30 = vld [vmem:[#allocation7 + $0xe0] sm:$0xff]  }
  0x8b   : > { %2098 = vmatpush3.bf16.msra.mxu1 %v2312_v15  ;;  %v993_v34 = vrot.slane %v979_v22, %v2707_v1  ;;  %2105 = vmatprep.mubr.msk.bf16.mxu1 %vm2493_vm0, %v2492_v2  ;;  %v1138_v58 = vrot.slane %v1130_v52, %v2707_v1  ;;  %v680_v7 = vcombine.low %v1112_v47, %v1116_v48  ;;  %v1407_v10 = vshrl.u32 %v1998_v5, 16  ;;  %v2328_v15 = vld [vmem:[#allocation7 + $0x58] sm:$0xff]   ;;  %v2327_v18 = vld [vmem:[#allocation7 + $0xd0] sm:$0xff]   ;;  %v2342_v47 = vld [vmem:[#allocation7 + $0x100] sm:$0xff]  }
  0x8c   : > { %2099 = vmatprep.subr.bf16.mxu1 %v2492_v2  ;;  %v1145_v59 = vrot.slane %v1131_v53, %v2707_v1  ;;  %v656_v61 = vrot.slane %v622_v54, 7  ;;  %v1410_v11 = vshll.u32 %v1998_v5, 16  ;;  %v2351_v17 = vld.sshfl [vmem:[%s2666_s21 + $0x10] sm:$0xf pattern:$0x76325410]  ;;  %v1363_v20 = vcombine.high %v1998_v5, %v1998_v5 }
  0x8d   : > { %v994_v43 = vcombine.low %v986_v23, %v993_v34  ;;  %v2782_v14 = vrot.slane %v680_v7, %v2707_v1  ;;  %v1409_v21 = vrot.slane %v1407_v10, 6  ;;  %v2352_v33 = vld.sshfl [vmem:[%s2666_s21 + $0x4] sm:$0xf pattern:$0x76325410]  ;;  %v2338_v38 = vld [vmem:[#allocation7 + $0x78] sm:$0xff]  }
  0x8e   : > { %v1146_v0 = vcombine.low %v1138_v58, %v1145_v59  ;;  %v657_v3 = vsel %vm2740_vm15, %v1934_v60, %v656_v61  ;;  %v1412_v22 = vrot.slane %v1410_v11, 7  ;;  %v1416_v27 = vshll.u32 %v1363_v20, 16  ;;  %v2353_v34 = vld.sshfl [vmem:[%s2666_s21 + $0xc] sm:$0xf pattern:$0x76325410] }
  0x8f   : > { %2142 = vmatmul.mubr.msk.bf16.vlgmr.msra.gmra.mrb[0].mxu0 %vm473_vm12, %v994_v43  ;;  %2100 = vmatpush3.bf16.msra.mxu1 %v2314_v29  ;;  %v679_v6 = vcombine.low %v657_v3, %v1108_v45  ;;  %v2334_v29 = vld [vmem:[#allocation7 + $0x68] sm:$0xff]   ;;  %v2337_v42 = vld [vmem:[#allocation7 + $0xf0] sm:$0xff]   ;;  %v2011_v43 = vld.sshfl [vmem:[%s2666_s21 + $0x14] sm:$0x12 pattern:$0x76325410] }
  0x90   : > { %2146 = vmatpush3.bf16.msra.mxu0 %v2313_v28  ;;  %2101 = vmatprep.subr.bf16.mxu1 %v2492_v2  ;;  %v1413_v26 = vor.u32 %v1412_v22, %v1409_v21  ;;  %v1253_v28 = vcombine.low %v2350_v16, %v2351_v17  ;;  %v1418_v32 = vrot.slane %v1416_v27, 7  ;;  %v2339_v45 = vld [vmem:[#allocation7 + $0xf8] sm:$0xff]   ;;  %v2015_v48 = vrot.slane %v2011_v43, 9  ;;  %v2344_v53 = vld [vmem:[#allocation7 + $0x110] sm:$0xff]  }
  0x91   : > { %2147 = vmatprep.subr.bf16.mxu0 %v2492_v2  ;;  %2153 = vmatprep.mubr.msk.bf16.mxu0 %vm2493_vm0, %v2492_v2  ;;  %v687_v13 = vrot.slane %v679_v6, %v2707_v1  ;;  %v1674_v16 = vld [vmem:[#allocation3] sm:$0x1]  ;;  %v1684_v20 = vld [vmem:[#allocation4] sm:$0x1] }
  0x92   : > { %v1414_v31 = vrot.slane %v1413_v26, 2 }
  0x93   : > { %2102 = vmatpush3.bf16.msra.mxu1 %v2316_v44  ;;  %v695_v23 = vcombine.low %v687_v13, %v2782_v14  ;;  %v802_v44 = vcombine.low %v2352_v33, %v2353_v34 }
  0x94   : > { %2148 = vmatpush3.bf16.msra.mxu0 %v2315_v46  ;;  %2103 = vmatprep.subr.bf16.mxu1 %v2492_v2  ;;  %v1419_v37 = vsel %vm2696_vm7, %v1414_v31, %v1418_v32  ;;  %v1555_v46 = vcombine.high %v2011_v43, %v2011_v43 }
  0x95   : > { %2149 = vmatprep.subr.bf16.mxu0 %v2492_v2  ;;  %v1430_v41 = vcombine.low %v2720_v19, %v1419_v37 }
  0x96   : > { %v1570_v50 = vrot.slane %v1555_v46, 7 }
  0x97   : > { %2104 = vmatpush3.bf16.msra.mxu1 %v2318_v51  ;;  %v1444_v39 = vrot.slane %v1430_v41, %v2707_v1  ;;  %v2343_v51 = vld [vmem:[#allocation7 + $0x108] sm:$0xff]  }
  0x98   : > { %2150 = vmatpush3.bf16.msra.mxu0 %v2317_v55  ;;  %2109 = vmatprep.subr.bf16.mxu1 %v2492_v2  ;;  %v1571_v52 = vsel %vm2740_vm15, %v2015_v48, %v1570_v50  ;;  %v2345_v55 = vld [vmem:[#allocation7 + $0x118] sm:$0xff]  }
  0x99   : > { %2151 = vmatprep.subr.bf16.mxu0 %v2492_v2  ;;  %v1445_v19 = vcombine.low %v2713_v12, %v1444_v39  ;;  %v1582_v12 = vcombine.low %v2754_v49, %v1571_v52 }
  0x9a   : > { %2106 = vmatmul.mubr.msk.bf16.vlgmr.msra.gmra.mrb[0].mxu1 %vm473_vm12, %v538_v56 }
  0x9b   : > { %2110 = vmatpush3.bf16.msra.mxu1 %v2322_v57  ;;  %2117 = vmatprep.mubr.msk.bf16.mxu1 %vm2493_vm0, %v2492_v2  ;;  %v1596_v54 = vrot.slane %v1582_v12, %v2707_v1 }
  0x9c   : > { %2152 = vmatpush3.bf16.msra.mxu0 %v2319_v62  ;;  %2111 = vmatprep.subr.bf16.mxu1 %v2492_v2 }
  0x9d   : > { %2157 = vmatprep.subr.bf16.mxu0 %v2492_v2  ;;  %v1597_v56 = vcombine.low %v2782_v14, %v1596_v54 }
  0x9f   : > { %2154 = vmatmul.mubr.msk.bf16.vlgmr.msra.gmra.mrb[0].mxu0 %vm473_vm12, %v1146_v0  ;;  %2112 = vmatpush3.bf16.msra.mxu1 %v2324_v63 }
  0xa0   : > { %2158 = vmatpush3.bf16.msra.mxu0 %v2323_v4  ;;  %2113 = vmatprep.subr.bf16.mxu1 %v2492_v2 }
  0xa1   : > { %2159 = vmatprep.subr.bf16.mxu0 %v2492_v2  ;;  %2165 = vmatprep.mubr.msk.bf16.mxu0 %vm2493_vm0, %v2492_v2 }
  0xa3   : > { %2114 = vmatpush3.bf16.msra.mxu1 %v2326_v8 }
  0xa4   : > { %2160 = vmatpush3.bf16.msra.mxu0 %v2325_v9  ;;  %2115 = vmatprep.subr.bf16.mxu1 %v2492_v2 }
  0xa5   : > { %2161 = vmatprep.subr.bf16.mxu0 %v2492_v2 }
  0xa7   : > { %2116 = vmatpush3.bf16.msra.mxu1 %v2328_v15 }
  0xa8   : > { %2162 = vmatpush3.bf16.msra.mxu0 %v2327_v18  ;;  %2121 = vmatprep.subr.bf16.mxu1 %v2492_v2 }
  0xa9   : > { %2163 = vmatprep.subr.bf16.mxu0 %v2492_v2 }
  0xaa   : > { %2118 = vmatmul.mubr.msk.bf16.vlgmr.msra.gmra.mrb[0].mxu1 %vm473_vm12, %v695_v23 }
  0xab   : > { %2122 = vmatpush3.bf16.msra.mxu1 %v2330_v24  ;;  %2129 = vmatprep.mubr.msk.bf16.mxu1 %vm2493_vm0, %v2492_v2 }
  0xac   : > { %2164 = vmatpush3.bf16.msra.mxu0 %v2329_v25  ;;  %2123 = vmatprep.subr.bf16.mxu1 %v2492_v2 }
  0xad   : > { %2169 = vmatprep.subr.bf16.mxu0 %v2492_v2 }
  0xaf   : > { %2166 = vmatmul.mubr.msk.bf16.vlgmr.msra.gmra.mrb[0].mxu0 %vm473_vm12, %v1253_v28  ;;  %2124 = vmatpush3.bf16.msra.mxu1 %v2334_v29 }
  0xb0   : > { %2170 = vmatpush3.bf16.msra.mxu0 %v2333_v30  ;;  %2125 = vmatprep.subr.bf16.mxu1 %v2492_v2 }
  0xb1   : > { %2171 = vmatprep.subr.bf16.mxu0 %v2492_v2  ;;  %2177 = vmatprep.mubr.msk.bf16.mxu0 %vm2493_vm0, %v2492_v2 }
  0xb3   : > { %2126 = vmatpush3.bf16.msra.mxu1 %v2336_v35 }
  0xb4   : > { %2172 = vmatpush3.bf16.msra.mxu0 %v2335_v36  ;;  %2127 = vmatprep.subr.bf16.mxu1 %v2492_v2 }
  0xb5   : > { %2173 = vmatprep.subr.bf16.mxu0 %v2492_v2 }
  0xb7   : > { %2128 = vmatpush3.bf16.msra.mxu1 %v2338_v38 }
  0xb8   : > { %2174 = vmatpush3.bf16.msra.mxu0 %v2337_v42 }
  0xb9   : > { %2175 = vmatprep.subr.bf16.mxu0 %v2492_v2 }
  0xba   : > { %2130 = vmatmul.mubr.msk.bf16.vlgmr.msra.gmra.mrb[0].mxu1 %vm473_vm12, %v802_v44 }
  0xbc   : > { %2176 = vmatpush3.bf16.msra.mxu0 %v2339_v45 }
  0xbd   : > { %2181 = vmatprep.subr.bf16.mxu0 %v2492_v2 }
  0xbf   : > { %2178 = vmatmul.mubr.msk.bf16.vlgmr.msra.gmra.mrb[0].mxu0 %vm473_vm12, %v1445_v19 }
  0xc0   : > { %2182 = vmatpush3.bf16.msra.mxu0 %v2342_v47  ;;  %2189 = vmatprep.mubr.msk.bf16.mxu0 %vm2493_vm0, %v2492_v2 }
  0xc1   : > { %2183 = vmatprep.subr.bf16.mxu0 %v2492_v2 }
  0xc4   : > { %2184 = vmatpush3.bf16.msra.mxu0 %v2343_v51 }
  0xc5   : > { %2185 = vmatprep.subr.bf16.mxu0 %v2492_v2 }
  0xc8   : > { %2186 = vmatpush3.bf16.msra.mxu0 %v2344_v53 }
  0xc9   : > { %2187 = vmatprep.subr.bf16.mxu0 %v2492_v2 }
  0xcc   : > { %2188 = vmatpush3.bf16.msra.mxu0 %v2345_v55 }
  0xcf   : > { %2190 = vmatmul.mubr.msk.bf16.vlgmr.msra.gmra.mrb[0].mxu0 %vm473_vm12, %v1597_v56 }
 0x18d   : > { %v864_v40 = vpop.f32.mrb[0].mxu1 }
 0x18e   : > { %v2131_v57 = vpop.f32.mrb[1].mxu1 }
 0x18f   : > { %v867_v58 = vpop.f32.mrb[2].mxu1 }
 0x190   : > { %v2132_v59 = vpop.f32.mrb[3].mxu1 }
 0x1a2   : > { %v1659_v49 = vpop.f32.mrb[0].mxu0 }
 0x1a3   : > { %v2193_v60 = vadd.f32 %v1659_v49, %v864_v40  ;;  %v2191_v61 = vpop.f32.mrb[1].mxu0 }
 0x1a4   : > { %v1662_v1 = vpop.f32.mrb[2].mxu0 }
 0x1a5   : > { %v2194_v62 = vadd.f32 %v1662_v1, %v867_v58  ;;  %v2192_v63 = vpop.f32.mrb[3].mxu0  ;;  %v1685_v0 = vmul.f32 %v2193_v60, %v2193_v60 }
 0x1a7   : > { %v1668_v2 = vpack.c.bf16 %v2194_v62, %v2193_v60  ;;  %v1675_v3 = vadd.f32 %v2194_v62, %v2193_v60  ;;  %v1686_v4 = vmul.f32 %v2194_v62, %v2194_v62 }
 0x1a9   : > { %1673 = vst [vmem:[%s1672_s8] sm:$0xff] %v1668_v2  ;;  %v1676_v5 = vrot.slane %v1675_v3, 4  ;;  %v1687_v6 = vadd.f32 %v1686_v4, %v1685_v0 }
 0x1ab   : > { %v1677_v7 = vadd.f32 %v1676_v5, %v1675_v3  ;;  %v1688_v8 = vrot.slane %v1687_v6, 4 }
 0x1ad   : > { %v1678_v9 = vrot.slane %v1677_v7, 2  ;;  %v1689_v10 = vadd.f32 %v1688_v8, %v1687_v6 }
 0x1af   : > { %v1679_v11 = vadd.f32 %v1678_v9, %v1677_v7  ;;  %v1690_v13 = vrot.slane %v1689_v10, 2 }
 0x1b1   : > { %v1680_v14 = vrot.slane %v1679_v11, 1  ;;  %v1691_v15 = vadd.f32 %v1690_v13, %v1689_v10 }
 0x1b3   : > { %v1681_v17 = vadd.f32 %v1680_v14, %v1679_v11  ;;  %v1692_v18 = vrot.slane %v1691_v15, 1 }
 0x1b5   : > { %v1682_v21 = vadd.f32 %v1681_v17, %v1674_v16  ;;  %v1693_v22 = vadd.f32 %v1692_v18, %v1691_v15 }
 0x1b7   : > { %1683 = vst [vmem:[#allocation3] sm:$0x1] %v1682_v21  ;;  %v1694_v23 = vadd.f32 %v1693_v22, %v1684_v20 }
 0x1b9   : > { %1695 = vst [vmem:[#allocation4] sm:$0x1] %v1694_v23 }
 0x1ba PF: > { %p2022_p11 = scmp.ne.s32.totalorder %s2472_s16, 1 }
 0x1bb   : > { %p1700_p12 = scmp.eq.s32.totalorder (!%p2022_p11), %s2468_s15, 0 }
 0x1bc   : > { %1699 = sbr.rel (%p2022_p11) target bundleno = 620 (0x26c), region = 60 }
 0x1c3   : > { %1705 = sbr.rel (!%p1700_p12) target bundleno = 605 (0x25d), region = 64  ;;  %v1706_v24 = vld [vmem:[#allocation3] sm:$0x1] (%p1700_p12)  ;;  %v1717_v25 = vld [vmem:[#allocation4] sm:$0x1] (%p1700_p12)  ;;  %s2495_s9 = smov (%p1700_p12), 32  }
 0x1c4   : > { %1707 = vrot.lane.b32.xlu0 (%p1700_p12), %v1706_v24, %s2495_s9  ;;  %1718 = vrot.lane.b32.xlu1 (%p1700_p12), %v1717_v25, %s2495_s9  ;;  %s2496_s10 = smov (%p1700_p12), 64   ;;  %s2497_s24 = smov (%p1700_p12), 96   ;;  %v1731_v45 = vld [vmem:[#allocation9] sm:$0x1] (%p1700_p12)  ;;  %v1736_v47 = vld [vmem:[#allocation11] sm:$0x1] (%p1700_p12) }
 0x1c8   : > { %1710 = vrot.lane.b32.xlu0 (%p1700_p12), %v1706_v24, %s2496_s10  ;;  %1713 = vrot.lane.b32.xlu1 (%p1700_p12), %v1706_v24, %s2497_s24 }
 0x1cc   : > { %1721 = vrot.lane.b32.xlu0 %v1717_v25, %s2496_s10  ;;  %1724 = vrot.lane.b32.xlu1 %v1717_v25, %s2497_s24 }
 0x236   : > { %v1708_v26 = vpop.permute.xlu0 %1707  ;;  %v1719_v27 = vpop.permute.xlu1 %1718 }
 0x237   : > { %v1709_v28 = vadd.f32 %v1708_v26, %v1706_v24  ;;  %v1720_v32 = vadd.f32 %v1719_v27, %v1717_v25 }
 0x23a   : > { %v1711_v29 = vpop.permute.xlu0 %1710  ;;  %v1714_v30 = vpop.permute.xlu1 %1713 }
 0x23b   : > { %v1712_v31 = vadd.f32 %v1711_v29, %v1709_v28 }
 0x23d   : > { %v1715_v33 = vadd.f32 %v1714_v30, %v1712_v31 }
 0x23e   : > { %v1722_v34 = vpop.permute.xlu0 %1721  ;;  %v1725_v35 = vpop.permute.xlu1 %1724 }
 0x23f   : > { %v1716_v36 = vmul.f32 0.0078125, %v1715_v33  ;;  %v1723_v37 = vadd.f32 %v1722_v34, %v1720_v32 }
 0x241   : > { %v1726_v38 = vadd.f32 %v1725_v35, %v1723_v37  ;;  %v1728_v41 = vmul.f32 %v1716_v36, %v1716_v36 }
 0x243   : > { %v1727_v42 = vmul.f32 0.0078125, %v1726_v38 }
 0x245   : > { %v1729_v43 = vsub.f32 %v1727_v42, %v1728_v41 }
 0x247   : > { %v1730_v44 = vmax.f32 %v1729_v43, 0.0 }
 0x249   : > { %v1732_v39 = vadd.f32 1e-05, %v1730_v44 }
 0x24b   : > { %2346 = vrsqrt.f32 %v1732_v39 }
 0x255   : > { %v2347_v46 = vpop.eup %2346 }
 0x256   : > { %v1734_v19 = vmul.f32 %v2347_v46, %v1731_v45 }
 0x258   : > { %1735 = vst [vmem:[#allocation5] sm:$0x1] %v1734_v19  ;;  %v1737_v48 = vmul.f32 %v1734_v19, %v1716_v36 }
 0x25a   : > { %v1738_v50 = vsub.f32 %v1736_v47, %v1737_v48 }
 0x25c   : > { %1739 = vst [vmem:[#allocation6] sm:$0x1] %v1738_v50 }
 0x25d PF: > { %s1740_s16 = sshra.s32 %s1913_s11, 4 }
 0x25e   : > { %s2024_s25 = sshll.u32 %s1740_s16, 3 }
 0x25f   : > { %s1743_s7 = scalar_lea.vmem [#allocation2], %s2024_s25  ;;  %v2025_v52 = vld [vmem:[#allocation5] ss:$0 sm:$0xff] }
 0x260   : > { %v1744_v51 = vld [vmem:[%s1743_s7] sm:$0xff] }
 0x261   : > { %v1745_v12 = vunpack.c.l.bf16 %v1744_v51  ;;  %v1746_v53 = vunpack.c.h.bf16 %v1744_v51 }
 0x263   : > { %v2026_v54 = vld [vmem:[#allocation6] ss:$0 sm:$0xff]  ;;  %v1754_v55 = vmul.f32 %v2025_v52, %v1745_v12  ;;  %v1755_v56 = vmul.f32 %v2025_v52, %v1746_v53 }
 0x265   : > { %v1763_v40 = vadd.f32 %v2026_v54, %v1754_v55  ;;  %v1764_v57 = vadd.f32 %v2026_v54, %v1755_v56 }
 0x267   : > { %v1765_v58 = vmax.f32 %v1763_v40, 0.0  ;;  %v1766_v59 = vmax.f32 %v1764_v57, 0.0 }
 0x269   : > { %v2038_v49 = vpack.c.bf16 %v1766_v59, %v1765_v58 }
 0x26b   : > { %2039 = vst [vmem:[%s2661_s30] sm:$0xff] %v2038_v49  }
 0x26c PF: > { %s16_s19 = sadd.s32 1, %s2484_s19   ;;  %s2873_s15 = smov %s2476_s17 }
 0x26d   : > { %p13_p13 = scmp.ge.s32.totalorder %s16_s19, 6   ;;  %s2874_s16 = smov %s2480_s18 }
 0x26e   : > { %s2875_s17 = smov %s2878_s26  ;;  %s2876_s18 = smov %s2882_s14 }
 0x26f   :  { %15 = sbr.rel (!%p13_p13) target bundleno = 4 (0x4), region = 108 }
 0x276   :  { %1805 = vsyncpa [#allocation8], 1 }
 0x277   :  { %1807 = vsyncpa [#allocation8 + $0x1], 1 }
 0x278   :  { %1808 = vsyncpa [#allocation10], 1 }

// kernel: generator_forward.7
= control target key start
LH: loop header
LB: loop body
LE: loop exit
PB: predicated region body
PF: predicated region fallthrough
CT: control target
= control target key end

     0   :  { %9 = vsyncpa [#allocation8], 0  ;;  %s3593_s0 = inlined_call_operand.vmem [shape: bf16[2,10,10,32], index: 0, kind: input, shape index: {}]   ;;  %s3594_s1 = inlined_call_operand.hbm [shape: bf16[9,32,128], index: 1, kind: input, shape index: {}]   ;;  %s3595_s2 = inlined_call_operand.hbm [shape: f32[1,128], index: 2, kind: input, shape index: {}]   ;;  %s3596_s3 = inlined_call_operand.hbm [shape: f32[1,128], index: 3, kind: input, shape index: {}]   ;;  %s3597_s4 = inlined_call_operand.vmem [shape: bf16[128,128], index: 4, kind: output, shape index: {}]  }
   0x1   :  { %10 = vsyncpa [#allocation10], 0  ;;  %s2987_s15 = smov 0   ;;  %s2989_s16 = smov 0  }
   0x2   :  { %s2991_s17 = smov 0   ;;  %s2993_s18 = smov 0  }
   0x3   :  { %s2995_s19 = smov 0  }
   0x4 LB: > { %s2953_s20 = smov [#allocation9]   ;;  %s2237_s22 = sadd.s32 4294967295, %s2951_s19   ;;  %s2951_s19 = sphi %s2995_s19, %s16_s19   ;;  %s2947_s18 = sphi %s2993_s18, %s3617_s18   ;;  %s2943_s17 = sphi %s2991_s17, %s3616_s17   ;;  %s2939_s16 = sphi %s2989_s16, %s3615_s16   ;;  %s2935_s15 = sphi %s2987_s15, %s3614_s15  }
   0x5   : > { %s191_s21 = sshll.u32 %s2953_s20, 4  ;;  %p2239_p0 = scmp.ge.s32.totalorder %s2951_s19, 1  ;;  %s192_s21 = int_to_ptr.vmem [resolvable:$true] %s191_s21 }
   0x6   : > { %p165_p1 = scmp.lt.s32.totalorder %s2951_s19, 5  ;;  %p3015_p2 = scmp.eq.s32.totalorder %s2237_s22, 0 }
   0x7   : > { %s31_s26 = sadd.s32 1, %s2943_s17  ;;  %s2821_s30 = scalar_lea.hbm %s3595_s2, 16 }
   0x8   : > { %s3602_s23 = scalar_select %p3015_p2, 1, 0 }
   0x9   : > { %p3019_p3 = pnand %p2239_p0, %p165_p1  ;;  %p3032_p6 = scmp.ge.s32.totalorder %s31_s26, 2 }
   0xa   : > { %p2822_p7 = scmp.ne.s32.totalorder %s3595_s2, %s2821_s30  ;;  %p2828_p11 = scmp.lt.u32.totalorder %s2821_s30, %s3595_s2 }
   0xb   : > { %s3603_s24 = scalar_select %p3019_p3, 1, 0 }
   0xc   : > { %p2724_p4 = pneg %p3019_p3 }
   0xd   : > { %s3605_s27 = scalar_select %p3032_p6, 1, 0 }
   0xe   : > { %p3027_p5 = pnand %p3015_p2, %p2724_p4 }
  0x10   : > { %p3044_p8 = pneg %p3027_p5 }
  0x12   : > { %p2824_p9 = pnand %p3044_p8, %p2822_p7 }
  0x14   : > { %p2825_p10 = pneg %p2824_p9 }
  0x16   : > { %p2830_p12 = pnand %p2828_p11, %p2825_p10 }
  0x18   : > { %2833 = shalt.err (!%p2830_p12)
}
  0x19   : > { %s2834_s10 = scalar_lea.vmem %s192_s21, 16  ;;  %s2841_s11 = scalar_lea.vmem %s192_s21, 32 }
  0x1a   : > { %p2835_p13 = scmp.ne.s32.totalorder %s192_s21, %s2834_s10  ;;  %p2842_p4 = scmp.lt.s32.totalorder %s192_s21, %s192_s21 }
  0x1b   : > { %p2843_p2 = scmp.lt.s32.totalorder %s2841_s11, %s2834_s10 }
  0x1c   : > { %p2837_p0 = pnand %p2835_p13, %p3044_p8 }
  0x1d   : > { %p2844_p3 = por %p2843_p2, %p2842_p4 }
  0x1e   : > { %p2838_p1 = pneg %p2837_p0 }
  0x20   : > { %p2845_p6 = pnand %p2844_p3, %p2838_p1 }
  0x22   : > { %2848 = shalt.err (!%p2845_p6)
}
  0x23   : > { %2730 = dma.hbm_to_vmem [thread:$0]  (!%p3027_p5), %s3595_s2, 16, %s192_s21, [#allocation10]  }
  0x24   : > { %p3607_p7 = scmp.ne.s32.totalorder %s3605_s27, 0  ;;  %s35_s14 = sadd.s32 1, %s2947_s18 }
  0x25   : > { %s2954_s20 = smov [#allocation7]   ;;  %s2849_s30 = scalar_lea.hbm %s3594_s1, 2304 }
  0x26   : > { %s3619_s26 = smov (%p3607_p7, %s31_s26), 0  ;;  %s3621_s14 = smov (!%p3607_p7, %s35_s14), %s2947_s18 }
  0x27   : > { %s177_s22 = sshll.u32 %s2954_s20, 4  ;;  %p37_p2 = scmp.ge.s32.totalorder %s3621_s14, 2  ;;  %s178_s22 = int_to_ptr.vmem [resolvable:$true] %s177_s22 }
  0x28   : > { %p2850_p3 = scmp.ne.s32.totalorder %s3594_s1, %s2849_s30  ;;  %p2856_p10 = scmp.lt.u32.totalorder %s2849_s30, %s3594_s1 }
  0x29   : > { %s3623_s14 = smov (%p37_p2, %s3621_s14), 0 }
  0x2a   : > { %p2852_p6 = pnand %p2850_p3, %p3044_p8 }
  0x2c   : > { %p2853_p9 = pneg %p2852_p6 }
  0x2e   : > { %p2858_p11 = pnand %p2856_p10, %p2853_p9 }
  0x30   : > { %2861 = shalt.err (!%p2858_p11)
}
  0x31   : > { %s2862_s8 = scalar_lea.vmem %s178_s22, 2304  ;;  %p2870_p1 = scmp.lt.s32.totalorder %s178_s22, %s178_s22 }
  0x32   : > { %p2863_p12 = scmp.ne.s32.totalorder %s178_s22, %s2862_s8  ;;  %p2871_p4 = scmp.lt.s32.totalorder %s2862_s8, %s2862_s8 }
  0x34   : > { %p2865_p13 = pnand %p2863_p12, %p3044_p8  ;;  %p2872_p7 = por %p2871_p4, %p2870_p1 }
  0x36   : > { %p2866_p0 = pneg %p2865_p13 }
  0x38   : > { %p2873_p2 = pnand %p2872_p7, %p2866_p0 }
  0x3a   : > { %2876 = shalt.err (!%p2873_p2)
}
  0x3b   : > { %s2955_s9 = smov 64   ;;  %s2956_s10 = smov 4  }
  0x3c   : > { %2727 = dma.hbm_to_vmem [thread:$0]  (!%p3027_p5), %s3594_s1, 2304, %s178_s22, [#allocation8], %s2955_s9, %s2955_s9, %s2956_s10  }
  0x3d   : > { %s2957_s13 = smov [#allocation11]   ;;  %s2877_s30 = scalar_lea.hbm %s3596_s3, 16 }
  0x3e   : > { %s202_s20 = sshll.u32 %s2957_s13, 4  ;;  %p2878_p3 = scmp.ne.s32.totalorder %s3596_s3, %s2877_s30  ;;  %s203_s20 = int_to_ptr.vmem [resolvable:$true] %s202_s20 }
  0x3f   : > { %p2884_p10 = scmp.lt.u32.totalorder %s2877_s30, %s3596_s3 }
  0x40   : > { %p2880_p6 = pnand %p2878_p3, %p3044_p8 }
  0x42   : > { %p2881_p9 = pneg %p2880_p6 }
  0x44   : > { %p2886_p11 = pnand %p2884_p10, %p2881_p9 }
  0x46   : > { %2889 = shalt.err (!%p2886_p11)
}
  0x47   : > { %s2890_s22 = scalar_lea.vmem %s203_s20, 16  ;;  %s2897_s8 = scalar_lea.vmem %s203_s20, 32 }
  0x48   : > { %p2891_p12 = scmp.ne.s32.totalorder %s203_s20, %s2890_s22  ;;  %p2898_p1 = scmp.lt.s32.totalorder %s203_s20, %s203_s20 }
  0x49   : > { %p2899_p4 = scmp.lt.s32.totalorder %s2897_s8, %s2890_s22 }
  0x4a   : > { %p2893_p13 = pnand %p2891_p12, %p3044_p8 }
  0x4b   : > { %p2900_p7 = por %p2899_p4, %p2898_p1 }
  0x4c   : > { %p2894_p0 = pneg %p2893_p13 }
  0x4e   : > { %p2901_p2 = pnand %p2900_p7, %p2894_p0 }
  0x50   : > { %2904 = shalt.err (!%p2901_p2)
}
  0x51   : > { %2733 = dma.hbm_to_vmem [thread:$0]  (!%p3027_p5), %s3596_s3, 16, %s203_s20, [#allocation10]  }
  0x52   : > { %p3608_p3 = scmp.ne.s32.totalorder %s3603_s24, 0 }
  0x53   : > { %p3609_p6 = scmp.ne.s32.totalorder (!%p3608_p3), %s3602_s23, 0 }
  0x54   : > { %229 = sbr.rel (%p3608_p3) target bundleno = 630 (0x276), region = 36 }
  0x5b   : > { %2926 = dma.done.wait (%p3609_p6), [#allocation8], 2304  }
  0x5c   : > { %2928 = vsyncadd (%p3609_p6), [#allocation8], 4294964992 }
  0x5d   : > { %2930 = dma.done.wait (%p3609_p6), [#allocation10], 32  }
  0x5e   : > { %2932 = vsyncadd (%p3609_p6), [#allocation10], 4294967264  ;;  %s268_s24 = ssub.s32 1, %s2939_s16  ;;  %s280_s25 = smul.u32 %s2935_s15, %s2939_s16 }
  0x5f   : > { %s269_s7 = smul.u32 %s2935_s15, %s268_s24  ;;  %s2251_s11 = sshll.u32 %s2935_s15, 6 }
  0x60   : > { %s2249_s12 = sshll.u32 %s280_s25, 3  ;;  %p2252_p9 = scmp.ne.s32.totalorder %s2939_s16, 0 }
  0x61   : > { %s270_s13 = sadd.s32 %s2939_s16, %s269_s7  ;;  %p282_p5 = scmp.lt.s32.totalorder %s2249_s12, 15 }
  0x62   : > { %p271_p8 = scmp.lt.s32.totalorder %s270_s13, 1  ;;  %297 = sbr.rel (%p2252_p9) target bundleno = 451 (0x1c3), region = 52 }
  0x63   : > { %s3625_s12 = smov (!%p282_p5, %s2249_s12), 15  ;;  %p298_p10 = scmp.eq.s32.totalorder (!%p2252_p9), %s2935_s15, 0 }
  0x64   : > { %s3627_s13 = smov (!%p271_p8, %s270_s13), 1  ;;  %s2250_s20 = sshll.u32 %s3625_s12, 2 }
  0x65   : > { %s2711_s28 = smul.u32 80, %s3627_s13  ;;  %s3125_s30 = scalar_lea.vmem %s3597_s4, %s2250_s20 }
  0x67   : > { %s3130_s21 = scalar_lea.vmem %s3593_s0, %s2711_s28 }
  0x69   : > { %303 = sbr.rel (!%p298_p10) target bundleno = 112 (0x70), region = 56  ;;  %v2958_v0 = vmov (%p298_p10), 0.0  }
  0x6a   : > { %304 = vst [vmem:[#allocation3] sm:$0x1] (%p298_p10), %v2958_v0  ;;  %305 = vst [vmem:[#allocation4] sm:$0x1] (%p298_p10), %v2958_v0 }
  0x70 PF: > { %v2789_v1 = vld [vmem:[#allocation7 + $0x10] sm:$0xff]   ;;  %v3134_v2 = vld [vmem:[#allocation7 + $0x40] sm:$0xff]   ;;  %v2791_v3 = vld [vmem:[#allocation7 + $0x18] sm:$0xff]   ;;  %vm329_vm0 = vsmask.f32 3328  ;;  %vm473_vm2 = vcmask 261120  }
  0x71   : > { %2535 = vmatprep.subr.bf16.mxu1 %v2789_v1  ;;  %2583 = vmatprep.subr.bf16.mxu0 %v3134_v2  ;;  %v3137_v4 = vld [vmem:[#allocation7 + $0x48] sm:$0xff]   ;;  %v3141_v5 = vld [vmem:[%s3130_s21] sm:$0xf]  ;;  %v3144_v6 = vld [vmem:[%s3130_s21 + $0x8] sm:$0xf]  ;;  %vm684_vm4 = vcmask 1042432  }
  0x72   : > { %2536 = vmatpush3.bf16.msra.mxu1 %v2789_v1  ;;  %2584 = vmatpush3.bf16.msra.mxu0 %v3134_v2  ;;  %v3147_v7 = vld [vmem:[%s3130_s21 + $0x4] sm:$0x1]  ;;  %v3151_v8 = vld [vmem:[%s3130_s21 + $0xc] sm:$0x1]  ;;  %v333_v9 = vshrl.u32 %v3141_v5, 16  ;;  %v336_v10 = vshll.u32 %v3141_v5, 16 }
  0x73   : > { %2537 = vmatprep.subr.bf16.mxu1 %v2791_v3  ;;  %2585 = vmatprep.subr.bf16.mxu0 %v3137_v4  ;;  %v342_v11 = vshll.u32 %v3147_v7, 16  ;;  %v347_v12 = vshrl.u32 %v3144_v6, 16  ;;  %vm330_vm1 = vsmask.f32 7440  ;;  %v350_v13 = vshll.u32 %v3144_v6, 16  ;;  %v3160_v19 = vld [vmem:[#allocation7] sm:$0xff]  }
  0x74   : > { %v356_v14 = vshll.u32 %v3151_v8, 16  ;;  %v335_v15 = vrot.slane %v333_v9, 4  ;;  %v338_v16 = vrot.slane %v336_v10, 5  ;;  %v3162_v20 = vld [vmem:[#allocation7 + $0x50] sm:$0xff]   ;;  %v2310_v23 = vld [vmem:[%s3130_s21 + $0x8] sm:$0xf]  ;;  %vm3176_vm3 = vmor %vm329_vm0, %vm330_vm1 }
  0x75   : > { %v344_v17 = vrot.slane %v342_v11, 5  ;;  %v349_v18 = vrot.slane %v347_v12, 4  ;;  %v352_v21 = vrot.slane %v350_v13, 5  ;;  %v3166_v24 = vld [vmem:[%s3130_s21 + $0xc] sm:$0x1]  ;;  %v984_v28 = vshrl.u32 %v2310_v23, 16 }
  0x76   : > { %2538 = vmatpush3.bf16.msra.mxu1 %v2791_v3  ;;  %2586 = vmatpush3.bf16.msra.mxu0 %v3137_v4  ;;  %v358_v22 = vrot.slane %v356_v14, 5  ;;  %v339_v25 = vor.u32 %v338_v16, %v335_v15  ;;  %v2312_v26 = vld [vmem:[%s3130_s21 + $0x10] sm:$0xf]  ;;  %v3171_v27 = vld [vmem:[%s3130_s21 + $0x14] sm:$0x1]  ;;  %v987_v29 = vshll.u32 %v2310_v23, 16 }
  0x77   : > { %2547 = vmatprep.subr.bf16.mxu1 %v3160_v19  ;;  %2595 = vmatprep.subr.bf16.mxu0 %v3162_v20  ;;  %v353_v31 = vor.u32 %v352_v21, %v349_v18  ;;  %v993_v32 = vshll.u32 %v3166_v24, 16  ;;  %v998_v33 = vshrl.u32 %v2312_v26, 16  ;;  %v1001_v34 = vshll.u32 %v2312_v26, 16  ;;  %v3183_v43 = vld [vmem:[%s3130_s21 + $0x10] sm:$0xf]  ;;  %s1929_s27 = sshra.s32 %s2251_s11, 4 }
  0x78   : > { %v340_v35 = vrot.slane %v339_v25, 4  ;;  %v986_v36 = vrot.slane %v984_v28, 4  ;;  %v989_v37 = vrot.slane %v987_v29, 5  ;;  %v1007_v38 = vshll.u32 %v3171_v27, 16  ;;  %v3189_v48 = vld [vmem:[%s3130_s21 + $0x18] sm:$0xf] }
  0x79   : > { %v354_v39 = vrot.slane %v353_v31, 4  ;;  %v995_v40 = vrot.slane %v993_v32, 5  ;;  %v1000_v41 = vrot.slane %v998_v33, 4  ;;  %v1003_v42 = vrot.slane %v1001_v34, 5  ;;  %v3192_v49 = vld [vmem:[%s3130_s21 + $0x14] sm:$0x1] }
  0x7a   : > { %v345_v44 = vsel %vm3176_vm3, %v340_v35, %v344_v17  ;;  %v990_v45 = vor.u32 %v989_v37, %v986_v36  ;;  %v1009_v46 = vrot.slane %v1007_v38, 5  ;;  %v1235_v47 = vrot.slane %v3166_v24, 5  ;;  %v3198_v53 = vld [vmem:[%s3130_s21 + $0x1c] sm:$0x1]  ;;  %v2314_v63 = vld [vmem:[%s3130_s21 + $0x18] sm:$0xf] }
  0x7b   : > { %v359_v50 = vsel %vm3176_vm3, %v354_v39, %v358_v22  ;;  %v1004_v51 = vor.u32 %v1003_v42, %v1000_v41  ;;  %v1239_v52 = vrot.slane %v3171_v27, 5  ;;  %v361_v54 = vshrl.u32 %v3183_v43, 16  ;;  %v3211_v9 = vld [vmem:[%s3130_s21 + $0x1c] sm:$0x1]  ;;  %v2316_v10 = vld [vmem:[%s3130_s21 + $0x20] sm:$0xf] }
  0x7c   : > { %v2254_v55 = vcombine.low %v345_v44, %v359_v50  ;;  %v991_v56 = vrot.slane %v990_v45, 4  ;;  %v364_v57 = vshll.u32 %v3183_v43, 16  ;;  %v370_v58 = vshll.u32 %v3192_v49, 16  ;;  %v3217_v14 = vld [vmem:[%s3130_s21 + $0x24] sm:$0x1]  ;;  %s2432_s22 = sshll.u32 %s1929_s27, 3 }
  0x7d   : > { %v1005_v59 = vrot.slane %v1004_v51, 4  ;;  %v363_v60 = vrot.slane %v361_v54, 4  ;;  %v375_v61 = vshrl.u32 %v3189_v48, 16  ;;  %v378_v62 = vshll.u32 %v3189_v48, 16  ;;  %v3221_v26 = vld [vmem:[%s3130_s21 + $0x20] sm:$0xf] }
  0x7e   : > { %2539 = vmatprep.mubr.msk.bf16.mxu1 %vm473_vm2, %v2254_v55  ;;  %v996_v0 = vsel %vm3176_vm3, %v991_v56, %v995_v40  ;;  %v366_v1 = vrot.slane %v364_v57, 5  ;;  %v384_v3 = vshll.u32 %v3198_v53, 16  ;;  %v372_v17 = vrot.slane %v370_v58, 5  ;;  %v3226_v33 = vld [vmem:[%s3130_s21 + $0x28] sm:$0xf]  ;;  %v2796_v58 = vld [vmem:[#allocation7 + $0x8] sm:$0xff]  }
  0x7f   : > { %v1010_v11 = vsel %vm3176_vm3, %v1005_v59, %v1009_v46  ;;  %v377_v12 = vrot.slane %v375_v61, 4  ;;  %v380_v13 = vrot.slane %v378_v62, 5  ;;  %v1012_v22 = vshrl.u32 %v2314_v63, 16  ;;  %v3229_v38 = vld [vmem:[%s3130_s21 + $0x24] sm:$0x1]  ;;  %s3564_s8 = scalar_lea.vmem [#allocation2], %s2432_s22 }
  0x80   : > { %v2326_v15 = vcombine.low %v996_v0, %v1010_v11  ;;  %v367_v16 = vor.u32 %v366_v1, %v363_v60  ;;  %v386_v18 = vrot.slane %v384_v3, 5  ;;  %v1015_v23 = vshll.u32 %v2314_v63, 16  ;;  %v3238_v51 = vld [vmem:[%s3130_s21 + $0x2c] sm:$0x1]  ;;  %v3243_v59 = vld [vmem:[%s3130_s21 + $0x30] sm:$0xf] }
  0x81   : > { %v381_v21 = vor.u32 %v380_v13, %v377_v12  ;;  %v1021_v25 = vshll.u32 %v3211_v9, 16  ;;  %v1026_v29 = vshrl.u32 %v2316_v10, 16  ;;  %v1029_v31 = vshll.u32 %v2316_v10, 16  ;;  %v3249_v0 = vld [vmem:[%s3130_s21 + $0x38] sm:$0xf] }
  0x82   : > { %2587 = vmatprep.mubr.msk.bf16.mxu0 %vm473_vm2, %v2326_v15  ;;  %v368_v28 = vrot.slane %v367_v16, 4  ;;  %v1035_v32 = vshll.u32 %v3217_v14, 16  ;;  %vm685_vm5 = vcmask 1046532   ;;  %v1014_v35 = vrot.slane %v1012_v22, 4  ;;  %v3252_v1 = vld [vmem:[%s3130_s21 + $0x34] sm:$0x1] }
  0x83   : > { %v382_v34 = vrot.slane %v381_v21, 4  ;;  %v1017_v36 = vrot.slane %v1015_v23, 5  ;;  %v1023_v37 = vrot.slane %v1021_v25, 5  ;;  %v1028_v40 = vrot.slane %v1026_v29, 4  ;;  %v3257_v13 = vld [vmem:[%s3130_s21 + $0x3c] sm:$0x1]  ;;  %vm3279_vm6 = vmor %vm684_vm4, %vm685_vm5 }
  0x84   : > { %v373_v39 = vsel %vm3176_vm3, %v368_v28, %v372_v17  ;;  %v1031_v41 = vrot.slane %v1029_v31, 5  ;;  %v1037_v42 = vrot.slane %v1035_v32, 5  ;;  %v1243_v46 = vrot.slane %v3211_v9, 5  ;;  %v2795_v16 = vld [vmem:[#allocation7 + $0x58] sm:$0xff]   ;;  %v2336_v22 = vld [vmem:[%s3130_s21 + $0x8] sm:$0xe] }
  0x85   : > { %v387_v44 = vsel %vm3176_vm3, %v382_v34, %v386_v18  ;;  %v1018_v45 = vor.u32 %v1017_v36, %v1014_v35  ;;  %v1247_v50 = vrot.slane %v3217_v14, 5  ;;  %v389_v56 = vshrl.u32 %v3221_v26, 16  ;;  %v3263_v23 = vld [vmem:[#allocation7 + $0x20] sm:$0xff]   ;;  %v2337_v36 = vld [vmem:[%s3130_s21 + $0x10] sm:$0xe] }
  0x86   : > { %v2255_v54 = vcombine.low %v373_v39, %v387_v44  ;;  %v1032_v55 = vor.u32 %v1031_v41, %v1028_v40  ;;  %v392_v57 = vshll.u32 %v3221_v26, 16  ;;  %v398_v61 = vshll.u32 %v3229_v38, 16  ;;  %v2342_v27 = vld [vmem:[%s3130_s21 + $0x38] sm:$0xe]  ;;  %v2343_v9 = vld [vmem:[%s3130_s21 + $0x40] sm:$0xe] }
  0x87   : > { %v1019_v60 = vrot.slane %v1018_v45, 4  ;;  %v403_v62 = vshrl.u32 %v3226_v33, 16  ;;  %v406_v63 = vshll.u32 %v3226_v33, 16  ;;  %v391_v10 = vrot.slane %v389_v56, 4 }
  0x88   : > { %2540 = vmatmul.mubr.msk.bf16.vlgmr.msra.gmra.mrb[0].mxu1 %vm473_vm2, %v2255_v54  ;;  %v1033_v3 = vrot.slane %v1032_v55, 4  ;;  %v394_v11 = vrot.slane %v392_v57, 5  ;;  %v412_v12 = vshll.u32 %v3238_v51, 16  ;;  %v400_v17 = vrot.slane %v398_v61, 5 }
  0x89   : > { %2548 = vmatpush3.bf16.msra.mxu1 %v3160_v19  ;;  %v1024_v15 = vsel %vm3176_vm3, %v1019_v60, %v1023_v37  ;;  %v405_v18 = vrot.slane %v403_v62, 4  ;;  %v408_v21 = vrot.slane %v406_v63, 5  ;;  %v417_v19 = vshrl.u32 %v3243_v59, 16  ;;  %v2338_v37 = vld [vmem:[%s3130_s21 + $0x18] sm:$0xe] }
  0x8a   : > { %v1038_v25 = vsel %vm3176_vm3, %v1033_v3, %v1037_v42  ;;  %v395_v28 = vor.u32 %v394_v11, %v391_v10  ;;  %v414_v29 = vrot.slane %v412_v12, 5  ;;  %2549 = vmatprep.subr.bf16.mxu1 %v2796_v58  ;;  %v420_v34 = vshll.u32 %v3243_v59, 16  ;;  %v2339_v42 = vld [vmem:[%s3130_s21 + $0x20] sm:$0xe]  ;;  %v2797_v3 = vld [vmem:[#allocation7 + $0x60] sm:$0xff]  }
  0x8b   : > { %v2327_v31 = vcombine.low %v1024_v15, %v1038_v25  ;;  %v409_v32 = vor.u32 %v408_v21, %v405_v18  ;;  %v426_v35 = vshll.u32 %v3252_v1, 16  ;;  %v419_v40 = vrot.slane %v417_v19, 4  ;;  %v3293_v15 = vld [vmem:[%s3130_s21 + $0x34] sm:$0x1] }
  0x8c   : > { %v396_v39 = vrot.slane %v395_v28, 4  ;;  %v431_v41 = vshrl.u32 %v3249_v0, 16  ;;  %v434_v44 = vshll.u32 %v3249_v0, 16  ;;  %v422_v54 = vrot.slane %v420_v34, 5  ;;  %v2341_v28 = vld [vmem:[%s3130_s21 + $0x30] sm:$0xe] }
  0x8d   : > { %2588 = vmatmul.mubr.msk.bf16.vlgmr.msra.gmra.mrb[0].mxu0 %vm473_vm2, %v2327_v31  ;;  %v410_v45 = vrot.slane %v409_v32, 4  ;;  %v428_v55 = vrot.slane %v426_v35, 5  ;;  %v440_v56 = vshll.u32 %v3257_v13, 16  ;;  %2550 = vmatpush3.bf16.msra.mxu1 %v2796_v58  ;;  %v2344_v63 = vrot.slane %v2336_v22, 9  ;;  %v3288_v58 = vld [vmem:[%s3130_s21 + $0x2c] sm:$0x1] }
  0x8e   : > { %2596 = vmatpush3.bf16.msra.mxu0 %v3162_v20  ;;  %v401_v60 = vsel %vm3176_vm3, %v396_v39, %v400_v17  ;;  %v433_v61 = vrot.slane %v431_v41, 4  ;;  %v436_v62 = vrot.slane %v434_v44, 5  ;;  %2559 = vmatprep.subr.bf16.mxu1 %v3263_v23  ;;  %v423_v11 = vor.u32 %v422_v54, %v419_v40  ;;  %v2340_v17 = vld [vmem:[%s3130_s21 + $0x28] sm:$0xe]  ;;  %v3306_v32 = vld [vmem:[%s3130_s21 + $0x3c] sm:$0x1] }
  0x8f   : > { %2597 = vmatprep.subr.bf16.mxu0 %v2795_v16  ;;  %v415_v10 = vsel %vm3176_vm3, %v410_v45, %v414_v29  ;;  %v442_v12 = vrot.slane %v440_v56, 5  ;;  %v2345_v20 = vrot.slane %v2337_v36, 9  ;;  %v1236_v22 = vsel %vm3279_vm6, %v2344_v63, %v1235_v47  ;;  %v3314_v36 = vld [vmem:[%s3130_s21 + $0x44] sm:$0x1] }
  0x90   : > { %v2256_v18 = vcombine.low %v401_v60, %v415_v10  ;;  %v437_v21 = vor.u32 %v436_v62, %v433_v61  ;;  %v2346_v25 = vrot.slane %v2338_v37, 9  ;;  %v424_v19 = vrot.slane %v423_v11, 4  ;;  %v2801_v60 = vld [vmem:[#allocation7 + $0x68] sm:$0xff]   ;;  %v661_v62 = vld [vmem:[%s3130_s21 + $0x8] sm:$0xe] }
  0x91   : > { %v1240_v29 = vsel %vm3279_vm6, %v2345_v20, %v1239_v52  ;;  %v2347_v31 = vrot.slane %v2339_v42, 9  ;;  %v2348_v35 = vrot.slane %v2340_v17, 9  ;;  %v1251_v37 = vrot.slane %v3288_v58, 5  ;;  %v2803_v20 = vld [vmem:[#allocation7 + $0x28] sm:$0xff]   ;;  %v3352_v17 = vld [vmem:[#allocation7 + $0x70] sm:$0xff]  }
  0x92   : > { %2598 = vmatpush3.bf16.msra.mxu0 %v2795_v16  ;;  %2543 = vmatprep.mubr.msk.bf16.mxu1 %vm473_vm2, %v2256_v18  ;;  %v438_v34 = vrot.slane %v437_v21, 4  ;;  %v2352_v24 = vcombine.low %v1236_v22, %v1240_v29  ;;  %v1244_v47 = vsel %vm3279_vm6, %v2346_v25, %v1243_v46  ;;  %v429_v52 = vsel %vm3176_vm3, %v424_v19, %v428_v55  ;;  %v662_v21 = vld [vmem:[%s3130_s21 + $0x10] sm:$0xe]  ;;  %v663_v22 = vld [vmem:[%s3130_s21 + $0x18] sm:$0xe] }
  0x93   : > { %2607 = vmatprep.subr.bf16.mxu0 %v2797_v3  ;;  %v1248_v16 = vsel %vm3279_vm6, %v2347_v31, %v1247_v50  ;;  %v2349_v39 = vrot.slane %v2341_v28, 9  ;;  %v2264_v40 = vcombine.low %v3141_v5, %v3144_v6  ;;  %v1255_v41 = vrot.slane %v3293_v15, 5  ;;  %v660_v6 = vld [vmem:[%s3130_s21] sm:$0xe]  ;;  %v665_v31 = vld [vmem:[%s3130_s21 + $0x28] sm:$0xe] }
  0x94   : > { %v443_v46 = vsel %vm3176_vm3, %v438_v34, %v442_v12  ;;  %2599 = vmatprep.mubr.msk.bf16.mxu0 %vm473_vm2, %v2352_v24  ;;  %v2353_v44 = vcombine.low %v1244_v47, %v1248_v16  ;;  %v1252_v50 = vsel %vm3279_vm6, %v2348_v35, %v1251_v37  ;;  %v2350_v45 = vrot.slane %v2342_v27, 9  ;;  %v664_v19 = vld [vmem:[%s3130_s21 + $0x20] sm:$0xe]  ;;  %v3378_v35 = vld [vmem:[%s3130_s21 + $0x30] sm:$0xe] }
  0x95   : > { %v2257_v14 = vcombine.low %v429_v52, %v443_v46  ;;  %v1256_v42 = vsel %vm3279_vm6, %v2349_v39, %v1255_v41  ;;  %v1259_v54 = vrot.slane %v3306_v32, 5  ;;  %v2351_v55 = vrot.slane %v2343_v9, 9  ;;  %v3381_v27 = vld [vmem:[%s3130_s21 + $0x38] sm:$0xe]  ;;  %v3388_v37 = vld [vmem:[%s3130_s21 + $0x14] sm:$0x1] }
  0x96   : > { %v2354_v56 = vcombine.low %v1252_v50, %v1256_v42  ;;  %v1263_v5 = vrot.slane %v3314_v36, 5  ;;  %v689_v61 = vrot.slane %v3147_v7, 5  ;;  %v693_v63 = vrot.slane %v3151_v8, 5  ;;  %v2382_v39 = vld [vmem:[%s3130_s21 + $0x18] sm:$0xf] }
  0x97   : > { %2544 = vmatmul.mubr.msk.bf16.gmra.mrb[4].mxu1 %vm473_vm2, %v2257_v14  ;;  %v697_v10 = vrot.slane %v3192_v49, 5  ;;  %v1260_v11 = vsel %vm3279_vm6, %v2350_v45, %v1259_v54  ;;  %v2265_v12 = vcombine.low %v3183_v43, %v3189_v48  ;;  %v2274_v8 = vrot.slane %v660_v6, 9  ;;  %v2807_v46 = vld [vmem:[%s3130_s21 + $0x20] ss:$8 sps:$4 sm:$0xff]   ;;  %v3401_v14 = vld [vmem:[%s3130_s21 + $0x1c] sm:$0x1] }
  0x98   : > { %2551 = vmatprep.mubr.msk.bf16.mxu1 %vm473_vm2, %v2264_v40  ;;  %v1264_v7 = vsel %vm3279_vm6, %v2351_v55, %v1263_v5  ;;  %v2275_v18 = vrot.slane %v661_v62, 9  ;;  %v2266_v49 = vcombine.low %v3221_v26, %v3226_v33  ;;  %v701_v28 = vrot.slane %v3198_v53, 5  ;;  %v3368_v33 = vld [vmem:[#allocation7 + $0x30] sm:$0xff]   ;;  %v2384_v6 = vld [vmem:[%s3130_s21 + $0x20] sm:$0xf] }
  0x99   : > { %2600 = vmatmul.mubr.msk.bf16.vlgmr.msra.gmra.mrb[0].mxu0 %vm473_vm2, %v2353_v44  ;;  %v2355_v25 = vcombine.low %v1260_v11, %v1264_v7  ;;  %v705_v43 = vrot.slane %v3229_v38, 5  ;;  %v690_v48 = vsel %vm3279_vm6, %v2274_v8, %v689_v61  ;;  %v2276_v53 = vrot.slane %v662_v21, 9  ;;  %v2809_v44 = vld [vmem:[%s3130_s21 + $0x30] ss:$8 sps:$4 sm:$0xff]   ;;  %v3415_v11 = vld [vmem:[%s3130_s21 + $0x24] sm:$0x1] }
  0x9a   : > { %2608 = vmatpush3.bf16.msra.mxu0 %v2797_v3  ;;  %2603 = vmatprep.mubr.msk.bf16.mxu0 %vm473_vm2, %v2354_v56  ;;  %v2805_v3 = vld [vmem:[%s3130_s21 + $0x10] ss:$8 sps:$4 sm:$0xff]   ;;  %v694_v26 = vsel %vm3279_vm6, %v2275_v18, %v693_v63  ;;  %v2277_v29 = vrot.slane %v663_v22, 9  ;;  %v2278_v38 = vrot.slane %v664_v19, 9  ;;  %v709_v34 = vrot.slane %v3238_v51, 5 }
  0x9b   : > { %2609 = vmatprep.subr.bf16.mxu0 %v2801_v60  ;;  %v713_v24 = vrot.slane %v3252_v1, 5  ;;  %v717_v47 = vrot.slane %v3257_v13, 5  ;;  %v2267_v52 = vcombine.low %v3243_v59, %v3249_v0  ;;  %v2282_v51 = vcombine.low %v690_v48, %v694_v26  ;;  %v2386_v7 = vld [vmem:[%s3130_s21 + $0x28] sm:$0xf]  ;;  %v3420_v18 = vld [vmem:[%s3130_s21 + $0x2c] sm:$0x1] }
  0x9c   : > { %v2279_v16 = vrot.slane %v665_v31, 9  ;;  %v3394_v40 = vsel %vm3279_vm6, %v2276_v53, %v697_v10  ;;  %v3398_v41 = vsel %vm3279_vm6, %v2277_v29, %v701_v28  ;;  %v1539_v0 = vshll.u32 %v3388_v37, 16 }
  0x9d   : > { %v2280_v50 = vrot.slane %v3378_v35, 9  ;;  %v1544_v45 = vshrl.u32 %v2382_v39, 16  ;;  %v1547_v54 = vshll.u32 %v2382_v39, 16  ;;  %v2281_v55 = vrot.slane %v3381_v27, 9  ;;  %v2812_v27 = vld [vmem:[#allocation7 + $0x38] sm:$0xff]  }
  0x9e   : > { %2610 = vmatpush3.bf16.msra.mxu0 %v2801_v60  ;;  %v1541_v60 = vrot.slane %v1539_v0, 5  ;;  %v1553_v5 = vshll.u32 %v3401_v14, 16  ;;  %v706_v61 = vsel %vm3279_vm6, %v2278_v38, %v705_v43  ;;  %v710_v62 = vsel %vm3279_vm6, %v2279_v16, %v709_v34  ;;  %v2811_v34 = vld [vmem:[%s3130_s21 + $0x40] ss:$8 sps:$4 sm:$0xff]   ;;  %v2390_v0 = vld [vmem:[%s3130_s21 + $0x38] sm:$0xf] }
  0x9f   : > { %2552 = vmatmul.mubr.msk.bf16.vlgmr.msra.gmra.mrb[0].mxu1 %vm473_vm2, %v2265_v12  ;;  %2619 = vmatprep.subr.bf16.mxu0 %v3352_v17  ;;  %v1546_v63 = vrot.slane %v1544_v45, 4  ;;  %v1549_v10 = vrot.slane %v1547_v54, 5  ;;  %v2810_v12 = vld [vmem:[#allocation7 + $0x78] sm:$0xff]   ;;  %v1567_v22 = vshll.u32 %v3415_v11, 16  ;;  %v1575_v28 = vshll.u32 %v2386_v7, 16 }
  0xa0   : > { %2560 = vmatpush3.bf16.msra.mxu1 %v3263_v23  ;;  %2555 = vmatprep.mubr.msk.bf16.mxu1 %vm473_vm2, %v2266_v49  ;;  %v2380_v23 = vld [vmem:[%s3130_s21 + $0x10] sm:$0xf]  ;;  %v1555_v8 = vrot.slane %v1553_v5, 5  ;;  %v1558_v49 = vshrl.u32 %v2384_v6, 16  ;;  %v1581_v26 = vshll.u32 %v3420_v18, 16  ;;  %v2283_v53 = vcombine.low %v3394_v40, %v3398_v41 }
  0xa1   : > { %2604 = vmatmul.mubr.msk.bf16.gmra.mrb[4].mxu0 %vm473_vm2, %v2355_v25  ;;  %2561 = vmatprep.subr.bf16.mxu1 %v2803_v20  ;;  %v1530_v9 = vshrl.u32 %v2380_v23, 16  ;;  %v1533_v59 = vshll.u32 %v2380_v23, 16  ;;  %v1550_v21 = vor.u32 %v1549_v10, %v1546_v63  ;;  %v1572_v25 = vshrl.u32 %v2386_v7, 16  ;;  %v2388_v40 = vld [vmem:[%s3130_s21 + $0x30] sm:$0xf] }
  0xa2   : > { %2611 = vmatprep.mubr.msk.bf16.mxu0 %vm473_vm2, %v2805_v3  ;;  %v1561_v3 = vshll.u32 %v2384_v6, 16  ;;  %v1560_v43 = vrot.slane %v1558_v49, 4  ;;  %v1577_v38 = vrot.slane %v1575_v28, 5  ;;  %v2284_v35 = vcombine.low %v706_v61, %v710_v62  ;;  %v3445_v41 = vld [vmem:[%s3130_s21 + $0x34] sm:$0x1] }
  0xa3   : > { %v1532_v42 = vrot.slane %v1530_v9, 4  ;;  %v1535_v56 = vrot.slane %v1533_v59, 5  ;;  %v1551_v29 = vrot.slane %v1550_v21, 4  ;;  %v1574_v31 = vrot.slane %v1572_v25, 4  ;;  %v2392_v63 = vld [vmem:[%s3130_s21 + $0x40] sm:$0xf] }
  0xa4   : > { %2562 = vmatpush3.bf16.msra.mxu1 %v2803_v20  ;;  %v1563_v48 = vrot.slane %v1561_v3, 5  ;;  %v1569_v39 = vrot.slane %v1567_v22, 5  ;;  %v718_v1 = vsel %vm3279_vm6, %v2281_v55, %v717_v47  ;;  %v1589_v45 = vshll.u32 %v2388_v40, 16  ;;  %v2814_v49 = vld [vmem:[%s3130_s21 + $0x8] ss:$8 sps:$4 sm:$0xff]  }
  0xa5   : > { %2571 = vmatprep.subr.bf16.mxu1 %v3368_v33  ;;  %v1536_v20 = vor.u32 %v1535_v56, %v1532_v42  ;;  %v1556_v16 = vsel %vm3176_vm3, %v1551_v29, %v1555_v8  ;;  %v1578_v9 = vor.u32 %v1577_v38, %v1574_v31  ;;  %v1595_v54 = vshll.u32 %v3445_v41, 16  ;;  %v2394_v8 = vld [vmem:[%s3130_s21 + $0x48] sm:$0xf]  ;;  %v3476_v21 = vld [vmem:[%s3130_s21 + $0x4c] sm:$0x1] }
  0xa6   : > { %v1600_v56 = vshrl.u32 %v2390_v0, 16  ;;  %v1049_v55 = vshll.u32 %v3288_v58, 16  ;;  %v1591_v6 = vrot.slane %v1589_v45, 5  ;;  %v1614_v22 = vshrl.u32 %v2392_v63, 16 }
  0xa7   : > { %2556 = vmatmul.mubr.msk.bf16.gmra.mrb[4].mxu1 %vm473_vm2, %v2267_v52  ;;  %v1537_v19 = vrot.slane %v1536_v20, 4  ;;  %v3439_v52 = vld [vmem:[#allocation7 + $0x80] sm:$0xff]   ;;  %v1579_v42 = vrot.slane %v1578_v9, 4  ;;  %v1597_v61 = vrot.slane %v1595_v54, 5  ;;  %v1617_v25 = vshll.u32 %v2392_v63, 16 }
  0xa8   : > { %2563 = vmatprep.mubr.msk.bf16.mxu1 %vm473_vm2, %v2282_v51  ;;  %v1564_v51 = vor.u32 %v1563_v48, %v1560_v43  ;;  %v1602_v62 = vrot.slane %v1600_v56, 4  ;;  %v3470_v20 = vld [vmem:[%s3130_s21 + $0x44] sm:$0x1]  ;;  %v1628_v43 = vshrl.u32 %v2394_v8, 16  ;;  %v1631_v48 = vshll.u32 %v2394_v8, 16 }
  0xa9   : > { %2612 = vmatmul.mubr.msk.bf16.vlgmr.msra.gmra.mrb[0].mxu0 %vm473_vm2, %v2807_v46  ;;  %v1542_v23 = vsel %vm3176_vm3, %v1537_v19, %v1541_v60  ;;  %v1583_v46 = vrot.slane %v1581_v26, 5  ;;  %v1603_v60 = vshll.u32 %v2390_v0, 16  ;;  %v1623_v28 = vshll.u32 %v3470_v20, 16  ;;  %v2408_v54 = vld [vmem:[%s3130_s21 + $0x20] sm:$0xe] }
  0xaa   : > { %2620 = vmatpush3.bf16.msra.mxu0 %v3352_v17  ;;  %2615 = vmatprep.mubr.msk.bf16.mxu0 %vm473_vm2, %v2809_v44  ;;  %v3435_v17 = vsel %vm3279_vm6, %v2280_v50, %v713_v24  ;;  %v2396_v24 = vcombine.low %v1542_v23, %v1556_v16  ;;  %v1565_v59 = vrot.slane %v1564_v51, 4  ;;  %v3453_v44 = vld [vmem:[%s3130_s21 + $0x3c] sm:$0x1]  ;;  %v1586_v50 = vshrl.u32 %v2388_v40, 16  ;;  %v2406_v40 = vld [vmem:[%s3130_s21 + $0x10] sm:$0xe] }
  0xab   : > { %2621 = vmatprep.subr.bf16.mxu0 %v2810_v12  ;;  %v1609_v47 = vshll.u32 %v3453_v44, 16  ;;  %v2285_v5 = vcombine.low %v3435_v17, %v718_v1  ;;  %v1584_v7 = vsel %vm3176_vm3, %v1579_v42, %v1583_v46  ;;  %v1637_v26 = vshll.u32 %v3476_v21, 16  ;;  %v2816_v17 = vld [vmem:[#allocation7 + $0x88] sm:$0xff]   ;;  %v2407_v1 = vld [vmem:[%s3130_s21 + $0x18] sm:$0xe] }
  0xac   : > { %v1588_v13 = vrot.slane %v1586_v50, 4  ;;  %v1570_v10 = vsel %vm3176_vm3, %v1565_v59, %v1569_v39  ;;  %v1616_v29 = vrot.slane %v1614_v22, 4  ;;  %v1619_v31 = vrot.slane %v1617_v25, 5  ;;  %v2815_v56 = vld [vmem:[%s3130_s21 + $0x18] ss:$8 sps:$4 sm:$0xff]  }
  0xad   : > { %v1781_v38 = vrot.slane %v3388_v37, 5  ;;  %v1630_v23 = vrot.slane %v1628_v43, 4  ;;  %v1633_v51 = vrot.slane %v1631_v48, 5  ;;  %v1639_v9 = vrot.slane %v1637_v26, 5  ;;  %v2411_v22 = vld [vmem:[%s3130_s21 + $0x38] sm:$0xe] }
  0xae   : > { %2622 = vmatpush3.bf16.msra.mxu0 %v2810_v12  ;;  %v1611_v12 = vrot.slane %v1609_v47, 5  ;;  %v1592_v3 = vor.u32 %v1591_v6, %v1588_v13  ;;  %v1620_v39 = vor.u32 %v1619_v31, %v1616_v29  ;;  %v1789_v59 = vrot.slane %v3415_v11, 5  ;;  %v2322_v48 = vld [vmem:[%s3130_s21 + $0x38] sm:$0xf]  ;;  %v2324_v29 = vld [vmem:[%s3130_s21 + $0x40] sm:$0xf] }
  0xaf   : > { %2564 = vmatmul.mubr.msk.bf16.vlgmr.msra.gmra.mrb[0].mxu1 %vm473_vm2, %v2283_v53  ;;  %2631 = vmatprep.subr.bf16.mxu0 %v3439_v52  ;;  %v1634_v46 = vor.u32 %v1633_v51, %v1630_v23  ;;  %v2414_v42 = vrot.slane %v2406_v40, 9  ;;  %v2415_v45 = vrot.slane %v2407_v1, 9  ;;  %v2416_v47 = vrot.slane %v2408_v54, 9  ;;  %v2412_v40 = vld [vmem:[%s3130_s21 + $0x40] sm:$0xe] }
  0xb0   : > { %2572 = vmatpush3.bf16.msra.mxu1 %v3368_v33  ;;  %2567 = vmatprep.mubr.msk.bf16.mxu1 %vm473_vm2, %v2284_v35  ;;  %v1605_v33 = vrot.slane %v1603_v60, 5  ;;  %v1593_v53 = vrot.slane %v1592_v3, 4  ;;  %v1621_v50 = vrot.slane %v1620_v39, 4  ;;  %v2409_v60 = vld [vmem:[%s3130_s21 + $0x28] sm:$0xe]  ;;  %v1793_v6 = vrot.slane %v3420_v18, 5 }
  0xb1   : > { %2616 = vmatmul.mubr.msk.bf16.gmra.mrb[4].mxu0 %vm473_vm2, %v2811_v34  ;;  %2573 = vmatprep.subr.bf16.mxu1 %v2812_v27  ;;  %v2397_v34 = vcombine.low %v1570_v10, %v1584_v7  ;;  %v1635_v13 = vrot.slane %v1634_v46, 4  ;;  %v1782_v11 = vsel %vm3279_vm6, %v2414_v42, %v1781_v38  ;;  %v2417_v63 = vrot.slane %v2409_v60, 9 }
  0xb2   : > { %2623 = vmatprep.mubr.msk.bf16.mxu0 %vm473_vm2, %v2396_v24  ;;  %v1606_v19 = vor.u32 %v1605_v33, %v1602_v62  ;;  %v1598_v16 = vsel %vm3176_vm3, %v1593_v53, %v1597_v61  ;;  %v1785_v24 = vrot.slane %v3401_v14, 5  ;;  %v2318_v61 = vld [vmem:[%s3130_s21 + $0x28] sm:$0xf]  ;;  %v2320_v62 = vld [vmem:[%s3130_s21 + $0x30] sm:$0xf]  ;;  %v1051_v7 = vrot.slane %v1049_v55, 5 }
  0xb3   : > { %v1040_v10 = vshrl.u32 %v2318_v61, 16  ;;  %v2410_v33 = vld [vmem:[%s3130_s21 + $0x30] sm:$0xe]  ;;  %v1043_v18 = vshll.u32 %v2318_v61, 16  ;;  %v1054_v3 = vshrl.u32 %v2320_v62, 16  ;;  %v1063_v43 = vshll.u32 %v3293_v15, 16 }
  0xb4   : > { %2574 = vmatpush3.bf16.msra.mxu1 %v2812_v27  ;;  %v1607_v35 = vrot.slane %v1606_v19, 4  ;;  %v1625_v27 = vrot.slane %v1623_v28, 5  ;;  %v1057_v19 = vshll.u32 %v2320_v62, 16  ;;  %v2418_v26 = vrot.slane %v2410_v33, 9 }
  0xb5   : > { %2643 = vmatprep.subr.bf16.mxu1 %v3134_v2  ;;  %v1042_v28 = vrot.slane %v1040_v10, 4  ;;  %v1045_v58 = vrot.slane %v1043_v18, 5  ;;  %v1056_v55 = vrot.slane %v1054_v3, 4  ;;  %v1797_v53 = vrot.slane %v3445_v41, 5  ;;  %v2818_v41 = vld [vmem:[%s3130_s21 + $0x38] ss:$8 sps:$4 sm:$0xff]  }
  0xb6   : > { %v1612_v37 = vsel %vm3176_vm3, %v1607_v35, %v1611_v12  ;;  %v1626_v14 = vsel %vm3176_vm3, %v1621_v50, %v1625_v27  ;;  %v2817_v12 = vld [vmem:[%s3130_s21 + $0x28] ss:$8 sps:$4 sm:$0xff]   ;;  %v1794_v31 = vsel %vm3279_vm6, %v2417_v63, %v1793_v6  ;;  %v1059_v38 = vrot.slane %v1057_v19, 5 }
  0xb7   : > { %2568 = vmatmul.mubr.msk.bf16.gmra.mrb[4].mxu1 %vm473_vm2, %v2285_v5  ;;  %v2398_v0 = vcombine.low %v1598_v16, %v1612_v37  ;;  %v1786_v5 = vsel %vm3279_vm6, %v2415_v45, %v1785_v24  ;;  %v1801_v35 = vrot.slane %v3453_v44, 5  ;;  %v1046_v15 = vor.u32 %v1045_v58, %v1042_v28  ;;  %v2413_v50 = vld [vmem:[%s3130_s21 + $0x48] sm:$0xe] }
  0xb8   : > { %2575 = vmatprep.mubr.msk.bf16.mxu1 %vm473_vm2, %v2814_v49  ;;  %v2422_v8 = vcombine.low %v1782_v11, %v1786_v5  ;;  %v3515_v49 = vsel %vm3279_vm6, %v2416_v47, %v1789_v59  ;;  %v1068_v23 = vshrl.u32 %v2322_v48, 16  ;;  %v1071_v51 = vshll.u32 %v2322_v48, 16 }
  0xb9   : > { %2624 = vmatmul.mubr.msk.bf16.vlgmr.msra.gmra.mrb[0].mxu0 %vm473_vm2, %v2397_v34  ;;  %v2419_v34 = vrot.slane %v2411_v22, 9  ;;  %v1060_v16 = vor.u32 %v1059_v38, %v1056_v55  ;;  %v1798_v39 = vsel %vm3279_vm6, %v2418_v26, %v1797_v53  ;;  %v1082_v44 = vshrl.u32 %v2324_v29, 16 }
  0xba   : > { %2632 = vmatpush3.bf16.msra.mxu0 %v3439_v52  ;;  %2627 = vmatprep.mubr.msk.bf16.mxu0 %vm473_vm2, %v2398_v0  ;;  %v1640_v52 = vsel %vm3176_vm3, %v1635_v13, %v1639_v9  ;;  %v1085_v27 = vshll.u32 %v2324_v29, 16  ;;  %v1070_v37 = vrot.slane %v1068_v23, 4  ;;  %v1073_v46 = vrot.slane %v1071_v51, 5 }
  0xbb   : > { %2633 = vmatprep.subr.bf16.mxu0 %v2816_v17  ;;  %v2399_v25 = vcombine.low %v1626_v14, %v1640_v52  ;;  %v1802_v9 = vsel %vm3279_vm6, %v2419_v34, %v1801_v35  ;;  %v1077_v1 = vshll.u32 %v3306_v32, 16  ;;  %v1061_v24 = vrot.slane %v1060_v16, 4 }
  0xbc   : > { %v1084_v59 = vrot.slane %v1082_v44, 4  ;;  %v1087_v0 = vrot.slane %v1085_v27, 5  ;;  %v1091_v42 = vshll.u32 %v3314_v36, 16  ;;  %v2423_v45 = vcombine.low %v3515_v49, %v1794_v31 }
  0xbd   : > { %v2424_v60 = vcombine.low %v1798_v39, %v1802_v9  ;;  %v2420_v32 = vrot.slane %v2412_v40, 9  ;;  %v1805_v11 = vrot.slane %v3470_v20, 5  ;;  %v2421_v5 = vrot.slane %v2413_v50, 9 }
  0xbe   : > { %2634 = vmatpush3.bf16.msra.mxu0 %v2816_v17  ;;  %v1065_v17 = vrot.slane %v1063_v43, 5  ;;  %v1088_v47 = vor.u32 %v1087_v0, %v1084_v59  ;;  %v1809_v36 = vrot.slane %v3476_v21, 5  ;;  %v1093_v6 = vrot.slane %v1091_v42, 5 }
  0xbf   : > { %2576 = vmatmul.mubr.msk.bf16.vlgmr.msra.gmra.mrb[0].mxu1 %vm473_vm2, %v2815_v56  ;;  %v1074_v56 = vor.u32 %v1073_v46, %v1070_v37  ;;  %v1806_v52 = vsel %vm3279_vm6, %v2420_v32, %v1805_v11 }
  0xc0   : > { %2645 = vmatpush3.bf16.msra.mxu1 %v3134_v2  ;;  %2579 = vmatprep.mubr.msk.bf16.mxu1 %vm473_vm2, %v2817_v12  ;;  %v1047_v2 = vrot.slane %v1046_v15, 4  ;;  %v1066_v13 = vsel %vm3176_vm3, %v1061_v24, %v1065_v17  ;;  %v1089_v62 = vrot.slane %v1088_v47, 4  ;;  %v1810_v20 = vsel %vm3279_vm6, %v2421_v5, %v1809_v36 }
  0xc1   : > { %2628 = vmatmul.mubr.msk.bf16.gmra.mrb[4].mxu0 %vm473_vm2, %v2399_v25  ;;  %2644 = vmatprep.subr.bf16.mxu1 %v3137_v4  ;;  %v1075_v61 = vrot.slane %v1074_v56, 4  ;;  %v2425_v10 = vcombine.low %v1806_v52, %v1810_v20  ;;  %v1937_v20 = vld [vmem:[#allocation3] sm:$0x1] }
  0xc2   : > { %2635 = vmatprep.mubr.msk.bf16.mxu0 %vm473_vm2, %v2422_v8  ;;  %v1052_v54 = vsel %vm3176_vm3, %v1047_v2, %v1051_v7  ;;  %v1094_v63 = vsel %vm3176_vm3, %v1089_v62, %v1093_v6 }
  0xc3   : > { %v2328_v14 = vcombine.low %v1052_v54, %v1066_v13 }
  0xc4   : > { %2646 = vmatpush3.bf16.msra.mxu1 %v3137_v4  ;;  %v1079_v4 = vrot.slane %v1077_v1, 5 }
  0xc6   : > { %v1080_v21 = vsel %vm3176_vm3, %v1075_v61, %v1079_v4 }
  0xc7   : > { %2580 = vmatmul.mubr.msk.bf16.gmra.mrb[4].mxu1 %vm473_vm2, %v2818_v41  ;;  %v2329_v7 = vcombine.low %v1080_v21, %v1094_v63 }
  0xc8   : > { %2591 = vmatprep.mubr.msk.bf16.mxu1 %vm473_vm2, %v2328_v14 }
  0xc9   : > { %2636 = vmatmul.mubr.msk.bf16.vlgmr.msra.gmra.mrb[0].mxu0 %vm473_vm2, %v2423_v45 }
  0xca   : > { %2639 = vmatprep.mubr.msk.bf16.mxu0 %vm473_vm2, %v2424_v60 }
  0xd1   : > { %2640 = vmatmul.mubr.msk.bf16.gmra.mrb[4].mxu0 %vm473_vm2, %v2425_v10  ;;  %v1953_v10 = vld [vmem:[#allocation4] sm:$0x1] }
  0xd3   : > { %2592 = vmatmul.mubr.msk.bf16.vlgmr.msra.gmra.mrb[4].mxu1 %vm473_vm2, %v2329_v7 }
 0x192   : > { %v2577_v33 = vpop.f32.mrb[0].mxu1 }
 0x193   : > { %v928_v12 = vpop.f32.mrb[1].mxu1 }
 0x194   : > { %v2578_v8 = vpop.f32.mrb[2].mxu1 }
 0x195   : > { %v931_v49 = vpop.f32.mrb[3].mxu1 }
 0x19c   : > { %v2637_v57 = vpop.f32.mrb[0].mxu0 }
 0x19d   : > { %v2647_v18 = vadd.f32 %v2637_v57, %v2577_v33  ;;  %v1886_v3 = vpop.f32.mrb[1].mxu0 }
 0x19e   : > { %v2648_v22 = vadd.f32 %v1886_v3, %v928_v12  ;;  %v2638_v25 = vpop.f32.mrb[2].mxu0 }
 0x19f   : > { %v2649_v30 = vadd.f32 %v2638_v25, %v2578_v8  ;;  %v1889_v28 = vpop.f32.mrb[3].mxu0  ;;  %v1956_v53 = vmul.f32 %v2647_v18, %v2647_v18 }
 0x1a0   : > { %v2650_v19 = vadd.f32 %v1889_v28, %v931_v49  ;;  %v1954_v48 = vmul.f32 %v2648_v22, %v2648_v22 }
 0x1a1   : > { %v1926_v43 = vpack.c.bf16 %v2649_v30, %v2647_v18  ;;  %v1957_v35 = vmul.f32 %v2649_v30, %v2649_v30 }
 0x1a2   : > { %v1925_v58 = vpack.c.bf16 %v2650_v19, %v2648_v22  ;;  %v1938_v55 = vadd.f32 %v2650_v19, %v2648_v22  ;;  %v1955_v26 = vmul.f32 %v2650_v19, %v2650_v19 }
 0x1a3   : > { %1934 = vst [vmem:[%s3564_s8 + $0x8] sm:$0xff] %v1926_v43 }
 0x1a4   : > { %1933 = vst [vmem:[%s3564_s8] sm:$0xff] %v1925_v58  ;;  %v1939_v29 = vadd.f32 %v2647_v18, %v1938_v55  ;;  %v1962_v31 = vadd.f32 %v1955_v26, %v1954_v48  ;;  %v2641_v38 = vpop.f32.mrb[4].mxu0 }
 0x1a5   : > { %v1902_v34 = vpop.f32.mrb[5].mxu0 }
 0x1a6   : > { %v1963_v15 = vadd.f32 %v1962_v31, %v1956_v53  ;;  %v2593_v17 = vpop.f32.mrb[4].mxu1  ;;  %v1940_v23 = vadd.f32 %v2649_v30, %v1939_v29  ;;  %v2642_v51 = vpop.f32.mrb[6].mxu0 }
 0x1a7   : > { %v2651_v41 = vadd.f32 %v2641_v38, %v2593_v17  ;;  %v1186_v16 = vpop.f32.mrb[5].mxu1  ;;  %v1905_v39 = vpop.f32.mrb[7].mxu0 }
 0x1a8   : > { %v2652_v44 = vadd.f32 %v1902_v34, %v1186_v16  ;;  %v1964_v27 = vadd.f32 %v1963_v15, %v1957_v35  ;;  %v2594_v2 = vpop.f32.mrb[6].mxu1 }
 0x1a9   : > { %v2653_v9 = vadd.f32 %v2642_v51, %v2594_v2  ;;  %v1189_v37 = vpop.f32.mrb[7].mxu1  ;;  %v1960_v45 = vmul.f32 %v2651_v41, %v2651_v41 }
 0x1aa   : > { %v1941_v46 = vadd.f32 %v2652_v44, %v1940_v23  ;;  %v1958_v40 = vmul.f32 %v2652_v44, %v2652_v44  ;;  %v2654_v1 = vadd.f32 %v1905_v39, %v1189_v37 }
 0x1ab   : > { %v1928_v24 = vpack.c.bf16 %v2653_v9, %v2651_v41  ;;  %v1961_v13 = vmul.f32 %v2653_v9, %v2653_v9 }
 0x1ac   : > { %v1965_v59 = vadd.f32 %v1964_v27, %v1958_v40  ;;  %v1927_v0 = vpack.c.bf16 %v2654_v1, %v2652_v44  ;;  %v1942_v50 = vadd.f32 %v2654_v1, %v1941_v46  ;;  %v1959_v42 = vmul.f32 %v2654_v1, %v2654_v1 }
 0x1ad   : > { %1936 = vst [vmem:[%s3564_s8 + $0x18] sm:$0xff] %v1928_v24 }
 0x1ae   : > { %1935 = vst [vmem:[%s3564_s8 + $0x10] sm:$0xff] %v1927_v0  ;;  %v1943_v54 = vadd.f32 %v2651_v41, %v1942_v50  ;;  %v1966_v56 = vadd.f32 %v1965_v59, %v1959_v42 }
 0x1b0   : > { %v1944_v60 = vadd.f32 %v2653_v9, %v1943_v54  ;;  %v1967_v47 = vadd.f32 %v1966_v56, %v1960_v45 }
 0x1b2   : > { %v1945_v32 = vrot.slane %v1944_v60, 4  ;;  %v1968_v14 = vadd.f32 %v1967_v47, %v1961_v13 }
 0x1b4   : > { %v1946_v11 = vadd.f32 %v1945_v32, %v1944_v60  ;;  %v1969_v5 = vrot.slane %v1968_v14, 4 }
 0x1b6   : > { %v1947_v36 = vrot.slane %v1946_v11, 2  ;;  %v1970_v4 = vadd.f32 %v1969_v5, %v1968_v14 }
 0x1b8   : > { %v1948_v6 = vadd.f32 %v1947_v36, %v1946_v11  ;;  %v1971_v61 = vrot.slane %v1970_v4, 2 }
 0x1ba   : > { %v1949_v62 = vrot.slane %v1948_v6, 1  ;;  %v1972_v52 = vadd.f32 %v1971_v61, %v1970_v4 }
 0x1bc   : > { %v1950_v21 = vadd.f32 %v1949_v62, %v1948_v6  ;;  %v1973_v63 = vrot.slane %v1972_v52, 1 }
 0x1be   : > { %v1951_v7 = vadd.f32 %v1950_v21, %v1937_v20  ;;  %v1974_v33 = vadd.f32 %v1973_v63, %v1972_v52 }
 0x1c0   : > { %1952 = vst [vmem:[#allocation3] sm:$0x1] %v1951_v7  ;;  %v1975_v12 = vadd.f32 %v1974_v33, %v1953_v10 }
 0x1c2   : > { %1976 = vst [vmem:[#allocation4] sm:$0x1] %v1975_v12 }
 0x1c3 PF: > { %p2433_p11 = scmp.ne.s32.totalorder %s2939_s16, 1 }
 0x1c4   : > { %p1981_p12 = scmp.eq.s32.totalorder (!%p2433_p11), %s2935_s15, 0 }
 0x1c5   : > { %1980 = sbr.rel (%p2433_p11) target bundleno = 630 (0x276), region = 60 }
 0x1cc   : > { %1986 = sbr.rel (!%p1981_p12) target bundleno = 614 (0x266), region = 64  ;;  %v1987_v8 = vld [vmem:[#allocation3] sm:$0x1] (%p1981_p12)  ;;  %v1998_v49 = vld [vmem:[#allocation4] sm:$0x1] (%p1981_p12)  ;;  %s2959_s9 = smov (%p1981_p12), 32  }
 0x1cd   : > { %1988 = vrot.lane.b32.xlu0 (%p1981_p12), %v1987_v8, %s2959_s9  ;;  %1999 = vrot.lane.b32.xlu1 (%p1981_p12), %v1998_v49, %s2959_s9  ;;  %s2960_s10 = smov (%p1981_p12), 64   ;;  %s2961_s24 = smov (%p1981_p12), 96   ;;  %v2012_v35 = vld [vmem:[#allocation9] sm:$0x1] (%p1981_p12)  ;;  %v2017_v23 = vld [vmem:[#allocation11] sm:$0x1] (%p1981_p12) }
 0x1d1   : > { %1991 = vrot.lane.b32.xlu0 (%p1981_p12), %v1987_v8, %s2960_s10  ;;  %1994 = vrot.lane.b32.xlu1 (%p1981_p12), %v1987_v8, %s2961_s24 }
 0x1d5   : > { %2002 = vrot.lane.b32.xlu0 %v1998_v49, %s2960_s10  ;;  %2005 = vrot.lane.b32.xlu1 %v1998_v49, %s2961_s24 }
 0x23f   : > { %v1989_v57 = vpop.permute.xlu0 %1988  ;;  %v2000_v18 = vpop.permute.xlu1 %1999 }
 0x240   : > { %v1990_v3 = vadd.f32 %v1989_v57, %v1987_v8  ;;  %v2001_v28 = vadd.f32 %v2000_v18, %v1998_v49 }
 0x243   : > { %v1992_v22 = vpop.permute.xlu0 %1991  ;;  %v1995_v25 = vpop.permute.xlu1 %1994 }
 0x244   : > { %v1993_v30 = vadd.f32 %v1992_v22, %v1990_v3 }
 0x246   : > { %v1996_v19 = vadd.f32 %v1995_v25, %v1993_v30 }
 0x247   : > { %v2003_v43 = vpop.permute.xlu0 %2002  ;;  %v2006_v48 = vpop.permute.xlu1 %2005 }
 0x248   : > { %v1997_v58 = vmul.f32 0.001953125, %v1996_v19  ;;  %v2004_v55 = vadd.f32 %v2003_v43, %v2001_v28 }
 0x24a   : > { %v2007_v26 = vadd.f32 %v2006_v48, %v2004_v55  ;;  %v2009_v53 = vmul.f32 %v1997_v58, %v1997_v58 }
 0x24c   : > { %v2008_v29 = vmul.f32 0.001953125, %v2007_v26 }
 0x24e   : > { %v2010_v31 = vsub.f32 %v2008_v29, %v2009_v53 }
 0x250   : > { %v2011_v38 = vmax.f32 %v2010_v31, 0.0 }
 0x252   : > { %v2013_v34 = vadd.f32 1e-05, %v2011_v38 }
 0x254   : > { %2819 = vrsqrt.f32 %v2013_v34 }
 0x25e   : > { %v2820_v15 = vpop.eup %2819 }
 0x25f   : > { %v2015_v17 = vmul.f32 %v2820_v15, %v2012_v35 }
 0x261   : > { %2016 = vst [vmem:[#allocation5] sm:$0x1] %v2015_v17  ;;  %v2018_v51 = vmul.f32 %v2015_v17, %v1997_v58 }
 0x263   : > { %v2019_v41 = vsub.f32 %v2017_v23, %v2018_v51 }
 0x265   : > { %2020 = vst [vmem:[#allocation6] sm:$0x1] %v2019_v41 }
 0x266 PF: > { %s2021_s16 = sshra.s32 %s2251_s11, 4 }
 0x267   : > { %s2435_s25 = sshll.u32 %s2021_s16, 3 }
 0x268   : > { %v2436_v16 = vld [vmem:[#allocation5] ss:$0 sm:$0xff]  ;;  %s2024_s7 = scalar_lea.vmem [#allocation2], %s2435_s25 }
 0x269   : > { %v2025_v39 = vld [vmem:[%s2024_s7] sm:$0xff]  ;;  %v2026_v44 = vld [vmem:[%s2024_s7 + $0x8] sm:$0xff]  ;;  %v2027_v27 = vld [vmem:[%s2024_s7 + $0x10] sm:$0xff] }
 0x26a   : > { %v2029_v2 = vunpack.c.l.bf16 %v2025_v39  ;;  %v2030_v9 = vunpack.c.h.bf16 %v2025_v39  ;;  %v2031_v37 = vunpack.c.l.bf16 %v2026_v44  ;;  %v2032_v46 = vunpack.c.h.bf16 %v2026_v44  ;;  %v2028_v40 = vld [vmem:[%s2024_s7 + $0x18] sm:$0xff] }
 0x26b   : > { %v2033_v24 = vunpack.c.l.bf16 %v2027_v27  ;;  %v2034_v59 = vunpack.c.h.bf16 %v2027_v27  ;;  %v2035_v0 = vunpack.c.l.bf16 %v2028_v40  ;;  %v2036_v50 = vunpack.c.h.bf16 %v2028_v40 }
 0x26c   : > { %v2437_v1 = vld [vmem:[#allocation6] ss:$0 sm:$0xff]  ;;  %v2044_v42 = vmul.f32 %v2436_v16, %v2029_v2  ;;  %v2045_v45 = vmul.f32 %v2436_v16, %v2030_v9  ;;  %v2046_v54 = vmul.f32 %v2436_v16, %v2031_v37  ;;  %v2047_v56 = vmul.f32 %v2436_v16, %v2032_v46 }
 0x26d   : > { %v2048_v13 = vmul.f32 %v2436_v16, %v2033_v24  ;;  %v2049_v60 = vmul.f32 %v2436_v16, %v2034_v59  ;;  %v2050_v47 = vmul.f32 %v2436_v16, %v2035_v0  ;;  %v2051_v32 = vmul.f32 %v2436_v16, %v2036_v50 }
 0x26e   : > { %v2059_v14 = vadd.f32 %v2437_v1, %v2044_v42  ;;  %v2060_v11 = vadd.f32 %v2437_v1, %v2045_v45  ;;  %v2061_v5 = vadd.f32 %v2437_v1, %v2046_v54  ;;  %v2062_v36 = vadd.f32 %v2437_v1, %v2047_v56 }
 0x26f   : > { %v2063_v4 = vadd.f32 %v2437_v1, %v2048_v13  ;;  %v2064_v6 = vadd.f32 %v2437_v1, %v2049_v60  ;;  %v2065_v61 = vadd.f32 %v2437_v1, %v2050_v47  ;;  %v2066_v62 = vadd.f32 %v2437_v1, %v2051_v32 }
 0x270   : > { %v2067_v52 = vmax.f32 %v2059_v14, 0.0  ;;  %v2068_v20 = vmax.f32 %v2060_v11, 0.0  ;;  %v2069_v21 = vmax.f32 %v2061_v5, 0.0  ;;  %v2070_v63 = vmax.f32 %v2062_v36, 0.0 }
 0x271   : > { %v2071_v10 = vmax.f32 %v2063_v4, 0.0  ;;  %v2072_v7 = vmax.f32 %v2064_v6, 0.0  ;;  %v2073_v33 = vmax.f32 %v2065_v61, 0.0  ;;  %v2074_v12 = vmax.f32 %v2066_v62, 0.0 }
 0x272   : > { %v2461_v8 = vpack.c.bf16 %v2068_v20, %v2067_v52  ;;  %v2466_v49 = vpack.c.bf16 %v2070_v63, %v2069_v21 }
 0x273   : > { %v2471_v57 = vpack.c.bf16 %v2072_v7, %v2071_v10  ;;  %v2476_v18 = vpack.c.bf16 %v2074_v12, %v2073_v33 }
 0x274   : > { %2462 = vst [vmem:[%s3125_s30] sm:$0xff] %v2461_v8   ;;  %2478 = vst [vmem:[%s3125_s30 + $0x8] sm:$0xff] %v2466_v49  }
 0x275   : > { %2479 = vst [vmem:[%s3125_s30 + $0x10] sm:$0xff] %v2471_v57   ;;  %2480 = vst [vmem:[%s3125_s30 + $0x18] sm:$0xff] %v2476_v18  }
 0x276 PF: > { %s16_s19 = sadd.s32 1, %s2951_s19   ;;  %s3614_s15 = smov %s2943_s17 }
 0x277   : > { %p13_p13 = scmp.ge.s32.totalorder %s16_s19, 6   ;;  %s3615_s16 = smov %s2947_s18 }
 0x278   : > { %s3616_s17 = smov %s3619_s26  ;;  %s3617_s18 = smov %s3623_s14 }
 0x279   :  { %15 = sbr.rel (!%p13_p13) target bundleno = 4 (0x4), region = 108 }
 0x280   :  { %2143 = vsyncpa [#allocation8], 1 }
 0x281   :  { %2145 = vsyncpa [#allocation8 + $0x1], 1 }
 0x282   :  { %2146 = vsyncpa [#allocation10], 1 }

// kernel: generator_forward.8
= control target key start
LH: loop header
LB: loop body
LE: loop exit
PB: predicated region body
PF: predicated region fallthrough
CT: control target
= control target key end

     0   :  { %9 = vsyncpa [#allocation8], 0  ;;  %s9416_s0 = inlined_call_operand.vmem [shape: bf16[2,18,18,32], index: 0, kind: input, shape index: {}]   ;;  %s9417_s1 = inlined_call_operand.hbm [shape: bf16[9,32,128], index: 1, kind: input, shape index: {}]   ;;  %s9418_s2 = inlined_call_operand.hbm [shape: f32[1,128], index: 2, kind: input, shape index: {}]   ;;  %s9419_s3 = inlined_call_operand.hbm [shape: f32[1,128], index: 3, kind: input, shape index: {}]   ;;  %s9420_s4 = inlined_call_operand.vmem [shape: bf16[512,128], index: 4, kind: output, shape index: {}]  }
   0x1   :  { %10 = vsyncpa [#allocation10], 0  ;;  %s7468_s15 = smov 0   ;;  %s7470_s16 = smov 0  }
   0x2   :  { %s7472_s17 = smov 0   ;;  %s7474_s18 = smov 0  }
   0x3   :  { %s7476_s19 = smov 0  }
   0x4 LB: > { %s7434_s20 = smov [#allocation9]   ;;  %s5617_s22 = sadd.s32 4294967295, %s7432_s19   ;;  %s7432_s19 = sphi %s7476_s19, %s16_s19   ;;  %s7428_s18 = sphi %s7474_s18, %s9505_s18   ;;  %s7424_s17 = sphi %s7472_s17, %s9504_s17   ;;  %s7420_s16 = sphi %s7470_s16, %s9503_s16   ;;  %s7416_s15 = sphi %s7468_s15, %s9502_s15  }
   0x5   : > { %s191_s21 = sshll.u32 %s7434_s20, 4  ;;  %p5619_p0 = scmp.ge.s32.totalorder %s7432_s19, 1  ;;  %s192_s21 = int_to_ptr.vmem [resolvable:$true] %s191_s21 }
   0x6   : > { %p165_p1 = scmp.lt.s32.totalorder %s7432_s19, 5  ;;  %p7496_p2 = scmp.eq.s32.totalorder %s5617_s22, 0 }
   0x7   : > { %s31_s26 = sadd.s32 1, %s7424_s17  ;;  %s7302_s30 = scalar_lea.hbm %s9418_s2, 16 }
   0x8   : > { %s9438_s23 = scalar_select %p7496_p2, 1, 0 }
   0x9   : > { %p7500_p3 = pnand %p5619_p0, %p165_p1  ;;  %p7513_p6 = scmp.ge.s32.totalorder %s31_s26, 2 }
   0xa   : > { %p7303_p7 = scmp.ne.s32.totalorder %s9418_s2, %s7302_s30  ;;  %p7309_p11 = scmp.lt.u32.totalorder %s7302_s30, %s9418_s2 }
   0xb   : > { %s9439_s24 = scalar_select %p7500_p3, 1, 0 }
   0xc   : > { %p7108_p4 = pneg %p7500_p3 }
   0xd   : > { %s9441_s27 = scalar_select %p7513_p6, 1, 0 }
   0xe   : > { %p7508_p5 = pnand %p7496_p2, %p7108_p4 }
  0x10   : > { %p7525_p8 = pneg %p7508_p5 }
  0x12   : > { %p7305_p9 = pnand %p7525_p8, %p7303_p7 }
  0x14   : > { %p7306_p10 = pneg %p7305_p9 }
  0x16   : > { %p7311_p12 = pnand %p7309_p11, %p7306_p10 }
  0x18   : > { %7314 = shalt.err (!%p7311_p12)
}
  0x19   : > { %s7315_s10 = scalar_lea.vmem %s192_s21, 16  ;;  %s7322_s11 = scalar_lea.vmem %s192_s21, 32 }
  0x1a   : > { %p7316_p13 = scmp.ne.s32.totalorder %s192_s21, %s7315_s10  ;;  %p7323_p4 = scmp.lt.s32.totalorder %s192_s21, %s192_s21 }
  0x1b   : > { %p7324_p2 = scmp.lt.s32.totalorder %s7322_s11, %s7315_s10 }
  0x1c   : > { %p7318_p0 = pnand %p7316_p13, %p7525_p8 }
  0x1d   : > { %p7325_p3 = por %p7324_p2, %p7323_p4 }
  0x1e   : > { %p7319_p1 = pneg %p7318_p0 }
  0x20   : > { %p7326_p6 = pnand %p7325_p3, %p7319_p1 }
  0x22   : > { %7329 = shalt.err (!%p7326_p6)
}
  0x23   : > { %7114 = dma.hbm_to_vmem [thread:$0]  (!%p7508_p5), %s9418_s2, 16, %s192_s21, [#allocation10]  }
  0x24   : > { %p9443_p7 = scmp.ne.s32.totalorder %s9441_s27, 0  ;;  %s35_s14 = sadd.s32 1, %s7428_s18 }
  0x25   : > { %s7435_s20 = smov [#allocation7]   ;;  %s7330_s30 = scalar_lea.hbm %s9417_s1, 2304 }
  0x26   : > { %s9507_s26 = smov (%p9443_p7, %s31_s26), 0  ;;  %s9509_s14 = smov (!%p9443_p7, %s35_s14), %s7428_s18 }
  0x27   : > { %s177_s22 = sshll.u32 %s7435_s20, 4  ;;  %p37_p2 = scmp.ge.s32.totalorder %s9509_s14, 2  ;;  %s178_s22 = int_to_ptr.vmem [resolvable:$true] %s177_s22 }
  0x28   : > { %p7331_p3 = scmp.ne.s32.totalorder %s9417_s1, %s7330_s30  ;;  %p7337_p10 = scmp.lt.u32.totalorder %s7330_s30, %s9417_s1 }
  0x29   : > { %s9511_s14 = smov (%p37_p2, %s9509_s14), 0 }
  0x2a   : > { %p7333_p6 = pnand %p7331_p3, %p7525_p8 }
  0x2c   : > { %p7334_p9 = pneg %p7333_p6 }
  0x2e   : > { %p7339_p11 = pnand %p7337_p10, %p7334_p9 }
  0x30   : > { %7342 = shalt.err (!%p7339_p11)
}
  0x31   : > { %s7343_s8 = scalar_lea.vmem %s178_s22, 2304  ;;  %p7351_p1 = scmp.lt.s32.totalorder %s178_s22, %s178_s22 }
  0x32   : > { %p7344_p12 = scmp.ne.s32.totalorder %s178_s22, %s7343_s8  ;;  %p7352_p4 = scmp.lt.s32.totalorder %s7343_s8, %s7343_s8 }
  0x34   : > { %p7346_p13 = pnand %p7344_p12, %p7525_p8  ;;  %p7353_p7 = por %p7352_p4, %p7351_p1 }
  0x36   : > { %p7347_p0 = pneg %p7346_p13 }
  0x38   : > { %p7354_p2 = pnand %p7353_p7, %p7347_p0 }
  0x3a   : > { %7357 = shalt.err (!%p7354_p2)
}
  0x3b   : > { %s7436_s9 = smov 64   ;;  %s7437_s10 = smov 4  }
  0x3c   : > { %7111 = dma.hbm_to_vmem [thread:$0]  (!%p7508_p5), %s9417_s1, 2304, %s178_s22, [#allocation8], %s7436_s9, %s7436_s9, %s7437_s10  }
  0x3d   : > { %s7438_s13 = smov [#allocation11]   ;;  %s7358_s30 = scalar_lea.hbm %s9419_s3, 16 }
  0x3e   : > { %s202_s20 = sshll.u32 %s7438_s13, 4  ;;  %p7359_p3 = scmp.ne.s32.totalorder %s9419_s3, %s7358_s30  ;;  %s203_s20 = int_to_ptr.vmem [resolvable:$true] %s202_s20 }
  0x3f   : > { %p7365_p10 = scmp.lt.u32.totalorder %s7358_s30, %s9419_s3 }
  0x40   : > { %p7361_p6 = pnand %p7359_p3, %p7525_p8 }
  0x42   : > { %p7362_p9 = pneg %p7361_p6 }
  0x44   : > { %p7367_p11 = pnand %p7365_p10, %p7362_p9 }
  0x46   : > { %7370 = shalt.err (!%p7367_p11)
}
  0x47   : > { %s7371_s22 = scalar_lea.vmem %s203_s20, 16  ;;  %s7378_s8 = scalar_lea.vmem %s203_s20, 32 }
  0x48   : > { %p7372_p12 = scmp.ne.s32.totalorder %s203_s20, %s7371_s22  ;;  %p7379_p1 = scmp.lt.s32.totalorder %s203_s20, %s203_s20 }
  0x49   : > { %p7380_p4 = scmp.lt.s32.totalorder %s7378_s8, %s7371_s22 }
  0x4a   : > { %p7374_p13 = pnand %p7372_p12, %p7525_p8 }
  0x4b   : > { %p7381_p7 = por %p7380_p4, %p7379_p1 }
  0x4c   : > { %p7375_p0 = pneg %p7374_p13 }
  0x4e   : > { %p7382_p2 = pnand %p7381_p7, %p7375_p0 }
  0x50   : > { %7385 = shalt.err (!%p7382_p2)
}
  0x51   : > { %7117 = dma.hbm_to_vmem [thread:$0]  (!%p7508_p5), %s9419_s3, 16, %s203_s20, [#allocation10]  }
  0x52   : > { %p9444_p3 = scmp.ne.s32.totalorder %s9439_s24, 0 }
  0x53   : > { %p9445_p6 = scmp.ne.s32.totalorder (!%p9444_p3), %s9438_s23, 0 }
  0x54   : > { %229 = sbr.rel (%p9444_p3) target bundleno = 911 (0x38f), region = 36 }
  0x5b   : > { %7407 = dma.done.wait (%p9445_p6), [#allocation8], 2304  }
  0x5c   : > { %7409 = vsyncadd (%p9445_p6), [#allocation8], 4294964992 }
  0x5d   : > { %7411 = dma.done.wait (%p9445_p6), [#allocation10], 32  }
  0x5e   : > { %7413 = vsyncadd (%p9445_p6), [#allocation10], 4294967264  ;;  %s268_s24 = ssub.s32 1, %s7420_s16  ;;  %s280_s25 = smul.u32 %s7416_s15, %s7420_s16 }
  0x5f   : > { %s269_s7 = smul.u32 %s7416_s15, %s268_s24  ;;  %s5631_s11 = sshll.u32 %s7416_s15, 8 }
  0x60   : > { %s5629_s12 = sshll.u32 %s280_s25, 5  ;;  %p5632_p9 = scmp.ne.s32.totalorder %s7420_s16, 0 }
  0x61   : > { %s270_s13 = sadd.s32 %s7420_s16, %s269_s7  ;;  %p282_p5 = scmp.lt.s32.totalorder %s5629_s12, 63 }
  0x62   : > { %p271_p8 = scmp.lt.s32.totalorder %s270_s13, 1  ;;  %297 = sbr.rel (%p5632_p9) target bundleno = 702 (0x2be), region = 52 }
  0x63   : > { %s9513_s12 = smov (!%p282_p5, %s5629_s12), 63 }
  0x64   : > { %s9515_s13 = smov (!%p271_p8, %s270_s13), 1  ;;  %s5630_s20 = sshll.u32 %s9513_s12, 2 }
  0x65   : > { %s7095_s28 = smul.u32 216, %s9515_s13  ;;  %s7606_s30 = scalar_lea.vmem %s9420_s4, %s5630_s20 }
  0x67   : > { %s7611_s21 = scalar_lea.vmem %s9416_s0, %s7095_s28 }
  0x69   : > { %p298_p10 = scmp.eq.s32.totalorder %s7416_s15, 0 }
  0x6a   : > { %v7439_v0 = vmov (%p298_p10), 0.0  }
  0x6b   : > { %303 = sbr.rel (!%p298_p10) target bundleno = 114 (0x72), region = 56  ;;  %304 = vst [vmem:[#allocation3] sm:$0x1] (%p298_p10), %v7439_v0  ;;  %305 = vst [vmem:[#allocation4] sm:$0x1] (%p298_p10), %v7439_v0 }
  0x72 PF: > { %v7173_v1 = vld [vmem:[#allocation7 + $0x10] sm:$0xff]   ;;  %v7174_v2 = vld [vmem:[#allocation7 + $0x40] sm:$0xff]   ;;  %v7175_v3 = vld [vmem:[#allocation7 + $0x18] sm:$0xff]   ;;  %vm361_vm0 = vsmask.f32 3328  ;;  %vm813_vm3 = vcmask 261120  }
  0x73   : > { %6511 = vmatprep.subr.bf16.mxu1 %v7173_v1  ;;  %6655 = vmatprep.subr.bf16.mxu0 %v7174_v2  ;;  %v7176_v4 = vld [vmem:[#allocation7 + $0x48] sm:$0xff]   ;;  %v309_v5 = vld [vmem:[%s7611_s21] sm:$0xf]  ;;  %v310_v6 = vld [vmem:[%s7611_s21 + $0x4] sm:$0xf]  ;;  %vm1372_vm4 = vcmask 1042432  }
  0x74   : > { %6512 = vmatpush3.bf16.msra.mxu1 %v7173_v1  ;;  %6656 = vmatpush3.bf16.msra.mxu0 %v7174_v2  ;;  %v345_v7 = vld [vmem:[%s7611_s21 + $0x8] sm:$0x1]  ;;  %vm362_vm1 = vsmask.f32 7440  ;;  %v365_v8 = vshrl.u32 %v309_v5, 16  ;;  %v368_v9 = vshll.u32 %v309_v5, 16 }
  0x75   : > { %6513 = vmatprep.subr.bf16.mxu1 %v7175_v3  ;;  %6657 = vmatprep.subr.bf16.mxu0 %v7176_v4  ;;  %v374_v10 = vshll.u32 %v310_v6, 16  ;;  %v378_v11 = vshrl.u32 %v310_v6, 16  ;;  %v384_v12 = vshll.u32 %v345_v7, 16  ;;  %v7618_v15 = vld [vmem:[#allocation7] sm:$0xff]   ;;  %v7620_v16 = vld [vmem:[#allocation7 + $0x50] sm:$0xff]   ;;  %vm7633_vm2 = vmor %vm361_vm0, %vm362_vm1  ;;  %vm1373_vm5 = vcmask 1046532  }
  0x76   : > { %v367_v13 = vrot.slane %v365_v8, 4  ;;  %v370_v14 = vrot.slane %v368_v9, 5  ;;  %v5818_v20 = vld [vmem:[%s7611_s21 + $0xc] sm:$0xf]  ;;  %v7625_v22 = vld [vmem:[%s7611_s21 + $0x10] sm:$0xf]  ;;  %vm7848_vm6 = vmor %vm1372_vm4, %vm1373_vm5 }
  0x77   : > { %v376_v17 = vrot.slane %v374_v10, 5  ;;  %v380_v18 = vrot.slane %v378_v11, 4  ;;  %v386_v19 = vrot.slane %v384_v12, 5  ;;  %v7628_v23 = vld [vmem:[%s7611_s21 + $0x14] sm:$0x1]  ;;  %v2216_v24 = vshrl.u32 %v5818_v20, 16 }
  0x78   : > { %6514 = vmatpush3.bf16.msra.mxu1 %v7175_v3  ;;  %6658 = vmatpush3.bf16.msra.mxu0 %v7176_v4  ;;  %v371_v21 = vor.u32 %v370_v14, %v367_v13  ;;  %v2219_v25 = vshll.u32 %v5818_v20, 16  ;;  %v2225_v28 = vshll.u32 %v7625_v22, 16  ;;  %v2229_v29 = vshrl.u32 %v7625_v22, 16  ;;  %v311_v37 = vld [vmem:[%s7611_s21 + $0xc] sm:$0xf]  ;;  %s4997_s27 = sshra.s32 %s5631_s11, 4 }
  0x79   : > { %6547 = vmatprep.subr.bf16.mxu1 %v7618_v15  ;;  %6691 = vmatprep.subr.bf16.mxu0 %v7620_v16  ;;  %v381_v27 = vor.u32 %v380_v18, %v376_v17  ;;  %v2235_v30 = vshll.u32 %v7628_v23, 16  ;;  %v2218_v32 = vrot.slane %v2216_v24, 4  ;;  %v312_v41 = vld [vmem:[%s7611_s21 + $0x10] sm:$0xf]  ;;  %v346_v42 = vld [vmem:[%s7611_s21 + $0x14] sm:$0x1] }
  0x7a   : > { %v372_v31 = vrot.slane %v371_v21, 4  ;;  %v2221_v33 = vrot.slane %v2219_v25, 5  ;;  %v2227_v35 = vrot.slane %v2225_v28, 5  ;;  %v2231_v36 = vrot.slane %v2229_v29, 4  ;;  %v5821_v52 = vld [vmem:[%s7611_s21 + $0x18] sm:$0xf] }
  0x7b   : > { %v382_v34 = vrot.slane %v381_v27, 4  ;;  %v2237_v40 = vrot.slane %v2235_v30, 5  ;;  %v389_v43 = vshrl.u32 %v311_v37, 16  ;;  %v392_v46 = vshll.u32 %v311_v37, 16  ;;  %v7649_v57 = vld [vmem:[%s7611_s21 + $0x1c] sm:$0xf] }
  0x7c   : > { %v377_v38 = vsel %vm7633_vm2, %v372_v31, %v376_v17  ;;  %v2222_v39 = vor.u32 %v2221_v33, %v2218_v32  ;;  %v2232_v45 = vor.u32 %v2231_v36, %v2227_v35  ;;  %v398_v47 = vshll.u32 %v312_v41, 16  ;;  %v7657_v62 = vld [vmem:[%s7611_s21 + $0x20] sm:$0x1]  ;;  %v313_v11 = vld [vmem:[%s7611_s21 + $0x18] sm:$0xf]  ;;  %v7180_v36 = vld [vmem:[#allocation7 + $0x8] sm:$0xff]  }
  0x7d   : > { %v387_v44 = vsel %vm7633_vm2, %v382_v34, %v386_v19  ;;  %v391_v50 = vrot.slane %v389_v43, 4  ;;  %v402_v51 = vshrl.u32 %v312_v41, 16  ;;  %v394_v54 = vrot.slane %v392_v46, 5  ;;  %v314_v18 = vld [vmem:[%s7611_s21 + $0x1c] sm:$0xf]  ;;  %s6180_s22 = sshll.u32 %s4997_s27, 3 }
  0x7e   : > { %v5634_v48 = vcombine.low %v377_v38, %v387_v44  ;;  %v2223_v49 = vrot.slane %v2222_v39, 4  ;;  %v2233_v53 = vrot.slane %v2232_v45, 4  ;;  %v400_v55 = vrot.slane %v398_v47, 5  ;;  %v347_v25 = vld [vmem:[%s7611_s21 + $0x20] sm:$0x1]  ;;  %s9272_s8 = scalar_lea.vmem [#allocation2], %s6180_s22 }
  0x7f   : > { %v408_v56 = vshll.u32 %v346_v42, 16  ;;  %v2971_v59 = vrot.slane %v7625_v22, 5  ;;  %v2974_v60 = vrot.slane %v7628_v23, 5  ;;  %v404_v61 = vrot.slane %v402_v51, 4  ;;  %v5824_v31 = vld [vmem:[%s7611_s21 + $0x24] sm:$0xf] }
  0x80   : > { %6515 = vmatprep.mubr.msk.bf16.mxu1 %vm813_vm3, %v5634_v48  ;;  %v2228_v58 = vsel %vm7633_vm2, %v2223_v49, %v2227_v35  ;;  %v2238_v63 = vsel %vm7633_vm2, %v2233_v53, %v2237_v40  ;;  %v395_v0 = vor.u32 %v394_v54, %v391_v50  ;;  %v2240_v2 = vshrl.u32 %v5821_v52, 16  ;;  %v7680_v41 = vld [vmem:[%s7611_s21 + $0x28] sm:$0xf]  ;;  %v7684_v45 = vld [vmem:[%s7611_s21 + $0x2c] sm:$0x1] }
  0x81   : > { %v410_v1 = vrot.slane %v408_v56, 5  ;;  %v5866_v3 = vcombine.low %v2228_v58, %v2238_v63  ;;  %v405_v4 = vor.u32 %v404_v61, %v400_v55  ;;  %v2243_v5 = vshll.u32 %v5821_v52, 16  ;;  %v315_v51 = vld [vmem:[%s7611_s21 + $0x24] sm:$0xf]  ;;  %v316_v56 = vld [vmem:[%s7611_s21 + $0x28] sm:$0xf] }
  0x82   : > { %v2249_v6 = vshll.u32 %v7649_v57, 16  ;;  %v396_v7 = vrot.slane %v395_v0, 4  ;;  %v2242_v8 = vrot.slane %v2240_v2, 4  ;;  %v2253_v9 = vshrl.u32 %v7649_v57, 16  ;;  %v7179_v58 = vld [vmem:[#allocation7 + $0x58] sm:$0xff]   ;;  %v7183_v61 = vld [vmem:[#allocation7 + $0x20] sm:$0xff]  }
  0x83   : > { %v2259_v10 = vshll.u32 %v7657_v62, 16  ;;  %6659 = vmatprep.mubr.msk.bf16.mxu0 %vm813_vm3, %v5866_v3  ;;  %v406_v12 = vrot.slane %v405_v4, 4  ;;  %v2245_v13 = vrot.slane %v2243_v5, 5  ;;  %v2978_v17 = vrot.slane %v7649_v57, 5 }
  0x84   : > { %v2251_v14 = vrot.slane %v2249_v6, 5  ;;  %v401_v19 = vsel %vm7633_vm2, %v396_v7, %v400_v55  ;;  %v2255_v20 = vrot.slane %v2253_v9, 4  ;;  %v2981_v24 = vrot.slane %v7657_v62, 5  ;;  %v348_v9 = vld [vmem:[%s7611_s21 + $0x2c] sm:$0x1] }
  0x85   : > { %v2261_v21 = vrot.slane %v2259_v10, 5  ;;  %v411_v27 = vsel %vm7633_vm2, %v406_v12, %v410_v1  ;;  %v2246_v28 = vor.u32 %v2245_v13, %v2242_v8  ;;  %v7676_v29 = vrot.slane %v2978_v17, 4 }
  0x86   : > { %v413_v30 = vshrl.u32 %v313_v11, 16  ;;  %v5635_v32 = vcombine.low %v401_v19, %v411_v27  ;;  %v2256_v33 = vor.u32 %v2255_v20, %v2251_v14  ;;  %v416_v34 = vshll.u32 %v313_v11, 16  ;;  %v7705_v27 = vld [vmem:[%s7611_s21 + $0x34] sm:$0xf] }
  0x87   : > { %v422_v35 = vshll.u32 %v314_v18, 16  ;;  %v2247_v37 = vrot.slane %v2246_v28, 4  ;;  %v426_v39 = vshrl.u32 %v314_v18, 16  ;;  %v432_v40 = vshll.u32 %v347_v25, 16  ;;  %v5827_v18 = vld [vmem:[%s7611_s21 + $0x30] sm:$0xf] }
  0x88   : > { %v415_v38 = vrot.slane %v413_v30, 4  ;;  %6516 = vmatmul.mubr.msk.bf16.vlgmr.msra.gmra.mrb[0].mxu1 %vm813_vm3, %v5635_v32  ;;  %v2257_v42 = vrot.slane %v2256_v33, 4  ;;  %v418_v43 = vrot.slane %v416_v34, 5  ;;  %v2264_v46 = vshrl.u32 %v5824_v31, 16 }
  0x89   : > { %v424_v44 = vrot.slane %v422_v35, 5  ;;  %6548 = vmatpush3.bf16.msra.mxu1 %v7618_v15  ;;  %v2252_v47 = vsel %vm7633_vm2, %v2247_v37, %v2251_v14  ;;  %v428_v48 = vrot.slane %v426_v39, 4  ;;  %v434_v49 = vrot.slane %v432_v40, 5 }
  0x8a   : > { %v2267_v50 = vshll.u32 %v5824_v31, 16  ;;  %v2262_v52 = vsel %vm7633_vm2, %v2257_v42, %v2261_v21  ;;  %v419_v53 = vor.u32 %v418_v43, %v415_v38  ;;  %v2266_v54 = vrot.slane %v2264_v46, 4  ;;  %6549 = vmatprep.subr.bf16.mxu1 %v7180_v36  ;;  %v317_v43 = vld [vmem:[%s7611_s21 + $0x30] sm:$0xf] }
  0x8b   : > { %v2273_v55 = vshll.u32 %v7680_v41, 16  ;;  %v5867_v15 = vcombine.low %v2252_v47, %v2262_v52  ;;  %v429_v63 = vor.u32 %v428_v48, %v424_v44  ;;  %v2277_v1 = vshrl.u32 %v7680_v41, 16 }
  0x8c   : > { %v2269_v0 = vrot.slane %v2267_v50, 5  ;;  %v420_v2 = vrot.slane %v419_v53, 4  ;;  %v2283_v4 = vshll.u32 %v7684_v45, 16  ;;  %v437_v5 = vshrl.u32 %v315_v51, 16 }
  0x8d   : > { %v2275_v3 = vrot.slane %v2273_v55, 5  ;;  %6660 = vmatmul.mubr.msk.bf16.vlgmr.msra.gmra.mrb[0].mxu0 %vm813_vm3, %v5867_v15  ;;  %v430_v6 = vrot.slane %v429_v63, 4  ;;  %v2279_v8 = vrot.slane %v2277_v1, 4  ;;  %v440_v10 = vshll.u32 %v315_v51, 16  ;;  %6550 = vmatpush3.bf16.msra.mxu1 %v7180_v36  ;;  %v7712_v36 = vld [vmem:[%s7611_s21 + $0x38] sm:$0x1] }
  0x8e   : > { %v2270_v7 = vor.u32 %v2269_v0, %v2266_v54  ;;  %6692 = vmatpush3.bf16.msra.mxu0 %v7620_v16  ;;  %v425_v11 = vsel %vm7633_vm2, %v420_v2, %v424_v44  ;;  %v2285_v12 = vrot.slane %v2283_v4, 5  ;;  %v439_v13 = vrot.slane %v437_v5, 4  ;;  %6583 = vmatprep.subr.bf16.mxu1 %v7183_v61  ;;  %v7707_v16 = vld [vmem:[#allocation7 + $0x60] sm:$0xff]   ;;  %v349_v63 = vld [vmem:[%s7611_s21 + $0x38] sm:$0x1] }
  0x8f   : > { %v446_v14 = vshll.u32 %v316_v56, 16  ;;  %v435_v19 = vsel %vm7633_vm2, %v430_v6, %v434_v49  ;;  %v2280_v21 = vor.u32 %v2279_v8, %v2275_v3  ;;  %v442_v25 = vrot.slane %v440_v10, 5  ;;  %6693 = vmatprep.subr.bf16.mxu0 %v7179_v58  ;;  %v318_v49 = vld [vmem:[%s7611_s21 + $0x34] sm:$0xf]  ;;  %v5830_v6 = vld [vmem:[%s7611_s21 + $0x3c] sm:$0xf] }
  0x90   : > { %v2271_v20 = vrot.slane %v2270_v7, 4  ;;  %v5636_v28 = vcombine.low %v425_v11, %v435_v19  ;;  %v450_v31 = vshrl.u32 %v316_v56, 16  ;;  %v456_v32 = vshll.u32 %v348_v9, 16  ;;  %v7731_v11 = vld [vmem:[%s7611_s21 + $0x40] sm:$0xf] }
  0x91   : > { %v448_v30 = vrot.slane %v446_v14, 5  ;;  %v2281_v34 = vrot.slane %v2280_v21, 4  ;;  %v443_v35 = vor.u32 %v442_v25, %v439_v13  ;;  %v2288_v37 = vshrl.u32 %v5827_v18, 16  ;;  %v7736_v21 = vld [vmem:[%s7611_s21 + $0x44] sm:$0x1] }
  0x92   : > { %v2276_v33 = vsel %vm7633_vm2, %v2271_v20, %v2275_v3  ;;  %6519 = vmatprep.mubr.msk.bf16.mxu1 %vm813_vm3, %v5636_v28  ;;  %v452_v38 = vrot.slane %v450_v31, 4  ;;  %v458_v39 = vrot.slane %v456_v32, 5  ;;  %v2291_v40 = vshll.u32 %v5827_v18, 16  ;;  %6694 = vmatpush3.bf16.msra.mxu0 %v7179_v58 }
  0x93   : > { %v2297_v42 = vshll.u32 %v7705_v27, 16  ;;  %v2286_v44 = vsel %vm7633_vm2, %v2281_v34, %v2285_v12  ;;  %v444_v46 = vrot.slane %v443_v35, 4  ;;  %v2290_v47 = vrot.slane %v2288_v37, 4  ;;  %6727 = vmatprep.subr.bf16.mxu0 %v7707_v16  ;;  %v319_v34 = vld [vmem:[%s7611_s21 + $0x3c] sm:$0xf] }
  0x94   : > { %v2301_v48 = vshrl.u32 %v7705_v27, 16  ;;  %v5868_v50 = vcombine.low %v2276_v33, %v2286_v44  ;;  %v453_v51 = vor.u32 %v452_v38, %v448_v30  ;;  %v2293_v52 = vrot.slane %v2291_v40, 5  ;;  %v320_v35 = vld [vmem:[%s7611_s21 + $0x40] sm:$0xf] }
  0x95   : > { %v2299_v53 = vrot.slane %v2297_v42, 5  ;;  %v449_v54 = vsel %vm7633_vm2, %v444_v46, %v448_v30  ;;  %v2307_v56 = vshll.u32 %v7712_v36, 16  ;;  %v461_v58 = vshrl.u32 %v317_v43, 16  ;;  %v350_v42 = vld [vmem:[%s7611_s21 + $0x44] sm:$0x1] }
  0x96   : > { %v2303_v55 = vrot.slane %v2301_v48, 4  ;;  %6663 = vmatprep.mubr.msk.bf16.mxu0 %vm813_vm3, %v5868_v50  ;;  %v454_v61 = vrot.slane %v453_v51, 4  ;;  %v2294_v15 = vor.u32 %v2293_v52, %v2290_v47  ;;  %v464_v0 = vshll.u32 %v317_v43, 16  ;;  %v5833_v52 = vld [vmem:[%s7611_s21 + $0x48] sm:$0xf] }
  0x97   : > { %v470_v1 = vshll.u32 %v318_v49, 16  ;;  %v2309_v3 = vrot.slane %v2307_v56, 5  ;;  %v463_v4 = vrot.slane %v461_v58, 4  ;;  %v474_v5 = vshrl.u32 %v318_v49, 16 }
  0x98   : > { %v2304_v2 = vor.u32 %v2303_v55, %v2299_v53  ;;  %v459_v7 = vsel %vm7633_vm2, %v454_v61, %v458_v39  ;;  %v2295_v8 = vrot.slane %v2294_v15, 4  ;;  %v466_v9 = vrot.slane %v464_v0, 5  ;;  %v7754_v0 = vld [vmem:[%s7611_s21 + $0x4c] sm:$0xf] }
  0x99   : > { %v472_v10 = vrot.slane %v470_v1, 5  ;;  %v5637_v12 = vcombine.low %v449_v54, %v459_v7  ;;  %v476_v14 = vrot.slane %v474_v5, 4  ;;  %v480_v18 = vshll.u32 %v349_v63, 16  ;;  %v7760_v7 = vld [vmem:[%s7611_s21 + $0x50] sm:$0x1] }
  0x9a   : > { %v2305_v13 = vrot.slane %v2304_v2, 4  ;;  %v2300_v19 = vsel %vm7633_vm2, %v2295_v8, %v2299_v53  ;;  %v467_v20 = vor.u32 %v466_v9, %v463_v4  ;;  %v2312_v25 = vshrl.u32 %v5830_v6, 16 }
  0x9b   : > { %v2315_v28 = vshll.u32 %v5830_v6, 16  ;;  %6520 = vmatmul.mubr.msk.bf16.gmra.mrb[4].mxu1 %vm813_vm3, %v5637_v12  ;;  %v477_v31 = vor.u32 %v476_v14, %v472_v10  ;;  %v482_v32 = vrot.slane %v480_v18, 5  ;;  %v2321_v33 = vshll.u32 %v7731_v11, 16 }
  0x9c   : > { %v2310_v30 = vsel %vm7633_vm2, %v2305_v13, %v2309_v3  ;;  %v468_v38 = vrot.slane %v467_v20, 4  ;;  %v2314_v39 = vrot.slane %v2312_v25, 4  ;;  %v2325_v46 = vshrl.u32 %v7731_v11, 16 }
  0x9d   : > { %v5869_v37 = vcombine.low %v2300_v19, %v2310_v30  ;;  %v2317_v40 = vrot.slane %v2315_v28, 5  ;;  %v478_v43 = vrot.slane %v477_v31, 4  ;;  %v2323_v44 = vrot.slane %v2321_v33, 5  ;;  %v7765_v28 = vld [vmem:[%s7611_s21 + $0x48] sm:$0xf] }
  0x9e   : > { %v2331_v47 = vshll.u32 %v7736_v21, 16  ;;  %v473_v48 = vsel %vm7633_vm2, %v468_v38, %v472_v10  ;;  %v485_v50 = vshrl.u32 %v319_v34, 16  ;;  %v488_v51 = vshll.u32 %v319_v34, 16  ;;  %v7771_v34 = vld [vmem:[%s7611_s21 + $0x4c] sm:$0xf] }
  0x9f   : > { %6664 = vmatmul.mubr.msk.bf16.gmra.mrb[4].mxu0 %vm813_vm3, %v5869_v37  ;;  %v2318_v49 = vor.u32 %v2317_v40, %v2314_v39  ;;  %v483_v53 = vsel %vm7633_vm2, %v478_v43, %v482_v32  ;;  %v2327_v54 = vrot.slane %v2325_v46, 4  ;;  %v494_v56 = vshll.u32 %v320_v35, 16  ;;  %v351_v40 = vld [vmem:[%s7611_s21 + $0x50] sm:$0x1] }
  0xa0   : > { %v2333_v55 = vrot.slane %v2331_v47, 5  ;;  %v5638_v58 = vcombine.low %v473_v48, %v483_v53  ;;  %v487_v15 = vrot.slane %v485_v50, 4  ;;  %v490_v63 = vrot.slane %v488_v51, 5  ;;  %v5836_v51 = vld [vmem:[%s7611_s21 + $0x54] sm:$0xf] }
  0xa1   : > { %v2319_v61 = vrot.slane %v2318_v49, 4  ;;  %v2328_v1 = vor.u32 %v2327_v54, %v2323_v44  ;;  %v496_v2 = vrot.slane %v494_v56, 5  ;;  %v498_v3 = vshrl.u32 %v320_v35, 16  ;;  %v7785_v56 = vld [vmem:[%s7611_s21 + $0x58] sm:$0xf] }
  0xa2   : > { %v504_v4 = vshll.u32 %v350_v42, 16  ;;  %6523 = vmatprep.mubr.msk.bf16.mxu1 %vm813_vm3, %v5638_v58  ;;  %v491_v6 = vor.u32 %v490_v63, %v487_v15  ;;  %v2336_v8 = vshrl.u32 %v5833_v52, 16  ;;  %v2339_v9 = vshll.u32 %v5833_v52, 16 }
  0xa3   : > { %v2324_v5 = vsel %vm7633_vm2, %v2319_v61, %v2323_v44  ;;  %v2329_v10 = vrot.slane %v2328_v1, 4  ;;  %v500_v12 = vrot.slane %v498_v3, 4  ;;  %v2345_v14 = vshll.u32 %v7754_v0, 16 }
  0xa4   : > { %v506_v13 = vrot.slane %v504_v4, 5  ;;  %v492_v18 = vrot.slane %v491_v6, 4  ;;  %v2338_v19 = vrot.slane %v2336_v8, 4  ;;  %v2341_v20 = vrot.slane %v2339_v9, 5  ;;  %v7790_v4 = vld [vmem:[%s7611_s21 + $0x5c] sm:$0x1] }
  0xa5   : > { %v2349_v25 = vshrl.u32 %v7754_v0, 16  ;;  %v2334_v30 = vsel %vm7633_vm2, %v2329_v10, %v2333_v55  ;;  %v501_v31 = vor.u32 %v500_v12, %v496_v2  ;;  %v2347_v32 = vrot.slane %v2345_v14, 5  ;;  %v7798_v12 = vld [vmem:[%s7611_s21 + $0x54] sm:$0xf] }
  0xa6   : > { %v2355_v33 = vshll.u32 %v7760_v7, 16  ;;  %v5870_v35 = vcombine.low %v2324_v5, %v2334_v30  ;;  %v497_v37 = vsel %vm7633_vm2, %v492_v18, %v496_v2  ;;  %v2342_v38 = vor.u32 %v2341_v20, %v2338_v19  ;;  %v7801_v20 = vld [vmem:[%s7611_s21 + $0x58] sm:$0xf] }
  0xa7   : > { %v2351_v39 = vrot.slane %v2349_v25, 4  ;;  %v502_v42 = vrot.slane %v501_v31, 4  ;;  %v509_v44 = vshrl.u32 %v7765_v28, 16  ;;  %v512_v46 = vshll.u32 %v7765_v28, 16 }
  0xa8   : > { %v2357_v43 = vrot.slane %v2355_v33, 5  ;;  %6667 = vmatprep.mubr.msk.bf16.mxu0 %vm813_vm3, %v5870_v35  ;;  %v2343_v47 = vrot.slane %v2342_v38, 4  ;;  %v518_v49 = vshll.u32 %v7771_v34, 16  ;;  %v522_v50 = vshrl.u32 %v7771_v34, 16 }
  0xa9   : > { %v2352_v48 = vor.u32 %v2351_v39, %v2347_v32  ;;  %v507_v52 = vsel %vm7633_vm2, %v502_v42, %v506_v13  ;;  %v511_v53 = vrot.slane %v509_v44, 4  ;;  %v514_v54 = vrot.slane %v512_v46, 5  ;;  %v5839_v46 = vld [vmem:[%s7611_s21 + $0x60] sm:$0xf] }
  0xaa   : > { %v528_v55 = vshll.u32 %v351_v40, 16  ;;  %v5639_v58 = vcombine.low %v497_v37, %v507_v52  ;;  %v2348_v61 = vsel %vm7633_vm2, %v2343_v47, %v2347_v32  ;;  %v520_v63 = vrot.slane %v518_v49, 5 }
  0xab   : > { %v2353_v15 = vrot.slane %v2352_v48, 4  ;;  %v515_v1 = vor.u32 %v514_v54, %v511_v53  ;;  %v524_v2 = vrot.slane %v522_v50, 4  ;;  %v2360_v5 = vshrl.u32 %v5836_v51, 16 }
  0xac   : > { %v530_v3 = vrot.slane %v528_v55, 5  ;;  %6524 = vmatmul.mubr.msk.bf16.gmra.mrb[8].mxu1 %vm813_vm3, %v5639_v58  ;;  %v2363_v8 = vshll.u32 %v5836_v51, 16  ;;  %v2369_v9 = vshll.u32 %v7785_v56, 16  ;;  %v2373_v10 = vshrl.u32 %v7785_v56, 16  ;;  %v7816_v51 = vld [vmem:[%s7611_s21 + $0x64] sm:$0xf] }
  0xad   : > { %v2358_v6 = vsel %vm7633_vm2, %v2353_v15, %v2357_v43  ;;  %v516_v14 = vrot.slane %v515_v1, 4  ;;  %v525_v18 = vor.u32 %v524_v2, %v520_v63  ;;  %v2362_v19 = vrot.slane %v2360_v5, 4  ;;  %v352_v43 = vld [vmem:[%s7611_s21 + $0x5c] sm:$0x1] }
  0xae   : > { %v5871_v13 = vcombine.low %v2348_v61, %v2358_v6  ;;  %v2365_v25 = vrot.slane %v2363_v8, 5  ;;  %v2371_v30 = vrot.slane %v2369_v9, 5  ;;  %v2375_v31 = vrot.slane %v2373_v10, 4  ;;  %v7828_v8 = vld [vmem:[%s7611_s21 + $0x60] sm:$0xf] }
  0xaf   : > { %v2379_v32 = vshll.u32 %v7790_v4, 16  ;;  %v521_v33 = vsel %vm7633_vm2, %v516_v14, %v520_v63  ;;  %v526_v35 = vrot.slane %v525_v18, 4  ;;  %v533_v37 = vshrl.u32 %v7798_v12, 16  ;;  %v7819_v63 = vld [vmem:[%s7611_s21 + $0x68] sm:$0x1] }
  0xb0   : > { %6668 = vmatmul.mubr.msk.bf16.gmra.mrb[8].mxu0 %vm813_vm3, %v5871_v13  ;;  %v536_v38 = vshll.u32 %v7798_v12, 16  ;;  %v2366_v39 = vor.u32 %v2365_v25, %v2362_v19  ;;  %v2376_v40 = vor.u32 %v2375_v31, %v2371_v30  ;;  %v542_v44 = vshll.u32 %v7801_v20, 16  ;;  %v7831_v9 = vld [vmem:[%s7611_s21 + $0x64] sm:$0xf] }
  0xb1   : > { %v2381_v42 = vrot.slane %v2379_v32, 5  ;;  %v531_v47 = vsel %vm7633_vm2, %v526_v35, %v530_v3  ;;  %v535_v48 = vrot.slane %v533_v37, 4  ;;  %v546_v50 = vshrl.u32 %v7801_v20, 16  ;;  %v353_v37 = vld [vmem:[%s7611_s21 + $0x68] sm:$0x1] }
  0xb2   : > { %v538_v49 = vrot.slane %v536_v38, 5  ;;  %v5640_v52 = vcombine.low %v521_v33, %v531_v47  ;;  %v2367_v53 = vrot.slane %v2366_v39, 4  ;;  %v2377_v54 = vrot.slane %v2376_v40, 4 }
  0xb3   : > { %v544_v55 = vrot.slane %v542_v44, 5  ;;  %v548_v61 = vrot.slane %v546_v50, 4  ;;  %v552_v15 = vshll.u32 %v352_v43, 16  ;;  %v2384_v1 = vshrl.u32 %v5839_v46, 16  ;;  %v5900_v44 = vld [vmem:[%s7611_s21 + $0xc] sm:$0xe] }
  0xb4   : > { %v539_v58 = vor.u32 %v538_v49, %v535_v48  ;;  %6527 = vmatprep.mubr.msk.bf16.mxu1 %vm813_vm3, %v5640_v52  ;;  %v2372_v2 = vsel %vm7633_vm2, %v2367_v53, %v2371_v30  ;;  %v2382_v3 = vsel %vm7633_vm2, %v2377_v54, %v2381_v42  ;;  %v2387_v5 = vshll.u32 %v5839_v46, 16 }
  0xb5   : > { %v2393_v6 = vshll.u32 %v7816_v51, 16  ;;  %v5872_v10 = vcombine.low %v2372_v2, %v2382_v3  ;;  %v549_v14 = vor.u32 %v548_v61, %v544_v55  ;;  %v554_v18 = vrot.slane %v552_v15, 5 }
  0xb6   : > { %v540_v13 = vrot.slane %v539_v58, 4  ;;  %v2386_v19 = vrot.slane %v2384_v1, 4  ;;  %v2389_v25 = vrot.slane %v2387_v5, 5  ;;  %v2397_v30 = vshrl.u32 %v7816_v51, 16  ;;  %v7853_v58 = vld [vmem:[%s7611_s21 + $0x6c] sm:$0xf] }
  0xb7   : > { %v2395_v31 = vrot.slane %v2393_v6, 5  ;;  %6671 = vmatprep.mubr.msk.bf16.mxu0 %vm813_vm3, %v5872_v10  ;;  %v550_v33 = vrot.slane %v549_v14, 4  ;;  %v2403_v35 = vshll.u32 %v7819_v63, 16  ;;  %v557_v38 = vshrl.u32 %v7828_v8, 16 }
  0xb8   : > { %v545_v32 = vsel %vm7633_vm2, %v540_v13, %v544_v55  ;;  %v2390_v39 = vor.u32 %v2389_v25, %v2386_v19  ;;  %v2399_v40 = vrot.slane %v2397_v30, 4  ;;  %v560_v42 = vshll.u32 %v7828_v8, 16  ;;  %v7865_v19 = vld [vmem:[%s7611_s21 + $0x70] sm:$0xf] }
  0xb9   : > { %v566_v43 = vshll.u32 %v7831_v9, 16  ;;  %v555_v46 = vsel %vm7633_vm2, %v550_v33, %v554_v18  ;;  %v2405_v47 = vrot.slane %v2403_v35, 5  ;;  %v559_v48 = vrot.slane %v557_v38, 4  ;;  %v354_v33 = vld [vmem:[%s7611_s21 + $0x74] sm:$0x1] }
  0xba   : > { %v570_v49 = vshrl.u32 %v7831_v9, 16  ;;  %v5641_v50 = vcombine.low %v545_v32, %v555_v46  ;;  %v2391_v52 = vrot.slane %v2390_v39, 4  ;;  %v2400_v53 = vor.u32 %v2399_v40, %v2395_v31  ;;  %v5901_v35 = vld [vmem:[%s7611_s21 + $0x18] sm:$0xe] }
  0xbb   : > { %v562_v54 = vrot.slane %v560_v42, 5  ;;  %v568_v61 = vrot.slane %v566_v43, 5  ;;  %v576_v1 = vshll.u32 %v353_v37, 16  ;;  %v5916_v2 = vrot.slane %v5900_v44, 9  ;;  %v7882_v44 = vld [vmem:[%s7611_s21 + $0x78] sm:$0xf] }
  0xbc   : > { %v572_v15 = vrot.slane %v570_v49, 4  ;;  %6528 = vmatmul.mubr.msk.bf16.gmra.mrb[12].mxu1 %vm813_vm3, %v5641_v50  ;;  %v2396_v3 = vsel %vm7633_vm2, %v2391_v52, %v2395_v31  ;;  %v2401_v5 = vrot.slane %v2400_v53, 4  ;;  %v2973_v10 = vrot.slane %v2971_v59, 4  ;;  %v7893_v49 = vld [vmem:[%s7611_s21 + $0x7c] sm:$0xf] }
  0xbd   : > { %v563_v6 = vor.u32 %v562_v54, %v559_v48  ;;  %v578_v14 = vrot.slane %v576_v1, 5  ;;  %v2972_v18 = vsel %vm7848_vm6, %v5916_v2, %v2971_v59  ;;  %v581_v25 = vshrl.u32 %v7853_v58, 16 }
  0xbe   : > { %v573_v13 = vor.u32 %v572_v15, %v568_v61  ;;  %v2406_v31 = vsel %vm7633_vm2, %v2401_v5, %v2405_v47  ;;  %v2975_v32 = vsel %vm7848_vm6, %v2973_v10, %v2974_v60  ;;  %v584_v22 = vshll.u32 %v7853_v58, 16  ;;  %v7907_v10 = vld [vmem:[%s7611_s21 + $0x84] sm:$0xf] }
  0xbf   : > { %v564_v30 = vrot.slane %v563_v6, 4  ;;  %v5873_v59 = vcombine.low %v2396_v3, %v2406_v31  ;;  %v5932_v38 = vcombine.low %v2972_v18, %v2975_v32  ;;  %v583_v39 = vrot.slane %v581_v25, 4  ;;  %v7911_v18 = vld [vmem:[%s7611_s21 + $0x88] sm:$0xf] }
  0xc0   : > { %v574_v37 = vrot.slane %v573_v13, 4  ;;  %v586_v42 = vrot.slane %v584_v22, 5  ;;  %v590_v43 = vshll.u32 %v7865_v19, 16  ;;  %v594_v23 = vshrl.u32 %v7865_v19, 16 }
  0xc1   : > { %v569_v40 = vsel %vm7633_vm2, %v564_v30, %v568_v61  ;;  %6672 = vmatmul.mubr.msk.bf16.gmra.mrb[12].mxu0 %vm813_vm3, %v5873_v59  ;;  %v600_v46 = vshll.u32 %v354_v33, 16  ;;  %v5917_v47 = vrot.slane %v5901_v35, 9  ;;  %v2982_v48 = vsel %vm7848_vm6, %v7676_v29, %v2981_v24  ;;  %v355_v61 = vld [vmem:[%s7611_s21 + $0x80] sm:$0x1]  ;;  %v5902_v29 = vld [vmem:[%s7611_s21 + $0x24] sm:$0xe] }
  0xc2   : > { %v579_v60 = vsel %vm7633_vm2, %v574_v37, %v578_v14  ;;  %6695 = vmatprep.mubr.msk.bf16.mxu0 %vm813_vm3, %v5932_v38  ;;  %v587_v52 = vor.u32 %v586_v42, %v583_v39  ;;  %v592_v53 = vrot.slane %v590_v43, 5  ;;  %v596_v54 = vrot.slane %v594_v23, 4  ;;  %v356_v33 = vld [vmem:[%s7611_s21 + $0x8c] sm:$0x1]  ;;  %v5903_v38 = vld [vmem:[%s7611_s21 + $0x30] sm:$0xe] }
  0xc3   : > { %v5642_v50 = vcombine.low %v569_v40, %v579_v60  ;;  %v602_v15 = vrot.slane %v600_v46, 5  ;;  %v2979_v62 = vsel %vm7848_vm6, %v5917_v47, %v2978_v17  ;;  %v605_v1 = vshrl.u32 %v7882_v44, 16  ;;  %v7184_v39 = vld [vmem:[#allocation7 + $0x68] sm:$0xff]  }
  0xc4   : > { %v608_v24 = vshll.u32 %v7882_v44, 16  ;;  %v588_v2 = vrot.slane %v587_v52, 4  ;;  %v597_v3 = vor.u32 %v596_v54, %v592_v53  ;;  %v5933_v5 = vcombine.low %v2979_v62, %v2982_v48  ;;  %v7932_v54 = vld [vmem:[%s7611_s21 + $0x94] sm:$0xf] }
  0xc5   : > { %6531 = vmatprep.mubr.msk.bf16.mxu1 %vm813_vm3, %v5642_v50  ;;  %v614_v6 = vshll.u32 %v7893_v49, 16  ;;  %v607_v57 = vrot.slane %v605_v1, 4  ;;  %v618_v17 = vshrl.u32 %v7893_v49, 16  ;;  %v624_v14 = vshll.u32 %v355_v61, 16  ;;  %v7938_v1 = vld [vmem:[#allocation7 + $0x70] sm:$0xff]  }
  0xc6   : > { %v610_v13 = vrot.slane %v608_v24, 5  ;;  %v593_v25 = vsel %vm7633_vm2, %v588_v2, %v592_v53  ;;  %v598_v31 = vrot.slane %v597_v3, 4  ;;  %v5918_v32 = vrot.slane %v5902_v29, 9 }
  0xc7   : > { %v616_v30 = vrot.slane %v614_v6, 5  ;;  %v620_v35 = vrot.slane %v618_v17, 4  ;;  %v626_v59 = vrot.slane %v624_v14, 5  ;;  %v2985_v37 = vrot.slane %v7680_v41, 5  ;;  %v357_v17 = vld [vmem:[%s7611_s21 + $0x98] sm:$0x1] }
  0xc8   : > { %v611_v22 = vor.u32 %v610_v13, %v607_v57  ;;  %v603_v40 = vsel %vm7633_vm2, %v598_v31, %v602_v15  ;;  %v2988_v42 = vrot.slane %v7684_v45, 5  ;;  %v629_v43 = vshrl.u32 %v7907_v10, 16  ;;  %v7929_v45 = vld [vmem:[%s7611_s21 + $0x90] sm:$0xf]  ;;  %v5904_v14 = vld [vmem:[%s7611_s21 + $0x3c] sm:$0xe] }
  0xc9   : > { %v632_v23 = vshll.u32 %v7907_v10, 16  ;;  %v5643_v60 = vcombine.low %v593_v25, %v603_v40  ;;  %6696 = vmatmul.mubr.msk.bf16.vlgmr.msra.gmra.mrb[0].mxu0 %vm813_vm3, %v5933_v5  ;;  %v621_v47 = vor.u32 %v620_v35, %v616_v30  ;;  %v2986_v41 = vsel %vm7848_vm6, %v5918_v32, %v2985_v37 }
  0xca   : > { %v612_v46 = vrot.slane %v611_v22, 4  ;;  %6728 = vmatpush3.bf16.msra.mxu0 %v7707_v16  ;;  %v2987_v48 = vrot.slane %v2985_v37, 4  ;;  %v631_v50 = vrot.slane %v629_v43, 4  ;;  %v638_v53 = vshll.u32 %v7911_v18, 16 }
  0xcb   : > { %v634_v52 = vrot.slane %v632_v23, 5  ;;  %6532 = vmatmul.mubr.msk.bf16.gmra.mrb[16].mxu1 %vm813_vm3, %v5643_v60  ;;  %v622_v15 = vrot.slane %v621_v47, 4  ;;  %v642_v62 = vshrl.u32 %v7911_v18, 16  ;;  %v648_v16 = vshll.u32 %v356_v33, 16  ;;  %6729 = vmatprep.subr.bf16.mxu0 %v7184_v39  ;;  %v7963_v60 = vld [vmem:[%s7611_s21 + $0xa0] sm:$0xf] }
  0xcc   : > { %v617_v61 = vsel %vm7633_vm2, %v612_v46, %v616_v30  ;;  %v2989_v24 = vsel %vm7848_vm6, %v2987_v48, %v2988_v42  ;;  %v640_v2 = vrot.slane %v638_v53, 5  ;;  %v5919_v3 = vrot.slane %v5903_v38, 9 }
  0xcd   : > { %v635_v29 = vor.u32 %v634_v52, %v631_v50  ;;  %v627_v5 = vsel %vm7633_vm2, %v622_v15, %v626_v59  ;;  %v5934_v6 = vcombine.low %v2986_v41, %v2989_v24  ;;  %v644_v57 = vrot.slane %v642_v62, 4  ;;  %v358_v50 = vld [vmem:[%s7611_s21 + $0xa4] sm:$0x1] }
  0xce   : > { %v650_v13 = vrot.slane %v648_v16, 5  ;;  %v5644_v25 = vcombine.low %v617_v61, %v627_v5  ;;  %v2992_v30 = vrot.slane %v7705_v27, 5  ;;  %v2995_v32 = vrot.slane %v7712_v36, 5  ;;  %6730 = vmatpush3.bf16.msra.mxu0 %v7184_v39  ;;  %v7960_v39 = vld [vmem:[%s7611_s21 + $0x9c] sm:$0xf] }
  0xcf   : > { %v636_v31 = vrot.slane %v635_v29, 4  ;;  %6699 = vmatprep.mubr.msk.bf16.mxu0 %vm813_vm3, %v5934_v6  ;;  %v645_v33 = vor.u32 %v644_v57, %v640_v2  ;;  %v653_v22 = vshrl.u32 %v7929_v45, 16  ;;  %v656_v35 = vshll.u32 %v7929_v45, 16  ;;  %6763 = vmatprep.subr.bf16.mxu0 %v7938_v1 }
  0xd0   : > { %v662_v59 = vshll.u32 %v7932_v54, 16  ;;  %6535 = vmatprep.mubr.msk.bf16.mxu1 %vm813_vm3, %v5644_v25  ;;  %v2993_v36 = vsel %vm7848_vm6, %v5919_v3, %v2992_v30  ;;  %v2994_v37 = vrot.slane %v2992_v30, 4  ;;  %v666_v38 = vshrl.u32 %v7932_v54, 16  ;;  %v7985_v25 = vld [vmem:[%s7611_s21 + $0xac] sm:$0xf] }
  0xd1   : > { %v641_v27 = vsel %vm7633_vm2, %v636_v31, %v640_v2  ;;  %v646_v40 = vrot.slane %v645_v33, 4  ;;  %v655_v42 = vrot.slane %v653_v22, 4  ;;  %v658_v43 = vrot.slane %v656_v35, 5  ;;  %v5905_v2 = vld [vmem:[%s7611_s21 + $0x48] sm:$0xe] }
  0xd2   : > { %v664_v23 = vrot.slane %v662_v59, 5  ;;  %v2996_v46 = vsel %vm7848_vm6, %v2994_v37, %v2995_v32  ;;  %v668_v47 = vrot.slane %v666_v38, 4  ;;  %v672_v41 = vshll.u32 %v357_v17, 16 }
  0xd3   : > { %v5920_v48 = vrot.slane %v5904_v14, 9  ;;  %v651_v52 = vsel %vm7633_vm2, %v646_v40, %v650_v13  ;;  %v5935_v53 = vcombine.low %v2993_v36, %v2996_v46  ;;  %v659_v61 = vor.u32 %v658_v43, %v655_v42  ;;  %v7978_v13 = vld [vmem:[%s7611_s21 + $0xa8] sm:$0xf]  ;;  %v359_v42 = vld [vmem:[%s7611_s21 + $0xb0] sm:$0x1] }
  0xd4   : > { %v2999_v15 = vrot.slane %v7731_v11, 5  ;;  %v5645_v62 = vcombine.low %v641_v27, %v651_v52  ;;  %v669_v16 = vor.u32 %v668_v47, %v664_v23  ;;  %v674_v24 = vrot.slane %v672_v41, 5 }
  0xd5   : > { %v3002_v29 = vrot.slane %v7736_v21, 5  ;;  %6700 = vmatmul.mubr.msk.bf16.gmra.mrb[4].mxu0 %vm813_vm3, %v5935_v53  ;;  %v660_v3 = vrot.slane %v659_v61, 4  ;;  %v677_v57 = vshrl.u32 %v7960_v39, 16  ;;  %v680_v17 = vshll.u32 %v7960_v39, 16  ;;  %v5906_v53 = vld [vmem:[%s7611_s21 + $0x54] sm:$0xe] }
  0xd6   : > { %v3000_v5 = vsel %vm7848_vm6, %v5920_v48, %v2999_v15  ;;  %v3001_v6 = vrot.slane %v2999_v15, 4  ;;  %6536 = vmatmul.mubr.msk.bf16.gmra.mrb[20].mxu1 %vm813_vm3, %v5645_v62  ;;  %v670_v11 = vrot.slane %v669_v16, 4  ;;  %v686_v21 = vshll.u32 %v7963_v60, 16 }
  0xd7   : > { %v690_v14 = vshrl.u32 %v7963_v60, 16  ;;  %v665_v31 = vsel %vm7633_vm2, %v660_v3, %v664_v23  ;;  %v679_v32 = vrot.slane %v677_v57, 4  ;;  %v696_v33 = vshll.u32 %v358_v50, 16  ;;  %v8010_v57 = vld [vmem:[%s7611_s21 + $0xb4] sm:$0xf] }
  0xd8   : > { %v3003_v30 = vsel %vm7848_vm6, %v3001_v6, %v3002_v29  ;;  %v675_v22 = vsel %vm7633_vm2, %v670_v11, %v674_v24  ;;  %v682_v59 = vrot.slane %v680_v17, 5  ;;  %v688_v27 = vrot.slane %v686_v21, 5 }
  0xd9   : > { %v5936_v35 = vcombine.low %v3000_v5, %v3003_v30  ;;  %v5646_v36 = vcombine.low %v665_v31, %v675_v22  ;;  %v692_v37 = vrot.slane %v690_v14, 4  ;;  %v698_v38 = vrot.slane %v696_v33, 5  ;;  %v8015_v31 = vld [vmem:[%s7611_s21 + $0xb8] sm:$0xf] }
  0xda   : > { %v5921_v40 = vrot.slane %v5905_v2, 9  ;;  %v683_v43 = vor.u32 %v682_v59, %v679_v32  ;;  %v3006_v23 = vrot.slane %v7754_v0, 5  ;;  %v3009_v46 = vrot.slane %v7760_v7, 5 }
  0xdb   : > { %6703 = vmatprep.mubr.msk.bf16.mxu0 %vm813_vm3, %v5936_v35  ;;  %v701_v47 = vshrl.u32 %v7978_v13, 16  ;;  %6539 = vmatprep.mubr.msk.bf16.mxu1 %vm813_vm3, %v5646_v36  ;;  %v693_v41 = vor.u32 %v692_v37, %v688_v27  ;;  %v704_v48 = vshll.u32 %v7978_v13, 16  ;;  %v710_v50 = vshll.u32 %v7985_v25, 16  ;;  %v360_v35 = vld [vmem:[%s7611_s21 + $0xbc] sm:$0x1] }
  0xdc   : > { %v714_v52 = vshrl.u32 %v7985_v25, 16  ;;  %v684_v61 = vrot.slane %v683_v43, 4  ;;  %v3007_v15 = vsel %vm7848_vm6, %v5921_v40, %v3006_v23  ;;  %v3008_v0 = vrot.slane %v3006_v23, 4  ;;  %v5843_v43 = vld [vmem:[%s7611_s21 + $0x70] sm:$0xf] }
  0xdd   : > { %v703_v7 = vrot.slane %v701_v47, 4  ;;  %v694_v62 = vrot.slane %v693_v41, 4  ;;  %v706_v16 = vrot.slane %v704_v48, 5  ;;  %v712_v24 = vrot.slane %v710_v50, 5  ;;  %v5844_v23 = vld [vmem:[%s7611_s21 + $0x74] sm:$0x1] }
  0xde   : > { %v716_v29 = vrot.slane %v714_v52, 4  ;;  %v689_v2 = vsel %vm7633_vm2, %v684_v61, %v688_v27  ;;  %v3010_v3 = vsel %vm7848_vm6, %v3008_v0, %v3009_v46  ;;  %v720_v5 = vshll.u32 %v359_v42, 16  ;;  %v5908_v50 = vld [vmem:[%s7611_s21 + $0x6c] sm:$0xe] }
  0xdf   : > { %v5922_v6 = vrot.slane %v5906_v53, 9  ;;  %v699_v11 = vsel %vm7633_vm2, %v694_v62, %v698_v38  ;;  %v5937_v17 = vcombine.low %v3007_v15, %v3010_v3  ;;  %v707_v21 = vor.u32 %v706_v16, %v703_v7  ;;  %v5907_v38 = vld [vmem:[%s7611_s21 + $0x60] sm:$0xe] }
  0xe0   : > { %v717_v14 = vor.u32 %v716_v29, %v712_v24  ;;  %v5647_v30 = vcombine.low %v689_v2, %v699_v11  ;;  %v722_v32 = vrot.slane %v720_v5, 5  ;;  %v3013_v33 = vrot.slane %v7785_v56, 5 }
  0xe1   : > { %v3016_v22 = vrot.slane %v7790_v4, 5  ;;  %6704 = vmatmul.mubr.msk.bf16.gmra.mrb[8].mxu0 %vm813_vm3, %v5937_v17  ;;  %v708_v59 = vrot.slane %v707_v21, 4  ;;  %v725_v36 = vshrl.u32 %v8010_v57, 16  ;;  %v728_v37 = vshll.u32 %v8010_v57, 16 }
  0xe2   : > { %v718_v27 = vrot.slane %v717_v14, 4  ;;  %6540 = vmatmul.mubr.msk.bf16.gmra.mrb[24].mxu1 %vm813_vm3, %v5647_v30  ;;  %v3014_v40 = vsel %vm7848_vm6, %v5922_v6, %v3013_v33  ;;  %v3015_v42 = vrot.slane %v3013_v33, 4  ;;  %v734_v56 = vshll.u32 %v8015_v31, 16 }
  0xe3   : > { %v738_v4 = vshrl.u32 %v8015_v31, 16  ;;  %v713_v46 = vsel %vm7633_vm2, %v708_v59, %v712_v24  ;;  %v727_v41 = vrot.slane %v725_v36, 4  ;;  %v730_v48 = vrot.slane %v728_v37, 5  ;;  %v8058_v36 = vld [vmem:[%s7611_s21 + $0x4] sm:$0xf] }
  0xe4   : > { %v723_v47 = vsel %vm7633_vm2, %v718_v27, %v722_v32  ;;  %v3017_v53 = vsel %vm7848_vm6, %v3015_v42, %v3016_v22  ;;  %v736_v61 = vrot.slane %v734_v56, 5  ;;  %v744_v62 = vshll.u32 %v360_v35, 16  ;;  %v5909_v22 = vld [vmem:[%s7611_s21 + $0x78] sm:$0xe]  ;;  %v7239_v27 = vld [vmem:[%s7611_s21] sm:$0xf] }
  0xe5   : > { %v5648_v52 = vcombine.low %v713_v46, %v723_v47  ;;  %v740_v15 = vrot.slane %v738_v4, 4  ;;  %v5938_v0 = vcombine.low %v3014_v40, %v3017_v53  ;;  %v731_v7 = vor.u32 %v730_v48, %v727_v41  ;;  %v5910_v40 = vld [vmem:[%s7611_s21 + $0x84] sm:$0xe]  ;;  %v5852_v41 = vld [vmem:[%s7611_s21 + $0x94] sm:$0xf] }
  0xe6   : > { %v5923_v16 = vrot.slane %v5907_v38, 9  ;;  %v3020_v29 = vrot.slane %v7816_v51, 5  ;;  %v3023_v2 = vrot.slane %v7819_v63, 5  ;;  %v5924_v3 = vrot.slane %v5908_v50, 9  ;;  %v8045_v51 = vld [vmem:[%s7611_s21 + $0x7c] sm:$0xf] }
  0xe7   : > { %6543 = vmatprep.mubr.msk.bf16.mxu1 %vm813_vm3, %v5648_v52  ;;  %v741_v24 = vor.u32 %v740_v15, %v736_v61  ;;  %6707 = vmatprep.mubr.msk.bf16.mxu0 %vm813_vm3, %v5938_v0  ;;  %v732_v5 = vrot.slane %v731_v7, 4  ;;  %v746_v6 = vrot.slane %v744_v62, 5  ;;  %v3027_v11 = vrot.slane %v5843_v43, 5  ;;  %v8062_v38 = vld [vmem:[%s7611_s21 + $0x80] sm:$0x1] }
  0xe8   : > { %v3030_v17 = vrot.slane %v5844_v23, 5  ;;  %v3021_v14 = vsel %vm7848_vm6, %v5923_v16, %v3020_v29  ;;  %v3022_v30 = vrot.slane %v3020_v29, 4  ;;  %v5668_v37 = vcombine.low %v7239_v27, %v8058_v36  ;;  %v5849_v43 = vld [vmem:[%s7611_s21 + $0x88] sm:$0xf]  ;;  %v5850_v23 = vld [vmem:[%s7611_s21 + $0x8c] sm:$0x1] }
  0xe9   : > { %v742_v21 = vrot.slane %v741_v24, 4  ;;  %v737_v63 = vsel %vm7633_vm2, %v732_v5, %v736_v61  ;;  %v3028_v32 = vsel %vm7848_vm6, %v5924_v3, %v3027_v11  ;;  %v3029_v33 = vrot.slane %v3027_v11, 4  ;;  %v5853_v15 = vld [vmem:[%s7611_s21 + $0x98] sm:$0x1]  ;;  %v5911_v0 = vld [vmem:[%s7611_s21 + $0x90] sm:$0xe] }
  0xea   : > { %v3024_v59 = vsel %vm7848_vm6, %v3022_v30, %v3023_v2  ;;  %v5925_v47 = vrot.slane %v5909_v22, 9  ;;  %v3034_v48 = vrot.slane %v8045_v51, 5  ;;  %v3037_v50 = vrot.slane %v8062_v38, 5  ;;  %v5855_v24 = vld [vmem:[%s7611_s21 + $0xa0] sm:$0xf] }
  0xeb   : > { %v747_v35 = vsel %vm7633_vm2, %v742_v21, %v746_v6  ;;  %v5939_v56 = vcombine.low %v3021_v14, %v3024_v59  ;;  %v3031_v4 = vsel %vm7848_vm6, %v3029_v33, %v3030_v17  ;;  %v5926_v52 = vrot.slane %v5910_v40, 9  ;;  %v7241_v29 = vld [vmem:[%s7611_s21 + $0xc] sm:$0xf]  ;;  %v8083_v2 = vld [vmem:[%s7611_s21 + $0x10] sm:$0xf] }
  0xec   : > { %v5649_v42 = vcombine.low %v737_v63, %v747_v35  ;;  %v5940_v46 = vcombine.low %v3028_v32, %v3031_v4  ;;  %v3041_v53 = vrot.slane %v5849_v43, 5  ;;  %v3044_v61 = vrot.slane %v5850_v23, 5  ;;  %v5856_v11 = vld [vmem:[%s7611_s21 + $0xa4] sm:$0x1]  ;;  %v5912_v17 = vld [vmem:[%s7611_s21 + $0x9c] sm:$0xe] }
  0xed   : > { %6708 = vmatmul.mubr.msk.bf16.gmra.mrb[12].mxu0 %vm813_vm3, %v5939_v56  ;;  %v3035_v7 = vsel %vm7848_vm6, %v5925_v47, %v3034_v48  ;;  %v3036_v62 = vrot.slane %v3034_v48, 4  ;;  %v3048_v16 = vrot.slane %v5852_v41, 5  ;;  %v5669_v3 = vcombine.low %v7241_v29, %v8083_v2  ;;  %v7243_v14 = vld [vmem:[%s7611_s21 + $0x18] sm:$0xf]  ;;  %v8094_v30 = vld [vmem:[%s7611_s21 + $0x1c] sm:$0xf] }
  0xee   : > { %6544 = vmatmul.mubr.msk.bf16.gmra.mrb[28].mxu1 %vm813_vm3, %v5649_v42  ;;  %6711 = vmatprep.mubr.msk.bf16.mxu0 %vm813_vm3, %v5940_v46  ;;  %v3042_v5 = vsel %vm7848_vm6, %v5926_v52, %v3041_v53  ;;  %v3043_v6 = vrot.slane %v3041_v53, 4  ;;  %v5670_v63 = vcombine.low %v7243_v14, %v8094_v30  ;;  %v5927_v32 = vrot.slane %v5911_v0, 9  ;;  %v5858_v56 = vld [vmem:[%s7611_s21 + $0xac] sm:$0xf]  ;;  %v5861_v23 = vld [vmem:[%s7611_s21 + $0xb8] sm:$0xf] }
  0xef   : > { %6551 = vmatprep.mubr.msk.bf16.mxu1 %vm813_vm3, %v5668_v37  ;;  %v3038_v21 = vsel %vm7848_vm6, %v3036_v62, %v3037_v50  ;;  %v3051_v33 = vrot.slane %v5853_v15, 5  ;;  %v3050_v59 = vrot.slane %v3048_v16, 4  ;;  %v3055_v27 = vrot.slane %v5855_v24, 5  ;;  %v7193_v4 = vld [vmem:[#allocation7 + $0x28] sm:$0xff]   ;;  %v7245_v46 = vld [vmem:[#allocation7 + $0x20] sm:$0xff]   ;;  %v8115_v0 = vld [vmem:[#allocation7 + $0x30] sm:$0xff]  }
  0xf0   : > { %v5941_v22 = vcombine.low %v3035_v7, %v3038_v21  ;;  %v3045_v35 = vsel %vm7848_vm6, %v3043_v6, %v3044_v61  ;;  %v5928_v40 = vrot.slane %v5912_v17, 9  ;;  %v3058_v42 = vrot.slane %v5856_v11, 5  ;;  %v5859_v53 = vld [vmem:[%s7611_s21 + $0xb0] sm:$0x1]  ;;  %v5913_v61 = vld [vmem:[%s7611_s21 + $0xa8] sm:$0xe] }
  0xf1   : > { %v5942_v37 = vcombine.low %v3042_v5, %v3045_v35  ;;  %v3057_v43 = vrot.slane %v3055_v27, 4  ;;  %v3049_v47 = vsel %vm7848_vm6, %v5927_v32, %v3048_v16  ;;  %v3052_v41 = vsel %vm7848_vm6, %v3050_v59, %v3051_v33  ;;  %v5862_v7 = vld [vmem:[%s7611_s21 + $0xbc] sm:$0x1]  ;;  %v5914_v62 = vld [vmem:[%s7611_s21 + $0xb4] sm:$0xe] }
  0xf2   : > { %v3062_v48 = vrot.slane %v5858_v56, 5  ;;  %v3056_v50 = vsel %vm7848_vm6, %v5928_v40, %v3055_v27  ;;  %v3069_v15 = vrot.slane %v5861_v23, 5  ;;  %v7246_v16 = vld [vmem:[%s7611_s21 + $0x24] sm:$0xf]  ;;  %v8121_v24 = vld [vmem:[%s7611_s21 + $0x28] sm:$0xf] }
  0xf3   : > { %v3059_v52 = vsel %vm7848_vm6, %v3057_v43, %v3058_v42  ;;  %v5671_v29 = vcombine.low %v7246_v16, %v8121_v24  ;;  %v7248_v5 = vld [vmem:[%s7611_s21 + $0x30] sm:$0xf]  ;;  %v8126_v6 = vld [vmem:[%s7611_s21 + $0x34] sm:$0xf]  ;;  %v5929_v21 = vrot.slane %v5913_v61, 9  ;;  %v5930_v32 = vrot.slane %v5914_v62, 9 }
  0xf4   : > { %v5672_v11 = vcombine.low %v7248_v5, %v8126_v6  ;;  %v5944_v17 = vcombine.low %v3056_v50, %v3059_v52  ;;  %v3064_v14 = vrot.slane %v3062_v48, 4  ;;  %v3071_v33 = vrot.slane %v3069_v15, 4  ;;  %v5864_v35 = vld [vmem:[%s7611_s21 + $0xc4] sm:$0xf]  ;;  %v7250_v43 = vld [vmem:[%s7611_s21 + $0x3c] sm:$0xf] }
  0xf5   : > { %6712 = vmatmul.mubr.msk.bf16.gmra.mrb[16].mxu0 %vm813_vm3, %v5941_v22  ;;  %v3072_v22 = vrot.slane %v5862_v7, 5  ;;  %v3063_v59 = vsel %vm7848_vm6, %v5929_v21, %v3062_v48  ;;  %v3076_v40 = vrot.slane %v5864_v35, 5  ;;  %v3070_v42 = vsel %vm7848_vm6, %v5930_v32, %v3069_v15  ;;  %v8147_v23 = vld [vmem:[%s7611_s21 + $0x40] sm:$0xf]  ;;  %v7194_v62 = vld [vmem:[%s7611_s21 + $0x18] sm:$0xff]  }
  0xf6   : > { %6552 = vmatmul.mubr.msk.bf16.vlgmr.msra.gmra.mrb[0].mxu1 %vm813_vm3, %v5669_v3  ;;  %6715 = vmatprep.mubr.msk.bf16.mxu0 %vm813_vm3, %v5942_v37  ;;  %v5943_v3 = vcombine.low %v3049_v47, %v3052_v41  ;;  %v5915_v37 = vld [vmem:[%s7611_s21 + $0xc0] sm:$0xe]  ;;  %v5674_v48 = vcombine.low %v7765_v28, %v7771_v34  ;;  %v5675_v34 = vcombine.low %v7798_v12, %v7801_v20  ;;  %v2441_v16 = vshll.u32 %v8045_v51, 16  ;;  %v7252_v5 = vld [vmem:[%s7611_s21 + $0x8] sm:$0x1] }
  0xf7   : > { %6584 = vmatpush3.bf16.msra.mxu1 %v7245_v46  ;;  %6555 = vmatprep.mubr.msk.bf16.mxu1 %vm813_vm3, %v5670_v63  ;;  %v3065_v63 = vrot.slane %v5859_v53, 5  ;;  %v3073_v56 = vsel %vm7848_vm6, %v3071_v33, %v3072_v22  ;;  %v5673_v46 = vcombine.low %v7250_v43, %v8147_v23  ;;  %v5931_v41 = vrot.slane %v5915_v37, 9  ;;  %v1324_v12 = vld [vmem:[%s7611_s21] sm:$0xe]  ;;  %v1325_v20 = vld [vmem:[%s7611_s21 + $0xc] sm:$0xe] }
  0xf8   : > { %6585 = vmatprep.subr.bf16.mxu1 %v7193_v4  ;;  %v5946_v50 = vcombine.low %v3070_v42, %v3073_v56  ;;  %v3078_v52 = vrot.slane %v3076_v40, 4  ;;  %v5676_v7 = vcombine.low %v7828_v8, %v7831_v9  ;;  %v1377_v8 = vrot.slane %v8058_v36, 5  ;;  %v1326_v9 = vld [vmem:[%s7611_s21 + $0x18] sm:$0xe]  ;;  %v7197_v36 = vld [vmem:[%s7611_s21 + $0x24] sm:$0xff]  }
  0xf9   : > { %v3066_v27 = vsel %vm7848_vm6, %v3064_v14, %v3065_v63  ;;  %v3077_v61 = vsel %vm7848_vm6, %v5931_v41, %v3076_v40  ;;  %v8181_v14 = vrot.slane %v2441_v16, 5  ;;  %v1398_v32 = vrot.slane %v8121_v24, 5  ;;  %v7254_v56 = vld [vmem:[%s7611_s21 + $0x20] sm:$0x1] }
  0xfa   : > { %v5945_v47 = vcombine.low %v3063_v59, %v3066_v27  ;;  %v5677_v22 = vcombine.low %v7853_v58, %v7865_v19  ;;  %v5702_v35 = vrot.slane %v1324_v12, 9  ;;  %v7199_v59 = vld [vmem:[%s7611_s21 + $0x30] sm:$0xff]   ;;  %v7212_v27 = vld [vmem:[#allocation7 + $0x78] sm:$0xff]   ;;  %v5703_v37 = vrot.slane %v1325_v20, 9  ;;  %v6032_v12 = vld [vmem:[%s7611_s21 + $0x18] sm:$0xf] }
  0xfb   : > { %6586 = vmatpush3.bf16.msra.mxu1 %v7193_v4  ;;  %v5865_v4 = vld [vmem:[%s7611_s21 + $0xc8] sm:$0x1]  ;;  %9450 = vst [vmem:[#allocation14_spill] sm:$0xff] %v8181_v14  ;;  %v5704_v42 = vrot.slane %v1326_v9, 9  ;;  %v1379_v24 = vrot.slane %v1377_v8, 4  ;;  %v7201_v16 = vld [vmem:[%s7611_s21 + $0x3c] sm:$0xff]  }
  0xfc   : > { %6619 = vmatprep.subr.bf16.mxu1 %v8115_v0  ;;  %v3079_v53 = vrot.slane %v5865_v4, 5  ;;  %v1394_v4 = vrot.slane %v7254_v56, 5  ;;  %v1328_v58 = vld [vmem:[%s7611_s21 + $0x30] sm:$0xe]  ;;  %v7203_v20 = vld [vmem:[%s7611_s21 + $0x48] sm:$0xff]  }
  0xfd   : > { %6716 = vmatmul.mubr.msk.bf16.gmra.mrb[20].mxu0 %vm813_vm3, %v5943_v3  ;;  %v2451_v3 = vshll.u32 %v8062_v38, 16  ;;  %v1327_v38 = vld [vmem:[%s7611_s21 + $0x24] sm:$0xe] }
  0xfe   : > { %6556 = vmatmul.mubr.msk.bf16.gmra.mrb[4].mxu1 %vm813_vm3, %v5671_v29  ;;  %6719 = vmatprep.mubr.msk.bf16.mxu0 %vm813_vm3, %v5944_v17  ;;  %v3080_v28 = vsel %vm7848_vm6, %v3078_v52, %v3079_v53  ;;  %v2445_v29 = vshrl.u32 %v8045_v51, 16  ;;  %v1384_v17 = vrot.slane %v8083_v2, 5  ;;  %v1391_v51 = vrot.slane %v8094_v30, 5  ;;  %v7253_v2 = vld [vmem:[%s7611_s21 + $0x14] sm:$0x1] }
  0xff   : > { %6559 = vmatprep.mubr.msk.bf16.mxu1 %vm813_vm3, %v5672_v11  ;;  %v5947_v15 = vcombine.low %v3077_v61, %v3080_v28  ;;  %v1380_v11 = vrot.slane %v7252_v5, 5  ;;  %v1387_v21 = vrot.slane %v7253_v2, 5  ;;  %v8186_v33 = vrot.slane %v2451_v3, 5  ;;  %v1329_v61 = vld [vmem:[%s7611_s21 + $0x3c] sm:$0xe] }
 0x100   : > { %v8183_v63 = vrot.slane %v2445_v29, 4  ;;  %v5678_v30 = vcombine.low %v7882_v44, %v7893_v49  ;;  %v1386_v40 = vrot.slane %v1384_v17, 4  ;;  %v1393_v43 = vrot.slane %v1391_v51, 4  ;;  %v6040_v52 = vld [vmem:[%s7611_s21 + $0x38] sm:$0x1] }
 0x101   : > { %9451 = vst [vmem:[#allocation15_spill] sm:$0xff] %v8186_v33  ;;  %v1405_v44 = vrot.slane %v8126_v6, 5  ;;  %v5679_v49 = vcombine.low %v7907_v10, %v7911_v18  ;;  %v8212_v6 = vsel %vm7848_vm6, %v5702_v35, %v1377_v8  ;;  %v8216_v10 = vsel %vm7848_vm6, %v5703_v37, %v1384_v17  ;;  %v7258_v35 = vld [vmem:[%s7611_s21 + $0x44] sm:$0x1]  ;;  %v8271_v37 = vld [vmem:[%s7611_s21 + $0x60] sm:$0xe] }
 0x102   : > { %v8220_v18 = vsel %vm7848_vm6, %v1386_v40, %v1387_v21  ;;  %v1412_v28 = vrot.slane %v8147_v23, 5  ;;  %v8239_v23 = vld [vmem:[%s7611_s21 + $0x48] sm:$0xe]  ;;  %v8262_v21 = vld [vmem:[%s7611_s21 + $0x54] sm:$0xe] }
 0x103   : > { %v1407_v5 = vrot.slane %v1405_v44, 4  ;;  %v6034_v40 = vld [vmem:[%s7611_s21 + $0x20] sm:$0x1]  ;;  %v8538_v33 = vld [vmem:[%s7611_s21 + $0x68] sm:$0x1] }
 0x104   : > { %9464 = vst [vmem:[#allocation20_spill] sm:$0xff] %v8538_v33 }
 0x105   : > { %6720 = vmatmul.mubr.msk.bf16.gmra.mrb[24].mxu0 %vm813_vm3, %v5945_v47  ;;  %v7255_v47 = vld [vmem:[%s7611_s21 + $0x2c] sm:$0x1] }
 0x106   : > { %6560 = vmatmul.mubr.msk.bf16.gmra.mrb[8].mxu1 %vm813_vm3, %v5673_v46  ;;  %6723 = vmatprep.mubr.msk.bf16.mxu0 %vm813_vm3, %v5946_v50  ;;  %v5705_v46 = vrot.slane %v1327_v38, 9  ;;  %v1401_v41 = vrot.slane %v7255_v47, 5  ;;  %v5680_v50 = vcombine.low %v7929_v45, %v7932_v54  ;;  %v7257_v38 = vld [vmem:[%s7611_s21 + $0x4c] sm:$0xf] }
 0x107   : > { %6563 = vmatprep.mubr.msk.bf16.mxu1 %vm813_vm3, %v5674_v48  ;;  %v1400_v48 = vrot.slane %v1398_v32, 4  ;;  %v1419_v2 = vrot.slane %v7257_v38, 5  ;;  %v6038_v38 = vld [vmem:[%s7611_s21 + $0x30] sm:$0xf] }
 0x108   : > { %v8247_v29 = vsel %vm7848_vm6, %v5705_v46, %v1398_v32  ;;  %v6033_v32 = vld [vmem:[%s7611_s21 + $0x1c] sm:$0xf]  ;;  %v5708_v46 = vrot.slane %v8239_v23, 9 }
 0x109   : > { %v8251_v3 = vsel %vm7848_vm6, %v1400_v48, %v1401_v41  ;;  %v3819_v47 = vshll.u32 %v6033_v32, 16  ;;  %v6035_v41 = vld [vmem:[%s7611_s21 + $0x24] sm:$0xf]  ;;  %v1421_v48 = vrot.slane %v1419_v2, 4 }
 0x10a   : > { %v8316_v45 = vsel %vm7848_vm6, %v5708_v46, %v1419_v2 }
 0x10b   : > { %v8318_v54 = vrot.slane %v3819_v47, 5 }
 0x10d   : > { %6724 = vmatmul.mubr.msk.bf16.gmra.mrb[28].mxu0 %vm813_vm3, %v5947_v15  ;;  %v8232_v15 = vsel %vm7848_vm6, %v5704_v42, %v1391_v51  ;;  %v5707_v51 = vrot.slane %v1329_v61, 9  ;;  %v3858_v42 = vshrl.u32 %v6038_v38, 16 }
 0x10e   : > { %6564 = vmatmul.mubr.msk.bf16.gmra.mrb[12].mxu1 %vm813_vm3, %v5675_v34  ;;  %6731 = vmatprep.mubr.msk.bf16.mxu0 %vm813_vm3, %v7194_v62  ;;  %v8228_v34 = vsel %vm7848_vm6, %v1379_v24, %v1380_v11  ;;  %v5706_v62 = vrot.slane %v1328_v58, 9  ;;  %v7256_v11 = vld [vmem:[%s7611_s21 + $0x38] sm:$0x1]  ;;  %v3813_v24 = vshll.u32 %v6032_v12, 16 }
 0x10f   : > { %6567 = vmatprep.mubr.msk.bf16.mxu1 %vm813_vm3, %v5676_v7  ;;  %v8236_v7 = vsel %vm7848_vm6, %v1393_v43, %v1394_v4  ;;  %v1408_v17 = vrot.slane %v7256_v11, 5  ;;  %v3810_v4 = vshrl.u32 %v6032_v12, 16  ;;  %v8289_v58 = vsel %vm7848_vm6, %v5707_v51, %v1412_v28  ;;  %v7260_v11 = vld [vmem:[%s7611_s21 + $0x58] sm:$0xf] }
 0x110   : > { %v8278_v56 = vsel %vm7848_vm6, %v5706_v62, %v1405_v44  ;;  %v7259_v44 = vld [vmem:[%s7611_s21 + $0x50] sm:$0x1]  ;;  %v5709_v62 = vrot.slane %v8262_v21, 9  ;;  %v5710_v51 = vrot.slane %v8271_v37, 9 }
 0x111   : > { %v8282_v43 = vsel %vm7848_vm6, %v1407_v5, %v1408_v17  ;;  %v1422_v61 = vrot.slane %v7259_v44, 5  ;;  %v6036_v5 = vld [vmem:[%s7611_s21 + $0x28] sm:$0xf]  ;;  %v7261_v17 = vld [vmem:[%s7611_s21 + $0x5c] sm:$0x1]  ;;  %v3812_v21 = vrot.slane %v3810_v4, 4 }
 0x112   : > { %v1429_v12 = vrot.slane %v7261_v17, 5  ;;  %v3837_v44 = vshll.u32 %v6035_v41, 16  ;;  %v1333_v17 = vld [vmem:[%s7611_s21 + $0x6c] sm:$0xe]  ;;  %v3843_v2 = vshll.u32 %v6036_v5, 16  ;;  %v3847_v46 = vshrl.u32 %v6036_v5, 16 }
 0x113   : > { %v3861_v4 = vshll.u32 %v6038_v38, 16  ;;  %v5711_v8 = vrot.slane %v1333_v17, 9  ;;  %v9452_v5 = vcombine.low %v7960_v39, %v7963_v60 }
 0x115   : > { %6732 = vmatmul.mubr.msk.bf16.vlgmr.msra.gmra.mrb[0].mxu0 %vm813_vm3, %v7197_v36 }
 0x116   : > { %6568 = vmatmul.mubr.msk.bf16.gmra.mrb[16].mxu1 %vm813_vm3, %v5677_v22  ;;  %6764 = vmatpush3.bf16.msra.mxu0 %v7938_v1  ;;  %v8241_v1 = vld [vmem:[#allocation7 + $0x80] sm:$0xff]  }
 0x117   : > { %6571 = vmatprep.mubr.msk.bf16.mxu1 %vm813_vm3, %v5678_v30  ;;  %6735 = vmatprep.mubr.msk.bf16.mxu0 %vm813_vm3, %v7199_v59  ;;  %v1414_v30 = vrot.slane %v1412_v28, 4  ;;  %v1415_v59 = vrot.slane %v7258_v35, 5  ;;  %v1426_v28 = vrot.slane %v7260_v11, 5  ;;  %v6039_v35 = vld [vmem:[%s7611_s21 + $0x34] sm:$0xf] }
 0x118   : > { %6765 = vmatprep.subr.bf16.mxu0 %v7212_v27  ;;  %v3867_v9 = vshll.u32 %v6039_v35, 16  ;;  %v3871_v22 = vshrl.u32 %v6039_v35, 16  ;;  %v3849_v35 = vrot.slane %v3847_v46, 4  ;;  %v7211_v46 = vld [vmem:[%s7611_s21 + $0x78] sm:$0xff]  }
 0x119   : > { %v8298_v23 = vsel %vm7848_vm6, %v1414_v30, %v1415_v59  ;;  %v3829_v30 = vshll.u32 %v6034_v40, 16  ;;  %v7205_v59 = vld [vmem:[%s7611_s21 + $0x54] sm:$0xff]   ;;  %v8325_v40 = vsel %vm7848_vm6, %v1421_v48, %v1422_v61  ;;  %v1428_v11 = vrot.slane %v1426_v28, 4  ;;  %v6037_v61 = vld [vmem:[%s7611_s21 + $0x2c] sm:$0x1] }
 0x11a   : > { %6766 = vmatpush3.bf16.msra.mxu0 %v7212_v27  ;;  %v3823_v27 = vshrl.u32 %v6033_v32, 16  ;;  %v3815_v32 = vrot.slane %v3813_v24, 5  ;;  %v3834_v24 = vshrl.u32 %v6035_v41, 16  ;;  %v8350_v39 = vsel %vm7848_vm6, %v5709_v62, %v1426_v28 }
 0x11b   : > { %6799 = vmatprep.subr.bf16.mxu0 %v8241_v1  ;;  %v8332_v41 = vrot.slane %v3829_v30, 5  ;;  %v9453_v30 = vcombine.low %v7978_v13, %v7985_v25  ;;  %v8354_v60 = vsel %vm7848_vm6, %v1428_v11, %v1429_v12  ;;  %v8356_v13 = vrot.slane %v3867_v9, 5  ;;  %v1334_v9 = vld [vmem:[%s7611_s21 + $0x78] sm:$0xe] }
 0x11c   : > { %v3816_v36 = vor.u32 %v3815_v32, %v3812_v21  ;;  %v3836_v53 = vrot.slane %v3834_v24, 4  ;;  %v7265_v21 = vld [vmem:[%s7611_s21 + $0x74] sm:$0x1]  ;;  %v3863_v24 = vrot.slane %v3861_v4, 5  ;;  %v3873_v25 = vrot.slane %v3871_v22, 4 }
 0x11d   : > { %6736 = vmatmul.mubr.msk.bf16.gmra.mrb[4].mxu0 %vm813_vm3, %v7201_v16  ;;  %v1443_v32 = vrot.slane %v7265_v21, 5  ;;  %v3853_v12 = vshll.u32 %v6037_v61, 16  ;;  %v7266_v22 = vld [vmem:[%s7611_s21 + $0x7c] sm:$0xf]  ;;  %v3877_v11 = vshll.u32 %v6040_v52, 16  ;;  %v5712_v21 = vrot.slane %v1334_v9, 9 }
 0x11e   : > { %6572 = vmatmul.mubr.msk.bf16.gmra.mrb[20].mxu1 %vm813_vm3, %v5679_v49  ;;  %6739 = vmatprep.mubr.msk.bf16.mxu0 %vm813_vm3, %v7203_v20  ;;  %v7262_v49 = vld [vmem:[%s7611_s21 + $0x64] sm:$0xf]  ;;  %v1447_v4 = vrot.slane %v7266_v22, 5 }
 0x11f   : > { %6575 = vmatprep.mubr.msk.bf16.mxu1 %vm813_vm3, %v5680_v50  ;;  %v1433_v16 = vrot.slane %v7262_v49, 5  ;;  %v3825_v50 = vrot.slane %v3823_v27, 4  ;;  %v7207_v20 = vld [vmem:[%s7611_s21 + $0x60] sm:$0xff]   ;;  %v7263_v49 = vld [vmem:[%s7611_s21 + $0x70] sm:$0xf] }
 0x120   : > { %v1440_v19 = vrot.slane %v7263_v49, 5  ;;  %v7264_v27 = vld [vmem:[%s7611_s21 + $0x68] sm:$0x1]  ;;  %v3839_v49 = vrot.slane %v3837_v44, 5  ;;  %v3817_v44 = vrot.slane %v3816_v36, 4 }
 0x121   : > { %v1435_v47 = vrot.slane %v1433_v16, 4  ;;  %v1436_v37 = vrot.slane %v7264_v27, 5  ;;  %v3826_v48 = vor.u32 %v3825_v50, %v8318_v54  ;;  %v8341_v50 = vrot.slane %v3843_v2, 5  ;;  %v7209_v2 = vld [vmem:[%s7611_s21 + $0x6c] sm:$0xff]  }
 0x122   : > { %v1442_v38 = vrot.slane %v1440_v19, 4  ;;  %v8363_v62 = vsel %vm7848_vm6, %v5710_v51, %v1433_v16  ;;  %v3840_v28 = vor.u32 %v3839_v49, %v3836_v53  ;;  %v8377_v53 = vsel %vm7848_vm6, %v5711_v8, %v1440_v19  ;;  %v6041_v19 = vld [vmem:[%s7611_s21 + $0x3c] sm:$0xf]  ;;  %v8394_v8 = vld [vmem:[%s7611_s21 + $0x40] sm:$0xf] }
 0x123   : > { %v3827_v17 = vrot.slane %v3826_v48, 4  ;;  %v3850_v36 = vor.u32 %v3849_v35, %v8341_v50  ;;  %v8373_v51 = vsel %vm7848_vm6, %v1435_v47, %v1436_v37  ;;  %v1335_v48 = vld [vmem:[%s7611_s21 + $0x84] sm:$0xe]  ;;  %v3822_v52 = vsel %vm7633_vm2, %v3817_v44, %v8318_v54  ;;  %v7267_v47 = vld [vmem:[%s7611_s21 + $0x88] sm:$0xf]  ;;  %9454 = vst [vmem:[#allocation16_spill] sm:$0xff] %v8394_v8 }
 0x124   : > { %v8381_v16 = vsel %vm7848_vm6, %v1442_v38, %v1443_v32  ;;  %v3874_v37 = vor.u32 %v3873_v25, %v8356_v13  ;;  %v1454_v49 = vrot.slane %v7267_v47, 5  ;;  %v3855_v38 = vrot.slane %v3853_v12, 5  ;;  %v7268_v32 = vld [vmem:[%s7611_s21 + $0x80] sm:$0x1]  ;;  %v7269_v12 = vld [vmem:[%s7611_s21 + $0x8c] sm:$0x1] }
 0x125   : > { %6740 = vmatmul.mubr.msk.bf16.gmra.mrb[8].mxu0 %vm813_vm3, %v7205_v59  ;;  %v3860_v59 = vrot.slane %v3858_v42, 4  ;;  %v3832_v61 = vsel %vm7633_vm2, %v3827_v17, %v8332_v41  ;;  %v1450_v35 = vrot.slane %v7268_v32, 5  ;;  %v9455_v54 = vcombine.low %v8010_v57, %v8015_v31  ;;  %v8439_v47 = vld [vmem:[%s7611_s21 + $0x4c] sm:$0xf]  ;;  %v8448_v32 = vld [vmem:[%s7611_s21 + $0x58] sm:$0xf] }
 0x126   : > { %6576 = vmatmul.mubr.msk.bf16.gmra.mrb[24].mxu1 %vm813_vm3, %v9452_v5  ;;  %6743 = vmatprep.mubr.msk.bf16.mxu0 %vm813_vm3, %v7207_v20  ;;  %v3841_v5 = vrot.slane %v3840_v28, 4  ;;  %v3851_v41 = vrot.slane %v3850_v36, 4  ;;  %v9456_v44 = vcombine.low %v8212_v6, %v8228_v34  ;;  %v3882_v25 = vshrl.u32 %v6041_v19, 16  ;;  %v7213_v6 = vld [vmem:[%s7611_s21 + $0x84] sm:$0xff]   ;;  %v1337_v34 = vld [vmem:[%s7611_s21 + $0x9c] sm:$0xe] }
 0x127   : > { %6579 = vmatprep.mubr.msk.bf16.mxu1 %vm813_vm3, %v9453_v30  ;;  %v3864_v27 = vor.u32 %v3863_v24, %v3860_v59  ;;  %v1449_v30 = vrot.slane %v1447_v4, 4  ;;  %v3879_v59 = vrot.slane %v3877_v11, 5  ;;  %v5713_v24 = vrot.slane %v1335_v48, 9  ;;  %v8504_v11 = vld [vmem:[%s7611_s21 + $0x5c] sm:$0x1] }
 0x128   : > { %v3885_v57 = vshll.u32 %v6041_v19, 16  ;;  %v3891_v31 = vshll.u32 %v8394_v8, 16  ;;  %v1456_v28 = vrot.slane %v1454_v49, 4  ;;  %v1457_v36 = vrot.slane %v7269_v12, 5  ;;  %v6047_v19 = vld [vmem:[%s7611_s21 + $0x54] sm:$0xf] }
 0x129   : > { %v3865_v17 = vrot.slane %v3864_v27, 4  ;;  %v3895_v9 = vshrl.u32 %v8394_v8, 16  ;;  %v8413_v22 = vcombine.low %v3822_v52, %v3832_v61  ;;  %v8422_v27 = vld [vmem:[%s7611_s21 + $0x44] sm:$0x1]  ;;  %v3846_v48 = vsel %vm7633_vm2, %v3841_v5, %v8341_v50 }
 0x12a   : > { %9457 = vst [vmem:[#allocation17_spill] sm:$0xff] %v8422_v27  ;;  %v8431_v52 = vsel %vm7848_vm6, %v1449_v30, %v1450_v35  ;;  %v8435_v61 = vsel %vm7848_vm6, %v5713_v24, %v1454_v49  ;;  %v3884_v5 = vrot.slane %v3882_v25, 4  ;;  %v7214_v35 = vld [vmem:[%s7611_s21 + $0x90] sm:$0xff]   ;;  %v3901_v24 = vshll.u32 %v8422_v27, 16 }
 0x12b   : > { %v3870_v50 = vsel %vm7633_vm2, %v3865_v17, %v8356_v13  ;;  %v3897_v30 = vrot.slane %v3895_v9, 4  ;;  %v3915_v25 = vshll.u32 %v8439_v47, 16  ;;  %v3943_v12 = vshrl.u32 %v8448_v32, 16 }
 0x12d   : > { %6744 = vmatmul.mubr.msk.bf16.gmra.mrb[12].mxu0 %vm813_vm3, %v7209_v2  ;;  %v3875_v2 = vrot.slane %v3874_v37, 4  ;;  %v3856_v37 = vsel %vm7633_vm2, %v3851_v41, %v3855_v38  ;;  %v8445_v38 = vrot.slane %v3891_v31, 5  ;;  %v8455_v41 = vsel %vm7848_vm6, %v1456_v28, %v1457_v36 }
 0x12e   : > { %6580 = vmatmul.mubr.msk.bf16.gmra.mrb[28].mxu1 %vm813_vm3, %v9455_v54  ;;  %6747 = vmatprep.mubr.msk.bf16.mxu0 %vm813_vm3, %v7211_v46  ;;  %v8419_v46 = vsel %vm7848_vm6, %v5712_v21, %v1447_v4  ;;  %v6044_v4 = vld [vmem:[%s7611_s21 + $0x48] sm:$0xf]  ;;  %v3887_v21 = vrot.slane %v3885_v57, 5  ;;  %v7220_v54 = vld [vmem:[#allocation7 + $0x38] sm:$0xff]   ;;  %v3919_v57 = vshrl.u32 %v8439_v47, 16  ;;  %v9458_v31 = vcombine.low %v8216_v10, %v8220_v18 }
 0x12f   : > { %6587 = vmatprep.mubr.msk.bf16.mxu1 %vm813_vm3, %v9456_v44  ;;  %v3880_v49 = vsel %vm7633_vm2, %v3875_v2, %v3879_v59  ;;  %v1336_v44 = vld [vmem:[%s7611_s21 + $0x90] sm:$0xe]  ;;  %v3906_v13 = vshrl.u32 %v6044_v4, 16  ;;  %v3909_v17 = vshll.u32 %v6044_v4, 16  ;;  %v3930_v59 = vshrl.u32 %v6047_v19, 16 }
 0x130   : > { %v3933_v2 = vshll.u32 %v6047_v19, 16  ;;  %v3939_v28 = vshll.u32 %v8448_v32, 16  ;;  %v9459_v36 = vcombine.low %v8232_v15, %v8236_v7  ;;  %v8473_v10 = vcombine.low %v3846_v48, %v3856_v37  ;;  %v8486_v48 = vld [vmem:[%s7611_s21 + $0x50] sm:$0x1]  ;;  %v6050_v37 = vld [vmem:[%s7611_s21 + $0x60] sm:$0xf] }
 0x131   : > { %v3888_v9 = vor.u32 %v3887_v21, %v3884_v5  ;;  %v8478_v4 = vcombine.low %v3870_v50, %v3880_v49  ;;  %v3898_v15 = vor.u32 %v3897_v30, %v8445_v38  ;;  %v8483_v7 = vrot.slane %v3901_v24, 5  ;;  %v8492_v50 = vld [vmem:[%s7611_s21 + $0x64] sm:$0xf]  ;;  %v7215_v49 = vld [vmem:[%s7611_s21 + $0x9c] sm:$0xff]   ;;  %v7270_v18 = vld [vmem:[%s7611_s21 + $0x94] sm:$0xf] }
 0x132   : > { %v3908_v19 = vrot.slane %v3906_v13, 4  ;;  %v3911_v5 = vrot.slane %v3909_v17, 5  ;;  %v8489_v21 = vrot.slane %v3915_v25, 5  ;;  %9460 = vst [vmem:[#allocation18_spill] sm:$0xff] %v8492_v50  ;;  %v3935_v30 = vrot.slane %v3933_v2, 5 }
 0x133   : > { %v8496_v24 = vrot.slane %v3939_v28, 5  ;;  %v1461_v13 = vrot.slane %v7270_v18, 5  ;;  %v7271_v17 = vld [vmem:[%s7611_s21 + $0x98] sm:$0x1]  ;;  %v3954_v42 = vshrl.u32 %v6050_v37, 16  ;;  %v3957_v20 = vshll.u32 %v6050_v37, 16 }
 0x134   : > { %v1464_v25 = vrot.slane %v7271_v17, 5  ;;  %v3967_v2 = vshrl.u32 %v8492_v50, 16  ;;  %v8509_v28 = vld [vmem:[#allocation7 + $0x40] sm:$0xff]   ;;  %v9462_v37 = vcombine.low %v8247_v29, %v8251_v3 }
 0x135   : > { %6748 = vmatmul.mubr.msk.bf16.gmra.mrb[16].mxu0 %vm813_vm3, %v7213_v6  ;;  %v5714_v6 = vrot.slane %v1336_v44, 9  ;;  %v7216_v44 = vld [vmem:[%s7611_s21 + $0xa8] sm:$0xff]   ;;  %9461 = vst [vmem:[#allocation19_spill] sm:$0xff] %v8509_v28  ;;  %v1463_v29 = vrot.slane %v1461_v13, 4 }
 0x136   : > { %6588 = vmatmul.mubr.msk.bf16.vlgmr.msra.gmra.mrb[0].mxu1 %vm813_vm3, %v9458_v31  ;;  %6751 = vmatprep.mubr.msk.bf16.mxu0 %vm813_vm3, %v7214_v35  ;;  %v3921_v35 = vrot.slane %v3919_v57, 4  ;;  %v3932_v31 = vrot.slane %v3930_v59, 4  ;;  %v3925_v57 = vshll.u32 %v8486_v48, 16  ;;  %v3963_v59 = vshll.u32 %v8492_v50, 16 }
 0x137   : > { %6620 = vmatpush3.bf16.msra.mxu1 %v8115_v0  ;;  %6591 = vmatprep.mubr.msk.bf16.mxu1 %vm813_vm3, %v9459_v36  ;;  %v3945_v36 = vrot.slane %v3943_v12, 4  ;;  %v8498_v0 = vrot.slane %v3888_v9, 4  ;;  %v3912_v12 = vor.u32 %v3911_v5, %v3908_v19  ;;  %v7273_v9 = vld [vmem:[%s7611_s21 + $0xa0] sm:$0xf]  ;;  %v8523_v27 = vsel %vm7848_vm6, %v5714_v6, %v1461_v13  ;;  %v1338_v6 = vld [vmem:[%s7611_s21 + $0xa8] sm:$0xe] }
 0x138   : > { %6621 = vmatprep.subr.bf16.mxu1 %v7220_v54  ;;  %v3922_v18 = vor.u32 %v3921_v35, %v8489_v21  ;;  %v1468_v17 = vrot.slane %v7273_v9, 5  ;;  %v3949_v19 = vshll.u32 %v8504_v11, 16  ;;  %v9463_v5 = vcombine.low %v8278_v56, %v8282_v43  ;;  %v7217_v13 = vld [vmem:[%s7611_s21 + $0xb4] sm:$0xff]  }
 0x139   : > { %v3946_v8 = vor.u32 %v3945_v36, %v8496_v24  ;;  %v3927_v3 = vrot.slane %v3925_v57, 5  ;;  %v5715_v35 = vrot.slane %v1337_v34, 9  ;;  %v3959_v36 = vrot.slane %v3957_v20, 5 }
 0x13a   : > { %v8534_v9 = vrot.slane %v3963_v59, 5  ;;  %v3913_v56 = vrot.slane %v3912_v12, 4  ;;  %v3923_v43 = vrot.slane %v3922_v18, 4  ;;  %v5716_v50 = vrot.slane %v1338_v6, 9  ;;  %v1339_v6 = vld [vmem:[%s7611_s21 + $0xb4] sm:$0xe] }
 0x13b   : > { %6622 = vmatpush3.bf16.msra.mxu1 %v7220_v54  ;;  %v8512_v54 = vrot.slane %v3898_v15, 4  ;;  %v3936_v15 = vor.u32 %v3935_v30, %v3932_v31  ;;  %v3956_v30 = vrot.slane %v3954_v42, 4  ;;  %v3947_v57 = vrot.slane %v3946_v8, 4  ;;  %v7218_v42 = vld [vmem:[%s7611_s21 + $0xc0] sm:$0xff]  }
 0x13c   : > { %6835 = vmatprep.subr.bf16.mxu1 %v8509_v28  ;;  %v7275_v28 = vld [vmem:[%s7611_s21 + $0xa4] sm:$0x1]  ;;  %v3894_v20 = vsel %vm7633_vm2, %v8498_v0, %v8445_v38  ;;  %v8553_v18 = vsel %vm7848_vm6, %v1463_v29, %v1464_v25  ;;  %v6053_v38 = vld [vmem:[%s7611_s21 + $0x6c] sm:$0xf]  ;;  %v3918_v0 = vsel %vm7633_vm2, %v3913_v56, %v8489_v21  ;;  %v8566_v25 = vsel %vm7848_vm6, %v5715_v35, %v1468_v17 }
 0x13d   : > { %6752 = vmatmul.mubr.msk.bf16.gmra.mrb[20].mxu0 %vm813_vm3, %v7215_v49  ;;  %v7274_v49 = vld [vmem:[%s7611_s21 + $0xac] sm:$0xf]  ;;  %v3937_v34 = vrot.slane %v3936_v15, 4  ;;  %v3904_v59 = vsel %vm7633_vm2, %v8512_v54, %v8483_v7  ;;  %v3960_v8 = vor.u32 %v3959_v36, %v3956_v30  ;;  %v3928_v7 = vsel %vm7633_vm2, %v3923_v43, %v3927_v3 }
 0x13e   : > { %6592 = vmatmul.mubr.msk.bf16.gmra.mrb[4].mxu1 %vm813_vm3, %v9462_v37  ;;  %6755 = vmatprep.mubr.msk.bf16.mxu0 %vm813_vm3, %v7216_v44  ;;  %v1475_v31 = vrot.slane %v7274_v49, 5  ;;  %v3969_v37 = vrot.slane %v3967_v2, 4  ;;  %v1471_v44 = vrot.slane %v7275_v28, 5  ;;  %v3951_v49 = vrot.slane %v3949_v19, 5  ;;  %v7276_v28 = vld [vmem:[%s7611_s21 + $0xb0] sm:$0x1] }
 0x13f   : > { %6595 = vmatprep.mubr.msk.bf16.mxu1 %vm813_vm3, %v9463_v5  ;;  %v1470_v5 = vrot.slane %v1468_v17, 4  ;;  %v1478_v12 = vrot.slane %v7276_v28, 5  ;;  %v3973_v19 = vshll.u32 %v8538_v33, 16  ;;  %v9465_v29 = vor.u32 %v8183_v63, %v8181_v14 }
 0x140   : > { %v1477_v2 = vrot.slane %v1475_v31, 4  ;;  %v3970_v15 = vor.u32 %v3969_v37, %v8534_v9  ;;  %v9467_v21 = vcombine.low %v8289_v58, %v8298_v23  ;;  %v3942_v17 = vsel %vm7633_vm2, %v3937_v34, %v8496_v24  ;;  %v7277_v24 = vld [vmem:[%s7611_s21 + $0xb8] sm:$0xf] }
 0x141   : > { %v8570_v54 = vsel %vm7848_vm6, %v1470_v5, %v1471_v44  ;;  %v8575_v30 = vrot.slane %v9465_v29, 4  ;;  %v3952_v3 = vsel %vm7633_vm2, %v3947_v57, %v3951_v49  ;;  %v8589_v35 = vsel %vm7848_vm6, %v5716_v50, %v1475_v31  ;;  %v8602_v50 = vld [vmem:[%s7611_s21 + $0x70] sm:$0xf]  ;;  %v6056_v34 = vld [vmem:[%s7611_s21 + $0x78] sm:$0xf] }
 0x142   : > { %9468 = vst [vmem:[#allocation22_spill] sm:$0xff] %v8589_v35  ;;  %v9469_v63 = vcombine.low %v8316_v45, %v8325_v40  ;;  %v8598_v58 = vsel %vm7848_vm6, %v1477_v2, %v1478_v12  ;;  %v5717_v23 = vrot.slane %v1339_v6, 9  ;;  %v1482_v36 = vrot.slane %v7277_v24, 5  ;;  %9471 = vst [vmem:[#allocation24_spill] sm:$0xff] %v8602_v50  ;;  %v8622_v57 = vld [vmem:[%s7611_s21 + $0x7c] sm:$0xf] }
 0x143   : > { %9466 = vst [vmem:[#allocation21_spill] sm:$0xff] %v8575_v30  ;;  %9470 = vst [vmem:[#allocation23_spill] sm:$0xff] %v8598_v58  ;;  %v3978_v31 = vshrl.u32 %v6053_v38, 16  ;;  %v8604_v45 = vcombine.low %v3894_v20, %v3904_v59  ;;  %v8606_v40 = vrot.slane %v3960_v8, 4  ;;  %v8608_v37 = vrot.slane %v3970_v15, 4 }
 0x144   : > { %v8610_v56 = vrot.slane %v3973_v19, 5  ;;  %v8614_v5 = vcombine.low %v3918_v0, %v3928_v7  ;;  %9472 = vst [vmem:[#allocation25_spill] sm:$0xff] %v8622_v57  ;;  %v6059_v49 = vld [vmem:[%s7611_s21 + $0x84] sm:$0xf]  ;;  %v8629_v59 = vld [vmem:[%s7611_s21 + $0xbc] sm:$0x1]  ;;  %v8638_v15 = vsel %vm7848_vm6, %v5717_v23, %v1482_v36  ;;  %v9476_v20 = vcombine.low %v8350_v39, %v8354_v60 }
 0x145   : > { %6756 = vmatmul.mubr.msk.bf16.gmra.mrb[24].mxu0 %vm813_vm3, %v7217_v13  ;;  %v8618_v13 = vcombine.low %v3942_v17, %v3952_v3  ;;  %v3981_v28 = vshll.u32 %v6053_v38, 16  ;;  %v3987_v12 = vshll.u32 %v8602_v50, 16  ;;  %v8634_v8 = vld [vmem:[%s7611_s21 + $0x88] sm:$0xf]  ;;  %v8640_v19 = vrot.slane %v1482_v36, 4 }
 0x146   : > { %6596 = vmatmul.mubr.msk.bf16.gmra.mrb[8].mxu1 %vm813_vm3, %v9467_v21  ;;  %6759 = vmatprep.mubr.msk.bf16.mxu0 %vm813_vm3, %v7218_v42  ;;  %v7219_v42 = vld [vmem:[%s7611_s21 + $0xcc] sm:$0xff]   ;;  %9473 = vst [vmem:[#allocation26_spill] sm:$0xff] %v8634_v8  ;;  %v8642_v6 = vrot.slane %v3978_v31, 4  ;;  %v3991_v0 = vshrl.u32 %v8602_v50, 16  ;;  %v4002_v21 = vshrl.u32 %v6056_v34, 16  ;;  %v4005_v17 = vshll.u32 %v6056_v34, 16 }
 0x147   : > { %6599 = vmatprep.mubr.msk.bf16.mxu1 %vm813_vm3, %v9469_v63  ;;  %v6062_v7 = vld [vmem:[%s7611_s21 + $0x90] sm:$0xf]  ;;  %v8655_v3 = vld [vmem:[%s7611_s21 + $0x94] sm:$0xf]  ;;  %v4011_v23 = vshll.u32 %v8622_v57, 16  ;;  %v4015_v24 = vshrl.u32 %v8622_v57, 16  ;;  %v9477_v43 = vcombine.low %v8363_v62, %v8373_v51 }
 0x148   : > { %9474 = vst [vmem:[#allocation27_spill] sm:$0xff] %v8655_v3  ;;  %v8658_v63 = vld [vmem:[%s7611_s21 + $0x74] sm:$0x1]  ;;  %v4026_v36 = vshrl.u32 %v6059_v49, 16  ;;  %v4029_v31 = vshll.u32 %v6059_v49, 16  ;;  %v4035_v34 = vshll.u32 %v8634_v8, 16 }
 0x149   : > { %9475 = vst [vmem:[#allocation28_spill] sm:$0xff] %v8658_v63  ;;  %v4039_v44 = vshrl.u32 %v8634_v8, 16  ;;  %v4050_v38 = vshrl.u32 %v6062_v7, 16  ;;  %v4053_v29 = vshll.u32 %v6062_v7, 16  ;;  %v3983_v39 = vrot.slane %v3981_v28, 5 }
 0x14a   : > { %v8675_v60 = vrot.slane %v3987_v12, 5  ;;  %v8678_v49 = vld [vmem:[%s7611_s21 + $0x80] sm:$0x1]  ;;  %v3993_v7 = vrot.slane %v3991_v0, 4  ;;  %v3997_v2 = vshll.u32 %v8658_v63, 16  ;;  %v4004_v62 = vrot.slane %v4002_v21, 4 }
 0x14b   : > { %v4007_v51 = vrot.slane %v4005_v17, 5  ;;  %v8684_v14 = vrot.slane %v4011_v23, 5  ;;  %v8687_v28 = vld [vmem:[%s7611_s21 + $0x8c] sm:$0x1]  ;;  %v4028_v12 = vrot.slane %v4026_v36, 4  ;;  %v4031_v8 = vrot.slane %v4029_v31, 5 }
 0x14c   : > { %v8689_v30 = vrot.slane %v4035_v34, 5  ;;  %v4041_v57 = vrot.slane %v4039_v44, 4  ;;  %v4052_v50 = vrot.slane %v4050_v38, 4  ;;  %v4055_v33 = vrot.slane %v4053_v29, 5  ;;  %v8695_v0 = vld [vmem:[%s7611_s21 + $0x98] sm:$0x1] }
 0x14d   : > { %6760 = vmatmul.mubr.msk.bf16.gmra.mrb[28].mxu0 %vm813_vm3, %v7219_v42  ;;  %v4059_v42 = vshll.u32 %v8655_v3, 16  ;;  %v3994_v58 = vor.u32 %v3993_v7, %v8675_v60  ;;  %v4008_v36 = vor.u32 %v4007_v51, %v4004_v62  ;;  %v4021_v31 = vshll.u32 %v8678_v49, 16  ;;  %v7223_v34 = vld [vmem:[#allocation7 + $0x88] sm:$0xff]  }
 0x14e   : > { %6600 = vmatmul.mubr.msk.bf16.gmra.mrb[12].mxu1 %vm813_vm3, %v9476_v20  ;;  %6767 = vmatprep.mubr.msk.bf16.mxu0 %vm813_vm3, %v8413_v22  ;;  %v4063_v20 = vshrl.u32 %v8655_v3, 16  ;;  %v4017_v22 = vrot.slane %v4015_v24, 4  ;;  %v8692_v3 = vld [vmem:[%s7611_s21 + $0xa0] sm:$0xf]  ;;  %v3984_v24 = vor.u32 %v3983_v39, %v8642_v6  ;;  %v4032_v38 = vor.u32 %v4031_v8, %v4028_v12 }
 0x14f   : > { %6603 = vmatprep.mubr.msk.bf16.mxu1 %vm813_vm3, %v9477_v43  ;;  %v6065_v43 = vld [vmem:[%s7611_s21 + $0x9c] sm:$0xf]  ;;  %v8697_v63 = vrot.slane %v4059_v42, 5  ;;  %v4083_v29 = vshll.u32 %v8692_v3, 16  ;;  %v4087_v35 = vshrl.u32 %v8692_v3, 16  ;;  %v9478_v42 = vcombine.low %v8377_v53, %v8381_v16 }
 0x150   : > { %v4065_v21 = vrot.slane %v4063_v20, 4  ;;  %v4074_v17 = vshrl.u32 %v6065_v43, 16  ;;  %v4077_v23 = vshll.u32 %v6065_v43, 16  ;;  %v4018_v44 = vor.u32 %v4017_v22, %v8684_v14 }
 0x151   : > { %v4042_v6 = vor.u32 %v4041_v57, %v8689_v30  ;;  %v4045_v39 = vshll.u32 %v8687_v28, 16  ;;  %v4056_v20 = vor.u32 %v4055_v33, %v4052_v50  ;;  %v4069_v8 = vshll.u32 %v8695_v0, 16 }
 0x152   : > { %v9479_v7 = vcombine.low %v8419_v46, %v8431_v52  ;;  %v3999_v53 = vrot.slane %v3997_v2, 5  ;;  %v4066_v16 = vor.u32 %v4065_v21, %v8697_v63  ;;  %v4076_v62 = vrot.slane %v4074_v17, 4 }
 0x153   : > { %v3985_v57 = vrot.slane %v3984_v24, 4  ;;  %v3995_v33 = vrot.slane %v3994_v58, 4  ;;  %v4009_v50 = vrot.slane %v4008_v36, 4  ;;  %v4023_v51 = vrot.slane %v4021_v31, 5  ;;  %v8729_v58 = vld [vmem:[%s7611_s21 + $0xac] sm:$0xf] }
 0x154   : > { %v4019_v43 = vrot.slane %v4018_v44, 4  ;;  %v4033_v46 = vrot.slane %v4032_v38, 4  ;;  %v8723_v52 = vrot.slane %v4083_v29, 5  ;;  %v4089_v2 = vrot.slane %v4087_v35, 4 }
 0x155   : > { %6768 = vmatmul.mubr.msk.bf16.vlgmr.msra.gmra.mrb[0].mxu0 %vm813_vm3, %v8473_v10  ;;  %v4079_v10 = vrot.slane %v4077_v23, 5  ;;  %v4043_v22 = vrot.slane %v4042_v6, 4  ;;  %v4047_v12 = vrot.slane %v4045_v39, 5  ;;  %v4057_v21 = vrot.slane %v4056_v20, 4  ;;  %v8726_v23 = vld [vmem:[%s7611_s21 + $0xa4] sm:$0x1] }
 0x156   : > { %6604 = vmatmul.mubr.msk.bf16.gmra.mrb[16].mxu1 %vm813_vm3, %v9478_v42  ;;  %6800 = vmatpush3.bf16.msra.mxu0 %v8241_v1  ;;  %v6068_v1 = vld [vmem:[%s7611_s21 + $0xa8] sm:$0xf]  ;;  %v4071_v17 = vrot.slane %v4069_v8, 5  ;;  %v9480_v44 = vrot.slane %v8629_v59, 5  ;;  %v3990_v38 = vsel %vm7633_vm2, %v3985_v57, %v8675_v60  ;;  %v4014_v29 = vsel %vm7633_vm2, %v4009_v50, %v8684_v14  ;;  %v6071_v57 = vld [vmem:[%s7611_s21 + $0xb4] sm:$0xf] }
 0x157   : > { %6607 = vmatprep.mubr.msk.bf16.mxu1 %vm813_vm3, %v9479_v7  ;;  %6771 = vmatprep.mubr.msk.bf16.mxu0 %vm813_vm3, %v8478_v4  ;;  %v4067_v4 = vrot.slane %v4066_v16, 4  ;;  %v4080_v24 = vor.u32 %v4079_v10, %v4076_v62  ;;  %v4098_v36 = vshrl.u32 %v6068_v1, 16  ;;  %v4101_v31 = vshll.u32 %v6068_v1, 16  ;;  %v6118_v8 = vld [vmem:[%s7611_s21 + $0x48] sm:$0xe] }
 0x158   : > { %6801 = vmatprep.subr.bf16.mxu0 %v7223_v34  ;;  %v8736_v35 = vsel %vm7848_vm6, %v8640_v19, %v9480_v44  ;;  %v4024_v59 = vsel %vm7633_vm2, %v4019_v43, %v4023_v51  ;;  %v4038_v19 = vsel %vm7633_vm2, %v4033_v46, %v8689_v30  ;;  %v4090_v42 = vor.u32 %v4089_v2, %v8723_v52  ;;  %v8776_v7 = vld [vmem:[%s7611_s21 + $0xb0] sm:$0x1] }
 0x159   : > { %v4093_v6 = vshll.u32 %v8726_v23, 16  ;;  %v9481_v60 = vcombine.low %v8435_v61, %v8455_v41  ;;  %v4048_v14 = vsel %vm7633_vm2, %v4043_v22, %v4047_v12  ;;  %v4062_v30 = vsel %vm7633_vm2, %v4057_v21, %v8697_v63  ;;  %v6120_v21 = vld [vmem:[%s7611_s21 + $0x60] sm:$0xe] }
 0x15a   : > { %6802 = vmatpush3.bf16.msra.mxu0 %v7223_v34  ;;  %v4000_v34 = vsel %vm7633_vm2, %v3995_v33, %v3999_v53  ;;  %v4107_v39 = vshll.u32 %v8729_v58, 16  ;;  %v4111_v20 = vshrl.u32 %v8729_v58, 16  ;;  %v9482_v61 = vcombine.low %v8523_v27, %v8553_v18 }
 0x15b   : > { %v4072_v41 = vsel %vm7633_vm2, %v4067_v4, %v4071_v17  ;;  %v4100_v63 = vrot.slane %v4098_v36, 4  ;;  %v4103_v53 = vrot.slane %v4101_v31, 5  ;;  %v9483_v16 = vsel %vm7633_vm2, %v8608_v37, %v8610_v56  ;;  %v6119_v56 = vld [vmem:[%s7611_s21 + $0x54] sm:$0xe]  ;;  %v6121_v31 = vld [vmem:[%s7611_s21 + $0x6c] sm:$0xe] }
 0x15c   : > { %v9484_v27 = vsel %vm7633_vm2, %v8606_v40, %v8534_v9  ;;  %v8790_v62 = vcombine.low %v3990_v38, %v4000_v34  ;;  %v8792_v10 = vcombine.low %v4014_v29, %v4024_v59  ;;  %v8795_v33 = vcombine.low %v4038_v19, %v4048_v14  ;;  %v9486_v19 = vld [vmem:[#allocation22_spill] sm:$0xff] }
 0x15d   : > { %6772 = vmatmul.mubr.msk.bf16.gmra.mrb[4].mxu0 %vm813_vm3, %v8604_v45  ;;  %v4081_v45 = vrot.slane %v4080_v24, 4  ;;  %v6086_v18 = vcombine.low %v9484_v27, %v9483_v16  ;;  %v4091_v50 = vrot.slane %v4090_v42, 4  ;;  %v4095_v51 = vrot.slane %v4093_v6, 5  ;;  %v9487_v42 = vld [vmem:[#allocation23_spill] sm:$0xff] }
 0x15e   : > { %6608 = vmatmul.mubr.msk.bf16.gmra.mrb[20].mxu1 %vm813_vm3, %v9481_v60  ;;  %6775 = vmatprep.mubr.msk.bf16.mxu0 %vm813_vm3, %v8614_v5  ;;  %v5733_v5 = vcombine.low %v8638_v15, %v8736_v35  ;;  %v6134_v37 = vrot.slane %v6118_v8, 9  ;;  %v8798_v1 = vcombine.low %v4062_v30, %v4072_v41  ;;  %v8800_v9 = vrot.slane %v4107_v39, 5  ;;  %v9490_v60 = vld [vmem:[#allocation20_spill] sm:$0xff] }
 0x15f   : > { %6611 = vmatprep.mubr.msk.bf16.mxu1 %vm813_vm3, %v9482_v61  ;;  %v4113_v40 = vrot.slane %v4111_v20, 4  ;;  %v4117_v43 = vshll.u32 %v8776_v7, 16  ;;  %v4086_v46 = vsel %vm7633_vm2, %v4081_v45, %v8723_v52  ;;  %v4104_v2 = vor.u32 %v4103_v53, %v4100_v63  ;;  %v9491_v8 = vld [vmem:[#allocation24_spill] sm:$0xff]  ;;  %v6074_v53 = vld [vmem:[%s7611_s21 + $0xc0] sm:$0xf] }
 0x160   : > { %v4593_v22 = vrot.slane %v8439_v47, 5  ;;  %v4596_v12 = vrot.slane %v8486_v48, 5  ;;  %v4122_v17 = vshrl.u32 %v6071_v57, 16  ;;  %v6135_v4 = vrot.slane %v6119_v56, 9  ;;  %v9492_v41 = vld [vmem:[#allocation28_spill] sm:$0xff] }
 0x161   : > { %v4600_v24 = vrot.slane %v8448_v32, 5  ;;  %v4603_v36 = vrot.slane %v8504_v11, 5  ;;  %v4096_v44 = vsel %vm7633_vm2, %v4091_v50, %v4095_v51  ;;  %v4125_v38 = vshll.u32 %v6071_v57, 16  ;;  %v8826_v32 = vld [vmem:[%s7611_s21 + $0xb8] sm:$0xf] }
 0x162   : > { %v8816_v52 = vsel %vm7848_vm6, %v6134_v37, %v4593_v22  ;;  %v4595_v34 = vrot.slane %v4593_v22, 4  ;;  %v9485_v47 = vcombine.low %v8566_v25, %v8570_v54  ;;  %v4114_v11 = vor.u32 %v4113_v40, %v8800_v9  ;;  %v9489_v54 = vld [vmem:[#allocation18_spill] sm:$0xff]  ;;  %v7222_v40 = vld [vmem:[%s7611_s21 + $0xc] sm:$0xff]  }
 0x163   : > { %v8830_v48 = vsel %vm7848_vm6, %v6135_v4, %v4600_v24  ;;  %v4602_v29 = vrot.slane %v4600_v24, 4  ;;  %v6136_v59 = vrot.slane %v6120_v21, 9  ;;  %v9488_v6 = vcombine.low %v9486_v19, %v9487_v42  ;;  %v6122_v56 = vld [vmem:[%s7611_s21 + $0x78] sm:$0xe] }
 0x164   : > { %v8839_v25 = vsel %vm7848_vm6, %v4595_v34, %v4596_v12  ;;  %v4610_v14 = vrot.slane %v9490_v60, 5  ;;  %v6137_v30 = vrot.slane %v6121_v31, 9  ;;  %v4614_v61 = vrot.slane %v9491_v8, 5  ;;  %v5845_v4 = vld [vmem:[%s7611_s21 + $0x78] sm:$0xf] }
 0x165   : > { %6776 = vmatmul.mubr.msk.bf16.gmra.mrb[8].mxu0 %vm813_vm3, %v8618_v13  ;;  %v4607_v13 = vrot.slane %v9489_v54, 5  ;;  %v6150_v39 = vcombine.low %v8816_v52, %v8839_v25  ;;  %v8847_v20 = vsel %vm7848_vm6, %v4602_v29, %v4603_v36  ;;  %v4617_v45 = vrot.slane %v9492_v41, 5  ;;  %v8884_v31 = vld [vmem:[%s7611_s21 + $0xc4] sm:$0xf]  ;;  %v9495_v54 = vld [vmem:[#allocation21_spill] sm:$0xff]  ;;  %v9496_v41 = vld [vmem:[#allocation26_spill] sm:$0xff] }
 0x166   : > { %6612 = vmatmul.mubr.msk.bf16.gmra.mrb[24].mxu1 %vm813_vm3, %v9485_v47  ;;  %6779 = vmatprep.mubr.msk.bf16.mxu0 %vm813_vm3, %v6086_v18  ;;  %v4131_v63 = vshll.u32 %v8826_v32, 16  ;;  %v6151_v16 = vcombine.low %v8830_v48, %v8847_v20  ;;  %v8859_v57 = vrot.slane %v4117_v43, 5  ;;  %v4135_v50 = vshrl.u32 %v8826_v32, 16  ;;  %v7291_v20 = vld [vmem:[%s7611_s21 + $0x8c] sm:$0x1] }
 0x167   : > { %6615 = vmatprep.mubr.msk.bf16.mxu1 %vm813_vm3, %v9488_v6  ;;  %v8857_v27 = vsel %vm7848_vm6, %v6136_v59, %v4607_v13  ;;  %v4609_v18 = vrot.slane %v4607_v13, 4  ;;  %v8864_v51 = vsel %vm7848_vm6, %v6137_v30, %v4614_v61  ;;  %v4616_v37 = vrot.slane %v4614_v61, 4  ;;  %v9493_v59 = vld [vmem:[#allocation25_spill] sm:$0xff] }
 0x168   : > { %v8868_v22 = vcombine.low %v4086_v46, %v4096_v44  ;;  %v8870_v12 = vrot.slane %v4104_v2, 4  ;;  %v8872_v21 = vrot.slane %v4122_v17, 4  ;;  %v8879_v24 = vrot.slane %v4114_v11, 4  ;;  %v6123_v11 = vld [vmem:[%s7611_s21 + $0x84] sm:$0xe] }
 0x169   : > { %v8876_v43 = vsel %vm7848_vm6, %v4609_v18, %v4610_v14  ;;  %v8881_v36 = vrot.slane %v4125_v38, 5  ;;  %v8890_v2 = vsel %vm7848_vm6, %v4616_v37, %v4617_v45  ;;  %v8892_v17 = vrot.slane %v4131_v63, 5  ;;  %v8904_v38 = vld [vmem:[%s7611_s21 + $0xbc] sm:$0x1]  ;;  %v6077_v37 = vld [vmem:[%s7611_s21 + $0xcc] sm:$0xf] }
 0x16a   : > { %v6152_v46 = vcombine.low %v8857_v27, %v8876_v43  ;;  %v4146_v44 = vshrl.u32 %v6074_v53, 16  ;;  %v6153_v34 = vcombine.low %v8864_v51, %v8890_v2  ;;  %v6138_v47 = vrot.slane %v6122_v56, 9  ;;  %v7224_v63 = vld [vmem:[%s7611_s21 + $0x18] sm:$0xff]  }
 0x16b   : > { %v4149_v29 = vshll.u32 %v6074_v53, 16  ;;  %v4621_v19 = vrot.slane %v9493_v59, 5  ;;  %v4624_v42 = vrot.slane %v8678_v49, 5  ;;  %v2432_v6 = vshrl.u32 %v5845_v4, 16 }
 0x16c   : > { %v4155_v15 = vshll.u32 %v8884_v31, 16  ;;  %v4159_v35 = vshrl.u32 %v8884_v31, 16  ;;  %v6139_v30 = vrot.slane %v6123_v11, 9  ;;  %v4141_v8 = vshll.u32 %v8904_v38, 16 }
 0x16d   : > { %6780 = vmatmul.mubr.msk.bf16.gmra.mrb[12].mxu0 %vm813_vm3, %v8790_v62  ;;  %v9494_v62 = vld [vmem:[#allocation15_spill] sm:$0xff]  ;;  %v8919_v49 = vsel %vm7848_vm6, %v6138_v47, %v4621_v19  ;;  %v4623_v60 = vrot.slane %v4621_v19, 4  ;;  %v2434_v14 = vrot.slane %v2432_v6, 4  ;;  %v4628_v45 = vrot.slane %v9496_v41, 5  ;;  %v6124_v19 = vld [vmem:[%s7611_s21 + $0x90] sm:$0xe] }
 0x16e   : > { %6616 = vmatmul.mubr.msk.bf16.gmra.mrb[28].mxu1 %vm813_vm3, %v5733_v5  ;;  %6783 = vmatprep.mubr.msk.bf16.mxu0 %vm813_vm3, %v8792_v10  ;;  %v2435_v5 = vshll.u32 %v5845_v4, 16  ;;  %v2454_v13 = vsel %vm7633_vm2, %v9495_v54, %v9494_v62  ;;  %v4137_v10 = vrot.slane %v4135_v50, 4  ;;  %v4110_v53 = vsel %vm7633_vm2, %v8870_v12, %v8800_v9  ;;  %v9497_v54 = vld [vmem:[#allocation27_spill] sm:$0xff] }
 0x16f   : > { %6623 = vmatprep.mubr.msk.bf16.mxu1 %vm813_vm3, %v7222_v40  ;;  %v4128_v18 = vor.u32 %v8881_v36, %v8872_v21  ;;  %v8933_v50 = vsel %vm7848_vm6, %v4623_v60, %v4624_v42  ;;  %v4631_v56 = vrot.slane %v8687_v28, 5  ;;  %v7225_v40 = vld [vmem:[%s7611_s21 + $0x24] sm:$0xff]   ;;  %v4148_v4 = vrot.slane %v4146_v44, 4  ;;  %v8943_v21 = vld [vmem:[%s7611_s21 + $0xd0] sm:$0xf] }
 0x170   : > { %v2437_v61 = vrot.slane %v2435_v5, 5  ;;  %v4151_v47 = vrot.slane %v4149_v29, 5  ;;  %v6154_v11 = vcombine.low %v8919_v49, %v8933_v50  ;;  %v8940_v9 = vrot.slane %v4155_v15, 5  ;;  %v8955_v29 = vld [vmem:[%s7611_s21 + $0xc8] sm:$0x1] }
 0x171   : > { %v4161_v12 = vrot.slane %v4159_v35, 4  ;;  %v8947_v36 = vsel %vm7848_vm6, %v6139_v30, %v4628_v45  ;;  %v4630_v42 = vrot.slane %v4628_v45, 4  ;;  %v4120_v28 = vsel %vm7633_vm2, %v8879_v24, %v8859_v57  ;;  %v9498_v57 = vld [vmem:[#allocation19_spill] sm:$0xff]  ;;  %v9499_v30 = vld [vmem:[#allocation14_spill] sm:$0xff] }
 0x172   : > { %v2438_v59 = vor.u32 %v2437_v61, %v2434_v14  ;;  %v4138_v44 = vor.u32 %v4137_v10, %v8892_v17  ;;  %v4170_v6 = vshrl.u32 %v6077_v37, 16  ;;  %v4173_v35 = vshll.u32 %v6077_v37, 16 }
 0x173   : > { %v8962_v5 = vsel %vm7848_vm6, %v4630_v42, %v4631_v56  ;;  %v6140_v62 = vrot.slane %v6124_v19, 9  ;;  %v4635_v60 = vrot.slane %v9497_v54, 5  ;;  %v4179_v24 = vshll.u32 %v8943_v21, 16  ;;  %v7226_v19 = vld [vmem:[%s7611_s21 + $0x30] sm:$0xff]   ;;  %v7227_v54 = vld [vmem:[%s7611_s21 + $0x3c] sm:$0xff]  }
 0x174   : > { %v2439_v15 = vrot.slane %v2438_v59, 4  ;;  %v4183_v14 = vshrl.u32 %v8943_v21, 16  ;;  %v6155_v10 = vcombine.low %v8947_v36, %v8962_v5  ;;  %v4152_v61 = vor.u32 %v4151_v47, %v4148_v4  ;;  %v7297_v36 = vld [vmem:[%s7611_s21 + $0xc4] sm:$0xf] }
 0x175   : > { %6784 = vmatmul.mubr.msk.bf16.gmra.mrb[16].mxu0 %vm813_vm3, %v8795_v33  ;;  %v4162_v41 = vor.u32 %v4161_v12, %v8940_v9  ;;  %v4165_v45 = vshll.u32 %v8955_v29, 16  ;;  %v4143_v56 = vrot.slane %v4141_v8, 5  ;;  %v4637_v59 = vrot.slane %v4635_v60, 4 }
 0x176   : > { %6624 = vmatmul.mubr.msk.bf16.vlgmr.msra.gmra.mrb[0].mxu1 %vm813_vm3, %v7224_v63  ;;  %v2444_v33 = vsel %vm7633_vm2, %v2439_v15, %v9499_v30  ;;  %6787 = vmatprep.mubr.msk.bf16.mxu0 %vm813_vm3, %v8798_v1  ;;  %v7279_v63 = vld [vmem:[#allocation7 + $0x48] sm:$0xff]   ;;  %v4638_v1 = vrot.slane %v8695_v0, 5  ;;  %v6092_v4 = vcombine.low %v4110_v53, %v4120_v28  ;;  %v4129_v47 = vrot.slane %v4128_v18, 4  ;;  %v6125_v15 = vld [vmem:[%s7611_s21 + $0x9c] sm:$0xe] }
 0x177   : > { %6837 = vmatpush3.bf16.msra.mxu1 %v9498_v57  ;;  %6627 = vmatprep.mubr.msk.bf16.mxu1 %vm813_vm3, %v7225_v40  ;;  %v8978_v37 = vcombine.low %v2444_v33, %v2454_v13  ;;  %v8982_v40 = vsel %vm7848_vm6, %v6140_v62, %v4635_v60  ;;  %v4139_v42 = vrot.slane %v4138_v44, 4  ;;  %v4172_v12 = vrot.slane %v4170_v6, 4  ;;  %v8989_v57 = vld [vmem:[%s7611_s21 + $0xd4] sm:$0x1]  ;;  %v6114_v33 = vld [vmem:[%s7611_s21 + $0x18] sm:$0xe] }
 0x178   : > { %6836 = vmatprep.subr.bf16.mxu1 %v7279_v63  ;;  %v4175_v30 = vrot.slane %v4173_v35, 5  ;;  %v8991_v13 = vrot.slane %v4179_v24, 5  ;;  %v4185_v8 = vrot.slane %v4183_v14, 4  ;;  %v8995_v62 = vsel %vm7848_vm6, %v4637_v59, %v4638_v1  ;;  %v6126_v59 = vld [vmem:[%s7611_s21 + $0xa8] sm:$0xe] }
 0x179   : > { %v4153_v60 = vrot.slane %v4152_v61, 4  ;;  %v4163_v0 = vrot.slane %v4162_v41, 4  ;;  %v4167_v53 = vrot.slane %v4165_v45, 5  ;;  %v6156_v18 = vcombine.low %v8982_v40, %v8995_v62  ;;  %v7280_v45 = vld [vmem:[%s7611_s21 + $0x1c] sm:$0xf]  ;;  %v7228_v1 = vld [vmem:[%s7611_s21 + $0x48] sm:$0xff]  }
 0x17a   : > { %v6141_v28 = vrot.slane %v6125_v15, 9  ;;  %v4642_v44 = vrot.slane %v8692_v3, 5  ;;  %v4134_v6 = vsel %vm7633_vm2, %v4129_v47, %v8892_v17  ;;  %v4144_v35 = vsel %vm7633_vm2, %v4139_v42, %v4143_v56 }
 0x17b   : > { %6838 = vmatpush3.bf16.msra.mxu1 %v7279_v63  ;;  %v4189_v24 = vshll.u32 %v8989_v57, 16  ;;  %v4645_v14 = vrot.slane %v8726_v23, 5  ;;  %v4176_v3 = vor.u32 %v4175_v30, %v4172_v12  ;;  %v4158_v41 = vsel %vm7633_vm2, %v4153_v60, %v8940_v9  ;;  %v7229_v12 = vld [vmem:[%s7611_s21 + $0x54] sm:$0xff]   ;;  %v7281_v30 = vld [vmem:[%s7611_s21 + $0x20] sm:$0x1] }
 0x17c   : > { %v9016_v17 = vsel %vm7848_vm6, %v6141_v28, %v4642_v44  ;;  %v4644_v61 = vrot.slane %v4642_v44, 4  ;;  %v4168_v23 = vsel %vm7633_vm2, %v4163_v0, %v4167_v53  ;;  %v4565_v63 = vrot.slane %v7280_v45, 5  ;;  %v6127_v44 = vld [vmem:[%s7611_s21 + $0xb4] sm:$0xe]  ;;  %v6116_v45 = vld [vmem:[%s7611_s21 + $0x30] sm:$0xe] }
 0x17d   : > { %6788 = vmatmul.mubr.msk.bf16.gmra.mrb[20].mxu0 %vm813_vm3, %v8868_v22  ;;  %v4186_v22 = vor.u32 %v4185_v8, %v8991_v13  ;;  %v6130_v47 = vrot.slane %v6114_v33, 9  ;;  %v6094_v9 = vcombine.low %v4158_v41, %v4168_v23  ;;  %v4177_v15 = vrot.slane %v4176_v3, 4  ;;  %v7282_v3 = vld [vmem:[%s7611_s21 + $0x28] sm:$0xf] }
 0x17e   : > { %6628 = vmatmul.mubr.msk.bf16.gmra.mrb[4].mxu1 %vm813_vm3, %v7226_v19  ;;  %6791 = vmatprep.mubr.msk.bf16.mxu0 %vm813_vm3, %v6092_v4  ;;  %v9026_v56 = vsel %vm7848_vm6, %v4644_v61, %v4645_v14  ;;  %v6093_v19 = vcombine.low %v4134_v6, %v4144_v35  ;;  %v4191_v4 = vrot.slane %v4189_v24, 5  ;;  %v4568_v8 = vrot.slane %v7281_v30, 5  ;;  %v6115_v14 = vld [vmem:[%s7611_s21 + $0x24] sm:$0xe]  ;;  %v7283_v61 = vld [vmem:[%s7611_s21 + $0x34] sm:$0xf] }
 0x17f   : > { %6631 = vmatprep.mubr.msk.bf16.mxu1 %vm813_vm3, %v7227_v54  ;;  %v6157_v42 = vcombine.low %v9016_v17, %v9026_v56  ;;  %v4187_v54 = vrot.slane %v4186_v22, 4  ;;  %v4567_v60 = vrot.slane %v4565_v63, 4  ;;  %v6142_v0 = vrot.slane %v6126_v59, 9 }
 0x180   : > { %v4649_v53 = vrot.slane %v8729_v58, 5  ;;  %v4652_v28 = vrot.slane %v8776_v7, 5  ;;  %v4182_v58 = vsel %vm7633_vm2, %v4177_v15, %v8991_v13  ;;  %v4566_v24 = vsel %vm7848_vm6, %v6130_v47, %v4565_v63  ;;  %v7284_v47 = vld [vmem:[%s7611_s21 + $0x2c] sm:$0x1] }
 0x181   : > { %v4192_v7 = vsel %vm7633_vm2, %v4187_v54, %v4191_v4  ;;  %v4572_v22 = vrot.slane %v7282_v3, 5  ;;  %v4569_v33 = vsel %vm7848_vm6, %v4567_v60, %v4568_v8  ;;  %v4579_v41 = vrot.slane %v7283_v61, 5  ;;  %v7231_v15 = vld [vmem:[%s7611_s21 + $0x6c] sm:$0xff]  }
 0x182   : > { %v9041_v6 = vsel %vm7848_vm6, %v6142_v0, %v4649_v53  ;;  %v4651_v35 = vrot.slane %v4649_v53, 4  ;;  %v6143_v13 = vrot.slane %v6127_v44, 9  ;;  %v4656_v63 = vrot.slane %v8826_v32, 5  ;;  %v7285_v32 = vld [vmem:[%s7611_s21 + $0x38] sm:$0x1] }
 0x183   : > { %v6131_v4 = vrot.slane %v6115_v14, 9  ;;  %v6146_v54 = vcombine.low %v4566_v24, %v4569_v33  ;;  %v4574_v30 = vrot.slane %v4572_v22, 4  ;;  %v6132_v0 = vrot.slane %v6116_v45, 9  ;;  %v6128_v44 = vld [vmem:[%s7611_s21 + $0xc0] sm:$0xe]  ;;  %v9500_v24 = vld [vmem:[#allocation16_spill] sm:$0xff] }
 0x184   : > { %v9059_v23 = vsel %vm7848_vm6, %v4651_v35, %v4652_v28  ;;  %v9071_v8 = vsel %vm7848_vm6, %v6143_v13, %v4656_v63  ;;  %v4658_v60 = vrot.slane %v4656_v63, 4  ;;  %v4581_v53 = vrot.slane %v4579_v41, 4  ;;  %v6117_v13 = vld [vmem:[%s7611_s21 + $0x3c] sm:$0xe] }
 0x185   : > { %6792 = vmatmul.mubr.msk.bf16.gmra.mrb[24].mxu0 %vm813_vm3, %v6093_v19  ;;  %v6158_v59 = vcombine.low %v9041_v6, %v9059_v23  ;;  %v6095_v19 = vcombine.low %v4182_v58, %v4192_v7  ;;  %v4582_v28 = vrot.slane %v7285_v32, 5  ;;  %v4573_v58 = vsel %vm7848_vm6, %v6131_v4, %v4572_v22  ;;  %v7232_v22 = vld [vmem:[%s7611_s21 + $0x78] sm:$0xff]  }
 0x186   : > { %6632 = vmatmul.mubr.msk.bf16.gmra.mrb[8].mxu1 %vm813_vm3, %v7228_v1  ;;  %6795 = vmatprep.mubr.msk.bf16.mxu0 %vm813_vm3, %v6094_v9  ;;  %v7230_v1 = vld [vmem:[%s7611_s21 + $0x60] sm:$0xff]   ;;  %v4659_v9 = vrot.slane %v8904_v38, 5  ;;  %v4586_v14 = vrot.slane %v9500_v24, 5  ;;  %v6144_v3 = vrot.slane %v6128_v44, 9  ;;  %v4580_v33 = vsel %vm7848_vm6, %v6132_v0, %v4579_v41 }
 0x187   : > { %6635 = vmatprep.mubr.msk.bf16.mxu1 %vm813_vm3, %v7229_v12  ;;  %v4575_v12 = vrot.slane %v7284_v47, 5  ;;  %v4583_v61 = vsel %vm7848_vm6, %v4581_v53, %v4582_v28  ;;  %v4663_v45 = vrot.slane %v8884_v31, 5  ;;  %v4666_v63 = vrot.slane %v8955_v29, 5  ;;  %v7286_v28 = vld [vmem:[%s7611_s21 + $0x70] sm:$0xf] }
 0x188   : > { %v9077_v35 = vsel %vm7848_vm6, %v4658_v60, %v4659_v9  ;;  %v7233_v9 = vld [vmem:[%s7611_s21 + $0x84] sm:$0xff]   ;;  %v6148_v41 = vcombine.low %v4580_v33, %v4583_v61  ;;  %v2417_v44 = vshll.u32 %v7286_v28, 16  ;;  %v4673_v24 = vrot.slane %v8989_v57, 5 }
 0x189   : > { %v6159_v38 = vcombine.low %v9071_v8, %v9077_v35  ;;  %v4576_v7 = vsel %vm7848_vm6, %v4574_v30, %v4575_v12  ;;  %v9102_v47 = vsel %vm7848_vm6, %v6144_v3, %v4663_v45  ;;  %v4665_v12 = vrot.slane %v4663_v45, 4  ;;  %v9501_v30 = vld [vmem:[#allocation17_spill] sm:$0xff] }
 0x18a   : > { %v6147_v4 = vcombine.low %v4573_v58, %v4576_v7  ;;  %v4589_v60 = vrot.slane %v9501_v30, 5  ;;  %v2421_v58 = vshrl.u32 %v7286_v28, 16  ;;  %v4670_v7 = vrot.slane %v8943_v21, 5  ;;  %v5851_v28 = vld [vmem:[%s7611_s21 + $0x90] sm:$0xf] }
 0x18b   : > { %v9108_v29 = vsel %vm7848_vm6, %v4665_v12, %v4666_v63  ;;  %v7234_v63 = vld [vmem:[%s7611_s21 + $0x90] sm:$0xff]   ;;  %v2480_v52 = vshrl.u32 %v5851_v28, 16  ;;  %v2483_v25 = vshll.u32 %v5851_v28, 16  ;;  %v7238_v28 = vld [vmem:[%s7611_s21 + $0xc0] sm:$0xff]   ;;  %v2585_v5 = vshll.u32 %v7297_v36, 16 }
 0x18c   : > { %v6160_v32 = vcombine.low %v9102_v47, %v9108_v29  ;;  %v4672_v21 = vrot.slane %v4670_v7, 4 }
 0x18d   : > { %6796 = vmatmul.mubr.msk.bf16.gmra.mrb[28].mxu0 %vm813_vm3, %v6095_v19  ;;  %v6129_v19 = vld [vmem:[%s7611_s21 + $0xcc] sm:$0xe]  ;;  %v2587_v40 = vrot.slane %v2585_v5, 5 }
 0x18e   : > { %6636 = vmatmul.mubr.msk.bf16.gmra.mrb[12].mxu1 %vm813_vm3, %v7230_v1  ;;  %6803 = vmatprep.mubr.msk.bf16.mxu0 %vm813_vm3, %v6146_v54  ;;  %v5842_v1 = vld [vmem:[%s7611_s21 + $0x6c] sm:$0xf]  ;;  %v4588_v54 = vrot.slane %v4586_v14, 4  ;;  %v6145_v53 = vrot.slane %v6129_v19, 9  ;;  %v2423_v19 = vrot.slane %v2421_v58, 4 }
 0x18f   : > { %6639 = vmatprep.mubr.msk.bf16.mxu1 %vm813_vm3, %v7231_v15  ;;  %v6133_v15 = vrot.slane %v6117_v13, 9  ;;  %v2408_v0 = vshrl.u32 %v5842_v1, 16  ;;  %v2411_v31 = vshll.u32 %v5842_v1, 16  ;;  %v2419_v1 = vrot.slane %v2417_v44, 5  ;;  %v7236_v44 = vld [vmem:[%s7611_s21 + $0xa8] sm:$0xff]  }
 0x190   : > { %v4590_v33 = vsel %vm7848_vm6, %v4588_v54, %v4589_v60  ;;  %v9125_v45 = vsel %vm7848_vm6, %v6145_v53, %v4670_v7  ;;  %v7288_v60 = vld [vmem:[%s7611_s21 + $0x88] sm:$0xf] }
 0x191   : > { %v4587_v3 = vsel %vm7848_vm6, %v6133_v15, %v4586_v14  ;;  %v2410_v61 = vrot.slane %v2408_v0, 4  ;;  %v2413_v13 = vrot.slane %v2411_v31, 5  ;;  %v7235_v14 = vld [vmem:[%s7611_s21 + $0x9c] sm:$0xff]   ;;  %v7287_v15 = vld [vmem:[%s7611_s21 + $0x74] sm:$0x1]  ;;  %v2465_v0 = vshll.u32 %v7288_v60, 16 }
 0x192   : > { %v6149_v57 = vcombine.low %v4587_v3, %v4590_v33  ;;  %v2427_v54 = vshll.u32 %v7287_v15, 16  ;;  %v2469_v31 = vshrl.u32 %v7288_v60, 16  ;;  %v5854_v33 = vld [vmem:[%s7611_s21 + $0x9c] sm:$0xf]  ;;  %v7290_v15 = vld [vmem:[%s7611_s21 + $0xa0] sm:$0xf] }
 0x194   : > { %v2429_v7 = vrot.slane %v2427_v54, 5  ;;  %v2517_v54 = vshrl.u32 %v7290_v15, 16 }
 0x195   : > { %6804 = vmatmul.mubr.msk.bf16.vlgmr.msra.gmra.mrb[0].mxu0 %vm813_vm3, %v6147_v4  ;;  %v5848_v4 = vld [vmem:[%s7611_s21 + $0x84] sm:$0xf] }
 0x196   : > { %6640 = vmatmul.mubr.msk.bf16.gmra.mrb[16].mxu1 %vm813_vm3, %v7232_v22  ;;  %6807 = vmatprep.mubr.msk.bf16.mxu0 %vm813_vm3, %v6148_v41  ;;  %v9130_v22 = vsel %vm7848_vm6, %v4672_v21, %v4673_v24  ;;  %v2424_v41 = vor.u32 %v2423_v19, %v2419_v1  ;;  %v2456_v55 = vshrl.u32 %v5848_v4, 16  ;;  %v2459_v30 = vshll.u32 %v5848_v4, 16 }
 0x197   : > { %6643 = vmatprep.mubr.msk.bf16.mxu1 %vm813_vm3, %v7233_v9  ;;  %v6161_v12 = vcombine.low %v9125_v45, %v9130_v22  ;;  %v2414_v9 = vor.u32 %v2413_v13, %v2410_v61  ;;  %v7237_v61 = vld [vmem:[%s7611_s21 + $0xb4] sm:$0xff]   ;;  %v9149_v13 = vrot.slane %v2465_v0, 5  ;;  %v2471_v21 = vrot.slane %v2469_v31, 4 }
 0x198   : > { %v2425_v58 = vrot.slane %v2424_v41, 4  ;;  %v2458_v24 = vrot.slane %v2456_v55, 4  ;;  %v2461_v3 = vrot.slane %v2459_v30, 5  ;;  %v2507_v4 = vshll.u32 %v5854_v33, 16 }
 0x199   : > { %v2415_v53 = vrot.slane %v2414_v9, 4  ;;  %v2472_v48 = vor.u32 %v2471_v21, %v9149_v13  ;;  %v2482_v55 = vrot.slane %v2480_v52, 4  ;;  %v2485_v30 = vrot.slane %v2483_v25, 5  ;;  %v7293_v25 = vld [vmem:[%s7611_s21 + $0xa4] sm:$0x1] }
 0x19a   : > { %v2430_v9 = vsel %vm7633_vm2, %v2425_v58, %v2429_v7  ;;  %v2462_v41 = vor.u32 %v2461_v3, %v2458_v24  ;;  %v5857_v58 = vld [vmem:[%s7611_s21 + $0xa8] sm:$0xf] }
 0x19b   : > { %v2473_v7 = vrot.slane %v2472_v48, 4  ;;  %v2486_v3 = vor.u32 %v2485_v30, %v2482_v55  ;;  %v7295_v48 = vld [vmem:[%s7611_s21 + $0xb8] sm:$0xf] }
 0x19c   : > { %v2463_v27 = vrot.slane %v2462_v41, 4 }
 0x19d   : > { %6808 = vmatmul.mubr.msk.bf16.gmra.mrb[4].mxu0 %vm813_vm3, %v6149_v57  ;;  %v2487_v2 = vrot.slane %v2486_v3, 4 }
 0x19e   : > { %6644 = vmatmul.mubr.msk.bf16.gmra.mrb[20].mxu1 %vm813_vm3, %v7234_v63  ;;  %6811 = vmatprep.mubr.msk.bf16.mxu0 %vm813_vm3, %v6150_v39  ;;  %v2420_v39 = vsel %vm7633_vm2, %v2415_v53, %v2419_v1  ;;  %v7289_v63 = vld [vmem:[%s7611_s21 + $0x94] sm:$0xf]  ;;  %v2513_v1 = vshll.u32 %v7290_v15, 16  ;;  %v2509_v53 = vrot.slane %v2507_v4, 5  ;;  %v7294_v4 = vld [vmem:[%s7611_s21 + $0xac] sm:$0xf]  ;;  %v2468_v15 = vsel %vm7633_vm2, %v2463_v27, %v9149_v13 }
 0x19f   : > { %6647 = vmatprep.mubr.msk.bf16.mxu1 %vm813_vm3, %v7235_v14  ;;  %v2489_v57 = vshll.u32 %v7289_v63, 16  ;;  %v2493_v19 = vshrl.u32 %v7289_v63, 16  ;;  %v2504_v14 = vshrl.u32 %v5854_v33, 16  ;;  %v7292_v33 = vld [vmem:[%s7611_s21 + $0x98] sm:$0x1]  ;;  %v2523_v63 = vshll.u32 %v7293_v25, 16 }
 0x1a0   : > { %v9172_v43 = vrot.slane %v2513_v1, 5  ;;  %v2541_v41 = vshrl.u32 %v7294_v4, 16  ;;  %v2589_v25 = vshrl.u32 %v7297_v36, 16 }
 0x1a1   : > { %v9169_v60 = vrot.slane %v2489_v57, 5  ;;  %v2495_v0 = vrot.slane %v2493_v19, 4  ;;  %v2506_v31 = vrot.slane %v2504_v14, 4  ;;  %v2528_v57 = vshrl.u32 %v5857_v58, 16  ;;  %v5860_v19 = vld [vmem:[%s7611_s21 + $0xb4] sm:$0xf] }
 0x1a2   : > { %v2531_v14 = vshll.u32 %v5857_v58, 16  ;;  %v2552_v1 = vshrl.u32 %v5860_v19, 16  ;;  %v2525_v49 = vrot.slane %v2523_v63, 5  ;;  %v2543_v13 = vrot.slane %v2541_v41, 4  ;;  %v5863_v58 = vld [vmem:[%s7611_s21 + $0xc0] sm:$0xf] }
 0x1a3   : > { %v2496_v21 = vor.u32 %v2495_v0, %v9169_v60  ;;  %v2510_v52 = vor.u32 %v2509_v53, %v2506_v31  ;;  %v2530_v50 = vrot.slane %v2528_v57, 4  ;;  %v7298_v57 = vld [vmem:[%s7611_s21 + $0xbc] sm:$0x1]  ;;  %v2591_v62 = vrot.slane %v2589_v25, 4 }
 0x1a4   : > { %v2533_v0 = vrot.slane %v2531_v14, 5 }
 0x1a5   : > { %6812 = vmatmul.mubr.msk.bf16.gmra.mrb[8].mxu0 %vm813_vm3, %v6151_v16  ;;  %v2475_v16 = vshll.u32 %v7291_v20, 16  ;;  %v2561_v20 = vshll.u32 %v7295_v48, 16  ;;  %v2497_v55 = vrot.slane %v2496_v21, 4  ;;  %v2511_v30 = vrot.slane %v2510_v52, 4  ;;  %v7296_v21 = vld [vmem:[%s7611_s21 + $0xb0] sm:$0x1] }
 0x1a6   : > { %6648 = vmatmul.mubr.msk.bf16.gmra.mrb[24].mxu1 %vm813_vm3, %v7236_v44  ;;  %6815 = vmatprep.mubr.msk.bf16.mxu0 %vm813_vm3, %v6152_v46  ;;  %v5874_v44 = vcombine.low %v2420_v39, %v2430_v9  ;;  %v2519_v46 = vrot.slane %v2517_v54, 4  ;;  %v2537_v9 = vshll.u32 %v7294_v4, 16  ;;  %v2555_v54 = vshll.u32 %v5860_v19, 16 }
 0x1a7   : > { %6651 = vmatprep.mubr.msk.bf16.mxu1 %vm813_vm3, %v7237_v61  ;;  %v2477_v24 = vrot.slane %v2475_v16, 5  ;;  %v2499_v61 = vshll.u32 %v7292_v33, 16  ;;  %v2565_v16 = vshrl.u32 %v7295_v48, 16  ;;  %v2563_v27 = vrot.slane %v2561_v20, 5 }
 0x1a8   : > { %v2520_v39 = vor.u32 %v2519_v46, %v9172_v43  ;;  %v2539_v31 = vrot.slane %v2537_v9, 5  ;;  %v2516_v3 = vsel %vm7633_vm2, %v2511_v30, %v9172_v43  ;;  %v2547_v52 = vshll.u32 %v7296_v21, 16 }
 0x1a9   : > { %v2478_v51 = vsel %vm7633_vm2, %v2473_v7, %v2477_v24  ;;  %v2567_v46 = vrot.slane %v2565_v16, 4  ;;  %v2492_v7 = vsel %vm7633_vm2, %v2487_v2, %v9169_v60  ;;  %v2534_v60 = vor.u32 %v2533_v0, %v2530_v50  ;;  %v7299_v16 = vld [vmem:[%s7611_s21 + $0xc8] sm:$0x1] }
 0x1aa   : > { %v5876_v53 = vcombine.low %v2468_v15, %v2478_v51  ;;  %v2579_v43 = vshll.u32 %v5863_v58, 16  ;;  %v2571_v19 = vshll.u32 %v7298_v57, 16  ;;  %v2549_v41 = vrot.slane %v2547_v52, 5 }
 0x1ab   : > { %v2568_v63 = vor.u32 %v2567_v46, %v2563_v27  ;;  %v2535_v4 = vrot.slane %v2534_v60, 4  ;;  %v2592_v20 = vor.u32 %v2591_v62, %v2587_v40 }
 0x1ac   : > { %v2581_v51 = vrot.slane %v2579_v43, 5 }
 0x1ad   : > { %6816 = vmatmul.mubr.msk.bf16.gmra.mrb[12].mxu0 %vm813_vm3, %v6153_v34  ;;  %v2501_v34 = vrot.slane %v2499_v61, 5  ;;  %v2544_v61 = vor.u32 %v2543_v13, %v2539_v31  ;;  %v2569_v2 = vrot.slane %v2568_v63, 4  ;;  %v2593_v50 = vrot.slane %v2592_v20, 4 }
 0x1ae   : > { %6652 = vmatmul.mubr.msk.bf16.gmra.mrb[28].mxu1 %vm813_vm3, %v7238_v28  ;;  %6819 = vmatprep.mubr.msk.bf16.mxu0 %vm813_vm3, %v6154_v11  ;;  %v2521_v11 = vrot.slane %v2520_v39, 4  ;;  %v2554_v28 = vrot.slane %v2552_v1, 4  ;;  %v2540_v1 = vsel %vm7633_vm2, %v2535_v4, %v2539_v31 }
 0x1af   : > { %6675 = vmatprep.mubr.msk.bf16.mxu1 %vm813_vm3, %v5874_v44  ;;  %v2557_v44 = vrot.slane %v2555_v54, 5  ;;  %v2502_v24 = vsel %vm7633_vm2, %v2497_v55, %v2501_v34  ;;  %v2545_v9 = vrot.slane %v2544_v61, 4  ;;  %v2573_v34 = vrot.slane %v2571_v19, 5 }
 0x1b0   : > { %v2526_v33 = vsel %vm7633_vm2, %v2521_v11, %v2525_v49  ;;  %v5877_v39 = vcombine.low %v2492_v7, %v2502_v24  ;;  %v2595_v55 = vshll.u32 %v7299_v16, 16 }
 0x1b1   : > { %v5878_v14 = vcombine.low %v2516_v3, %v2526_v33  ;;  %v2550_v54 = vsel %vm7633_vm2, %v2545_v9, %v2549_v41  ;;  %v2574_v56 = vsel %vm7633_vm2, %v2569_v2, %v2573_v34 }
 0x1b2   : > { %v2597_v6 = vrot.slane %v2595_v55, 5 }
 0x1b5   : > { %6820 = vmatmul.mubr.msk.bf16.gmra.mrb[16].mxu0 %vm813_vm3, %v6155_v10  ;;  %v2558_v10 = vor.u32 %v2557_v44, %v2554_v28 }
 0x1b6   : > { %6676 = vmatmul.mubr.msk.bf16.vlgmr.msra.gmra.mrb[16].mxu1 %vm813_vm3, %v8978_v37  ;;  %6823 = vmatprep.mubr.msk.bf16.mxu0 %vm813_vm3, %v6156_v18  ;;  %v2576_v37 = vshrl.u32 %v5863_v58, 16 }
 0x1b7   : > { %6679 = vmatprep.mubr.msk.bf16.mxu1 %vm813_vm3, %v5876_v53  ;;  %v2559_v18 = vrot.slane %v2558_v10, 4 }
 0x1b8   : > { %v2578_v15 = vrot.slane %v2576_v37, 4 }
 0x1b9   : > { %v2564_v17 = vsel %vm7633_vm2, %v2559_v18, %v2563_v27 }
 0x1ba   : > { %v2582_v48 = vor.u32 %v2581_v51, %v2578_v15  ;;  %v5880_v30 = vcombine.low %v2564_v17, %v2574_v56 }
 0x1bc   : > { %v2583_v49 = vrot.slane %v2582_v48, 4 }
 0x1bd   : > { %6824 = vmatmul.mubr.msk.bf16.gmra.mrb[20].mxu0 %vm813_vm3, %v6157_v42  ;;  %v5879_v42 = vcombine.low %v2540_v1, %v2550_v54 }
 0x1be   : > { %6680 = vmatmul.mubr.msk.bf16.gmra.mrb[20].mxu1 %vm813_vm3, %v5877_v39  ;;  %6827 = vmatprep.mubr.msk.bf16.mxu0 %vm813_vm3, %v6158_v59  ;;  %v2588_v23 = vsel %vm7633_vm2, %v2583_v49, %v2587_v40  ;;  %v2598_v59 = vsel %vm7633_vm2, %v2593_v50, %v2597_v6 }
 0x1bf   : > { %6683 = vmatprep.mubr.msk.bf16.mxu1 %vm813_vm3, %v5878_v14  ;;  %v5881_v11 = vcombine.low %v2588_v23, %v2598_v59 }
 0x1c5   : > { %6828 = vmatmul.mubr.msk.bf16.gmra.mrb[24].mxu0 %vm813_vm3, %v6159_v38 }
 0x1c6   : > { %6684 = vmatmul.mubr.msk.bf16.gmra.mrb[24].mxu1 %vm813_vm3, %v5879_v42  ;;  %6831 = vmatprep.mubr.msk.bf16.mxu0 %vm813_vm3, %v6160_v32 }
 0x1c7   : > { %6687 = vmatprep.mubr.msk.bf16.mxu1 %vm813_vm3, %v5880_v30 }
 0x1cd   : > { %6832 = vmatmul.mubr.msk.bf16.gmra.mrb[28].mxu0 %vm813_vm3, %v6161_v12 }
 0x1ce   : > { %6688 = vmatmul.mubr.msk.bf16.gmra.mrb[28].mxu1 %vm813_vm3, %v5881_v11 }
 0x249   : > { %v6625_v8 = vpop.f32.mrb[0].mxu1 }
 0x24a   : > { %v2008_v35 = vpop.f32.mrb[1].mxu1 }
 0x24b   : > { %v6626_v38 = vpop.f32.mrb[2].mxu1 }
 0x24c   : > { %v2011_v47 = vpop.f32.mrb[3].mxu1 }
 0x251   : > { %v6629_v29 = vpop.f32.mrb[4].mxu1 }
 0x252   : > { %v2024_v32 = vpop.f32.mrb[5].mxu1 }
 0x253   : > { %v6630_v0 = vpop.f32.mrb[6].mxu1 }
 0x254   : > { %v2027_v31 = vpop.f32.mrb[7].mxu1 }
 0x259   : > { %v6633_v13 = vpop.f32.mrb[8].mxu1 }
 0x25a   : > { %v2040_v26 = vpop.f32.mrb[9].mxu1 }
 0x25b   : > { %v6634_v53 = vpop.f32.mrb[10].mxu1 }
 0x25c   : > { %v9260_v28 = vpop.f32.mrb[11].mxu1 }
 0x261   : > { %v9262_v44 = vpop.f32.mrb[12].mxu1 }
 0x262   : > { %v9264_v27 = vpop.f32.mrb[13].mxu1 }
 0x263   : > { %v9266_v45 = vpop.f32.mrb[14].mxu1 }
 0x264   : > { %v9268_v22 = vpop.f32.mrb[15].mxu1 }
 0x268   : > { %v6805_v12 = vpop.f32.mrb[0].mxu0 }
 0x269   : > { %v6839_v46 = vadd.f32 %v6805_v12, %v6625_v8  ;;  %v4822_v58 = vpop.f32.mrb[1].mxu0 }
 0x26a   : > { %v6840_v7 = vadd.f32 %v4822_v58, %v2008_v35  ;;  %v6806_v24 = vpop.f32.mrb[2].mxu0 }
 0x26b   : > { %v6841_v3 = vadd.f32 %v6806_v24, %v6626_v38  ;;  %v4825_v33 = vpop.f32.mrb[3].mxu0  ;;  %v5060_v36 = vmul.f32 %v6839_v46, %v6839_v46 }
 0x26c   : > { %v6842_v60 = vadd.f32 %v4825_v33, %v2011_v47  ;;  %v5058_v21 = vmul.f32 %v6840_v7, %v6840_v7 }
 0x26d   : > { %v4982_v61 = vpack.c.bf16 %v6841_v3, %v6839_v46  ;;  %v5061_v19 = vmul.f32 %v6841_v3, %v6841_v3 }
 0x26e   : > { %v4981_v52 = vpack.c.bf16 %v6842_v60, %v6840_v7  ;;  %v5018_v37 = vadd.f32 %v6842_v60, %v6840_v7  ;;  %v5059_v43 = vmul.f32 %v6842_v60, %v6842_v60 }
 0x26f   : > { %5002 = vst [vmem:[%s9272_s8 + $0x8] sm:$0xff] %v4982_v61 }
 0x270   : > { %5001 = vst [vmem:[%s9272_s8] sm:$0xff] %v4981_v52  ;;  %v5019_v5 = vadd.f32 %v6839_v46, %v5018_v37  ;;  %v5090_v25 = vadd.f32 %v5059_v43, %v5058_v21  ;;  %v6809_v10 = vpop.f32.mrb[4].mxu0 }
 0x271   : > { %v6843_v63 = vadd.f32 %v6809_v10, %v6629_v29  ;;  %v4838_v57 = vpop.f32.mrb[5].mxu0 }
 0x272   : > { %v5091_v39 = vadd.f32 %v5090_v25, %v5060_v36  ;;  %v6844_v14 = vadd.f32 %v4838_v57, %v2024_v32  ;;  %v5020_v4 = vadd.f32 %v6841_v3, %v5019_v5  ;;  %v6810_v9 = vpop.f32.mrb[6].mxu0 }
 0x273   : > { %v6845_v41 = vadd.f32 %v6810_v9, %v6630_v0  ;;  %v4841_v15 = vpop.f32.mrb[7].mxu0  ;;  %v5064_v20 = vmul.f32 %v6843_v63, %v6843_v63 }
 0x274   : > { %v5021_v51 = vadd.f32 %v6844_v14, %v5020_v4  ;;  %v5062_v40 = vmul.f32 %v6844_v14, %v6844_v14  ;;  %v5092_v62 = vadd.f32 %v5091_v39, %v5061_v19  ;;  %v6846_v18 = vadd.f32 %v4841_v15, %v2027_v31 }
 0x275   : > { %v4984_v2 = vpack.c.bf16 %v6845_v41, %v6843_v63  ;;  %v5065_v30 = vmul.f32 %v6845_v41, %v6845_v41 }
 0x276   : > { %v5093_v34 = vadd.f32 %v5092_v62, %v5062_v40  ;;  %v4983_v1 = vpack.c.bf16 %v6846_v18, %v6844_v14  ;;  %v5022_v54 = vadd.f32 %v6846_v18, %v5021_v51  ;;  %v5063_v48 = vmul.f32 %v6846_v18, %v6846_v18 }
 0x277   : > { %5004 = vst [vmem:[%s9272_s8 + $0x18] sm:$0xff] %v4984_v2 }
 0x278   : > { %5003 = vst [vmem:[%s9272_s8 + $0x10] sm:$0xff] %v4983_v1  ;;  %v5023_v16 = vadd.f32 %v6843_v63, %v5022_v54  ;;  %v5094_v55 = vadd.f32 %v5093_v34, %v5063_v48  ;;  %v6813_v17 = vpop.f32.mrb[8].mxu0 }
 0x279   : > { %v6847_v56 = vadd.f32 %v6813_v17, %v6633_v13  ;;  %v4854_v42 = vpop.f32.mrb[9].mxu0 }
 0x27a   : > { %v5095_v49 = vadd.f32 %v5094_v55, %v5064_v20  ;;  %v6848_v50 = vadd.f32 %v4854_v42, %v2040_v26  ;;  %v5024_v6 = vadd.f32 %v6845_v41, %v5023_v16  ;;  %v6814_v23 = vpop.f32.mrb[10].mxu0 }
 0x27b   : > { %v6849_v59 = vadd.f32 %v6814_v23, %v6634_v53  ;;  %v4857_v11 = vpop.f32.mrb[11].mxu0  ;;  %v5068_v12 = vmul.f32 %v6847_v56, %v6847_v56 }
 0x27c   : > { %v5025_v8 = vadd.f32 %v6848_v50, %v5024_v6  ;;  %v5066_v35 = vmul.f32 %v6848_v50, %v6848_v50  ;;  %v5096_v38 = vadd.f32 %v5095_v49, %v5065_v30  ;;  %v6850_v47 = vadd.f32 %v4857_v11, %v9260_v28 }
 0x27d   : > { %v4986_v29 = vpack.c.bf16 %v6849_v59, %v6847_v56  ;;  %v5069_v24 = vmul.f32 %v6849_v59, %v6849_v59 }
 0x27e   : > { %v5097_v32 = vadd.f32 %v5096_v38, %v5066_v35  ;;  %v4985_v0 = vpack.c.bf16 %v6850_v47, %v6848_v50  ;;  %v5026_v31 = vadd.f32 %v6850_v47, %v5025_v8  ;;  %v5067_v13 = vmul.f32 %v6850_v47, %v6850_v47 }
 0x27f   : > { %5006 = vst [vmem:[%s9272_s8 + $0x28] sm:$0xff] %v4986_v29 }
 0x280   : > { %5005 = vst [vmem:[%s9272_s8 + $0x20] sm:$0xff] %v4985_v0  ;;  %v5027_v46 = vadd.f32 %v6847_v56, %v5026_v31  ;;  %v5098_v26 = vadd.f32 %v5097_v32, %v5067_v13  ;;  %v6817_v58 = vpop.f32.mrb[12].mxu0 }
 0x281   : > { %v6851_v7 = vadd.f32 %v6817_v58, %v9262_v44  ;;  %v4870_v53 = vpop.f32.mrb[13].mxu0 }
 0x282   : > { %v5099_v3 = vadd.f32 %v5098_v26, %v5068_v12  ;;  %v6852_v33 = vadd.f32 %v4870_v53, %v9264_v27  ;;  %v5028_v28 = vadd.f32 %v6849_v59, %v5027_v46  ;;  %v6818_v60 = vpop.f32.mrb[14].mxu0 }
 0x283   : > { %v6853_v61 = vadd.f32 %v6818_v60, %v9266_v45  ;;  %v4873_v21 = vpop.f32.mrb[15].mxu0  ;;  %v5072_v57 = vmul.f32 %v6851_v7, %v6851_v7 }
 0x284   : > { %v5029_v52 = vadd.f32 %v6852_v33, %v5028_v28  ;;  %v5070_v37 = vmul.f32 %v6852_v33, %v6852_v33  ;;  %v5100_v43 = vadd.f32 %v5099_v3, %v5069_v24  ;;  %v6854_v36 = vadd.f32 %v4873_v21, %v9268_v22 }
 0x285   : > { %v4988_v5 = vpack.c.bf16 %v6853_v61, %v6851_v7  ;;  %v5073_v41 = vmul.f32 %v6853_v61, %v6853_v61 }
 0x286   : > { %v5101_v25 = vadd.f32 %v5100_v43, %v5070_v37  ;;  %v4987_v44 = vpack.c.bf16 %v6854_v36, %v6852_v33  ;;  %v5030_v10 = vadd.f32 %v6854_v36, %v5029_v52  ;;  %v5071_v63 = vmul.f32 %v6854_v36, %v6854_v36 }
 0x287   : > { %5008 = vst [vmem:[%s9272_s8 + $0x38] sm:$0xff] %v4988_v5 }
 0x288   : > { %5007 = vst [vmem:[%s9272_s8 + $0x30] sm:$0xff] %v4987_v44  ;;  %v5031_v27 = vadd.f32 %v6851_v7, %v5030_v10  ;;  %v5102_v19 = vadd.f32 %v5101_v25, %v5071_v63  ;;  %v6821_v14 = vpop.f32.mrb[16].mxu0 }
 0x289   : > { %v6677_v39 = vpop.f32.mrb[16].mxu1  ;;  %v4886_v9 = vpop.f32.mrb[17].mxu0 }
 0x28a   : > { %v6855_v4 = vadd.f32 %v6821_v14, %v6677_v39  ;;  %v2810_v45 = vpop.f32.mrb[17].mxu1  ;;  %v5103_v15 = vadd.f32 %v5102_v19, %v5072_v57  ;;  %v5032_v22 = vadd.f32 %v6853_v61, %v5031_v27  ;;  %v6822_v62 = vpop.f32.mrb[18].mxu0 }
 0x28b   : > { %v6856_v51 = vadd.f32 %v4886_v9, %v2810_v45  ;;  %v6678_v40 = vpop.f32.mrb[18].mxu1  ;;  %v4889_v34 = vpop.f32.mrb[19].mxu0 }
 0x28c   : > { %v6857_v18 = vadd.f32 %v6822_v62, %v6678_v40  ;;  %v2813_v2 = vpop.f32.mrb[19].mxu1  ;;  %v5104_v48 = vadd.f32 %v5103_v15, %v5073_v41  ;;  %v5076_v30 = vmul.f32 %v6855_v4, %v6855_v4 }
 0x28d   : > { %v5033_v1 = vadd.f32 %v6856_v51, %v5032_v22  ;;  %v5074_v54 = vmul.f32 %v6856_v51, %v6856_v51  ;;  %v6858_v20 = vadd.f32 %v4889_v34, %v2813_v2 }
 0x28e   : > { %v4990_v16 = vpack.c.bf16 %v6857_v18, %v6855_v4  ;;  %v5077_v35 = vmul.f32 %v6857_v18, %v6857_v18 }
 0x28f   : > { %v5105_v55 = vadd.f32 %v5104_v48, %v5074_v54  ;;  %v4989_v17 = vpack.c.bf16 %v6858_v20, %v6856_v51  ;;  %v5034_v56 = vadd.f32 %v6858_v20, %v5033_v1  ;;  %v5075_v42 = vmul.f32 %v6858_v20, %v6858_v20 }
 0x290   : > { %5010 = vst [vmem:[%s9272_s8 + $0x48] sm:$0xff] %v4990_v16  ;;  %v6825_v23 = vpop.f32.mrb[20].mxu0 }
 0x291   : > { %5009 = vst [vmem:[%s9272_s8 + $0x40] sm:$0xff] %v4989_v17  ;;  %v5035_v49 = vadd.f32 %v6855_v4, %v5034_v56  ;;  %v5106_v50 = vadd.f32 %v5105_v55, %v5075_v42  ;;  %v6681_v6 = vpop.f32.mrb[20].mxu1  ;;  %v4902_v8 = vpop.f32.mrb[21].mxu0 }
 0x292   : > { %v6859_v59 = vadd.f32 %v6825_v23, %v6681_v6  ;;  %v2826_v11 = vpop.f32.mrb[21].mxu1  ;;  %v6826_v0 = vpop.f32.mrb[22].mxu0 }
 0x293   : > { %v5107_v38 = vadd.f32 %v5106_v50, %v5076_v30  ;;  %v6860_v47 = vadd.f32 %v4902_v8, %v2826_v11  ;;  %v5036_v29 = vadd.f32 %v6857_v18, %v5035_v49  ;;  %v6682_v32 = vpop.f32.mrb[22].mxu1  ;;  %v4905_v12 = vpop.f32.mrb[23].mxu0 }
 0x294   : > { %v6861_v31 = vadd.f32 %v6826_v0, %v6682_v32  ;;  %v2829_v13 = vpop.f32.mrb[23].mxu1  ;;  %v5080_v60 = vmul.f32 %v6859_v59, %v6859_v59 }
 0x295   : > { %v5037_v46 = vadd.f32 %v6860_v47, %v5036_v29  ;;  %v5078_v26 = vmul.f32 %v6860_v47, %v6860_v47  ;;  %v5108_v58 = vadd.f32 %v5107_v38, %v5077_v35  ;;  %v6862_v7 = vadd.f32 %v4905_v12, %v2829_v13 }
 0x296   : > { %v4992_v53 = vpack.c.bf16 %v6861_v31, %v6859_v59  ;;  %v5081_v25 = vmul.f32 %v6861_v31, %v6861_v31 }
 0x297   : > { %v5109_v24 = vadd.f32 %v5108_v58, %v5078_v26  ;;  %v4991_v3 = vpack.c.bf16 %v6862_v7, %v6860_v47  ;;  %v5038_v33 = vadd.f32 %v6862_v7, %v5037_v46  ;;  %v5079_v28 = vmul.f32 %v6862_v7, %v6862_v7 }
 0x298   : > { %5012 = vst [vmem:[%s9272_s8 + $0x58] sm:$0xff] %v4992_v53  ;;  %v6829_v37 = vpop.f32.mrb[24].mxu0 }
 0x299   : > { %5011 = vst [vmem:[%s9272_s8 + $0x50] sm:$0xff] %v4991_v3  ;;  %v5039_v61 = vadd.f32 %v6859_v59, %v5038_v33  ;;  %v5110_v21 = vadd.f32 %v5109_v24, %v5079_v28  ;;  %v6685_v52 = vpop.f32.mrb[24].mxu1  ;;  %v4918_v5 = vpop.f32.mrb[25].mxu0 }
 0x29a   : > { %v6863_v43 = vadd.f32 %v6829_v37, %v6685_v52  ;;  %v2842_v36 = vpop.f32.mrb[25].mxu1  ;;  %v6830_v27 = vpop.f32.mrb[26].mxu0  ;;  %v5017_v37 = vld [vmem:[#allocation3] sm:$0x1] }
 0x29b   : > { %v5111_v44 = vadd.f32 %v5110_v21, %v5080_v60  ;;  %v6864_v10 = vadd.f32 %v4918_v5, %v2842_v36  ;;  %v5040_v63 = vadd.f32 %v6861_v31, %v5039_v61  ;;  %v6686_v57 = vpop.f32.mrb[26].mxu1  ;;  %v4921_v14 = vpop.f32.mrb[27].mxu0  ;;  %v5057_v5 = vld [vmem:[#allocation4] sm:$0x1] }
 0x29c   : > { %v6865_v19 = vadd.f32 %v6830_v27, %v6686_v57  ;;  %v2845_v39 = vpop.f32.mrb[27].mxu1  ;;  %v5084_v18 = vmul.f32 %v6863_v43, %v6863_v43 }
 0x29d   : > { %v5041_v4 = vadd.f32 %v6864_v10, %v5040_v63  ;;  %v5082_v45 = vmul.f32 %v6864_v10, %v6864_v10  ;;  %v5112_v9 = vadd.f32 %v5111_v44, %v5081_v25  ;;  %v6866_v41 = vadd.f32 %v4921_v14, %v2845_v39 }
 0x29e   : > { %v4994_v15 = vpack.c.bf16 %v6865_v19, %v6863_v43  ;;  %v5085_v55 = vmul.f32 %v6865_v19, %v6865_v19 }
 0x29f   : > { %v5113_v51 = vadd.f32 %v5112_v9, %v5082_v45  ;;  %v4993_v22 = vpack.c.bf16 %v6866_v41, %v6864_v10  ;;  %v5042_v40 = vadd.f32 %v6866_v41, %v5041_v4  ;;  %v5083_v62 = vmul.f32 %v6866_v41, %v6866_v41 }
 0x2a0   : > { %5014 = vst [vmem:[%s9272_s8 + $0x68] sm:$0xff] %v4994_v15  ;;  %v6833_v54 = vpop.f32.mrb[28].mxu0 }
 0x2a1   : > { %5013 = vst [vmem:[%s9272_s8 + $0x60] sm:$0xff] %v4993_v22  ;;  %v5043_v2 = vadd.f32 %v6863_v43, %v5042_v40  ;;  %v5114_v34 = vadd.f32 %v5113_v51, %v5083_v62  ;;  %v6689_v1 = vpop.f32.mrb[28].mxu1  ;;  %v4934_v16 = vpop.f32.mrb[29].mxu0 }
 0x2a2   : > { %v6867_v48 = vadd.f32 %v6833_v54, %v6689_v1  ;;  %v2858_v20 = vpop.f32.mrb[29].mxu1  ;;  %v6834_v49 = vpop.f32.mrb[30].mxu0 }
 0x2a3   : > { %v5115_v17 = vadd.f32 %v5114_v34, %v5084_v18  ;;  %v6868_v56 = vadd.f32 %v4934_v16, %v2858_v20  ;;  %v5044_v42 = vadd.f32 %v6865_v19, %v5043_v2  ;;  %v6690_v30 = vpop.f32.mrb[30].mxu1  ;;  %v4937_v23 = vpop.f32.mrb[31].mxu0 }
 0x2a4   : > { %v6869_v50 = vadd.f32 %v6834_v49, %v6690_v30  ;;  %v2861_v6 = vpop.f32.mrb[31].mxu1  ;;  %v5088_v31 = vmul.f32 %v6867_v48, %v6867_v48 }
 0x2a5   : > { %v5045_v59 = vadd.f32 %v6868_v56, %v5044_v42  ;;  %v5086_v11 = vmul.f32 %v6868_v56, %v6868_v56  ;;  %v5116_v8 = vadd.f32 %v5115_v17, %v5085_v55  ;;  %v6870_v35 = vadd.f32 %v4937_v23, %v2861_v6 }
 0x2a6   : > { %v4996_v38 = vpack.c.bf16 %v6869_v50, %v6867_v48  ;;  %v5089_v46 = vmul.f32 %v6869_v50, %v6869_v50 }
 0x2a7   : > { %v5117_v47 = vadd.f32 %v5116_v8, %v5086_v11  ;;  %v4995_v29 = vpack.c.bf16 %v6870_v35, %v6868_v56  ;;  %v5046_v32 = vadd.f32 %v6870_v35, %v5045_v59  ;;  %v5087_v0 = vmul.f32 %v6870_v35, %v6870_v35 }
 0x2a8   : > { %5016 = vst [vmem:[%s9272_s8 + $0x78] sm:$0xff] %v4996_v38 }
 0x2a9   : > { %5015 = vst [vmem:[%s9272_s8 + $0x70] sm:$0xff] %v4995_v29  ;;  %v5047_v13 = vadd.f32 %v6867_v48, %v5046_v32  ;;  %v5118_v12 = vadd.f32 %v5117_v47, %v5087_v0 }
 0x2ab   : > { %v5048_v26 = vadd.f32 %v6869_v50, %v5047_v13  ;;  %v5119_v58 = vadd.f32 %v5118_v12, %v5088_v31 }
 0x2ad   : > { %v5049_v7 = vrot.slane %v5048_v26, 4  ;;  %v5120_v53 = vadd.f32 %v5119_v58, %v5089_v46 }
 0x2af   : > { %v5050_v24 = vadd.f32 %v5049_v7, %v5048_v26  ;;  %v5121_v3 = vrot.slane %v5120_v53, 4 }
 0x2b1   : > { %v5051_v33 = vrot.slane %v5050_v24, 2  ;;  %v5122_v28 = vadd.f32 %v5121_v3, %v5120_v53 }
 0x2b3   : > { %v5052_v60 = vadd.f32 %v5051_v33, %v5050_v24  ;;  %v5123_v61 = vrot.slane %v5122_v28, 2 }
 0x2b5   : > { %v5053_v21 = vrot.slane %v5052_v60, 1  ;;  %v5124_v52 = vadd.f32 %v5123_v61, %v5122_v28 }
 0x2b7   : > { %v5054_v43 = vadd.f32 %v5053_v21, %v5052_v60  ;;  %v5125_v36 = vrot.slane %v5124_v52, 1 }
 0x2b9   : > { %v5055_v25 = vadd.f32 %v5054_v43, %v5017_v37  ;;  %v5126_v44 = vadd.f32 %v5125_v36, %v5124_v52 }
 0x2bb   : > { %5056 = vst [vmem:[#allocation3] sm:$0x1] %v5055_v25  ;;  %v5127_v10 = vadd.f32 %v5126_v44, %v5057_v5 }
 0x2bd   : > { %5128 = vst [vmem:[#allocation4] sm:$0x1] %v5127_v10 }
 0x2be PF: > { %p6181_p11 = scmp.ne.s32.totalorder %s7420_s16, 1 }
 0x2bf   : > { %p5133_p12 = scmp.eq.s32.totalorder (!%p6181_p11), %s7416_s15, 0 }
 0x2c0   : > { %5132 = sbr.rel (%p6181_p11) target bundleno = 911 (0x38f), region = 60 }
 0x2c7   : > { %5138 = sbr.rel (!%p5133_p12) target bundleno = 865 (0x361), region = 64  ;;  %v5139_v63 = vld [vmem:[#allocation3] sm:$0x1] (%p5133_p12)  ;;  %v5150_v57 = vld [vmem:[#allocation4] sm:$0x1] (%p5133_p12)  ;;  %s7440_s9 = smov (%p5133_p12), 32  }
 0x2c8   : > { %5140 = vrot.lane.b32.xlu0 (%p5133_p12), %v5139_v63, %s7440_s9  ;;  %5151 = vrot.lane.b32.xlu1 (%p5133_p12), %v5150_v57, %s7440_s9  ;;  %s7441_s10 = smov (%p5133_p12), 64   ;;  %s7442_s24 = smov (%p5133_p12), 96   ;;  %v5164_v48 = vld [vmem:[#allocation9] sm:$0x1] (%p5133_p12)  ;;  %v5169_v55 = vld [vmem:[#allocation11] sm:$0x1] (%p5133_p12) }
 0x2cc   : > { %5143 = vrot.lane.b32.xlu0 (%p5133_p12), %v5139_v63, %s7441_s10  ;;  %5146 = vrot.lane.b32.xlu1 (%p5133_p12), %v5139_v63, %s7442_s24 }
 0x2d0   : > { %5154 = vrot.lane.b32.xlu0 %v5150_v57, %s7441_s10  ;;  %5157 = vrot.lane.b32.xlu1 %v5150_v57, %s7442_s24 }
 0x33a   : > { %v5141_v27 = vpop.permute.xlu0 %5140  ;;  %v5152_v19 = vpop.permute.xlu1 %5151 }
 0x33b   : > { %v5142_v39 = vadd.f32 %v5141_v27, %v5139_v63  ;;  %v5153_v9 = vadd.f32 %v5152_v19, %v5150_v57 }
 0x33e   : > { %v5144_v14 = vpop.permute.xlu0 %5143  ;;  %v5147_v4 = vpop.permute.xlu1 %5146 }
 0x33f   : > { %v5145_v45 = vadd.f32 %v5144_v14, %v5142_v39 }
 0x341   : > { %v5148_v41 = vadd.f32 %v5147_v4, %v5145_v45 }
 0x342   : > { %v5155_v15 = vpop.permute.xlu0 %5154  ;;  %v5158_v51 = vpop.permute.xlu1 %5157 }
 0x343   : > { %v5149_v22 = vmul.f32 0.00048828125, %v5148_v41  ;;  %v5156_v40 = vadd.f32 %v5155_v15, %v5153_v9 }
 0x345   : > { %v5159_v62 = vadd.f32 %v5158_v51, %v5156_v40  ;;  %v5161_v18 = vmul.f32 %v5149_v22, %v5149_v22 }
 0x347   : > { %v5160_v2 = vmul.f32 0.00048828125, %v5159_v62 }
 0x349   : > { %v5162_v34 = vsub.f32 %v5160_v2, %v5161_v18 }
 0x34b   : > { %v5163_v1 = vmax.f32 %v5162_v34, 0.0 }
 0x34d   : > { %v5165_v54 = vadd.f32 1e-05, %v5163_v1 }
 0x34f   : > { %7300 = vrsqrt.f32 %v5165_v54 }
 0x359   : > { %v7301_v20 = vpop.eup %7300 }
 0x35a   : > { %v5167_v16 = vmul.f32 %v7301_v20, %v5164_v48 }
 0x35c   : > { %5168 = vst [vmem:[#allocation5] sm:$0x1] %v5167_v16  ;;  %v5170_v17 = vmul.f32 %v5167_v16, %v5149_v22 }
 0x35e   : > { %v5171_v56 = vsub.f32 %v5169_v55, %v5170_v17 }
 0x360   : > { %5172 = vst [vmem:[#allocation6] sm:$0x1] %v5171_v56 }
 0x361 PF: > { %s5173_s16 = sshra.s32 %s5631_s11, 4 }
 0x362   : > { %s6183_s25 = sshll.u32 %s5173_s16, 3 }
 0x363   : > { %v9299_v42 = vld [vmem:[#allocation5] ss:$0 sm:$0xff]  ;;  %s9301_s7 = scalar_lea.vmem [#allocation2], %s6183_s25 }
 0x364   : > { %v5177_v30 = vld [vmem:[%s9301_s7] sm:$0xff]  ;;  %v5178_v49 = vld [vmem:[%s9301_s7 + $0x8] sm:$0xff]  ;;  %v5179_v50 = vld [vmem:[%s9301_s7 + $0x10] sm:$0xff] }
 0x365   : > { %v5193_v6 = vunpack.c.l.bf16 %v5177_v30  ;;  %v5194_v23 = vunpack.c.h.bf16 %v5177_v30  ;;  %v5195_v59 = vunpack.c.l.bf16 %v5178_v49  ;;  %v5196_v11 = vunpack.c.h.bf16 %v5178_v49  ;;  %v5180_v8 = vld [vmem:[%s9301_s7 + $0x18] sm:$0xff]  ;;  %v5181_v52 = vld [vmem:[%s9301_s7 + $0x20] sm:$0xff]  ;;  %v5182_v25 = vld [vmem:[%s9301_s7 + $0x28] sm:$0xff] }
 0x366   : > { %v5197_v38 = vunpack.c.l.bf16 %v5179_v50  ;;  %v5198_v47 = vunpack.c.h.bf16 %v5179_v50  ;;  %v5199_v29 = vunpack.c.l.bf16 %v5180_v8  ;;  %v5200_v32 = vunpack.c.h.bf16 %v5180_v8  ;;  %v5183_v27 = vld [vmem:[%s9301_s7 + $0x30] sm:$0xff]  ;;  %v5184_v45 = vld [vmem:[%s9301_s7 + $0x38] sm:$0xff]  ;;  %v5185_v50 = vld [vmem:[%s9301_s7 + $0x40] sm:$0xff] }
 0x367   : > { %v9307_v35 = vld [vmem:[#allocation6] ss:$0 sm:$0xff]  ;;  %v5232_v0 = vmul.f32 %v9299_v42, %v5193_v6  ;;  %v5233_v31 = vmul.f32 %v9299_v42, %v5194_v23  ;;  %v5234_v13 = vmul.f32 %v9299_v42, %v5195_v59  ;;  %v5235_v12 = vmul.f32 %v9299_v42, %v5196_v11 }
 0x368   : > { %v5236_v46 = vmul.f32 %v9299_v42, %v5197_v38  ;;  %v5237_v26 = vmul.f32 %v9299_v42, %v5198_v47  ;;  %v5238_v58 = vmul.f32 %v9299_v42, %v5199_v29  ;;  %v5239_v7 = vmul.f32 %v9299_v42, %v5200_v32  ;;  %v5186_v32 = vld [vmem:[%s9301_s7 + $0x48] sm:$0xff] }
 0x369   : > { %v5271_v53 = vadd.f32 %v9307_v35, %v5232_v0  ;;  %v5272_v24 = vadd.f32 %v9307_v35, %v5233_v31  ;;  %v5273_v3 = vadd.f32 %v9307_v35, %v5234_v13  ;;  %v5274_v33 = vadd.f32 %v9307_v35, %v5235_v12 }
 0x36a   : > { %v5275_v28 = vadd.f32 %v9307_v35, %v5236_v46  ;;  %v5276_v60 = vadd.f32 %v9307_v35, %v5237_v26  ;;  %v5277_v61 = vadd.f32 %v9307_v35, %v5238_v58  ;;  %v5278_v21 = vadd.f32 %v9307_v35, %v5239_v7  ;;  %v5187_v46 = vld [vmem:[%s9301_s7 + $0x50] sm:$0xff] }
 0x36b   : > { %v5303_v37 = vmax.f32 %v5271_v53, 0.0  ;;  %v5304_v43 = vmax.f32 %v5272_v24, 0.0  ;;  %v5305_v36 = vmax.f32 %v5273_v3, 0.0  ;;  %v5306_v5 = vmax.f32 %v5274_v33, 0.0  ;;  %v5188_v24 = vld [vmem:[%s9301_s7 + $0x58] sm:$0xff] }
 0x36c   : > { %v5307_v44 = vmax.f32 %v5275_v28, 0.0  ;;  %v5308_v10 = vmax.f32 %v5276_v60, 0.0  ;;  %v5309_v63 = vmax.f32 %v5277_v61, 0.0  ;;  %v5310_v57 = vmax.f32 %v5278_v21, 0.0 }
 0x36d   : > { %v6257_v19 = vpack.c.bf16 %v5304_v43, %v5303_v37  ;;  %v6262_v39 = vpack.c.bf16 %v5306_v5, %v5305_v36  ;;  %v5201_v14 = vunpack.c.l.bf16 %v5181_v52  ;;  %v5202_v4 = vunpack.c.h.bf16 %v5181_v52 }
 0x36e   : > { %v6267_v9 = vpack.c.bf16 %v5308_v10, %v5307_v44  ;;  %v6272_v41 = vpack.c.bf16 %v5310_v57, %v5309_v63  ;;  %v5203_v15 = vunpack.c.l.bf16 %v5182_v25  ;;  %v5204_v51 = vunpack.c.h.bf16 %v5182_v25 }
 0x36f   : > { %6258 = vst [vmem:[%s7606_s30] sm:$0xff] %v6257_v19   ;;  %6334 = vst [vmem:[%s7606_s30 + $0x8] sm:$0xff] %v6262_v39   ;;  %v5240_v22 = vmul.f32 %v9299_v42, %v5201_v14  ;;  %v5241_v40 = vmul.f32 %v9299_v42, %v5202_v4  ;;  %v5205_v62 = vunpack.c.l.bf16 %v5183_v27  ;;  %v5206_v18 = vunpack.c.h.bf16 %v5183_v27  ;;  %v5189_v27 = vld [vmem:[%s9301_s7 + $0x60] sm:$0xff] }
 0x370   : > { %6335 = vst [vmem:[%s7606_s30 + $0x10] sm:$0xff] %v6267_v9   ;;  %6336 = vst [vmem:[%s7606_s30 + $0x18] sm:$0xff] %v6272_v41   ;;  %v5242_v2 = vmul.f32 %v9299_v42, %v5203_v15  ;;  %v5243_v34 = vmul.f32 %v9299_v42, %v5204_v51  ;;  %v5207_v1 = vunpack.c.l.bf16 %v5184_v45  ;;  %v5208_v54 = vunpack.c.h.bf16 %v5184_v45 }
 0x371   : > { %v5279_v48 = vadd.f32 %v9307_v35, %v5240_v22  ;;  %v5280_v20 = vadd.f32 %v9307_v35, %v5241_v40  ;;  %v5244_v16 = vmul.f32 %v9299_v42, %v5205_v62  ;;  %v5245_v55 = vmul.f32 %v9299_v42, %v5206_v18  ;;  %v5190_v18 = vld [vmem:[%s9301_s7 + $0x68] sm:$0xff] }
 0x372   : > { %v5281_v17 = vadd.f32 %v9307_v35, %v5242_v2  ;;  %v5282_v56 = vadd.f32 %v9307_v35, %v5243_v34  ;;  %v5246_v30 = vmul.f32 %v9299_v42, %v5207_v1  ;;  %v5247_v49 = vmul.f32 %v9299_v42, %v5208_v54 }
 0x373   : > { %v5311_v6 = vmax.f32 %v5279_v48, 0.0  ;;  %v5312_v23 = vmax.f32 %v5280_v20, 0.0  ;;  %v5283_v59 = vadd.f32 %v9307_v35, %v5244_v16  ;;  %v5284_v11 = vadd.f32 %v9307_v35, %v5245_v55  ;;  %v5191_v48 = vld [vmem:[%s9301_s7 + $0x70] sm:$0xff] }
 0x374   : > { %v5313_v8 = vmax.f32 %v5281_v17, 0.0  ;;  %v5314_v38 = vmax.f32 %v5282_v56, 0.0  ;;  %v5285_v47 = vadd.f32 %v9307_v35, %v5246_v30  ;;  %v5286_v29 = vadd.f32 %v9307_v35, %v5247_v49  ;;  %v5192_v56 = vld [vmem:[%s9301_s7 + $0x78] sm:$0xff] }
 0x375   : > { %v6277_v0 = vpack.c.bf16 %v5312_v23, %v5311_v6  ;;  %v5315_v31 = vmax.f32 %v5283_v59, 0.0  ;;  %v5316_v13 = vmax.f32 %v5284_v11, 0.0  ;;  %v5209_v12 = vunpack.c.l.bf16 %v5185_v50 }
 0x376   : > { %v6282_v26 = vpack.c.bf16 %v5314_v38, %v5313_v8  ;;  %v5317_v58 = vmax.f32 %v5285_v47, 0.0  ;;  %v5318_v7 = vmax.f32 %v5286_v29, 0.0  ;;  %v5210_v53 = vunpack.c.h.bf16 %v5185_v50 }
 0x377   : > { %6337 = vst [vmem:[%s7606_s30 + $0x20] sm:$0xff] %v6277_v0   ;;  %v6287_v3 = vpack.c.bf16 %v5316_v13, %v5315_v31  ;;  %v5248_v33 = vmul.f32 %v9299_v42, %v5209_v12  ;;  %v5211_v28 = vunpack.c.l.bf16 %v5186_v32  ;;  %v5212_v60 = vunpack.c.h.bf16 %v5186_v32 }
 0x378   : > { %6338 = vst [vmem:[%s7606_s30 + $0x28] sm:$0xff] %v6282_v26   ;;  %v6292_v61 = vpack.c.bf16 %v5318_v7, %v5317_v58  ;;  %v5249_v21 = vmul.f32 %v9299_v42, %v5210_v53  ;;  %v5213_v52 = vunpack.c.l.bf16 %v5187_v46  ;;  %v5214_v37 = vunpack.c.h.bf16 %v5187_v46 }
 0x379   : > { %6339 = vst [vmem:[%s7606_s30 + $0x30] sm:$0xff] %v6287_v3   ;;  %v5287_v43 = vadd.f32 %v9307_v35, %v5248_v33  ;;  %v5250_v36 = vmul.f32 %v9299_v42, %v5211_v28  ;;  %v5251_v5 = vmul.f32 %v9299_v42, %v5212_v60  ;;  %v5215_v25 = vunpack.c.l.bf16 %v5188_v24 }
 0x37a   : > { %6340 = vst [vmem:[%s7606_s30 + $0x38] sm:$0xff] %v6292_v61   ;;  %v5288_v44 = vadd.f32 %v9307_v35, %v5249_v21  ;;  %v5252_v10 = vmul.f32 %v9299_v42, %v5213_v52  ;;  %v5253_v63 = vmul.f32 %v9299_v42, %v5214_v37  ;;  %v5216_v57 = vunpack.c.h.bf16 %v5188_v24 }
 0x37b   : > { %v5319_v19 = vmax.f32 %v5287_v43, 0.0  ;;  %v5289_v39 = vadd.f32 %v9307_v35, %v5250_v36  ;;  %v5290_v14 = vadd.f32 %v9307_v35, %v5251_v5  ;;  %v5254_v4 = vmul.f32 %v9299_v42, %v5215_v25 }
 0x37c   : > { %v5320_v45 = vmax.f32 %v5288_v44, 0.0  ;;  %v5291_v9 = vadd.f32 %v9307_v35, %v5252_v10  ;;  %v5292_v41 = vadd.f32 %v9307_v35, %v5253_v63  ;;  %v5255_v15 = vmul.f32 %v9299_v42, %v5216_v57 }
 0x37d   : > { %v5321_v51 = vmax.f32 %v5289_v39, 0.0  ;;  %v5322_v22 = vmax.f32 %v5290_v14, 0.0  ;;  %v5293_v40 = vadd.f32 %v9307_v35, %v5254_v4  ;;  %v5217_v62 = vunpack.c.l.bf16 %v5189_v27 }
 0x37e   : > { %v6297_v2 = vpack.c.bf16 %v5320_v45, %v5319_v19  ;;  %v5323_v34 = vmax.f32 %v5291_v9, 0.0  ;;  %v5324_v1 = vmax.f32 %v5292_v41, 0.0  ;;  %v5294_v54 = vadd.f32 %v9307_v35, %v5255_v15 }
 0x37f   : > { %v6302_v20 = vpack.c.bf16 %v5322_v22, %v5321_v51  ;;  %v5325_v16 = vmax.f32 %v5293_v40, 0.0  ;;  %v5218_v55 = vunpack.c.h.bf16 %v5189_v27  ;;  %v5256_v17 = vmul.f32 %v9299_v42, %v5217_v62 }
 0x380   : > { %6341 = vst [vmem:[%s7606_s30 + $0x40] sm:$0xff] %v6297_v2   ;;  %v6307_v30 = vpack.c.bf16 %v5324_v1, %v5323_v34  ;;  %v5326_v49 = vmax.f32 %v5294_v54, 0.0  ;;  %v5219_v50 = vunpack.c.l.bf16 %v5190_v18  ;;  %v5220_v6 = vunpack.c.h.bf16 %v5190_v18 }
 0x381   : > { %6342 = vst [vmem:[%s7606_s30 + $0x48] sm:$0xff] %v6302_v20   ;;  %v5257_v23 = vmul.f32 %v9299_v42, %v5218_v55  ;;  %v5295_v59 = vadd.f32 %v9307_v35, %v5256_v17  ;;  %v5221_v11 = vunpack.c.l.bf16 %v5191_v48  ;;  %v5222_v8 = vunpack.c.h.bf16 %v5191_v48 }
 0x382   : > { %6343 = vst [vmem:[%s7606_s30 + $0x50] sm:$0xff] %v6307_v30   ;;  %v6312_v38 = vpack.c.bf16 %v5326_v49, %v5325_v16  ;;  %v5258_v47 = vmul.f32 %v9299_v42, %v5219_v50  ;;  %v5259_v29 = vmul.f32 %v9299_v42, %v5220_v6  ;;  %v5223_v32 = vunpack.c.l.bf16 %v5192_v56 }
 0x383   : > { %v5296_v0 = vadd.f32 %v9307_v35, %v5257_v23  ;;  %v5327_v31 = vmax.f32 %v5295_v59, 0.0  ;;  %v5260_v13 = vmul.f32 %v9299_v42, %v5221_v11  ;;  %v5261_v12 = vmul.f32 %v9299_v42, %v5222_v8 }
 0x384   : > { %6344 = vst [vmem:[%s7606_s30 + $0x58] sm:$0xff] %v6312_v38   ;;  %v5297_v46 = vadd.f32 %v9307_v35, %v5258_v47  ;;  %v5298_v26 = vadd.f32 %v9307_v35, %v5259_v29  ;;  %v5224_v58 = vunpack.c.h.bf16 %v5192_v56  ;;  %v5262_v7 = vmul.f32 %v9299_v42, %v5223_v32 }
 0x385   : > { %v5328_v53 = vmax.f32 %v5296_v0, 0.0  ;;  %v5299_v24 = vadd.f32 %v9307_v35, %v5260_v13  ;;  %v5300_v3 = vadd.f32 %v9307_v35, %v5261_v12 }
 0x386   : > { %v5329_v33 = vmax.f32 %v5297_v46, 0.0  ;;  %v5330_v28 = vmax.f32 %v5298_v26, 0.0  ;;  %v5263_v60 = vmul.f32 %v9299_v42, %v5224_v58  ;;  %v5301_v61 = vadd.f32 %v9307_v35, %v5262_v7 }
 0x387   : > { %v6317_v21 = vpack.c.bf16 %v5328_v53, %v5327_v31  ;;  %v5331_v52 = vmax.f32 %v5299_v24, 0.0  ;;  %v5332_v37 = vmax.f32 %v5300_v3, 0.0 }
 0x388   : > { %v6322_v43 = vpack.c.bf16 %v5330_v28, %v5329_v33  ;;  %v5302_v36 = vadd.f32 %v9307_v35, %v5263_v60  ;;  %v5333_v5 = vmax.f32 %v5301_v61, 0.0 }
 0x389   : > { %6345 = vst [vmem:[%s7606_s30 + $0x60] sm:$0xff] %v6317_v21   ;;  %v6327_v25 = vpack.c.bf16 %v5332_v37, %v5331_v52 }
 0x38a   : > { %6346 = vst [vmem:[%s7606_s30 + $0x68] sm:$0xff] %v6322_v43   ;;  %v5334_v44 = vmax.f32 %v5302_v36, 0.0 }
 0x38b   : > { %6347 = vst [vmem:[%s7606_s30 + $0x70] sm:$0xff] %v6327_v25  }
 0x38c   : > { %v6332_v10 = vpack.c.bf16 %v5334_v44, %v5333_v5 }
 0x38e   : > { %6348 = vst [vmem:[%s7606_s30 + $0x78] sm:$0xff] %v6332_v10  }
 0x38f PF: > { %s16_s19 = sadd.s32 1, %s7432_s19   ;;  %s9502_s15 = smov %s7424_s17 }
 0x390   : > { %p13_p13 = scmp.ge.s32.totalorder %s16_s19, 6   ;;  %s9503_s16 = smov %s7428_s18 }
 0x391   : > { %s9504_s17 = smov %s9507_s26  ;;  %s9505_s18 = smov %s9511_s14 }
 0x392   :  { %15 = sbr.rel (!%p13_p13) target bundleno = 4 (0x4), region = 108 }
 0x399   :  { %5523 = vsyncpa [#allocation8], 1 }
 0x39a   :  { %5525 = vsyncpa [#allocation8 + $0x1], 1 }
 0x39b   :  { %5526 = vsyncpa [#allocation10], 1 }

// kernel: generator_forward.9
= control target key start
LH: loop header
LB: loop body
LE: loop exit
PB: predicated region body
PF: predicated region fallthrough
CT: control target
= control target key end

     0   :  { %s6715_s12 = smov 0   ;;  %s6717_s13 = smov 0   ;;  %s8536_s0 = inlined_call_operand.vmem [shape: bf16[2,34,34,32], index: 0, kind: input, shape index: {}]   ;;  %s8537_s1 = inlined_call_operand.vmem [shape: bf16[9,32,128], index: 1, kind: input, shape index: {}]   ;;  %s8538_s2 = inlined_call_operand.vmem [shape: f32[1,128], index: 2, kind: input, shape index: {}]   ;;  %s8539_s3 = inlined_call_operand.vmem [shape: bf16[2048,128], index: 3, kind: output, shape index: {}]  }
   0x1   :  { %s6719_s14 = smov 0   ;;  %s6721_s15 = smov 0  }
   0x2   :  { %s6723_s16 = smov 0  }
   0x3 LB: > { %s22_s17 = sadd.s32 1, %s6685_s14  ;;  %s25_s18 = sadd.s32 1, %s6689_s15  ;;  %s6693_s16 = sphi %s6723_s16, %s13_s16   ;;  %s6689_s15 = sphi %s6721_s15, %s8622_s15   ;;  %s6685_s14 = sphi %s6719_s14, %s8621_s14   ;;  %s6681_s13 = sphi %s6717_s13, %s8620_s13   ;;  %s6677_s12 = sphi %s6715_s12, %s8619_s12  }
   0x4   : > { %p23_p0 = scmp.ge.s32.totalorder %s22_s17, 4  ;;  %p4992_p1 = scmp.ge.s32.totalorder %s6693_s16, 1 }
   0x5   : > { %p153_p2 = scmp.lt.s32.totalorder %s6693_s16, 9 }
   0x6   : > { %s8624_s17 = smov (%p23_p0, %s22_s17), 0  ;;  %s8626_s18 = smov (!%p23_p0, %s25_s18), %s6689_s15 }
   0x7   : > { %p154_p3 = pnand %p4992_p1, %p153_p2  ;;  %p27_p4 = scmp.ge.s32.totalorder %s8626_s18, 2 }
   0x9   : > { %s8628_s18 = smov (%p27_p4, %s8626_s18), 0  ;;  %157 = sbr.rel (%p154_p3) target bundleno = 598 (0x256), region = 32 }
  0x10   : > { %v6476_v0 = vld [vmem:[%s8537_s1 + $0x10] sm:$0xff]   ;;  %p179_p5 = scmp.lt.s32.totalorder %s6681_s13, 1  ;;  %v6477_v1 = vld [vmem:[%s8537_s1 + $0x40] sm:$0xff]   ;;  %v6478_v2 = vld [vmem:[%s8537_s1 + $0x18] sm:$0xff]   ;;  %s5561_s28 = smul.u32 160, %s6677_s12  ;;  %vm663_vm2 = vcmask 261120  }
  0x11   : > { %5851 = vmatprep.subr.bf16.mxu1 %v6476_v0  ;;  %5995 = vmatprep.subr.bf16.mxu0 %v6477_v1  ;;  %v6479_v3 = vld [vmem:[%s8537_s1 + $0x48] sm:$0xff]   ;;  %v6767_v4 = vld [vmem:[%s8537_s1] sm:$0xff]   ;;  %vm243_vm0 = vsmask.f32 3328  ;;  %v6775_v5 = vld [vmem:[%s8537_s1 + $0x50] sm:$0xff]   ;;  %vm1198_vm4 = vcmask 1042432  }
  0x12   : > { %s180_s25 = scalar_select %p179_p5, %s6681_s13, 1  ;;  %5852 = vmatpush3.bf16.msra.mxu1 %v6476_v0  ;;  %5996 = vmatpush3.bf16.msra.mxu0 %v6477_v1  ;;  %vm244_vm1 = vsmask.f32 7440  ;;  %vm1199_vm5 = vcmask 1046532  }
  0x13   : > { %5853 = vmatprep.subr.bf16.mxu1 %v6478_v2  ;;  %5997 = vmatprep.subr.bf16.mxu0 %v6479_v3  ;;  %vm6795_vm3 = vmor %vm243_vm0, %vm244_vm1 }
  0x14   : > { %s6435_s29 = smul.u32 680, %s180_s25  ;;  %vm7020_vm6 = vmor %vm1198_vm4, %vm1199_vm5 }
  0x16   : > { %s183_s7 = scalar_lea.vmem %s8536_s0, %s6435_s29  ;;  %5854 = vmatpush3.bf16.msra.mxu1 %v6478_v2  ;;  %5998 = vmatpush3.bf16.msra.mxu0 %v6479_v3 }
  0x17   : > { %s6777_s10 = scalar_lea.vmem %s183_s7, %s5561_s28  ;;  %5887 = vmatprep.subr.bf16.mxu1 %v6767_v4  ;;  %6031 = vmatprep.subr.bf16.mxu0 %v6775_v5 }
  0x18   : > { %v199_v6 = vld [vmem:[%s6777_s10] sm:$0xf]  ;;  %v200_v7 = vld [vmem:[%s6777_s10 + $0x4] sm:$0xf]  ;;  %v201_v8 = vld [vmem:[%s6777_s10 + $0x8] sm:$0xf] }
  0x19   : > { %v247_v9 = vshrl.u32 %v199_v6, 16  ;;  %v250_v10 = vshll.u32 %v199_v6, 16  ;;  %v256_v11 = vshll.u32 %v200_v7, 16  ;;  %v260_v12 = vshrl.u32 %v200_v7, 16  ;;  %v5190_v15 = vld [vmem:[%s6777_s10 + $0x14] sm:$0xf] }
  0x1a   : > { %v266_v13 = vshll.u32 %v201_v8, 16  ;;  %v270_v14 = vshrl.u32 %v201_v8, 16  ;;  %v6786_v16 = vld [vmem:[%s6777_s10 + $0x18] sm:$0xf]  ;;  %v6789_v21 = vld [vmem:[%s6777_s10 + $0x1c] sm:$0xf] }
  0x1b   : > { %v249_v17 = vrot.slane %v247_v9, 4  ;;  %v252_v18 = vrot.slane %v250_v10, 5  ;;  %v258_v19 = vrot.slane %v256_v11, 5  ;;  %v262_v20 = vrot.slane %v260_v12, 4  ;;  %v202_v39 = vld [vmem:[%s6777_s10 + $0xc] sm:$0xf] }
  0x1c   : > { %v268_v22 = vrot.slane %v266_v13, 5  ;;  %v272_v23 = vrot.slane %v270_v14, 4  ;;  %v2026_v24 = vshrl.u32 %v5190_v15, 16  ;;  %v2029_v25 = vshll.u32 %v5190_v15, 16  ;;  %v235_v43 = vld [vmem:[%s6777_s10 + $0x10] sm:$0x1] }
  0x1d   : > { %v253_v26 = vor.u32 %v252_v18, %v249_v17  ;;  %v263_v27 = vor.u32 %v262_v20, %v258_v19  ;;  %v2035_v28 = vshll.u32 %v6786_v16, 16  ;;  %v2039_v29 = vshrl.u32 %v6786_v16, 16  ;;  %v6809_v56 = vld [vmem:[%s6777_s10 + $0x20] sm:$0xf]  ;;  %v6820_v61 = vld [vmem:[%s6777_s10 + $0x24] sm:$0x1] }
  0x1e   : > { %v273_v31 = vor.u32 %v272_v23, %v268_v22  ;;  %v2028_v32 = vrot.slane %v2026_v24, 4  ;;  %v2031_v33 = vrot.slane %v2029_v25, 5  ;;  %v2045_v34 = vshll.u32 %v6789_v21, 16  ;;  %v203_v2 = vld [vmem:[%s6777_s10 + $0x14] sm:$0xf] }
  0x1f   : > { %v254_v35 = vrot.slane %v253_v26, 4  ;;  %v264_v36 = vrot.slane %v263_v27, 4  ;;  %v2037_v37 = vrot.slane %v2035_v28, 5  ;;  %v2041_v38 = vrot.slane %v2039_v29, 4  ;;  %v204_v13 = vld [vmem:[%s6777_s10 + $0x18] sm:$0xf] }
  0x20   : > { %v2032_v40 = vor.u32 %v2031_v33, %v2028_v32  ;;  %v2047_v41 = vrot.slane %v2045_v34, 5  ;;  %v2049_v42 = vshrl.u32 %v6789_v21, 16  ;;  %v274_v46 = vrot.slane %v273_v31, 4  ;;  %v205_v18 = vld [vmem:[%s6777_s10 + $0x1c] sm:$0xf] }
  0x21   : > { %v259_v44 = vsel %vm6795_vm3, %v254_v35, %v258_v19  ;;  %v269_v45 = vsel %vm6795_vm3, %v264_v36, %v268_v22  ;;  %v2042_v47 = vor.u32 %v2041_v38, %v2037_v37  ;;  %v2736_v51 = vrot.slane %v6789_v21, 5  ;;  %v5195_v25 = vld [vmem:[%s6777_s10 + $0x28] sm:$0xf]  ;;  %v6845_v35 = vld [vmem:[%s6777_s10 + $0x2c] sm:$0xf] }
  0x22   : > { %v5004_v48 = vcombine.low %v259_v44, %v269_v45  ;;  %v2033_v49 = vrot.slane %v2032_v40, 4  ;;  %v2051_v50 = vrot.slane %v2049_v42, 4  ;;  %v276_v53 = vshll.u32 %v202_v39, 16  ;;  %v6484_v40 = vld [vmem:[%s8537_s1 + $0x8] sm:$0xff]   ;;  %v6851_v44 = vld [vmem:[%s6777_s10 + $0x30] sm:$0xf] }
  0x23   : > { %v2043_v52 = vrot.slane %v2042_v47, 4  ;;  %v280_v54 = vshrl.u32 %v202_v39, 16  ;;  %v286_v55 = vshll.u32 %v235_v43, 16  ;;  %v2733_v59 = vrot.slane %v6786_v16, 5 }
  0x24   : > { %5855 = vmatprep.mubr.msk.bf16.mxu1 %vm663_vm2, %v5004_v48  ;;  %v2038_v57 = vsel %vm6795_vm3, %v2033_v49, %v2037_v37  ;;  %v2052_v58 = vor.u32 %v2051_v50, %v2047_v41  ;;  %v6817_v60 = vrot.slane %v2736_v51, 4  ;;  %v278_v63 = vrot.slane %v276_v53, 5  ;;  %v206_v50 = vld [vmem:[%s6777_s10 + $0x20] sm:$0xf] }
  0x25   : > { %v2048_v62 = vsel %vm6795_vm3, %v2043_v52, %v2047_v41  ;;  %v282_v0 = vrot.slane %v280_v54, 4  ;;  %v288_v1 = vrot.slane %v286_v55, 5  ;;  %v2055_v7 = vshll.u32 %v6809_v56, 16 }
  0x26   : > { %v2053_v3 = vrot.slane %v2052_v58, 4  ;;  %v5234_v6 = vcombine.low %v2038_v57, %v2048_v62  ;;  %v2059_v8 = vshrl.u32 %v6809_v56, 16  ;;  %v279_v9 = vsel %vm6795_vm3, %v274_v46, %v278_v63  ;;  %v6483_v57 = vld [vmem:[%s8537_s1 + $0x58] sm:$0xff]   ;;  %v6487_v58 = vld [vmem:[%s8537_s1 + $0x20] sm:$0xff]  }
  0x27   : > { %v283_v10 = vor.u32 %v282_v0, %v278_v63  ;;  %v2065_v11 = vshll.u32 %v6820_v61, 16  ;;  %v2739_v12 = vrot.slane %v6809_v56, 5  ;;  %v2057_v14 = vrot.slane %v2055_v7, 5 }
  0x28   : > { %5999 = vmatprep.mubr.msk.bf16.mxu0 %vm663_vm2, %v5234_v6  ;;  %v2061_v15 = vrot.slane %v2059_v8, 4  ;;  %v2742_v17 = vrot.slane %v6820_v61, 5  ;;  %v291_v19 = vshrl.u32 %v203_v2, 16  ;;  %v294_v24 = vshll.u32 %v203_v2, 16 }
  0x29   : > { %v284_v20 = vrot.slane %v283_v10, 4  ;;  %v2067_v22 = vrot.slane %v2065_v11, 5  ;;  %v6837_v23 = vrot.slane %v2739_v12, 4  ;;  %v2058_v26 = vsel %vm6795_vm3, %v2053_v3, %v2057_v14 }
  0x2a   : > { %v2062_v27 = vor.u32 %v2061_v15, %v2057_v14  ;;  %v293_v28 = vrot.slane %v291_v19, 4  ;;  %v300_v29 = vshll.u32 %v204_v13, 16  ;;  %v296_v32 = vrot.slane %v294_v24, 5 }
  0x2b   : > { %v289_v31 = vsel %vm6795_vm3, %v284_v20, %v288_v1  ;;  %v304_v33 = vshrl.u32 %v204_v13, 16  ;;  %v310_v34 = vshll.u32 %v205_v18, 16  ;;  %v2070_v39 = vshrl.u32 %v5195_v25, 16  ;;  %v236_v1 = vld [vmem:[%s6777_s10 + $0x24] sm:$0x1] }
  0x2c   : > { %v5005_v36 = vcombine.low %v279_v9, %v289_v31  ;;  %v2063_v37 = vrot.slane %v2062_v27, 4  ;;  %v302_v38 = vrot.slane %v300_v29, 5  ;;  %v297_v41 = vor.u32 %v296_v32, %v293_v28  ;;  %v6873_v13 = vld [vmem:[%s6777_s10 + $0x34] sm:$0xf]  ;;  %v6880_v20 = vld [vmem:[%s8537_s1 + $0x60] sm:$0xff]  }
  0x2d   : > { %v306_v42 = vrot.slane %v304_v33, 4  ;;  %v312_v43 = vrot.slane %v310_v34, 5  ;;  %v2073_v45 = vshll.u32 %v5195_v25, 16  ;;  %v2072_v47 = vrot.slane %v2070_v39, 4  ;;  %v207_v32 = vld [vmem:[%s6777_s10 + $0x28] sm:$0xf] }
  0x2e   : > { %5856 = vmatmul.mubr.msk.bf16.vlgmr.msra.gmra.mrb[0].mxu1 %vm663_vm2, %v5005_v36  ;;  %v2068_v46 = vsel %vm6795_vm3, %v2063_v37, %v2067_v22  ;;  %v2079_v48 = vshll.u32 %v6845_v35, 16  ;;  %v2083_v49 = vshrl.u32 %v6845_v35, 16  ;;  %v298_v53 = vrot.slane %v297_v41, 4 }
  0x2f   : > { %5888 = vmatpush3.bf16.msra.mxu1 %v6767_v4  ;;  %v5235_v52 = vcombine.low %v2058_v26, %v2068_v46  ;;  %v307_v54 = vor.u32 %v306_v42, %v302_v38  ;;  %v2075_v55 = vrot.slane %v2073_v45, 5  ;;  %v2089_v0 = vshll.u32 %v6851_v44, 16  ;;  %v6883_v26 = vld [vmem:[%s6777_s10 + $0x38] sm:$0x1]  ;;  %v5200_v45 = vld [vmem:[%s6777_s10 + $0x3c] sm:$0xf] }
  0x30   : > { %v2081_v62 = vrot.slane %v2079_v48, 5  ;;  %v2085_v63 = vrot.slane %v2083_v49, 4  ;;  %v314_v2 = vshrl.u32 %v205_v18, 16  ;;  %5889 = vmatprep.subr.bf16.mxu1 %v6484_v40  ;;  %v303_v4 = vsel %vm6795_vm3, %v298_v53, %v302_v38  ;;  %v208_v38 = vld [vmem:[%s6777_s10 + $0x2c] sm:$0xf] }
  0x31   : > { %6000 = vmatmul.mubr.msk.bf16.vlgmr.msra.gmra.mrb[0].mxu0 %vm663_vm2, %v5235_v52  ;;  %v308_v3 = vrot.slane %v307_v54, 4  ;;  %v2076_v6 = vor.u32 %v2075_v55, %v2072_v47  ;;  %v320_v7 = vshll.u32 %v206_v50, 16  ;;  %v2091_v9 = vrot.slane %v2089_v0, 5  ;;  %v6903_v55 = vld [vmem:[%s6777_s10 + $0x40] sm:$0xf] }
  0x32   : > { %6032 = vmatpush3.bf16.msra.mxu0 %v6775_v5  ;;  %v2086_v8 = vor.u32 %v2085_v63, %v2081_v62  ;;  %v316_v10 = vrot.slane %v314_v2, 4  ;;  %v324_v11 = vshrl.u32 %v206_v50, 16  ;;  %v330_v19 = vshll.u32 %v236_v1, 16 }
  0x33   : > { %v313_v14 = vsel %vm6795_vm3, %v308_v3, %v312_v43  ;;  %v2077_v15 = vrot.slane %v2076_v6, 4  ;;  %v322_v18 = vrot.slane %v320_v7, 5  ;;  %6033 = vmatprep.subr.bf16.mxu0 %v6483_v57  ;;  %5890 = vmatpush3.bf16.msra.mxu1 %v6484_v40  ;;  %v2093_v29 = vshrl.u32 %v6851_v44, 16 }
  0x34   : > { %v5006_v5 = vcombine.low %v303_v4, %v313_v14  ;;  %v2087_v22 = vrot.slane %v2086_v8, 4  ;;  %v317_v24 = vor.u32 %v316_v10, %v312_v43  ;;  %v326_v25 = vrot.slane %v324_v11, 4  ;;  %5923 = vmatprep.subr.bf16.mxu1 %v6487_v58  ;;  %v209_v43 = vld [vmem:[%s6777_s10 + $0x30] sm:$0xf]  ;;  %v6911_v11 = vld [vmem:[%s6777_s10 + $0x44] sm:$0xf] }
  0x35   : > { %v2082_v27 = vsel %vm6795_vm3, %v2077_v15, %v2081_v62  ;;  %v332_v28 = vrot.slane %v330_v19, 5  ;;  %v2099_v31 = vshll.u32 %v6873_v13, 16  ;;  %v2103_v37 = vshrl.u32 %v6873_v13, 16 }
  0x36   : > { %5859 = vmatprep.mubr.msk.bf16.mxu1 %vm663_vm2, %v5006_v5  ;;  %v2092_v33 = vsel %vm6795_vm3, %v2087_v22, %v2091_v9  ;;  %v318_v34 = vrot.slane %v317_v24, 4  ;;  %v327_v36 = vor.u32 %v326_v25, %v322_v18  ;;  %6034 = vmatpush3.bf16.msra.mxu0 %v6483_v57  ;;  %v2095_v40 = vrot.slane %v2093_v29, 4  ;;  %v210_v24 = vld [vmem:[%s6777_s10 + $0x34] sm:$0xf] }
  0x37   : > { %v5236_v39 = vcombine.low %v2082_v27, %v2092_v33  ;;  %v2101_v41 = vrot.slane %v2099_v31, 5  ;;  %v2109_v42 = vshll.u32 %v6883_v26, 16  ;;  %6067 = vmatprep.subr.bf16.mxu0 %v6880_v20  ;;  %v2105_v48 = vrot.slane %v2103_v37, 4 }
  0x38   : > { %v323_v46 = vsel %vm6795_vm3, %v318_v34, %v322_v18  ;;  %v328_v47 = vrot.slane %v327_v36, 4  ;;  %v335_v49 = vshrl.u32 %v207_v32, 16  ;;  %v2096_v50 = vor.u32 %v2095_v40, %v2091_v9 }
  0x39   : > { %6003 = vmatprep.mubr.msk.bf16.mxu0 %vm663_vm2, %v5236_v39  ;;  %v2111_v52 = vrot.slane %v2109_v42, 5  ;;  %v338_v53 = vshll.u32 %v207_v32, 16  ;;  %v344_v54 = vshll.u32 %v208_v38, 16  ;;  %v2106_v58 = vor.u32 %v2105_v48, %v2101_v41 }
  0x3a   : > { %v333_v57 = vsel %vm6795_vm3, %v328_v47, %v332_v28  ;;  %v337_v62 = vrot.slane %v335_v49, 4  ;;  %v348_v63 = vshrl.u32 %v208_v38, 16  ;;  %v2097_v1 = vrot.slane %v2096_v50, 4  ;;  %v237_v38 = vld [vmem:[%s6777_s10 + $0x38] sm:$0x1] }
  0x3b   : > { %v5007_v0 = vcombine.low %v323_v46, %v333_v57  ;;  %v340_v2 = vrot.slane %v338_v53, 5  ;;  %v346_v4 = vrot.slane %v344_v54, 5  ;;  %v2107_v3 = vrot.slane %v2106_v58, 4  ;;  %v6926_v47 = vld [vmem:[%s6777_s10 + $0x48] sm:$0xf] }
  0x3c   : > { %v350_v6 = vrot.slane %v348_v63, 4  ;;  %v354_v7 = vshll.u32 %v209_v43, 16  ;;  %v2114_v8 = vshrl.u32 %v5200_v45, 16  ;;  %v2102_v9 = vsel %vm6795_vm3, %v2097_v1, %v2101_v41  ;;  %v6929_v57 = vld [vmem:[%s6777_s10 + $0x4c] sm:$0x1] }
  0x3d   : > { %5860 = vmatmul.mubr.msk.bf16.gmra.mrb[4].mxu1 %vm663_vm2, %v5007_v0  ;;  %v341_v10 = vor.u32 %v340_v2, %v337_v62  ;;  %v2117_v14 = vshll.u32 %v5200_v45, 16  ;;  %v2123_v15 = vshll.u32 %v6903_v55, 16  ;;  %v2112_v18 = vsel %vm6795_vm3, %v2107_v3, %v2111_v52  ;;  %v6938_v2 = vld [vmem:[%s6777_s10 + $0x3c] sm:$0xf] }
  0x3e   : > { %v351_v19 = vor.u32 %v350_v6, %v346_v4  ;;  %v356_v5 = vrot.slane %v354_v7, 5  ;;  %v2116_v22 = vrot.slane %v2114_v8, 4  ;;  %v5237_v25 = vcombine.low %v2102_v9, %v2112_v18 }
  0x3f   : > { %v342_v27 = vrot.slane %v341_v10, 4  ;;  %v2119_v28 = vrot.slane %v2117_v14, 5  ;;  %v2125_v29 = vrot.slane %v2123_v15, 5  ;;  %v2127_v32 = vshrl.u32 %v6903_v55, 16  ;;  %v6942_v15 = vld [vmem:[%s6777_s10 + $0x40] sm:$0xf] }
  0x40   : > { %v352_v31 = vrot.slane %v351_v19, 4  ;;  %v2133_v33 = vshll.u32 %v6911_v11, 16  ;;  %v358_v34 = vshrl.u32 %v209_v43, 16  ;;  %6004 = vmatmul.mubr.msk.bf16.gmra.mrb[4].mxu0 %vm663_vm2, %v5237_v25  ;;  %v364_v39 = vshll.u32 %v210_v24, 16  ;;  %v5205_v25 = vld [vmem:[%s6777_s10 + $0x50] sm:$0xf] }
  0x41   : > { %v347_v36 = vsel %vm6795_vm3, %v342_v27, %v346_v4  ;;  %v2120_v37 = vor.u32 %v2119_v28, %v2116_v22  ;;  %v368_v40 = vshrl.u32 %v210_v24, 16  ;;  %v2129_v42 = vrot.slane %v2127_v32, 4  ;;  %v6949_v22 = vld [vmem:[%s6777_s10 + $0x44] sm:$0xf] }
  0x42   : > { %v357_v41 = vsel %vm6795_vm3, %v352_v31, %v356_v5  ;;  %v2135_v45 = vrot.slane %v2133_v33, 5  ;;  %v360_v46 = vrot.slane %v358_v34, 4  ;;  %v366_v49 = vrot.slane %v364_v39, 5 }
  0x43   : > { %v5008_v43 = vcombine.low %v347_v36, %v357_v41  ;;  %v2121_v48 = vrot.slane %v2120_v37, 4  ;;  %v370_v50 = vrot.slane %v368_v40, 4  ;;  %v2130_v52 = vor.u32 %v2129_v42, %v2125_v29  ;;  %v6957_v37 = vld [vmem:[%s6777_s10 + $0x54] sm:$0xf]  ;;  %v6964_v42 = vld [vmem:[%s6777_s10 + $0x58] sm:$0xf] }
  0x44   : > { %v361_v53 = vor.u32 %v360_v46, %v356_v5  ;;  %v374_v54 = vshll.u32 %v237_v38, 16  ;;  %v2137_v58 = vshrl.u32 %v6911_v11, 16  ;;  %v2143_v0 = vshll.u32 %v6926_v47, 16 }
  0x45   : > { %5863 = vmatprep.mubr.msk.bf16.mxu1 %vm663_vm2, %v5008_v43  ;;  %v2126_v62 = vsel %vm6795_vm3, %v2121_v48, %v2125_v29  ;;  %v371_v63 = vor.u32 %v370_v50, %v366_v49  ;;  %v2147_v1 = vshrl.u32 %v6926_v47, 16  ;;  %v2131_v4 = vrot.slane %v2130_v52, 4 }
  0x46   : > { %v362_v3 = vrot.slane %v361_v53, 4  ;;  %v376_v6 = vrot.slane %v374_v54, 5  ;;  %v2139_v7 = vrot.slane %v2137_v58, 4  ;;  %v2145_v9 = vrot.slane %v2143_v0, 5 }
  0x47   : > { %v372_v8 = vrot.slane %v371_v63, 4  ;;  %v2149_v10 = vrot.slane %v2147_v1, 4  ;;  %v2153_v14 = vshll.u32 %v6929_v57, 16  ;;  %v2136_v18 = vsel %vm6795_vm3, %v2131_v4, %v2135_v45 }
  0x48   : > { %v367_v19 = vsel %vm6795_vm3, %v362_v3, %v366_v49  ;;  %v2140_v5 = vor.u32 %v2139_v7, %v2135_v45  ;;  %v379_v24 = vshrl.u32 %v6938_v2, 16  ;;  %v5238_v27 = vcombine.low %v2126_v62, %v2136_v18  ;;  %v6970_v49 = vld [vmem:[%s6777_s10 + $0x48] sm:$0xf] }
  0x49   : > { %v377_v28 = vsel %vm6795_vm3, %v372_v8, %v376_v6  ;;  %v2150_v29 = vor.u32 %v2149_v10, %v2145_v9  ;;  %v2155_v31 = vrot.slane %v2153_v14, 5  ;;  %v382_v36 = vshll.u32 %v6938_v2, 16 }
  0x4a   : > { %v5009_v32 = vcombine.low %v367_v19, %v377_v28  ;;  %v2141_v33 = vrot.slane %v2140_v5, 4  ;;  %v381_v34 = vrot.slane %v379_v24, 4  ;;  %6007 = vmatprep.mubr.msk.bf16.mxu0 %vm663_vm2, %v5238_v27  ;;  %v388_v39 = vshll.u32 %v6942_v15, 16 }
  0x4b   : > { %v2151_v38 = vrot.slane %v2150_v29, 4  ;;  %v392_v40 = vshrl.u32 %v6942_v15, 16  ;;  %v398_v41 = vshll.u32 %v6949_v22, 16  ;;  %v384_v46 = vrot.slane %v382_v36, 5 }
  0x4c   : > { %5864 = vmatmul.mubr.msk.bf16.gmra.mrb[8].mxu1 %vm663_vm2, %v5009_v32  ;;  %v2146_v45 = vsel %vm6795_vm3, %v2141_v33, %v2145_v9  ;;  %v2158_v43 = vshrl.u32 %v5205_v25, 16  ;;  %v2161_v48 = vshll.u32 %v5205_v25, 16  ;;  %v390_v52 = vrot.slane %v388_v39, 5  ;;  %v238_v9 = vld [vmem:[%s6777_s10 + $0x4c] sm:$0x1] }
  0x4d   : > { %v2156_v50 = vsel %vm6795_vm3, %v2151_v38, %v2155_v31  ;;  %v394_v53 = vrot.slane %v392_v40, 4  ;;  %v400_v54 = vrot.slane %v398_v41, 5  ;;  %v385_v62 = vor.u32 %v384_v46, %v381_v34  ;;  %v6984_v31 = vld [vmem:[%s6777_s10 + $0x5c] sm:$0xf]  ;;  %v6990_v38 = vld [vmem:[%s6777_s10 + $0x60] sm:$0x1] }
  0x4e   : > { %v5239_v58 = vcombine.low %v2146_v45, %v2156_v50  ;;  %v2160_v63 = vrot.slane %v2158_v43, 4  ;;  %v2163_v0 = vrot.slane %v2161_v48, 5  ;;  %v2167_v4 = vshll.u32 %v6957_v37, 16  ;;  %v6996_v46 = vld [vmem:[%s6777_s10 + $0x50] sm:$0xf] }
  0x4f   : > { %v395_v1 = vor.u32 %v394_v53, %v390_v52  ;;  %v2171_v3 = vshrl.u32 %v6957_v37, 16  ;;  %v2177_v6 = vshll.u32 %v6964_v42, 16  ;;  %v386_v7 = vrot.slane %v385_v62, 4 }
  0x50   : > { %6008 = vmatmul.mubr.msk.bf16.gmra.mrb[8].mxu0 %vm663_vm2, %v5239_v58  ;;  %v2164_v8 = vor.u32 %v2163_v0, %v2160_v63  ;;  %v402_v10 = vshrl.u32 %v6949_v22, 16  ;;  %v408_v14 = vshll.u32 %v6970_v49, 16  ;;  %v2169_v19 = vrot.slane %v2167_v4, 5  ;;  %v7005_v4 = vld [vmem:[%s6777_s10 + $0x54] sm:$0xf] }
  0x51   : > { %v396_v18 = vrot.slane %v395_v1, 4  ;;  %v2173_v5 = vrot.slane %v2171_v3, 4  ;;  %v2179_v24 = vrot.slane %v2177_v6, 5  ;;  %v391_v25 = vsel %vm6795_vm3, %v386_v7, %v390_v52 }
  0x52   : > { %v2165_v27 = vrot.slane %v2164_v8, 4  ;;  %v404_v28 = vrot.slane %v402_v10, 4  ;;  %v410_v29 = vrot.slane %v408_v14, 5  ;;  %v412_v34 = vshrl.u32 %v6970_v49, 16  ;;  %v7011_v10 = vld [vmem:[%s6777_s10 + $0x58] sm:$0xf] }
  0x53   : > { %v401_v32 = vsel %vm6795_vm3, %v396_v18, %v400_v54  ;;  %v2174_v33 = vor.u32 %v2173_v5, %v2169_v19  ;;  %v418_v36 = vshll.u32 %v238_v9, 16  ;;  %v2181_v45 = vshrl.u32 %v6964_v42, 16  ;;  %v5268_v14 = vld [vmem:[%s6777_s10 + $0x14] sm:$0xe] }
  0x54   : > { %v5010_v39 = vcombine.low %v391_v25, %v401_v32  ;;  %v2170_v40 = vsel %vm6795_vm3, %v2165_v27, %v2169_v19  ;;  %v405_v41 = vor.u32 %v404_v28, %v400_v54  ;;  %v414_v48 = vrot.slane %v412_v34, 4 }
  0x55   : > { %v2175_v43 = vrot.slane %v2174_v33, 4  ;;  %v420_v50 = vrot.slane %v418_v36, 5  ;;  %v2187_v52 = vshll.u32 %v6984_v31, 16  ;;  %v2183_v58 = vrot.slane %v2181_v45, 4 }
  0x56   : > { %5867 = vmatprep.mubr.msk.bf16.mxu1 %vm663_vm2, %v5010_v39  ;;  %v406_v53 = vrot.slane %v405_v41, 4  ;;  %v2191_v62 = vshrl.u32 %v6984_v31, 16  ;;  %v2197_v63 = vshll.u32 %v6990_v38, 16  ;;  %v415_v0 = vor.u32 %v414_v48, %v410_v29  ;;  %v239_v41 = vld [vmem:[%s6777_s10 + $0x60] sm:$0x1] }
  0x57   : > { %v2180_v54 = vsel %vm6795_vm3, %v2175_v43, %v2179_v24  ;;  %v2189_v1 = vrot.slane %v2187_v52, 5  ;;  %v423_v3 = vshrl.u32 %v6996_v46, 16  ;;  %v2184_v8 = vor.u32 %v2183_v58, %v2179_v24  ;;  %v5215_v24 = vld [vmem:[%s6777_s10 + $0x78] sm:$0xf] }
  0x58   : > { %v5240_v6 = vcombine.low %v2170_v40, %v2180_v54  ;;  %v411_v7 = vsel %vm6795_vm3, %v406_v53, %v410_v29  ;;  %v2193_v9 = vrot.slane %v2191_v62, 4  ;;  %v416_v18 = vrot.slane %v415_v0, 4  ;;  %v7025_v29 = vld [vmem:[%s6777_s10 + $0x5c] sm:$0xf] }
  0x59   : > { %v2199_v19 = vrot.slane %v2197_v63, 5  ;;  %v425_v5 = vrot.slane %v423_v3, 4  ;;  %v426_v25 = vshll.u32 %v6996_v46, 16  ;;  %v2185_v27 = vrot.slane %v2184_v8, 4  ;;  %v7045_v3 = vld [vmem:[%s6777_s10 + $0x64] sm:$0xf] }
  0x5a   : > { %6011 = vmatprep.mubr.msk.bf16.mxu0 %vm663_vm2, %v5240_v6  ;;  %v2194_v28 = vor.u32 %v2193_v9, %v2189_v1  ;;  %v432_v32 = vshll.u32 %v7005_v4, 16  ;;  %v436_v33 = vshrl.u32 %v7005_v4, 16  ;;  %v421_v34 = vsel %vm6795_vm3, %v416_v18, %v420_v50 }
  0x5b   : > { %v428_v36 = vrot.slane %v426_v25, 5  ;;  %v442_v39 = vshll.u32 %v7011_v10, 16  ;;  %v5276_v40 = vrot.slane %v5268_v14, 9  ;;  %v5011_v45 = vcombine.low %v411_v7, %v421_v34  ;;  %v7049_v14 = vld [vmem:[%s6777_s10 + $0x68] sm:$0xf] }
  0x5c   : > { %v2190_v43 = vsel %vm6795_vm3, %v2185_v27, %v2189_v1  ;;  %v2195_v48 = vrot.slane %v2194_v28, 4  ;;  %v434_v52 = vrot.slane %v432_v32, 5  ;;  %v438_v58 = vrot.slane %v436_v33, 4  ;;  %v5269_v33 = vld [vmem:[%s6777_s10 + $0x28] sm:$0xe] }
  0x5d   : > { %v429_v53 = vor.u32 %v428_v36, %v425_v5  ;;  %v444_v62 = vrot.slane %v442_v39, 5  ;;  %v2734_v50 = vsel %vm7020_vm6, %v5276_v40, %v2733_v59  ;;  %5868 = vmatmul.mubr.msk.bf16.gmra.mrb[12].mxu1 %vm663_vm2, %v5011_v45  ;;  %v2735_v54 = vrot.slane %v2733_v59, 4  ;;  %v7056_v5 = vld [vmem:[%s6777_s10 + $0x6c] sm:$0xf] }
  0x5e   : > { %v2200_v63 = vsel %vm6795_vm3, %v2195_v48, %v2199_v19  ;;  %v446_v0 = vshrl.u32 %v7011_v10, 16  ;;  %v452_v1 = vshll.u32 %v7025_v29, 16  ;;  %v439_v8 = vor.u32 %v438_v58, %v434_v52 }
  0x5f   : > { %v5241_v6 = vcombine.low %v2190_v43, %v2200_v63  ;;  %v430_v7 = vrot.slane %v429_v53, 4  ;;  %v456_v9 = vshrl.u32 %v7025_v29, 16  ;;  %v2737_v16 = vsel %vm7020_vm6, %v2735_v54, %v2736_v51  ;;  %v240_v53 = vld [vmem:[%s6777_s10 + $0x74] sm:$0x1] }
  0x60   : > { %v448_v59 = vrot.slane %v446_v0, 4  ;;  %v454_v18 = vrot.slane %v452_v1, 5  ;;  %v462_v19 = vshll.u32 %v239_v41, 16  ;;  %v440_v27 = vrot.slane %v439_v8, 4 }
  0x61   : > { %6012 = vmatmul.mubr.msk.bf16.gmra.mrb[12].mxu0 %vm663_vm2, %v5241_v6  ;;  %v435_v25 = vsel %vm6795_vm3, %v430_v7, %v434_v52  ;;  %v5288_v28 = vcombine.low %v2734_v50, %v2737_v16  ;;  %v458_v32 = vrot.slane %v456_v9, 4  ;;  %v2740_v51 = vsel %vm7020_vm6, %v6817_v60, %v2739_v12  ;;  %v7079_v12 = vld [vmem:[%s6777_s10 + $0x70] sm:$0xf]  ;;  %v6488_v7 = vld [vmem:[%s8537_s1 + $0x68] sm:$0xff]  }
  0x62   : > { %v449_v34 = vor.u32 %v448_v59, %v444_v62  ;;  %v464_v21 = vrot.slane %v462_v19, 5  ;;  %v2743_v36 = vsel %vm7020_vm6, %v6837_v23, %v2742_v17  ;;  %v445_v39 = vsel %vm6795_vm3, %v440_v27, %v444_v62  ;;  %v7100_v27 = vld [vmem:[%s6777_s10 + $0x78] sm:$0xf] }
  0x63   : > { %6035 = vmatprep.mubr.msk.bf16.mxu0 %vm663_vm2, %v5288_v28  ;;  %v459_v40 = vor.u32 %v458_v32, %v454_v18  ;;  %v5289_v41 = vcombine.low %v2740_v51, %v2743_v36  ;;  %v467_v56 = vshrl.u32 %v7045_v3, 16  ;;  %v5012_v45 = vcombine.low %v435_v25, %v445_v39 }
  0x64   : > { %v450_v43 = vrot.slane %v449_v34, 4  ;;  %v470_v60 = vshll.u32 %v7045_v3, 16  ;;  %v476_v61 = vshll.u32 %v7049_v14, 16  ;;  %v480_v17 = vshrl.u32 %v7049_v14, 16  ;;  %v7106_v34 = vld [vmem:[%s6777_s10 + $0x7c] sm:$0xf] }
  0x65   : > { %v460_v48 = vrot.slane %v459_v40, 4  ;;  %v469_v52 = vrot.slane %v467_v56, 4  ;;  %v486_v23 = vshll.u32 %v7056_v5, 16  ;;  %5871 = vmatprep.mubr.msk.bf16.mxu1 %vm663_vm2, %v5012_v45  ;;  %v5277_v63 = vrot.slane %v5269_v33, 9 }
  0x66   : > { %v455_v58 = vsel %vm6795_vm3, %v450_v43, %v454_v18  ;;  %v472_v62 = vrot.slane %v470_v60, 5  ;;  %v478_v50 = vrot.slane %v476_v61, 5  ;;  %v482_v0 = vrot.slane %v480_v17, 4  ;;  %v7118_v43 = vld [vmem:[%s6777_s10 + $0x80] sm:$0xf] }
  0x67   : > { %v465_v54 = vsel %vm6795_vm3, %v460_v48, %v464_v21  ;;  %v488_v1 = vrot.slane %v486_v23, 5  ;;  %v2746_v6 = vrot.slane %v6845_v35, 5  ;;  %v2749_v16 = vrot.slane %v6851_v44, 5 }
  0x68   : > { %v5013_v8 = vcombine.low %v455_v58, %v465_v54  ;;  %v473_v9 = vor.u32 %v472_v62, %v469_v52  ;;  %v490_v59 = vshrl.u32 %v7056_v5, 16  ;;  %v483_v18 = vor.u32 %v482_v0, %v478_v50  ;;  %v5270_v62 = vld [vmem:[%s6777_s10 + $0x3c] sm:$0xe] }
  0x69   : > { %6036 = vmatmul.mubr.msk.bf16.vlgmr.msra.gmra.mrb[0].mxu0 %vm663_vm2, %v5289_v41  ;;  %v2747_v19 = vsel %vm7020_vm6, %v5277_v63, %v2746_v6  ;;  %v2748_v25 = vrot.slane %v2746_v6, 4  ;;  %v496_v35 = vshll.u32 %v7079_v12, 16  ;;  %v500_v32 = vshrl.u32 %v7079_v12, 16 }
  0x6a   : > { %5872 = vmatmul.mubr.msk.bf16.gmra.mrb[16].mxu1 %vm663_vm2, %v5013_v8  ;;  %6068 = vmatpush3.bf16.msra.mxu0 %v6880_v20  ;;  %v474_v28 = vrot.slane %v473_v9, 4  ;;  %v492_v44 = vrot.slane %v490_v59, 4  ;;  %v506_v33 = vshll.u32 %v240_v53, 16  ;;  %v484_v21 = vrot.slane %v483_v18, 4  ;;  %v7113_v20 = vld [vmem:[%s8537_s1 + $0x70] sm:$0xff]  }
  0x6b   : > { %v2750_v51 = vsel %vm7020_vm6, %v2748_v25, %v2749_v16  ;;  %v498_v36 = vrot.slane %v496_v35, 5  ;;  %v2751_v39 = vrot.slane %v2749_v16, 4  ;;  %6069 = vmatprep.subr.bf16.mxu0 %v6488_v7  ;;  %v502_v45 = vrot.slane %v500_v32, 4 }
  0x6c   : > { %v479_v40 = vsel %vm6795_vm3, %v474_v28, %v478_v50  ;;  %v5290_v41 = vcombine.low %v2747_v19, %v2750_v51  ;;  %v493_v56 = vor.u32 %v492_v44, %v488_v1  ;;  %v489_v60 = vsel %vm6795_vm3, %v484_v21, %v488_v1  ;;  %v7145_v28 = vld [vmem:[%s6777_s10 + $0x88] sm:$0x1] }
  0x6d   : > { %v508_v61 = vrot.slane %v506_v33, 5  ;;  %v2752_v48 = vrot.slane %v6873_v13, 5  ;;  %v2755_v52 = vrot.slane %v6883_v26, 5  ;;  %v5014_v17 = vcombine.low %v479_v40, %v489_v60  ;;  %v7132_v13 = vld [vmem:[%s6777_s10 + $0x84] sm:$0xf] }
  0x6e   : > { %6039 = vmatprep.mubr.msk.bf16.mxu0 %vm663_vm2, %v5290_v41  ;;  %v494_v23 = vrot.slane %v493_v56, 4  ;;  %v503_v53 = vor.u32 %v502_v45, %v498_v36  ;;  %v511_v58 = vshrl.u32 %v7100_v27, 16  ;;  %6070 = vmatpush3.bf16.msra.mxu0 %v6488_v7  ;;  %v514_v54 = vshll.u32 %v7100_v27, 16 }
  0x6f   : > { %v2753_v50 = vsel %vm7020_vm6, %v2751_v39, %v2752_v48  ;;  %v2754_v63 = vrot.slane %v2752_v48, 4  ;;  %v520_v0 = vshll.u32 %v7106_v34, 16  ;;  %6103 = vmatprep.subr.bf16.mxu0 %v7113_v20  ;;  %5875 = vmatprep.mubr.msk.bf16.mxu1 %vm663_vm2, %v5014_v17  ;;  %v524_v7 = vshrl.u32 %v7106_v34, 16  ;;  %v7161_v17 = vld [vmem:[%s6777_s10 + $0x90] sm:$0xf] }
  0x70   : > { %v499_v26 = vsel %vm6795_vm3, %v494_v23, %v498_v36  ;;  %v504_v1 = vrot.slane %v503_v53, 4  ;;  %v513_v6 = vrot.slane %v511_v58, 4  ;;  %v516_v9 = vrot.slane %v514_v54, 5 }
  0x71   : > { %v2756_v8 = vsel %vm7020_vm6, %v2754_v63, %v2755_v52  ;;  %v522_v16 = vrot.slane %v520_v0, 5  ;;  %v530_v59 = vshll.u32 %v7118_v43, 16  ;;  %v526_v25 = vrot.slane %v524_v7, 4 }
  0x72   : > { %v509_v18 = vsel %vm6795_vm3, %v504_v1, %v508_v61  ;;  %v5291_v19 = vcombine.low %v2753_v50, %v2756_v8  ;;  %v5278_v35 = vrot.slane %v5270_v62, 9  ;;  %v517_v32 = vor.u32 %v516_v9, %v513_v6  ;;  %v7172_v8 = vld [vmem:[%s6777_s10 + $0x94] sm:$0xf] }
  0x73   : > { %v5015_v44 = vcombine.low %v499_v26, %v509_v18  ;;  %v532_v33 = vrot.slane %v530_v59, 5  ;;  %v2759_v21 = vrot.slane %v6903_v55, 5  ;;  %v527_v51 = vor.u32 %v526_v25, %v522_v16  ;;  %v7157_v55 = vld [vmem:[%s6777_s10 + $0x8c] sm:$0xf] }
  0x74   : > { %6040 = vmatmul.mubr.msk.bf16.gmra.mrb[4].mxu0 %vm663_vm2, %v5291_v19  ;;  %v2762_v36 = vrot.slane %v6911_v11, 5  ;;  %v534_v39 = vshrl.u32 %v7118_v43, 16  ;;  %v540_v40 = vshll.u32 %v7132_v13, 16  ;;  %v518_v41 = vrot.slane %v517_v32, 4 }
  0x75   : > { %5876 = vmatmul.mubr.msk.bf16.gmra.mrb[20].mxu1 %vm663_vm2, %v5015_v44  ;;  %v2760_v56 = vsel %vm7020_vm6, %v5278_v35, %v2759_v21  ;;  %v2761_v45 = vrot.slane %v2759_v21, 4  ;;  %v544_v60 = vshrl.u32 %v7132_v13, 16  ;;  %v528_v61 = vrot.slane %v527_v51, 4  ;;  %v5271_v35 = vld [vmem:[%s6777_s10 + $0x50] sm:$0xe] }
  0x76   : > { %v536_v48 = vrot.slane %v534_v39, 4  ;;  %v542_v52 = vrot.slane %v540_v40, 5  ;;  %v550_v11 = vshll.u32 %v7145_v28, 16  ;;  %v523_v23 = vsel %vm6795_vm3, %v518_v41, %v522_v16  ;;  %v7191_v41 = vld [vmem:[%s6777_s10 + $0x98] sm:$0xf] }
  0x77   : > { %v2763_v53 = vsel %vm7020_vm6, %v2761_v45, %v2762_v36  ;;  %v546_v58 = vrot.slane %v544_v60, 4  ;;  %v2764_v62 = vrot.slane %v2762_v36, 4  ;;  %v533_v50 = vsel %vm6795_vm3, %v528_v61, %v532_v33 }
  0x78   : > { %v5292_v63 = vcombine.low %v2760_v56, %v2763_v53  ;;  %v537_v54 = vor.u32 %v536_v48, %v532_v33  ;;  %v552_v0 = vrot.slane %v550_v11, 5  ;;  %v5016_v26 = vcombine.low %v523_v23, %v533_v50  ;;  %v242_v48 = vld [vmem:[%s6777_s10 + $0x9c] sm:$0x1] }
  0x79   : > { %v547_v1 = vor.u32 %v546_v58, %v542_v52  ;;  %v2765_v6 = vrot.slane %v6926_v47, 5  ;;  %v2768_v7 = vrot.slane %v6929_v57, 5  ;;  %v555_v16 = vshrl.u32 %v7157_v55, 16 }
  0x7a   : > { %6043 = vmatprep.mubr.msk.bf16.mxu0 %vm663_vm2, %v5292_v63  ;;  %v538_v9 = vrot.slane %v537_v54, 4  ;;  %v558_v59 = vshll.u32 %v7157_v55, 16  ;;  %v564_v18 = vshll.u32 %v7161_v17, 16  ;;  %5879 = vmatprep.mubr.msk.bf16.mxu1 %vm663_vm2, %v5016_v26  ;;  %v568_v57 = vshrl.u32 %v7161_v17, 16 }
  0x7b   : > { %v548_v19 = vrot.slane %v547_v1, 4  ;;  %v2766_v47 = vsel %vm7020_vm6, %v2764_v62, %v2765_v6  ;;  %v2767_v25 = vrot.slane %v2765_v6, 4  ;;  %v557_v32 = vrot.slane %v555_v16, 4  ;;  %v5272_v16 = vld [vmem:[%s6777_s10 + $0x64] sm:$0xe] }
  0x7c   : > { %v543_v44 = vsel %vm6795_vm3, %v538_v9, %v542_v52  ;;  %v560_v33 = vrot.slane %v558_v59, 5  ;;  %v566_v21 = vrot.slane %v564_v18, 5  ;;  %v570_v39 = vrot.slane %v568_v57, 4 }
  0x7d   : > { %v553_v51 = vsel %vm6795_vm3, %v548_v19, %v552_v0  ;;  %v2769_v36 = vsel %vm7020_vm6, %v2767_v25, %v2768_v7  ;;  %v574_v40 = vshll.u32 %v7172_v8, 16  ;;  %v5279_v61 = vrot.slane %v5271_v35, 9  ;;  %v5212_v25 = vld [vmem:[%s6777_s10 + $0x6c] sm:$0xf] }
  0x7e   : > { %v5017_v56 = vcombine.low %v543_v44, %v553_v51  ;;  %v5293_v45 = vcombine.low %v2766_v47, %v2769_v36  ;;  %v561_v60 = vor.u32 %v560_v33, %v557_v32  ;;  %v571_v52 = vor.u32 %v570_v39, %v566_v21 }
  0x7f   : > { %v576_v11 = vrot.slane %v574_v40, 5  ;;  %v2772_v23 = vrot.slane %v6957_v37, 5  ;;  %v2775_v53 = vrot.slane %v6964_v42, 5  ;;  %v578_v62 = vshrl.u32 %v7172_v8, 16  ;;  %v5211_v42 = vld [vmem:[%s6777_s10 + $0x68] sm:$0xf] }
  0x80   : > { %5880 = vmatmul.mubr.msk.bf16.gmra.mrb[24].mxu1 %vm663_vm2, %v5017_v56  ;;  %6044 = vmatmul.mubr.msk.bf16.gmra.mrb[8].mxu0 %vm663_vm2, %v5293_v45  ;;  %v562_v58 = vrot.slane %v561_v60, 4  ;;  %v584_v50 = vshll.u32 %v7191_v41, 16  ;;  %v588_v63 = vshrl.u32 %v7191_v41, 16  ;;  %v572_v54 = vrot.slane %v571_v52, 4  ;;  %v6606_v52 = vld [vmem:[%s6777_s10] sm:$0xf] }
  0x81   : > { %v2773_v0 = vsel %vm7020_vm6, %v5279_v61, %v2772_v23  ;;  %v2774_v37 = vrot.slane %v2772_v23, 4  ;;  %v594_v26 = vshll.u32 %v242_v48, 16  ;;  %v580_v6 = vrot.slane %v578_v62, 4 }
  0x82   : > { %v567_v1 = vsel %vm6795_vm3, %v562_v58, %v566_v21  ;;  %v586_v7 = vrot.slane %v584_v50, 5  ;;  %v590_v9 = vrot.slane %v588_v63, 4  ;;  %v577_v59 = vsel %vm6795_vm3, %v572_v54, %v576_v11  ;;  %v7233_v58 = vld [vmem:[%s6777_s10 + $0x74] sm:$0x1]  ;;  %v5216_v54 = vld [vmem:[%s6777_s10 + $0x7c] sm:$0xf] }
  0x83   : > { %v2776_v18 = vsel %vm7020_vm6, %v2774_v37, %v2775_v53  ;;  %v596_v19 = vrot.slane %v594_v26, 5  ;;  %v2777_v47 = vrot.slane %v2775_v53, 4  ;;  %v5018_v57 = vcombine.low %v567_v1, %v577_v59  ;;  %v7230_v53 = vld [vmem:[%s6777_s10 + $0x70] sm:$0xf]  ;;  %v5273_v37 = vld [vmem:[%s6777_s10 + $0x78] sm:$0xe] }
  0x84   : > { %v5294_v35 = vcombine.low %v2773_v0, %v2776_v18  ;;  %v581_v44 = vor.u32 %v580_v6, %v576_v11  ;;  %v591_v32 = vor.u32 %v590_v9, %v586_v7  ;;  %v2778_v33 = vrot.slane %v6984_v31, 5  ;;  %v7226_v11 = vld [vmem:[%s6777_s10 + $0x4] sm:$0xf]  ;;  %v5217_v0 = vld [vmem:[%s6777_s10 + $0x80] sm:$0xf] }
  0x85   : > { %v2781_v21 = vrot.slane %v6990_v38, 5  ;;  %v5280_v51 = vrot.slane %v5272_v16, 9  ;;  %v2785_v36 = vrot.slane %v5211_v42, 5  ;;  %5883 = vmatprep.mubr.msk.bf16.mxu1 %vm663_vm2, %v5018_v57  ;;  %v2788_v56 = vrot.slane %v5212_v25, 5  ;;  %v5218_v6 = vld [vmem:[%s6777_s10 + $0x84] sm:$0xf] }
  0x86   : > { %6047 = vmatprep.mubr.msk.bf16.mxu0 %vm663_vm2, %v5294_v35  ;;  %v582_v39 = vrot.slane %v581_v44, 4  ;;  %v592_v40 = vrot.slane %v591_v32, 4  ;;  %v2779_v45 = vsel %vm7020_vm6, %v2777_v47, %v2778_v33  ;;  %v2780_v31 = vrot.slane %v2778_v33, 4  ;;  %v5219_v25 = vld [vmem:[%s6777_s10 + $0x88] sm:$0x1] }
  0x87   : > { %v2786_v38 = vsel %vm7020_vm6, %v5280_v51, %v2785_v36  ;;  %v2787_v60 = vrot.slane %v2785_v36, 4  ;;  %v5038_v23 = vcombine.low %v6606_v52, %v7226_v11  ;;  %v2790_v1 = vrot.slane %v2788_v56, 4  ;;  %v5221_v32 = vld [vmem:[%s6777_s10 + $0x90] sm:$0xf]  ;;  %v5222_v33 = vld [vmem:[%s6777_s10 + $0x94] sm:$0xf] }
  0x88   : > { %v587_v61 = vsel %vm6795_vm3, %v582_v39, %v586_v7  ;;  %v597_v48 = vsel %vm6795_vm3, %v592_v40, %v596_v19  ;;  %v2782_v50 = vsel %vm7020_vm6, %v2780_v31, %v2781_v21  ;;  %v2791_v7 = vrot.slane %v7230_v53, 5  ;;  %v7257_v21 = vld [vmem:[%s6777_s10 + $0x8] sm:$0xf]  ;;  %v7260_v51 = vld [vmem:[%s6777_s10 + $0xc] sm:$0xf] }
  0x89   : > { %v5019_v62 = vcombine.low %v587_v61, %v597_v48  ;;  %v2789_v63 = vsel %vm7020_vm6, %v2787_v60, %v2788_v56  ;;  %v5295_v26 = vcombine.low %v2779_v45, %v2782_v50  ;;  %v2794_v9 = vrot.slane %v7233_v58, 5  ;;  %v5274_v40 = vld [vmem:[%s6777_s10 + $0x8c] sm:$0xe]  ;;  %v6610_v45 = vld [vmem:[%s6777_s10 + $0x14] sm:$0xf] }
  0x8a   : > { %v5296_v42 = vcombine.low %v2786_v38, %v2789_v63  ;;  %v5281_v16 = vrot.slane %v5273_v37, 9  ;;  %v2798_v59 = vrot.slane %v5216_v54, 5  ;;  %v2801_v18 = vrot.slane %v5217_v0, 5  ;;  %v7269_v31 = vld [vmem:[%s6777_s10 + $0x18] sm:$0xf]  ;;  %v6496_v63 = vld [vmem:[%s8537_s1 + $0x28] sm:$0xff]  }
  0x8b   : > { %5884 = vmatmul.mubr.msk.bf16.gmra.mrb[28].mxu1 %vm663_vm2, %v5019_v62  ;;  %6048 = vmatmul.mubr.msk.bf16.gmra.mrb[12].mxu0 %vm663_vm2, %v5295_v26  ;;  %v2792_v19 = vsel %vm7020_vm6, %v2790_v1, %v2791_v7  ;;  %v2793_v47 = vrot.slane %v2791_v7, 4  ;;  %v2804_v57 = vrot.slane %v5218_v6, 5  ;;  %v5039_v36 = vcombine.low %v7257_v21, %v7260_v51  ;;  %v5223_v50 = vld [vmem:[%s6777_s10 + $0x98] sm:$0xf]  ;;  %v5226_v26 = vld [vmem:[%s6777_s10 + $0xa4] sm:$0xf] }
  0x8c   : > { %5891 = vmatprep.mubr.msk.bf16.mxu1 %vm663_vm2, %v5038_v23  ;;  %6051 = vmatprep.mubr.msk.bf16.mxu0 %vm663_vm2, %v5296_v42  ;;  %v2799_v35 = vsel %vm7020_vm6, %v5281_v16, %v2798_v59  ;;  %v2800_v44 = vrot.slane %v2798_v59, 4  ;;  %v5040_v38 = vcombine.low %v6610_v45, %v7269_v31  ;;  %v2803_v61 = vrot.slane %v2801_v18, 4  ;;  %v6612_v42 = vld [vmem:[%s8537_s1 + $0x20] sm:$0xff]   ;;  %v5224_v7 = vld [vmem:[%s6777_s10 + $0x9c] sm:$0x1]  ;;  %v7294_v16 = vld [vmem:[%s8537_s1 + $0x30] sm:$0xff]  }
  0x8d   : > { %v2795_v39 = vsel %vm7020_vm6, %v2793_v47, %v2794_v9  ;;  %v2806_v52 = vrot.slane %v2804_v57, 4  ;;  %v2807_v23 = vrot.slane %v5219_v25, 5  ;;  %v2811_v62 = vrot.slane %v5221_v32, 5  ;;  %v7302_v25 = vld [vmem:[%s6777_s10 + $0x1c] sm:$0xf] }
  0x8e   : > { %v5297_v56 = vcombine.low %v2792_v19, %v2795_v39  ;;  %v2802_v60 = vsel %vm7020_vm6, %v2800_v44, %v2801_v18  ;;  %v5282_v54 = vrot.slane %v5274_v40, 9  ;;  %v2814_v0 = vrot.slane %v5222_v33, 5  ;;  %v5275_v19 = vld [vmem:[%s6777_s10 + $0xa0] sm:$0xe]  ;;  %v5227_v44 = vld [vmem:[%s6777_s10 + $0xa8] sm:$0xf] }
  0x8f   : > { %v5298_v48 = vcombine.low %v2799_v35, %v2802_v60  ;;  %v2813_v37 = vrot.slane %v2811_v62, 4  ;;  %v2805_v1 = vsel %vm7020_vm6, %v2803_v61, %v2804_v57  ;;  %v2808_v6 = vsel %vm7020_vm6, %v2806_v52, %v2807_v23  ;;  %v7305_v57 = vld [vmem:[%s6777_s10 + $0x20] sm:$0xf]  ;;  %v6615_v33 = vld [vmem:[%s6777_s10 + $0x28] sm:$0xf] }
  0x90   : > { %v2817_v9 = vrot.slane %v5223_v50, 5  ;;  %v2812_v59 = vsel %vm7020_vm6, %v5282_v54, %v2811_v62  ;;  %v2824_v47 = vrot.slane %v5226_v26, 5  ;;  %v5041_v35 = vcombine.low %v7302_v25, %v7305_v57  ;;  %v7334_v26 = vld [vmem:[%s6777_s10 + $0x34] sm:$0xf] }
  0x91   : > { %v2815_v18 = vsel %vm7020_vm6, %v2813_v37, %v2814_v0  ;;  %v5299_v32 = vcombine.low %v2805_v1, %v2808_v6  ;;  %v2820_v40 = vrot.slane %v5224_v7, 5  ;;  %v5283_v61 = vrot.slane %v5275_v19, 9  ;;  %v7331_v37 = vld [vmem:[%s6777_s10 + $0x30] sm:$0xf] }
  0x92   : > { %v5300_v45 = vcombine.low %v2812_v59, %v2815_v18  ;;  %v2819_v60 = vrot.slane %v2817_v9, 4  ;;  %v2827_v52 = vrot.slane %v5227_v44, 5  ;;  %v5044_v6 = vcombine.low %v6938_v2, %v6942_v15  ;;  %v6497_v44 = vld [vmem:[%s6777_s10 + $0x28] sm:$0xff]  }
  0x93   : > { %5892 = vmatmul.mubr.msk.bf16.vlgmr.msra.gmra.mrb[0].mxu1 %vm663_vm2, %v5039_v36  ;;  %6052 = vmatmul.mubr.msk.bf16.gmra.mrb[16].mxu0 %vm663_vm2, %v5297_v56  ;;  %v7312_v36 = vld [vmem:[%s6777_s10 + $0x2c] sm:$0xf]  ;;  %v5045_v15 = vcombine.low %v6949_v22, %v6970_v49  ;;  %v1203_v22 = vrot.slane %v7226_v11, 5  ;;  %v1206_v49 = vrot.slane %v7257_v21, 5  ;;  %v5047_v11 = vcombine.low %v7011_v10, %v7025_v29 }
  0x94   : > { %5924 = vmatpush3.bf16.msra.mxu1 %v6612_v42  ;;  %5895 = vmatprep.mubr.msk.bf16.mxu1 %vm663_vm2, %v5040_v38  ;;  %v5042_v39 = vcombine.low %v6615_v33, %v7312_v36  ;;  %v5228_v56 = vld [vmem:[%s6777_s10 + $0xac] sm:$0xf]  ;;  %v2816_v38 = vrot.slane %v2814_v0, 4  ;;  %v2821_v62 = vsel %vm7020_vm6, %v2819_v60, %v2820_v40  ;;  %v5229_v0 = vld [vmem:[%s6777_s10 + $0xb0] sm:$0x1]  ;;  %v5043_v42 = vcombine.low %v7331_v37, %v7334_v26 }
  0x95   : > { %6055 = vmatprep.mubr.msk.bf16.mxu0 %vm663_vm2, %v5298_v48  ;;  %5925 = vmatprep.subr.bf16.mxu1 %v6496_v63  ;;  %v2826_v48 = vrot.slane %v2824_v47, 4  ;;  %v2830_v50 = vrot.slane %v5228_v56, 5  ;;  %v2829_v7 = vrot.slane %v2827_v52, 4  ;;  %v2833_v18 = vrot.slane %v5229_v0, 5 }
  0x96   : > { %v2818_v23 = vsel %vm7020_vm6, %v2816_v38, %v2817_v9  ;;  %v2235_v33 = vshrl.u32 %v7230_v53, 16  ;;  %v1216_v40 = vrot.slane %v7269_v31, 5  ;;  %v1222_v56 = vrot.slane %v7305_v57, 5 }
  0x97   : > { %v2828_v54 = vsel %vm7020_vm6, %v2826_v48, %v2827_v52  ;;  %v5301_v1 = vcombine.low %v2818_v23, %v2821_v62  ;;  %v2832_v59 = vrot.slane %v2830_v50, 4  ;;  %v2831_v19 = vsel %vm7020_vm6, %v2829_v7, %v2830_v50  ;;  %v6500_v48 = vld [vmem:[%s6777_s10 + $0x30] sm:$0xff]   ;;  %v6502_v52 = vld [vmem:[%s6777_s10 + $0x3c] sm:$0xff]  }
  0x98   : > { %5926 = vmatpush3.bf16.msra.mxu1 %v6496_v63  ;;  %v2825_v63 = vsel %vm7020_vm6, %v5283_v61, %v2824_v47  ;;  %v2237_v61 = vrot.slane %v2235_v33, 4  ;;  %v2241_v21 = vshll.u32 %v7233_v58, 16  ;;  %v1208_v57 = vrot.slane %v1206_v49, 4  ;;  %v6515_v50 = vld [vmem:[%s8537_s1 + $0x78] sm:$0xff]   ;;  %v6620_v58 = vld [vmem:[%s6777_s10 + $0x24] sm:$0x1] }
  0x99   : > { %5959 = vmatprep.subr.bf16.mxu1 %v7294_v16  ;;  %v5302_v9 = vcombine.low %v2825_v63, %v2828_v54  ;;  %v2834_v2 = vsel %vm7020_vm6, %v2832_v59, %v2833_v18  ;;  %v1218_v10 = vrot.slane %v1216_v40, 4  ;;  %v1224_v54 = vrot.slane %v1222_v56, 4 }
  0x9a   : > { %v5303_v47 = vcombine.low %v2831_v19, %v2834_v2  ;;  %v1225_v0 = vrot.slane %v6620_v58, 5  ;;  %v7393_v7 = vrot.slane %v2241_v21, 5  ;;  %v7428_v2 = vld [vmem:[%s8537_s1 + $0x80] sm:$0xff]  }
  0x9b   : > { %5896 = vmatmul.mubr.msk.bf16.gmra.mrb[4].mxu1 %vm663_vm2, %v5041_v35  ;;  %6056 = vmatmul.mubr.msk.bf16.gmra.mrb[20].mxu0 %vm663_vm2, %v5299_v32  ;;  %v5046_v35 = vcombine.low %v6996_v46, %v7005_v4  ;;  %v2231_v32 = vshll.u32 %v7230_v53, 16  ;;  %v1209_v46 = vrot.slane %v7260_v51, 5  ;;  %v1175_v4 = vld [vmem:[%s6777_s10 + $0x14] sm:$0xe]  ;;  %v1219_v53 = vrot.slane %v7302_v25, 5 }
  0x9c   : > { %5899 = vmatprep.mubr.msk.bf16.mxu1 %vm663_vm2, %v5042_v39  ;;  %6059 = vmatprep.mubr.msk.bf16.mxu0 %vm663_vm2, %v5300_v45  ;;  %v1174_v39 = vld [vmem:[%s6777_s10] sm:$0xe]  ;;  %v6619_v45 = vld [vmem:[%s6777_s10 + $0x10] sm:$0x1]  ;;  %v5048_v51 = vcombine.low %v7045_v3, %v7049_v14  ;;  %v1205_v25 = vrot.slane %v1203_v22, 4  ;;  %v5073_v62 = vrot.slane %v1175_v4, 9  ;;  %v5049_v14 = vcombine.low %v7056_v5, %v7079_v12 }
  0x9d   : > { %v1212_v38 = vrot.slane %v6619_v45, 5  ;;  %v7368_v60 = vrot.slane %v2231_v32, 5  ;;  %v5072_v31 = vrot.slane %v1174_v39, 9  ;;  %v1211_v23 = vrot.slane %v1209_v46, 4  ;;  %8563 = vst [vmem:[#allocation3_spill] sm:$0xff] %v7393_v7  ;;  %v6504_v39 = vld [vmem:[%s6777_s10 + $0x44] sm:$0xff]  }
  0x9e   : > { %v1221_v63 = vrot.slane %v1219_v53, 4  ;;  %v7403_v5 = vsel %vm7020_vm6, %v1208_v57, %v1209_v46  ;;  %v7407_v12 = vsel %vm7020_vm6, %v5073_v62, %v1216_v40  ;;  %v7415_v59 = vsel %vm7020_vm6, %v1218_v10, %v1219_v53  ;;  %v6506_v4 = vld [vmem:[%s6777_s10 + $0x50] sm:$0xff]  }
  0x9f   : > { %8562 = vst [vmem:[#allocation2_spill] sm:$0xff] %v7368_v60  ;;  %v2238_v3 = vor.u32 %v2237_v61, %v7368_v60  ;;  %v7423_v19 = vsel %vm7020_vm6, %v1224_v54, %v1225_v0  ;;  %v1229_v46 = vrot.slane %v7312_v36, 5  ;;  %v5052_v40 = vcombine.low %v7157_v55, %v7161_v17  ;;  %v5396_v61 = vld [vmem:[%s6777_s10 + $0x30] sm:$0xf]  ;;  %v6624_v54 = vld [vmem:[%s6777_s10 + $0x48] sm:$0xf] }
  0xa0   : > { %v7419_v18 = vsel %vm7020_vm6, %v1221_v63, %v1222_v56  ;;  %v5053_v53 = vcombine.low %v7172_v8, %v7191_v41  ;;  %v1248_v58 = vrot.slane %v6624_v54, 5  ;;  %v6625_v0 = vld [vmem:[%s6777_s10 + $0x54] sm:$0xf] }
  0xa1   : > { %v7431_v33 = vrot.slane %v2238_v3, 4  ;;  %v1255_v3 = vrot.slane %v6625_v0, 5 }
  0xa3   : > { %5900 = vmatmul.mubr.msk.bf16.gmra.mrb[8].mxu1 %vm663_vm2, %v5043_v42  ;;  %6060 = vmatmul.mubr.msk.bf16.gmra.mrb[24].mxu0 %vm663_vm2, %v5301_v1  ;;  %v7389_v42 = vsel %vm7020_vm6, %v5072_v31, %v1203_v22  ;;  %v5394_v1 = vld [vmem:[%s6777_s10 + $0x28] sm:$0xf]  ;;  %8564 = vst [vmem:[#allocation4_spill] sm:$0xff] %v7431_v33  ;;  %v5050_v22 = vcombine.low %v7100_v27, %v7106_v34  ;;  %v6518_v33 = vld [vmem:[%s6777_s10 + $0x94] sm:$0xff]  }
  0xa4   : > { %5903 = vmatprep.mubr.msk.bf16.mxu1 %vm663_vm2, %v5044_v6  ;;  %6063 = vmatprep.mubr.msk.bf16.mxu0 %vm663_vm2, %v5302_v9  ;;  %v5395_v6 = vld [vmem:[%s6777_s10 + $0x2c] sm:$0xf]  ;;  %v7399_v9 = vsel %vm7020_vm6, %v1205_v25, %v1206_v49  ;;  %v5051_v49 = vcombine.low %v7118_v43, %v7132_v13  ;;  %v6621_v25 = vld [vmem:[%s6777_s10 + $0x40] sm:$0xf] }
  0xa5   : > { %v3569_v32 = vshrl.u32 %v5395_v6, 16  ;;  %v5084_v56 = vcombine.low %v7389_v42, %v7399_v9  ;;  %v1242_v57 = vrot.slane %v6621_v25, 5  ;;  %v7482_v25 = vld [vmem:[%s6777_s10 + $0x34] sm:$0xf] }
  0xa6   : > { %8565 = vst [vmem:[#allocation5_spill] sm:$0xff] %v7482_v25  ;;  %v3585_v45 = vshll.u32 %v7482_v25, 16 }
  0xa7   : > { %v3571_v31 = vrot.slane %v3569_v32, 4 }
  0xab   : > { %5904 = vmatmul.mubr.msk.bf16.gmra.mrb[12].mxu1 %vm663_vm2, %v5045_v15  ;;  %6064 = vmatmul.mubr.msk.bf16.gmra.mrb[28].mxu0 %vm663_vm2, %v5303_v47  ;;  %v1176_v15 = vld [vmem:[%s6777_s10 + $0x28] sm:$0xe]  ;;  %v3556_v47 = vshrl.u32 %v5394_v1, 16 }
  0xac   : > { %5907 = vmatprep.mubr.msk.bf16.mxu1 %vm663_vm2, %v5046_v35  ;;  %6071 = vmatprep.mubr.msk.bf16.mxu0 %vm663_vm2, %v6497_v44  ;;  %v3559_v35 = vshll.u32 %v5394_v1, 16  ;;  %v3565_v44 = vshll.u32 %v5395_v6, 16  ;;  %v5074_v36 = vrot.slane %v1176_v15, 9  ;;  %v6626_v1 = vld [vmem:[%s6777_s10 + $0x58] sm:$0xf]  ;;  %v3575_v15 = vshll.u32 %v5396_v61, 16 }
  0xad   : > { %v3558_v21 = vrot.slane %v3556_v47, 4  ;;  %v1258_v6 = vrot.slane %v6626_v1, 5  ;;  %v3579_v47 = vshrl.u32 %v5396_v61, 16  ;;  %v6627_v61 = vld [vmem:[%s6777_s10 + $0x4c] sm:$0x1] }
  0xae   : > { %v1251_v54 = vrot.slane %v6627_v61, 5  ;;  %v6628_v1 = vld [vmem:[%s6777_s10 + $0x60] sm:$0x1]  ;;  %v6514_v61 = vld [vmem:[%s6777_s10 + $0x78] sm:$0xff]  }
  0xaf   : > { %v3581_v0 = vrot.slane %v3579_v47, 4  ;;  %v1264_v34 = vrot.slane %v6628_v1, 5 }
  0xb3   : > { %5908 = vmatmul.mubr.msk.bf16.gmra.mrb[16].mxu1 %vm663_vm2, %v5047_v11  ;;  %6072 = vmatmul.mubr.msk.bf16.vlgmr.msra.gmra.mrb[0].mxu0 %vm663_vm2, %v6500_v48  ;;  %v1177_v11 = vld [vmem:[%s6777_s10 + $0x3c] sm:$0xe]  ;;  %v3561_v48 = vrot.slane %v3559_v35, 5 }
  0xb4   : > { %5911 = vmatprep.mubr.msk.bf16.mxu1 %vm663_vm2, %v5048_v51  ;;  %6104 = vmatpush3.bf16.msra.mxu0 %v7113_v20  ;;  %v7411_v20 = vsel %vm7020_vm6, %v1211_v23, %v1212_v38  ;;  %v1232_v38 = vrot.slane %v7331_v37, 5  ;;  %v7457_v51 = vrot.slane %v3565_v44, 5  ;;  %v1231_v37 = vrot.slane %v1229_v46, 4  ;;  %v6622_v23 = vld [vmem:[%s6777_s10 + $0x44] sm:$0xf] }
  0xb5   : > { %6075 = vmatprep.mubr.msk.bf16.mxu0 %vm663_vm2, %v6502_v52  ;;  %6105 = vmatprep.subr.bf16.mxu0 %v6515_v50  ;;  %v1235_v52 = vrot.slane %v7334_v26, 5  ;;  %v1245_v62 = vrot.slane %v6622_v23, 5  ;;  %v5075_v63 = vrot.slane %v1177_v11, 9  ;;  %v1178_v26 = vld [vmem:[%s6777_s10 + $0x50] sm:$0xe]  ;;  %v3562_v44 = vor.u32 %v3561_v48, %v3558_v21  ;;  %v6510_v23 = vld [vmem:[%s6777_s10 + $0x64] sm:$0xff]  }
  0xb6   : > { %v1234_v35 = vrot.slane %v1232_v38, 4  ;;  %v3572_v32 = vor.u32 %v3571_v31, %v7457_v51  ;;  %v5076_v21 = vrot.slane %v1178_v26, 9  ;;  %v1257_v48 = vrot.slane %v1255_v3, 4 }
  0xb7   : > { %v1247_v11 = vrot.slane %v1245_v62, 4  ;;  %v3577_v31 = vrot.slane %v3575_v15, 5  ;;  %v3589_v15 = vshrl.u32 %v7482_v25, 16 }
  0xb8   : > { %6106 = vmatpush3.bf16.msra.mxu0 %v6515_v50  ;;  %v6623_v50 = vld [vmem:[%s6777_s10 + $0x38] sm:$0x1]  ;;  %v7499_v26 = vsel %vm7020_vm6, %v1234_v35, %v1235_v52  ;;  %v7532_v47 = vsel %vm7020_vm6, %v1257_v48, %v1258_v6  ;;  %v6512_v35 = vld [vmem:[%s6777_s10 + $0x6c] sm:$0xff]   ;;  %v7571_v48 = vld [vmem:[%s6777_s10 + $0x48] sm:$0xf] }
  0xb9   : > { %6139 = vmatprep.subr.bf16.mxu0 %v7428_v2  ;;  %v1238_v10 = vrot.slane %v6623_v50, 5  ;;  %v1250_v50 = vrot.slane %v1248_v58, 4  ;;  %8569 = vst [vmem:[#allocation9_spill] sm:$0xff] %v7571_v48  ;;  %v3633_v42 = vshrl.u32 %v7571_v48, 16 }
  0xbb   : > { %5912 = vmatmul.mubr.msk.bf16.gmra.mrb[20].mxu1 %vm663_vm2, %v5049_v14  ;;  %6076 = vmatmul.mubr.msk.bf16.gmra.mrb[4].mxu0 %vm663_vm2, %v6504_v39  ;;  %v7470_v14 = vsel %vm7020_vm6, %v5074_v36, %v1229_v46  ;;  %v1261_v39 = vrot.slane %v7025_v29, 5  ;;  %v1237_v46 = vrot.slane %v1235_v52, 4  ;;  %v1244_v36 = vrot.slane %v1242_v57, 4 }
  0xbc   : > { %5915 = vmatprep.mubr.msk.bf16.mxu1 %vm663_vm2, %v5050_v22  ;;  %6079 = vmatprep.mubr.msk.bf16.mxu0 %vm663_vm2, %v6506_v4  ;;  %v6508_v22 = vld [vmem:[%s6777_s10 + $0x58] sm:$0xff]   ;;  %v7479_v4 = vsel %vm7020_vm6, %v1231_v37, %v1232_v38  ;;  %v1260_v29 = vrot.slane %v1258_v6, 4  ;;  %v3563_v38 = vrot.slane %v3562_v44, 4  ;;  %v3573_v37 = vrot.slane %v3572_v32, 4 }
  0xbd   : > { %v1263_v27 = vrot.slane %v1261_v39, 4  ;;  %v7503_v43 = vsel %vm7020_vm6, %v1237_v46, %v1238_v10  ;;  %v7519_v52 = vsel %vm7020_vm6, %v1247_v11, %v1248_v58  ;;  %v5399_v10 = vld [vmem:[%s6777_s10 + $0x3c] sm:$0xf]  ;;  %v7549_v6 = vld [vmem:[%s6777_s10 + $0x38] sm:$0x1]  ;;  %v3591_v46 = vrot.slane %v3589_v15, 4 }
  0xbe   : > { %v7536_v58 = vsel %vm7020_vm6, %v1260_v29, %v1261_v39  ;;  %v3568_v44 = vsel %vm6795_vm3, %v3563_v38, %v7457_v51  ;;  %v3578_v32 = vsel %vm6795_vm3, %v3573_v37, %v3577_v31  ;;  %8566 = vst [vmem:[#allocation6_spill] sm:$0xff] %v7549_v6  ;;  %v1179_v39 = vld [vmem:[%s6777_s10 + $0x64] sm:$0xe]  ;;  %v3600_v51 = vshrl.u32 %v5399_v10, 16  ;;  %v5404_v38 = vld [vmem:[%s6777_s10 + $0x50] sm:$0xf] }
  0xbf   : > { %v3595_v29 = vshll.u32 %v7549_v6, 16  ;;  %v5077_v1 = vrot.slane %v1179_v39, 9  ;;  %v7583_v37 = vcombine.low %v3568_v44, %v3578_v32  ;;  %v6630_v15 = vld [vmem:[%s6777_s10 + $0x6c] sm:$0xf]  ;;  %v3644_v9 = vshrl.u32 %v5404_v38, 16 }
  0xc0   : > { %v3602_v44 = vrot.slane %v3600_v51, 4  ;;  %v7625_v51 = vld [vmem:[%s6777_s10 + $0x4c] sm:$0x1]  ;;  %v3635_v6 = vrot.slane %v3633_v42, 4 }
  0xc1   : > { %8571 = vst [vmem:[#allocation11_spill] sm:$0xff] %v7625_v51  ;;  %v3639_v25 = vshll.u32 %v7625_v51, 16 }
  0xc3   : > { %5916 = vmatmul.mubr.msk.bf16.gmra.mrb[24].mxu1 %vm663_vm2, %v5051_v49  ;;  %6080 = vmatmul.mubr.msk.bf16.gmra.mrb[8].mxu0 %vm663_vm2, %v6508_v22  ;;  %v7507_v49 = vsel %vm7020_vm6, %v5075_v63, %v1242_v57  ;;  %v7523_v57 = vsel %vm7020_vm6, %v1250_v50, %v1251_v54  ;;  %v7528_v63 = vsel %vm7020_vm6, %v5076_v21, %v1255_v3  ;;  %v7551_v22 = vrot.slane %v3585_v45, 5  ;;  %v7568_v21 = vld [vmem:[%s6777_s10 + $0x44] sm:$0xf]  ;;  %v7589_v54 = vld [vmem:[%s6777_s10 + $0x54] sm:$0xf] }
  0xc4   : > { %5919 = vmatprep.mubr.msk.bf16.mxu1 %vm663_vm2, %v5052_v40  ;;  %6083 = vmatprep.mubr.msk.bf16.mxu0 %vm663_vm2, %v6510_v23  ;;  %v7515_v40 = vsel %vm7020_vm6, %v1244_v36, %v1245_v62  ;;  %v3582_v62 = vor.u32 %v3581_v0, %v3577_v31  ;;  %v7546_v3 = vsel %vm7020_vm6, %v1263_v27, %v1264_v34  ;;  %v6629_v36 = vld [vmem:[%s6777_s10 + $0x68] sm:$0xf]  ;;  %v7556_v23 = vld [vmem:[%s6777_s10 + $0x40] sm:$0xf]  ;;  %v3603_v50 = vshll.u32 %v5399_v10, 16  ;;  %v6517_v27 = vld [vmem:[%s6777_s10 + $0x8c] sm:$0xff]  }
  0xc5   : > { %v1268_v11 = vrot.slane %v6629_v36, 5  ;;  %8567 = vst [vmem:[#allocation7_spill] sm:$0xff] %v7556_v23  ;;  %8568 = vst [vmem:[#allocation8_spill] sm:$0xff] %v7568_v21  ;;  %v1271_v10 = vrot.slane %v6630_v15, 5  ;;  %v3609_v36 = vshll.u32 %v7556_v23, 16  ;;  %v3592_v41 = vor.u32 %v3591_v46, %v7551_v22  ;;  %v6516_v34 = vld [vmem:[%s6777_s10 + $0x80] sm:$0xff]  }
  0xc6   : > { %v7573_v31 = vrot.slane %v3582_v62, 4  ;;  %v3613_v62 = vshrl.u32 %v7556_v23, 16  ;;  %8570 = vst [vmem:[#allocation10_spill] sm:$0xff] %v7589_v54  ;;  %v3605_v32 = vrot.slane %v3603_v50, 5  ;;  %v3619_v39 = vshll.u32 %v7568_v21, 16 }
  0xc7   : > { %v3623_v15 = vshrl.u32 %v7568_v21, 16  ;;  %v3653_v46 = vshll.u32 %v7589_v54, 16  ;;  %v3657_v0 = vshrl.u32 %v7589_v54, 16  ;;  %v7608_v50 = vrot.slane %v3595_v29, 5 }
  0xc8   : > { %v3615_v45 = vrot.slane %v3613_v62, 4  ;;  %v7614_v55 = vrot.slane %v3592_v41, 4  ;;  %v3606_v21 = vor.u32 %v3605_v32, %v3602_v44  ;;  %v7627_v29 = vrot.slane %v3619_v39, 5  ;;  %v7632_v41 = vld [vmem:[%s6777_s10 + $0x58] sm:$0xf] }
  0xc9   : > { %8572 = vst [vmem:[#allocation12_spill] sm:$0xff] %v7632_v41  ;;  %v3659_v44 = vrot.slane %v3657_v0, 4  ;;  %v8573_v32 = vcombine.low %v7403_v5, %v7411_v20  ;;  %v3667_v0 = vshrl.u32 %v7632_v41, 16  ;;  %v1180_v5 = vld [vmem:[%s6777_s10 + $0x78] sm:$0xe]  ;;  %v3641_v60 = vrot.slane %v3639_v25, 5 }
  0xca   : > { %v3607_v20 = vrot.slane %v3606_v21, 4  ;;  %v7679_v25 = vld [vmem:[%s8537_s1 + $0x40] sm:$0xff]  }
  0xcb   : > { %5920 = vmatmul.mubr.msk.bf16.gmra.mrb[28].mxu1 %vm663_vm2, %v5053_v53  ;;  %6084 = vmatmul.mubr.msk.bf16.gmra.mrb[12].mxu0 %vm663_vm2, %v6512_v35  ;;  %v1270_v53 = vrot.slane %v1268_v11, 4  ;;  %v3629_v35 = vshll.u32 %v7571_v48, 16  ;;  %8575 = vst [vmem:[#allocation13_spill] sm:$0xff] %v7679_v25 }
  0xcc   : > { %5927 = vmatprep.mubr.msk.bf16.mxu1 %vm663_vm2, %v5084_v56  ;;  %6087 = vmatprep.mubr.msk.bf16.mxu0 %vm663_vm2, %v6514_v61  ;;  %v3647_v56 = vshll.u32 %v5404_v38, 16  ;;  %v7610_v61 = vrot.slane %v3609_v36, 5  ;;  %v7618_v38 = vsel %vm7020_vm6, %v5077_v1, %v1268_v11  ;;  %v3625_v36 = vrot.slane %v3623_v15, 4  ;;  %v6523_v11 = vld [vmem:[%s8537_s1 + $0x38] sm:$0xff]  }
  0xcd   : > { %v7622_v48 = vsel %vm7020_vm6, %v1270_v53, %v1271_v10  ;;  %v7629_v62 = vrot.slane %v3629_v35, 5  ;;  %v3646_v1 = vrot.slane %v3644_v9, 4  ;;  %v7637_v53 = vrot.slane %v3653_v46, 5  ;;  %v6631_v35 = vld [vmem:[%s6777_s10 + $0x70] sm:$0xf] }
  0xce   : > { %v3649_v23 = vrot.slane %v3647_v56, 5  ;;  %v3616_v39 = vor.u32 %v3615_v45, %v7610_v61  ;;  %v1273_v15 = vrot.slane %v1271_v10, 4  ;;  %v1274_v42 = vrot.slane %v6631_v35, 5  ;;  %v6633_v46 = vld [vmem:[%s6777_s10 + $0x7c] sm:$0xf] }
  0xcf   : > { %v3663_v45 = vshll.u32 %v7632_v41, 16  ;;  %v8574_v10 = vcombine.low %v7407_v12, %v7415_v59  ;;  %v3626_v9 = vor.u32 %v3625_v36, %v7627_v29  ;;  %v3636_v56 = vor.u32 %v3635_v6, %v7629_v62  ;;  %v7666_v35 = vld [vmem:[%s6777_s10 + $0x5c] sm:$0xf]  ;;  %v6634_v12 = vld [vmem:[%s6777_s10 + $0x80] sm:$0xf] }
  0xd0   : > { %v1284_v59 = vrot.slane %v6634_v12, 5  ;;  %v3617_v51 = vrot.slane %v3616_v39, 4  ;;  %v1287_v36 = vrot.slane %v7132_v13, 5  ;;  %v3673_v7 = vshll.u32 %v7666_v35, 16  ;;  %v6519_v41 = vld [vmem:[%s6777_s10 + $0xa0] sm:$0xff]  }
  0xd1   : > { %v3665_v6 = vrot.slane %v3663_v45, 5  ;;  %v3677_v21 = vshrl.u32 %v7666_v35, 16  ;;  %v3627_v54 = vrot.slane %v3626_v9, 4  ;;  %v3637_v12 = vrot.slane %v3636_v56, 4  ;;  %v7698_v9 = vld [vmem:[%s6777_s10 + $0x60] sm:$0x1] }
  0xd2   : > { %v7684_v13 = vsel %vm7020_vm6, %v1273_v15, %v1274_v42  ;;  %v1286_v39 = vrot.slane %v1284_v59, 4  ;;  %v3612_v45 = vsel %vm6795_vm3, %v3607_v20, %v7610_v61  ;;  %v1289_v15 = vrot.slane %v1287_v36, 4 }
  0xd3   : > { %5928 = vmatmul.mubr.msk.bf16.vlgmr.msra.gmra.mrb[0].mxu1 %vm663_vm2, %v8573_v32  ;;  %6088 = vmatmul.mubr.msk.bf16.gmra.mrb[16].mxu0 %vm663_vm2, %v6516_v34  ;;  %v1281_v32 = vrot.slane %v6633_v46, 5  ;;  %v3669_v46 = vrot.slane %v3667_v0, 4  ;;  %v3622_v0 = vsel %vm6795_vm3, %v3617_v51, %v7627_v29  ;;  %v7709_v20 = vrot.slane %v3673_v7, 5  ;;  %v1181_v29 = vld [vmem:[%s6777_s10 + $0x8c] sm:$0xe] }
  0xd4   : > { %5960 = vmatpush3.bf16.msra.mxu1 %v7294_v16  ;;  %5931 = vmatprep.mubr.msk.bf16.mxu1 %vm663_vm2, %v8574_v10  ;;  %v6632_v16 = vld [vmem:[%s6777_s10 + $0x74] sm:$0x1]  ;;  %v3650_v10 = vor.u32 %v3649_v23, %v3646_v1  ;;  %v5078_v23 = vrot.slane %v1180_v5, 9  ;;  %v8576_v5 = vcombine.low %v7419_v18, %v7423_v19  ;;  %v8577_v18 = vcombine.low %v7470_v14, %v7479_v4 }
  0xd5   : > { %6091 = vmatprep.mubr.msk.bf16.mxu0 %vm663_vm2, %v6517_v27  ;;  %v1277_v34 = vrot.slane %v6632_v16, 5  ;;  %5961 = vmatprep.subr.bf16.mxu1 %v6523_v11  ;;  %v3660_v27 = vor.u32 %v3659_v44, %v7637_v53  ;;  %v1276_v16 = vrot.slane %v1274_v42, 4  ;;  %v1283_v1 = vrot.slane %v1281_v32, 4 }
  0xd6   : > { %v1290_v42 = vrot.slane %v7145_v28, 5  ;;  %v3670_v61 = vor.u32 %v3669_v46, %v3665_v6  ;;  %v3679_v51 = vrot.slane %v3677_v21, 4  ;;  %v5409_v28 = vld [vmem:[%s6777_s10 + $0x64] sm:$0xf]  ;;  %v3642_v14 = vsel %vm6795_vm3, %v3637_v12, %v3641_v60  ;;  %v6521_v21 = vld [vmem:[%s6777_s10 + $0xb4] sm:$0xff]  }
  0xd7   : > { %v3661_v44 = vrot.slane %v3660_v27, 4  ;;  %v7707_v19 = vsel %vm7020_vm6, %v1276_v16, %v1277_v34  ;;  %v7721_v4 = vsel %vm7020_vm6, %v5078_v23, %v1281_v32  ;;  %v7725_v7 = vsel %vm7020_vm6, %v1283_v1, %v1284_v59 }
  0xd8   : > { %5962 = vmatpush3.bf16.msra.mxu1 %v6523_v11  ;;  %v3651_v11 = vrot.slane %v3650_v10, 4  ;;  %v3683_v60 = vshll.u32 %v7698_v9, 16  ;;  %v7739_v34 = vsel %vm7020_vm6, %v1289_v15, %v1290_v42  ;;  %v5079_v56 = vrot.slane %v1181_v29, 9  ;;  %v6520_v10 = vld [vmem:[%s6777_s10 + $0xa8] sm:$0xff]  }
  0xd9   : > { %6175 = vmatprep.subr.bf16.mxu1 %v7679_v25  ;;  %8578 = vst [vmem:[#allocation14_spill] sm:$0xff] %v7739_v34  ;;  %v1294_v32 = vrot.slane %v7161_v17, 5  ;;  %v3688_v59 = vshrl.u32 %v5409_v28, 16  ;;  %v8580_v27 = vsel %vm6795_vm3, %v7573_v31, %v7551_v22  ;;  %v3680_v17 = vor.u32 %v3679_v51, %v7709_v20  ;;  %v7771_v31 = vld [vmem:[%s6777_s10 + $0x6c] sm:$0xf] }
  0xda   : > { %v3691_v46 = vshll.u32 %v5409_v28, 16  ;;  %v7762_v12 = vcombine.low %v3612_v45, %v3622_v0  ;;  %v8581_v45 = vcombine.low %v7499_v26, %v7503_v43  ;;  %v7809_v28 = vld [vmem:[%s6777_s10 + $0x80] sm:$0xf] }
  0xdb   : > { %5932 = vmatmul.mubr.msk.bf16.gmra.mrb[4].mxu1 %vm663_vm2, %v8576_v5  ;;  %6092 = vmatmul.mubr.msk.bf16.gmra.mrb[20].mxu0 %vm663_vm2, %v6518_v33  ;;  %v3632_v33 = vsel %vm6795_vm3, %v3627_v54, %v7629_v62  ;;  %v3666_v54 = vsel %vm6795_vm3, %v3661_v44, %v3665_v6  ;;  %v7734_v62 = vsel %vm7020_vm6, %v1286_v39, %v1287_v36  ;;  %v7755_v36 = vrot.slane %v3670_v61, 4  ;;  %v7759_v6 = vld [vmem:[%s6777_s10 + $0x68] sm:$0xf]  ;;  %v7781_v39 = vld [vmem:[%s6777_s10 + $0x70] sm:$0xf] }
  0xdc   : > { %5935 = vmatprep.mubr.msk.bf16.mxu1 %vm663_vm2, %v8577_v18  ;;  %6095 = vmatprep.mubr.msk.bf16.mxu0 %vm663_vm2, %v6519_v41  ;;  %v3656_v41 = vsel %vm6795_vm3, %v3651_v11, %v7637_v53  ;;  %v8579_v53 = vsel %vm6795_vm3, %v7614_v55, %v7608_v50  ;;  %v7766_v50 = vcombine.low %v3632_v33, %v3642_v14  ;;  %v7777_v11 = vrot.slane %v3683_v60, 5  ;;  %v5414_v5 = vld [vmem:[%s6777_s10 + $0x78] sm:$0xf]  ;;  %v7794_v61 = vld [vmem:[%s6777_s10 + $0x7c] sm:$0xf] }
  0xdd   : > { %v7753_v16 = vcombine.low %v8580_v27, %v8579_v53  ;;  %v7773_v23 = vcombine.low %v3656_v41, %v3666_v54  ;;  %v1297_v44 = vrot.slane %v7172_v8, 5  ;;  %v7790_v0 = vsel %vm7020_vm6, %v5079_v56, %v1294_v32  ;;  %8582 = vst [vmem:[#allocation15_spill] sm:$0xff] %v7794_v61  ;;  %8584 = vst [vmem:[#allocation16_spill] sm:$0xff] %v7809_v28  ;;  %v7817_v41 = vld [vmem:[%s6777_s10 + $0x84] sm:$0xf] }
  0xde   : > { %v1296_v15 = vrot.slane %v1294_v32, 4  ;;  %v3690_v42 = vrot.slane %v3688_v59, 4  ;;  %v3697_v18 = vshll.u32 %v7759_v6, 16  ;;  %v8583_v8 = vcombine.low %v7507_v49, %v7515_v40  ;;  %8585 = vst [vmem:[#allocation17_spill] sm:$0xff] %v7817_v41 }
  0xdf   : > { %v7805_v43 = vrot.slane %v3680_v17, 4  ;;  %v3693_v51 = vrot.slane %v3691_v46, 5  ;;  %v3701_v29 = vshrl.u32 %v7759_v6, 16  ;;  %v3707_v33 = vshll.u32 %v7771_v31, 16  ;;  %v6522_v17 = vld [vmem:[%s6777_s10 + $0xbc] sm:$0xff]  }
  0xe0   : > { %v3711_v49 = vshrl.u32 %v7771_v31, 16  ;;  %v3717_v40 = vshll.u32 %v7781_v39, 16  ;;  %v3721_v14 = vshrl.u32 %v7781_v39, 16  ;;  %v3732_v54 = vshrl.u32 %v5414_v5, 16 }
  0xe1   : > { %v3735_v60 = vshll.u32 %v5414_v5, 16  ;;  %v3741_v56 = vshll.u32 %v7794_v61, 16  ;;  %v3745_v32 = vshrl.u32 %v7794_v61, 16  ;;  %v7823_v59 = vsel %vm7020_vm6, %v1296_v15, %v1297_v44 }
  0xe2   : > { %v3751_v53 = vshll.u32 %v7809_v28, 16  ;;  %v3755_v27 = vshrl.u32 %v7809_v28, 16  ;;  %v3694_v46 = vor.u32 %v3693_v51, %v3690_v42  ;;  %v3761_v5 = vshll.u32 %v7817_v41, 16 }
  0xe3   : > { %5936 = vmatmul.mubr.msk.bf16.gmra.mrb[8].mxu1 %vm663_vm2, %v8581_v45  ;;  %6096 = vmatmul.mubr.msk.bf16.gmra.mrb[24].mxu0 %vm663_vm2, %v6520_v10  ;;  %v7825_v10 = vrot.slane %v3697_v18, 5  ;;  %v3765_v45 = vshrl.u32 %v7817_v41, 16  ;;  %v7833_v1 = vrot.slane %v3707_v33, 5  ;;  %v3713_v22 = vrot.slane %v3711_v49, 4  ;;  %v7838_v18 = vld [vmem:[%s6777_s10 + $0x74] sm:$0x1] }
  0xe4   : > { %5939 = vmatprep.mubr.msk.bf16.mxu1 %vm663_vm2, %v8583_v8  ;;  %6099 = vmatprep.mubr.msk.bf16.mxu0 %vm663_vm2, %v6521_v21  ;;  %v3703_v21 = vrot.slane %v3701_v29, 4  ;;  %v5419_v8 = vld [vmem:[%s6777_s10 + $0x8c] sm:$0xf]  ;;  %v7835_v55 = vrot.slane %v3717_v40, 5  ;;  %v3723_v15 = vrot.slane %v3721_v14, 4  ;;  %8586 = vst [vmem:[#allocation18_spill] sm:$0xff] %v7838_v18  ;;  %v8587_v51 = vcombine.low %v7519_v52, %v7523_v57 }
  0xe5   : > { %v3734_v26 = vrot.slane %v3732_v54, 4  ;;  %v3737_v25 = vrot.slane %v3735_v60, 5  ;;  %v7840_v28 = vrot.slane %v3741_v56, 5  ;;  %v3747_v42 = vrot.slane %v3745_v32, 4  ;;  %v7858_v54 = vld [vmem:[%s6777_s10 + $0x88] sm:$0x1] }
  0xe6   : > { %v7846_v29 = vrot.slane %v3751_v53, 5  ;;  %v3757_v33 = vrot.slane %v3755_v27, 4  ;;  %v3776_v49 = vshrl.u32 %v5419_v8, 16  ;;  %v3779_v40 = vshll.u32 %v5419_v8, 16  ;;  %8589 = vst [vmem:[#allocation19_spill] sm:$0xff] %v7858_v54 }
  0xe7   : > { %v8588_v14 = vcombine.low %v7528_v63, %v7532_v47  ;;  %v1299_v57 = vrot.slane %v1297_v44, 4  ;;  %v7860_v60 = vrot.slane %v3761_v5, 5  ;;  %v3767_v56 = vrot.slane %v3765_v45, 4  ;;  %v6636_v63 = vld [vmem:[%s6777_s10 + $0x98] sm:$0xf] }
  0xe8   : > { %v3704_v32 = vor.u32 %v3703_v21, %v7825_v10  ;;  %v1300_v47 = vrot.slane %v6636_v63, 5  ;;  %v6637_v53 = vld [vmem:[%s6777_s10 + $0x9c] sm:$0x1]  ;;  %v7869_v8 = vld [vmem:[%s6777_s10 + $0x90] sm:$0xf]  ;;  %v3695_v44 = vrot.slane %v3694_v46, 4  ;;  %v3724_v5 = vor.u32 %v3723_v15, %v7835_v55 }
  0xe9   : > { %v1303_v27 = vrot.slane %v6637_v53, 5  ;;  %8590 = vst [vmem:[#allocation20_spill] sm:$0xff] %v7869_v8  ;;  %v3748_v45 = vor.u32 %v3747_v42, %v7840_v28  ;;  %v7876_v21 = vld [vmem:[%s6777_s10 + $0x94] sm:$0xf]  ;;  %v3778_v63 = vrot.slane %v3776_v49, 4  ;;  %v3781_v52 = vrot.slane %v3779_v40, 5 }
  0xea   : > { %8591 = vst [vmem:[#allocation21_spill] sm:$0xff] %v7876_v21  ;;  %v3768_v53 = vor.u32 %v3767_v56, %v7860_v60  ;;  %v3771_v41 = vshll.u32 %v7858_v54, 16  ;;  %v3785_v46 = vshll.u32 %v7869_v8, 16  ;;  %v3705_v61 = vrot.slane %v3704_v32, 4  ;;  %v6526_v42 = vld [vmem:[%s8537_s1 + $0x88] sm:$0xff]  }
  0xeb   : > { %5940 = vmatmul.mubr.msk.bf16.gmra.mrb[12].mxu1 %vm663_vm2, %v8587_v51  ;;  %6100 = vmatmul.mubr.msk.bf16.gmra.mrb[28].mxu0 %vm663_vm2, %v6522_v17  ;;  %v3727_v17 = vshll.u32 %v7838_v18, 16  ;;  %v3714_v51 = vor.u32 %v3713_v22, %v7833_v1  ;;  %v3789_v22 = vshrl.u32 %v7869_v8, 16  ;;  %v3725_v49 = vrot.slane %v3724_v5, 4  ;;  %v7891_v56 = vld [vmem:[%s6777_s10 + $0x98] sm:$0xf] }
  0xec   : > { %5943 = vmatprep.mubr.msk.bf16.mxu1 %vm663_vm2, %v8588_v14  ;;  %6107 = vmatprep.mubr.msk.bf16.mxu0 %vm663_vm2, %v7583_v37  ;;  %v3738_v14 = vor.u32 %v3737_v25, %v3734_v26  ;;  %v3758_v37 = vor.u32 %v3757_v33, %v7846_v29  ;;  %v7884_v25 = vsel %vm7020_vm6, %v1299_v57, %v1300_v47  ;;  %v1302_v26 = vrot.slane %v1300_v47, 4 }
  0xed   : > { %v3729_v15 = vrot.slane %v3727_v17, 5  ;;  %v3715_v33 = vrot.slane %v3714_v51, 4  ;;  %v3795_v40 = vshll.u32 %v7876_v21, 16  ;;  %v3799_v8 = vshrl.u32 %v7876_v21, 16 }
  0xee   : > { %v8592_v32 = vcombine.low %v7536_v58, %v7546_v3  ;;  %v3739_v57 = vrot.slane %v3738_v14, 4  ;;  %v3749_v47 = vrot.slane %v3748_v45, 4  ;;  %v3759_v17 = vrot.slane %v3758_v37, 4  ;;  %v7907_v58 = vld [vmem:[%s6777_s10 + $0x9c] sm:$0x1] }
  0xef   : > { %v3782_v54 = vor.u32 %v3781_v52, %v3778_v63  ;;  %v8593_v51 = vcombine.low %v7618_v38, %v7622_v48  ;;  %v3769_v5 = vrot.slane %v3768_v53, 4  ;;  %v3773_v18 = vrot.slane %v3771_v41, 5  ;;  %v5474_v37 = vld [vmem:[%s6777_s10 + $0x50] sm:$0xe] }
  0xf0   : > { %v7904_v21 = vrot.slane %v3785_v46, 5  ;;  %v3791_v34 = vrot.slane %v3789_v22, 4  ;;  %v3700_v3 = vsel %vm6795_vm3, %v3695_v44, %v7825_v10  ;;  %v7917_v48 = vsel %vm7020_vm6, %v1302_v26, %v1303_v27  ;;  %v7982_v22 = vld [vmem:[%s6777_s10 + $0xa4] sm:$0xf] }
  0xf1   : > { %v3805_v38 = vshll.u32 %v7891_v56, 16  ;;  %v3710_v41 = vsel %vm6795_vm3, %v3705_v61, %v7833_v1  ;;  %v3801_v10 = vrot.slane %v3799_v8, 4  ;;  %v3730_v52 = vsel %vm6795_vm3, %v3725_v49, %v3729_v15  ;;  %v5475_v49 = vld [vmem:[%s6777_s10 + $0x64] sm:$0xe] }
  0xf2   : > { %v3744_v27 = vsel %vm6795_vm3, %v3739_v57, %v7840_v28  ;;  %v7934_v44 = vrot.slane %v3782_v54, 4  ;;  %v3815_v1 = vshll.u32 %v7907_v58, 16  ;;  %v3764_v61 = vsel %vm6795_vm3, %v3759_v17, %v7860_v60 }
  0xf3   : > { %5944 = vmatmul.mubr.msk.bf16.gmra.mrb[16].mxu1 %vm663_vm2, %v8592_v32  ;;  %6108 = vmatmul.mubr.msk.bf16.vlgmr.msra.gmra.mrb[0].mxu0 %vm663_vm2, %v7753_v16  ;;  %v3809_v16 = vshrl.u32 %v7891_v56, 16  ;;  %v3774_v8 = vsel %vm6795_vm3, %v3769_v5, %v3773_v18  ;;  %v3792_v14 = vor.u32 %v3791_v34, %v7904_v21  ;;  %v8594_v28 = vsel %vm6795_vm3, %v7805_v43, %v7777_v11  ;;  %v5424_v34 = vld [vmem:[%s6777_s10 + $0xa0] sm:$0xf] }
  0xf4   : > { %5947 = vmatprep.mubr.msk.bf16.mxu1 %vm663_vm2, %v8593_v51  ;;  %6140 = vmatpush3.bf16.msra.mxu0 %v7428_v2  ;;  %v3720_v2 = vsel %vm6795_vm3, %v3715_v33, %v7835_v55  ;;  %v3754_v55 = vsel %vm6795_vm3, %v3749_v47, %v7846_v29  ;;  %v8595_v54 = vsel %vm6795_vm3, %v7755_v36, %v7709_v20  ;;  %v7958_v45 = vrot.slane %v3805_v38, 5 }
  0xf5   : > { %6111 = vmatprep.mubr.msk.bf16.mxu0 %vm663_vm2, %v7762_v12  ;;  %6141 = vmatprep.subr.bf16.mxu0 %v6526_v42  ;;  %v7927_v12 = vrot.slane %v3795_v40, 5  ;;  %v5443_v29 = vcombine.low %v8595_v54, %v8594_v28  ;;  %v5098_v60 = vcombine.low %v7790_v0, %v7823_v59  ;;  %v3811_v18 = vrot.slane %v3809_v16, 4  ;;  %v8599_v40 = vld [vmem:[#allocation12_spill] sm:$0xff]  ;;  %v8602_v28 = vld [vmem:[#allocation18_spill] sm:$0xff] }
  0xf6   : > { %v5444_v63 = vcombine.low %v3700_v3, %v3710_v41  ;;  %v5099_v11 = vcombine.low %v7884_v25, %v7917_v48  ;;  %v7964_v43 = vcombine.low %v3720_v2, %v3730_v52  ;;  %v8596_v36 = vcombine.low %v7684_v13, %v7707_v19 }
  0xf7   : > { %v3802_v20 = vor.u32 %v3801_v10, %v7927_v12  ;;  %v7971_v0 = vcombine.low %v3744_v27, %v3754_v55  ;;  %v7973_v59 = vcombine.low %v3764_v61, %v3774_v8  ;;  %v3788_v53 = vsel %vm6795_vm3, %v7934_v44, %v7904_v21 }
  0xf8   : > { %6142 = vmatpush3.bf16.msra.mxu0 %v6526_v42  ;;  %v7979_v46 = vrot.slane %v3815_v1, 5  ;;  %v8597_v13 = vcombine.low %v7721_v4, %v7725_v7  ;;  %v3793_v19 = vrot.slane %v3792_v14, 4  ;;  %v3820_v26 = vshrl.u32 %v5424_v34, 16  ;;  %v8598_v42 = vld [vmem:[#allocation10_spill] sm:$0xff]  ;;  %v8001_v7 = vld [vmem:[%s6777_s10 + $0xa8] sm:$0xf] }
  0xf9   : > { %v5482_v15 = vrot.slane %v5474_v37, 9  ;;  %v4289_v33 = vrot.slane %v8598_v42, 5  ;;  %v3812_v21 = vor.u32 %v3811_v18, %v7958_v45  ;;  %v4292_v32 = vrot.slane %v8599_v40, 5  ;;  %v8600_v1 = vld [vmem:[#allocation14_spill] sm:$0xff]  ;;  %v6638_v42 = vld [vmem:[%s6777_s10 + $0x6c] sm:$0xf] }
  0xfa   : > { %v4298_v57 = vrot.slane %v7698_v9, 5  ;;  %v7998_v4 = vrot.slane %v3802_v20, 4  ;;  %v3823_v47 = vshll.u32 %v5424_v34, 16  ;;  %v3829_v17 = vshll.u32 %v7982_v22, 16  ;;  %v5476_v20 = vld [vmem:[%s6777_s10 + $0x78] sm:$0xe] }
  0xfb   : > { %5948 = vmatmul.mubr.msk.bf16.gmra.mrb[20].mxu1 %vm663_vm2, %v8596_v36  ;;  %6112 = vmatmul.mubr.msk.bf16.gmra.mrb[4].mxu0 %vm663_vm2, %v7766_v50  ;;  %v4295_v50 = vrot.slane %v7666_v35, 5  ;;  %v8006_v51 = vsel %vm7020_vm6, %v5482_v15, %v4289_v33  ;;  %v4294_v5 = vrot.slane %v4292_v32, 4  ;;  %v5483_v38 = vrot.slane %v5475_v49, 9  ;;  %v8070_v15 = vld [vmem:[%s6777_s10 + $0xac] sm:$0xf] }
  0xfc   : > { %5951 = vmatprep.mubr.msk.bf16.mxu1 %vm663_vm2, %v8597_v13  ;;  %6115 = vmatprep.mubr.msk.bf16.mxu0 %vm663_vm2, %v7773_v23  ;;  %v4291_v23 = vrot.slane %v4289_v33, 4  ;;  %v3833_v16 = vshrl.u32 %v7982_v22, 16  ;;  %v4302_v35 = vrot.slane %v7759_v6, 5  ;;  %v4305_v9 = vrot.slane %v7771_v31, 5  ;;  %v8603_v40 = vld [vmem:[#allocation15_spill] sm:$0xff] }
  0xfd   : > { %v4297_v3 = vrot.slane %v4295_v50, 4  ;;  %v4308_v41 = vrot.slane %v7781_v39, 5  ;;  %v3839_v2 = vshll.u32 %v8001_v7, 16  ;;  %v8019_v52 = vsel %vm7020_vm6, %v4294_v5, %v4295_v50  ;;  %v6525_v50 = vld [vmem:[%s6777_s10 + $0x14] sm:$0xff]  }
  0xfe   : > { %v8015_v10 = vsel %vm7020_vm6, %v4291_v23, %v4292_v32  ;;  %v8031_v39 = vsel %vm7020_vm6, %v5483_v38, %v4302_v35  ;;  %v4304_v44 = vrot.slane %v4302_v35, 4  ;;  %v8601_v55 = vcombine.low %v7734_v62, %v8600_v1  ;;  %v8605_v23 = vld [vmem:[#allocation3_spill] sm:$0xff]  ;;  %v8606_v5 = vld [vmem:[#allocation4_spill] sm:$0xff] }
  0xff   : > { %v8023_v27 = vsel %vm7020_vm6, %v4297_v3, %v4298_v57  ;;  %v5496_v6 = vcombine.low %v8006_v51, %v8015_v10  ;;  %v3798_v61 = vsel %vm6795_vm3, %v3793_v19, %v7927_v12  ;;  %v4307_v8 = vrot.slane %v4305_v9, 4  ;;  %v5429_v38 = vld [vmem:[%s6777_s10 + $0xb4] sm:$0xf]  ;;  %v6645_v51 = vld [vmem:[%s6777_s10 + $0x84] sm:$0xf] }
 0x100   : > { %v5497_v31 = vcombine.low %v8019_v52, %v8023_v27  ;;  %v4310_v14 = vrot.slane %v4308_v41, 4  ;;  %v4311_v54 = vrot.slane %v8602_v28, 5  ;;  %v8043_v18 = vrot.slane %v3812_v21, 4 }
 0x101   : > { %v3822_v34 = vrot.slane %v3820_v26, 4  ;;  %v3825_v62 = vrot.slane %v3823_v47, 5  ;;  %v8047_v37 = vsel %vm7020_vm6, %v4304_v44, %v4305_v9  ;;  %v8051_v12 = vrot.slane %v3829_v17, 5  ;;  %v8604_v47 = vld [vmem:[#allocation16_spill] sm:$0xff] }
 0x102   : > { %v8061_v36 = vsel %vm7020_vm6, %v4310_v14, %v4311_v54  ;;  %v8063_v13 = vcombine.low %v3788_v53, %v3798_v61  ;;  %v3835_v19 = vrot.slane %v3833_v16, 4  ;;  %v8065_v26 = vrot.slane %v3839_v2, 5  ;;  %v8097_v14 = vld [vmem:[%s6777_s10 + $0xb8] sm:$0xf] }
 0x103   : > { %5952 = vmatmul.mubr.msk.bf16.gmra.mrb[24].mxu1 %vm663_vm2, %v8601_v55  ;;  %6116 = vmatmul.mubr.msk.bf16.gmra.mrb[8].mxu0 %vm663_vm2, %v5443_v29  ;;  %v5498_v29 = vcombine.low %v8031_v39, %v8047_v37  ;;  %v2221_v33 = vshll.u32 %v6638_v42, 16  ;;  %v2225_v49 = vshrl.u32 %v6638_v42, 16  ;;  %v5484_v21 = vrot.slane %v5476_v20, 9  ;;  %v8607_v55 = vld [vmem:[#allocation17_spill] sm:$0xff]  ;;  %v6541_v39 = vld [vmem:[%s6777_s10 + $0xa8] sm:$0xff]  }
 0x104   : > { %5955 = vmatprep.mubr.msk.bf16.mxu1 %vm663_vm2, %v5098_v60  ;;  %6119 = vmatprep.mubr.msk.bf16.mxu0 %vm663_vm2, %v5444_v63  ;;  %v8057_v60 = vsel %vm7020_vm6, %v4307_v8, %v4308_v41  ;;  %v4315_v32 = vrot.slane %v8603_v40, 5  ;;  %v3826_v57 = vor.u32 %v3825_v62, %v3822_v34  ;;  %v3843_v53 = vshrl.u32 %v8001_v7, 16  ;;  %v8608_v34 = vld [vmem:[#allocation19_spill] sm:$0xff] }
 0x105   : > { %v5499_v63 = vcombine.low %v8057_v60, %v8061_v36  ;;  %v4318_v17 = vrot.slane %v8604_v47, 5  ;;  %v2244_v3 = vsel %vm6795_vm3, %v8606_v5, %v8605_v23  ;;  %v8082_v16 = vrot.slane %v2221_v33, 5  ;;  %v8609_v47 = vld [vmem:[#allocation2_spill] sm:$0xff] }
 0x106   : > { %v2227_v35 = vrot.slane %v2225_v49, 4  ;;  %v8086_v9 = vsel %vm7020_vm6, %v5484_v21, %v4315_v32  ;;  %v4317_v41 = vrot.slane %v4315_v32, 4  ;;  %v3836_v2 = vor.u32 %v3835_v19, %v8051_v12  ;;  %v5477_v19 = vld [vmem:[%s6777_s10 + $0x8c] sm:$0xe]  ;;  %v6650_v60 = vld [vmem:[%s6777_s10 + $0xa4] sm:$0xf] }
 0x107   : > { %v3849_v44 = vshll.u32 %v8070_v15, 16  ;;  %v4320_v1 = vrot.slane %v4318_v17, 4  ;;  %v4321_v61 = vrot.slane %v8607_v55, 5  ;;  %v3853_v8 = vshrl.u32 %v8070_v15, 16 }
 0x108   : > { %v2228_v28 = vor.u32 %v2227_v35, %v8082_v16  ;;  %v8102_v54 = vsel %vm7020_vm6, %v4317_v41, %v4318_v17  ;;  %v4324_v62 = vrot.slane %v8608_v34, 5  ;;  %v3864_v25 = vshrl.u32 %v5429_v38, 16 }
 0x109   : > { %v3867_v48 = vshll.u32 %v5429_v38, 16  ;;  %v4323_v20 = vrot.slane %v4321_v61, 4  ;;  %v3827_v42 = vrot.slane %v3826_v57, 4  ;;  %v3845_v33 = vrot.slane %v3843_v53, 4  ;;  %v8127_v57 = vld [vmem:[%s6777_s10 + $0xb0] sm:$0x1] }
 0x10a   : > { %v2229_v49 = vrot.slane %v2228_v28, 4  ;;  %v8117_v21 = vrot.slane %v3849_v44, 5  ;;  %v3873_v40 = vshll.u32 %v8097_v14, 16  ;;  %v3877_v32 = vshrl.u32 %v8097_v14, 16  ;;  %v8610_v28 = vld [vmem:[#allocation20_spill] sm:$0xff] }
 0x10b   : > { %5956 = vmatmul.mubr.msk.bf16.gmra.mrb[28].mxu1 %vm663_vm2, %v5099_v11  ;;  %6120 = vmatmul.mubr.msk.bf16.gmra.mrb[12].mxu0 %vm663_vm2, %v7964_v43  ;;  %v5500_v11 = vcombine.low %v8086_v9, %v8102_v54  ;;  %v8115_v43 = vsel %vm7020_vm6, %v4320_v1, %v4321_v61  ;;  %v3855_v53 = vrot.slane %v3853_v8, 4  ;;  %v5485_v5 = vrot.slane %v5477_v19, 9  ;;  %v6528_v1 = vld [vmem:[%s6777_s10 + $0x28] sm:$0xff]   ;;  %v8146_v8 = vld [vmem:[%s6777_s10 + $0xbc] sm:$0xf] }
 0x10c   : > { %5963 = vmatprep.mubr.msk.bf16.mxu1 %vm663_vm2, %v6525_v50  ;;  %6123 = vmatprep.mubr.msk.bf16.mxu0 %vm663_vm2, %v7971_v0  ;;  %v8123_v50 = vsel %vm7020_vm6, %v4323_v20, %v4324_v62  ;;  %v6527_v0 = vld [vmem:[%s6777_s10 + $0x1c] sm:$0xff]   ;;  %v2234_v17 = vsel %vm6795_vm3, %v2229_v49, %v8609_v47  ;;  %v3837_v38 = vrot.slane %v3836_v2, 4  ;;  %v3866_v35 = vrot.slane %v3864_v25, 4 }
 0x10d   : > { %v5501_v23 = vcombine.low %v8115_v43, %v8123_v50  ;;  %v3869_v41 = vrot.slane %v3867_v48, 5  ;;  %v8134_v44 = vcombine.low %v2234_v17, %v2244_v3  ;;  %v3808_v55 = vsel %vm6795_vm3, %v7998_v4, %v7958_v45  ;;  %v8611_v2 = vld [vmem:[#allocation21_spill] sm:$0xff]  ;;  %v8157_v4 = vld [vmem:[%s6777_s10 + $0xc0] sm:$0xf] }
 0x10e   : > { %v3818_v61 = vsel %vm6795_vm3, %v8043_v18, %v7979_v46  ;;  %v4328_v34 = vrot.slane %v8610_v28, 5  ;;  %v4331_v62 = vrot.slane %v8611_v2, 5  ;;  %v3832_v3 = vsel %vm6795_vm3, %v3827_v42, %v8051_v12  ;;  %v8612_v49 = vld [vmem:[#allocation13_spill] sm:$0xff] }
 0x10f   : > { %v3859_v25 = vshll.u32 %v8127_v57, 16  ;;  %v8154_v48 = vrot.slane %v3873_v40, 5  ;;  %v3879_v45 = vrot.slane %v3877_v32, 4  ;;  %v3846_v46 = vor.u32 %v3845_v33, %v8065_v26 }
 0x110   : > { %v3856_v18 = vor.u32 %v3855_v53, %v8117_v21  ;;  %v8164_v20 = vsel %vm7020_vm6, %v5485_v5, %v4328_v34  ;;  %v4330_v19 = vrot.slane %v4328_v34, 4  ;;  %v3842_v12 = vsel %vm6795_vm3, %v3837_v38, %v8065_v26  ;;  %v6639_v5 = vld [vmem:[%s8537_s1 + $0x48] sm:$0xff]   ;;  %v6529_v38 = vld [vmem:[%s6777_s10 + $0x30] sm:$0xff]  }
 0x111   : > { %v3870_v42 = vor.u32 %v3869_v41, %v3866_v35  ;;  %v3883_v33 = vshll.u32 %v8146_v8, 16  ;;  %v3887_v40 = vshrl.u32 %v8146_v8, 16  ;;  %v3893_v32 = vshll.u32 %v8157_v4, 16 }
 0x112   : > { %v4333_v26 = vrot.slane %v4331_v62, 4  ;;  %v5449_v53 = vcombine.low %v3808_v55, %v3818_v61  ;;  %v3861_v47 = vrot.slane %v3859_v25, 5  ;;  %v3880_v17 = vor.u32 %v3879_v45, %v8154_v48  ;;  %v6530_v55 = vld [vmem:[%s6777_s10 + $0x3c] sm:$0xff]  }
 0x113   : > { %5964 = vmatmul.mubr.msk.bf16.vlgmr.msra.gmra.mrb[0].mxu1 %vm663_vm2, %v6527_v0  ;;  %6124 = vmatmul.mubr.msk.bf16.gmra.mrb[16].mxu0 %vm663_vm2, %v7973_v59  ;;  %v3897_v59 = vshrl.u32 %v8157_v4, 16  ;;  %v8181_v0 = vsel %vm7020_vm6, %v4330_v19, %v4331_v62  ;;  %v3847_v35 = vrot.slane %v3846_v46, 4  ;;  %v3857_v41 = vrot.slane %v3856_v18, 4  ;;  %v8194_v62 = vld [vmem:[%s6777_s10 + $0xc4] sm:$0x1] }
 0x114   : > { %6177 = vmatpush3.bf16.msra.mxu1 %v8612_v49  ;;  %5967 = vmatprep.mubr.msk.bf16.mxu1 %vm663_vm2, %v6528_v1  ;;  %v4334_v1 = vrot.slane %v7891_v56, 5  ;;  %v4337_v28 = vrot.slane %v7907_v58, 5  ;;  %v5450_v61 = vcombine.low %v3832_v3, %v3842_v12  ;;  %v3871_v34 = vrot.slane %v3870_v42, 4  ;;  %v5478_v18 = vld [vmem:[%s6777_s10 + $0xa0] sm:$0xe] }
 0x115   : > { %6127 = vmatprep.mubr.msk.bf16.mxu0 %vm663_vm2, %v8063_v13  ;;  %6176 = vmatprep.subr.bf16.mxu1 %v6639_v5  ;;  %v5502_v13 = vcombine.low %v8164_v20, %v8181_v0  ;;  %v3885_v2 = vrot.slane %v3883_v33, 5  ;;  %v3889_v25 = vrot.slane %v3887_v40, 4  ;;  %v8196_v45 = vrot.slane %v3893_v32, 5 }
 0x116   : > { %v3899_v19 = vrot.slane %v3897_v59, 4  ;;  %v8200_v49 = vsel %vm7020_vm6, %v4333_v26, %v4334_v1  ;;  %v4336_v46 = vrot.slane %v4334_v1, 4  ;;  %v3881_v56 = vrot.slane %v3880_v17, 4 }
 0x117   : > { %v3852_v58 = vsel %vm6795_vm3, %v3847_v35, %v8117_v21  ;;  %v3862_v3 = vsel %vm6795_vm3, %v3857_v41, %v3861_v47  ;;  %v3903_v42 = vshll.u32 %v8194_v62, 16  ;;  %v5486_v21 = vrot.slane %v5478_v18, 9  ;;  %v6531_v41 = vld [vmem:[%s6777_s10 + $0x44] sm:$0xff]   ;;  %v6641_v18 = vld [vmem:[%s6777_s10 + $0x30] sm:$0xf] }
 0x118   : > { %6178 = vmatpush3.bf16.msra.mxu1 %v6639_v5  ;;  %v8211_v12 = vsel %vm7020_vm6, %v4336_v46, %v4337_v28  ;;  %v4341_v40 = vrot.slane %v7982_v22, 5  ;;  %v3876_v32 = vsel %vm6795_vm3, %v3871_v34, %v8154_v48  ;;  %v3890_v59 = vor.u32 %v3889_v25, %v3885_v2  ;;  %v6640_v5 = vld [vmem:[%s6777_s10 + $0x2c] sm:$0xf]  ;;  %v6532_v48 = vld [vmem:[%s6777_s10 + $0x50] sm:$0xff]  }
 0x119   : > { %v5503_v33 = vcombine.low %v8200_v49, %v8211_v12  ;;  %v3900_v26 = vor.u32 %v3899_v19, %v8196_v45  ;;  %v4344_v47 = vrot.slane %v8001_v7, 5  ;;  %v3886_v17 = vsel %vm6795_vm3, %v3881_v56, %v3885_v2 }
 0x11a   : > { %v8231_v22 = vsel %vm7020_vm6, %v5486_v21, %v4341_v40  ;;  %v4343_v35 = vrot.slane %v4341_v40, 4  ;;  %v5451_v1 = vcombine.low %v3852_v58, %v3862_v3  ;;  %v3905_v28 = vrot.slane %v3903_v42, 5  ;;  %v8613_v42 = vld [vmem:[#allocation5_spill] sm:$0xff] }
 0x11b   : > { %5968 = vmatmul.mubr.msk.bf16.gmra.mrb[4].mxu1 %vm663_vm2, %v6529_v38  ;;  %6128 = vmatmul.mubr.msk.bf16.gmra.mrb[20].mxu0 %vm663_vm2, %v5449_v53  ;;  %v5472_v53 = vld [vmem:[%s6777_s10 + $0x28] sm:$0xe]  ;;  %v4263_v38 = vrot.slane %v6640_v5, 5  ;;  %v4346_v7 = vrot.slane %v4344_v47, 4  ;;  %v5452_v34 = vcombine.low %v3876_v32, %v3886_v17  ;;  %v3891_v2 = vrot.slane %v3890_v59, 4 }
 0x11c   : > { %5971 = vmatprep.mubr.msk.bf16.mxu1 %vm663_vm2, %v6530_v55  ;;  %6131 = vmatprep.mubr.msk.bf16.mxu0 %vm663_vm2, %v5450_v61  ;;  %v5480_v55 = vrot.slane %v5472_v53, 9  ;;  %v8237_v61 = vsel %vm7020_vm6, %v4343_v35, %v4344_v47  ;;  %v3901_v25 = vrot.slane %v3900_v26, 4  ;;  %v4266_v56 = vrot.slane %v6641_v18, 5  ;;  %v5479_v59 = vld [vmem:[%s6777_s10 + $0xb4] sm:$0xe]  ;;  %v8614_v17 = vld [vmem:[#allocation7_spill] sm:$0xff] }
 0x11d   : > { %v5504_v19 = vcombine.low %v8231_v22, %v8237_v61  ;;  %v4265_v46 = vrot.slane %v4263_v38, 4  ;;  %v4347_v58 = vrot.slane %v8070_v15, 5  ;;  %v4350_v3 = vrot.slane %v8127_v57, 5  ;;  %v5473_v47 = vld [vmem:[%s6777_s10 + $0x3c] sm:$0xe] }
 0x11e   : > { %v4269_v21 = vrot.slane %v8613_v42, 5  ;;  %v3896_v15 = vsel %vm6795_vm3, %v3891_v2, %v8196_v45  ;;  %v3906_v57 = vsel %vm6795_vm3, %v3901_v25, %v3905_v28  ;;  %v4264_v26 = vsel %vm7020_vm6, %v5480_v55, %v4263_v38  ;;  %v8615_v38 = vld [vmem:[#allocation6_spill] sm:$0xff] }
 0x11f   : > { %v8250_v40 = vsel %vm7020_vm6, %v4346_v7, %v4347_v58  ;;  %v4349_v32 = vrot.slane %v4347_v58, 4  ;;  %v4267_v53 = vsel %vm7020_vm6, %v4265_v46, %v4266_v56  ;;  %v4276_v5 = vrot.slane %v8614_v17, 5  ;;  %v6534_v7 = vld [vmem:[%s6777_s10 + $0x64] sm:$0xff]  }
 0x120   : > { %v5453_v28 = vcombine.low %v3896_v15, %v3906_v57  ;;  %v4272_v55 = vrot.slane %v8615_v38, 5  ;;  %v4354_v2 = vrot.slane %v8097_v14, 5  ;;  %v5492_v25 = vcombine.low %v4264_v26, %v4267_v53  ;;  %v8618_v38 = vld [vmem:[#allocation11_spill] sm:$0xff] }
 0x121   : > { %v8267_v35 = vsel %vm7020_vm6, %v4349_v32, %v4350_v3  ;;  %v5481_v46 = vrot.slane %v5473_v47, 9  ;;  %v4357_v18 = vrot.slane %v8146_v8, 5  ;;  %v4278_v58 = vrot.slane %v4276_v5, 4  ;;  %v8616_v3 = vld [vmem:[#allocation8_spill] sm:$0xff]  ;;  %v8617_v8 = vld [vmem:[#allocation9_spill] sm:$0xff] }
 0x122   : > { %v5505_v45 = vcombine.low %v8250_v40, %v8267_v35  ;;  %v4279_v42 = vrot.slane %v8616_v3, 5  ;;  %v4356_v32 = vrot.slane %v4354_v2, 4  ;;  %v4282_v15 = vrot.slane %v8617_v8, 5  ;;  %v6537_v8 = vld [vmem:[%s6777_s10 + $0x80] sm:$0xff]  }
 0x123   : > { %5972 = vmatmul.mubr.msk.bf16.gmra.mrb[8].mxu1 %vm663_vm2, %v6531_v41  ;;  %6132 = vmatmul.mubr.msk.bf16.gmra.mrb[24].mxu0 %vm663_vm2, %v5451_v1  ;;  %v6533_v41 = vld [vmem:[%s6777_s10 + $0x58] sm:$0xff]   ;;  %v4268_v1 = vrot.slane %v4266_v56, 4  ;;  %v4359_v26 = vrot.slane %v4357_v18, 4  ;;  %v4277_v53 = vsel %vm7020_vm6, %v5481_v46, %v4276_v5  ;;  %v4360_v17 = vrot.slane %v8157_v4, 5  ;;  %v5210_v46 = vld [vmem:[%s6777_s10 + $0x64] sm:$0xf] }
 0x124   : > { %5975 = vmatprep.mubr.msk.bf16.mxu1 %vm663_vm2, %v6532_v48  ;;  %6135 = vmatprep.mubr.msk.bf16.mxu0 %vm663_vm2, %v5452_v34  ;;  %v5487_v48 = vrot.slane %v5479_v59, 9  ;;  %v4271_v34 = vrot.slane %v4269_v21, 4  ;;  %v8291_v57 = vsel %vm7020_vm6, %v4356_v32, %v4357_v18  ;;  %v4280_v47 = vsel %vm7020_vm6, %v4278_v58, %v4279_v42  ;;  %v6642_v32 = vld [vmem:[%s6777_s10 + $0x68] sm:$0xf] }
 0x125   : > { %v4270_v59 = vsel %vm7020_vm6, %v4268_v1, %v4269_v21  ;;  %v6535_v1 = vld [vmem:[%s6777_s10 + $0x6c] sm:$0xff]   ;;  %v4362_v5 = vrot.slane %v4360_v17, 4  ;;  %v2202_v3 = vshrl.u32 %v5210_v46, 16  ;;  %v2275_v10 = vshll.u32 %v6645_v51, 16 }
 0x126   : > { %v8279_v56 = vsel %vm7020_vm6, %v5487_v48, %v4354_v2  ;;  %v4273_v14 = vsel %vm7020_vm6, %v4271_v34, %v4272_v55  ;;  %v4284_v34 = vrot.slane %v4282_v15, 4  ;;  %v4285_v55 = vrot.slane %v8618_v38, 5 }
 0x127   : > { %v5506_v21 = vcombine.low %v8279_v56, %v8291_v57  ;;  %v5493_v48 = vcombine.low %v4270_v59, %v4273_v14  ;;  %v8307_v2 = vsel %vm7020_vm6, %v4359_v26, %v4360_v17  ;;  %v2211_v59 = vshll.u32 %v6642_v32, 16 }
 0x128   : > { %v4286_v58 = vsel %vm7020_vm6, %v4284_v34, %v4285_v55  ;;  %v2215_v14 = vshrl.u32 %v6642_v32, 16  ;;  %v2343_v36 = vshll.u32 %v6650_v60, 16 }
 0x12a   : > { %v2345_v54 = vrot.slane %v2343_v36, 5 }
 0x12b   : > { %5976 = vmatmul.mubr.msk.bf16.gmra.mrb[12].mxu1 %vm663_vm2, %v6533_v41  ;;  %6136 = vmatmul.mubr.msk.bf16.gmra.mrb[28].mxu0 %vm663_vm2, %v5453_v28  ;;  %v4363_v41 = vrot.slane %v8194_v62, 5  ;;  %v4281_v28 = vrot.slane %v4279_v42, 4  ;;  %v2205_v42 = vshll.u32 %v5210_v46, 16  ;;  %v6540_v46 = vld [vmem:[%s6777_s10 + $0xa0] sm:$0xff]  }
 0x12c   : > { %5979 = vmatprep.mubr.msk.bf16.mxu1 %vm663_vm2, %v6534_v7  ;;  %6143 = vmatprep.mubr.msk.bf16.mxu0 %vm663_vm2, %v5492_v25  ;;  %v6536_v7 = vld [vmem:[%s6777_s10 + $0x78] sm:$0xff]   ;;  %v5494_v25 = vcombine.low %v4277_v53, %v4280_v47  ;;  %v6538_v53 = vld [vmem:[%s6777_s10 + $0x8c] sm:$0xff]   ;;  %v2204_v47 = vrot.slane %v2202_v3, 4 }
 0x12d   : > { %v8312_v4 = vsel %vm7020_vm6, %v4362_v5, %v4363_v41  ;;  %v4283_v18 = vsel %vm7020_vm6, %v4281_v28, %v4282_v15  ;;  %v2207_v17 = vrot.slane %v2205_v42, 5  ;;  %v2213_v41 = vrot.slane %v2211_v59, 5  ;;  %v6643_v28 = vld [vmem:[%s6777_s10 + $0x7c] sm:$0xf]  ;;  %v6539_v5 = vld [vmem:[%s6777_s10 + $0x94] sm:$0xff]  }
 0x12e   : > { %v5507_v62 = vcombine.low %v8307_v2, %v8312_v4  ;;  %v5495_v26 = vcombine.low %v4283_v18, %v4286_v58  ;;  %v2217_v15 = vrot.slane %v2215_v14, 4  ;;  %v2259_v34 = vshrl.u32 %v6643_v28, 16  ;;  %v6644_v14 = vld [vmem:[%s6777_s10 + $0x80] sm:$0xf] }
 0x12f   : > { %v2208_v38 = vor.u32 %v2207_v17, %v2204_v47  ;;  %v6646_v17 = vld [vmem:[%s6777_s10 + $0x90] sm:$0xf] }
 0x130   : > { %v2218_v55 = vor.u32 %v2217_v15, %v2213_v41  ;;  %v2261_v42 = vrot.slane %v2259_v34, 4  ;;  %v2299_v15 = vshll.u32 %v6646_v17, 16 }
 0x131   : > { %v2209_v32 = vrot.slane %v2208_v38, 4 }
 0x132   : > { %v2219_v59 = vrot.slane %v2218_v55, 4  ;;  %v8363_v37 = vrot.slane %v2299_v15, 5 }
 0x133   : > { %5980 = vmatmul.mubr.msk.bf16.gmra.mrb[16].mxu1 %vm663_vm2, %v6535_v1  ;;  %6144 = vmatmul.mubr.msk.bf16.vlgmr.msra.gmra.mrb[0].mxu0 %vm663_vm2, %v5493_v48  ;;  %v2246_v1 = vshrl.u32 %v5215_v24, 16  ;;  %v2249_v48 = vshll.u32 %v5215_v24, 16  ;;  %v2303_v24 = vshrl.u32 %v6646_v17, 16 }
 0x134   : > { %5983 = vmatprep.mubr.msk.bf16.mxu1 %vm663_vm2, %v6536_v7  ;;  %6147 = vmatprep.mubr.msk.bf16.mxu0 %vm663_vm2, %v5494_v25  ;;  %v2255_v7 = vshll.u32 %v6643_v28, 16  ;;  %v5220_v25 = vld [vmem:[%s6777_s10 + $0x8c] sm:$0xf]  ;;  %v2214_v28 = vsel %vm6795_vm3, %v2209_v32, %v2213_v41  ;;  %v2224_v52 = vsel %vm6795_vm3, %v2219_v59, %v8082_v16  ;;  %v6648_v32 = vld [vmem:[%s6777_s10 + $0x94] sm:$0xf] }
 0x135   : > { %v2248_v18 = vrot.slane %v2246_v1, 4  ;;  %v2251_v58 = vrot.slane %v2249_v48, 5  ;;  %v2293_v47 = vshll.u32 %v5220_v25, 16  ;;  %v2309_v59 = vshll.u32 %v6648_v32, 16 }
 0x136   : > { %v8339_v3 = vrot.slane %v2255_v7, 5  ;;  %v8360_v7 = vrot.slane %v2275_v10, 5 }
 0x137   : > { %v2252_v1 = vor.u32 %v2251_v58, %v2248_v18  ;;  %v2295_v55 = vrot.slane %v2293_v47, 5 }
 0x138   : > { %v2262_v48 = vor.u32 %v2261_v42, %v8339_v3 }
 0x139   : > { %v2253_v41 = vrot.slane %v2252_v1, 4 }
 0x13b   : > { %5984 = vmatmul.mubr.msk.bf16.gmra.mrb[20].mxu1 %vm663_vm2, %v6537_v8  ;;  %6148 = vmatmul.mubr.msk.bf16.gmra.mrb[4].mxu0 %vm663_vm2, %v5495_v26  ;;  %v2265_v8 = vshll.u32 %v6644_v14, 16  ;;  %v2269_v26 = vshrl.u32 %v6644_v14, 16  ;;  %v5225_v14 = vld [vmem:[%s6777_s10 + $0xa0] sm:$0xf] }
 0x13c   : > { %5987 = vmatprep.mubr.msk.bf16.mxu1 %vm663_vm2, %v6538_v53  ;;  %6151 = vmatprep.mubr.msk.bf16.mxu0 %vm663_vm2, %v5496_v6  ;;  %v2279_v53 = vshrl.u32 %v6645_v51, 16  ;;  %v2290_v6 = vshrl.u32 %v5220_v25, 16  ;;  %v2263_v25 = vrot.slane %v2262_v48, 4  ;;  %v6649_v51 = vld [vmem:[%s6777_s10 + $0x98] sm:$0xf]  ;;  %v2334_v15 = vshrl.u32 %v5225_v14, 16 }
 0x13d   : > { %v2267_v27 = vrot.slane %v2265_v8, 5  ;;  %v2319_v10 = vshll.u32 %v6649_v51, 16 }
 0x13e   : > { %v2281_v34 = vrot.slane %v2279_v53, 4  ;;  %v2292_v38 = vrot.slane %v2290_v6, 4  ;;  %v2323_v53 = vshrl.u32 %v6649_v51, 16  ;;  %v2258_v6 = vsel %vm6795_vm3, %v2253_v41, %v8339_v3 }
 0x13f   : > { %v2268_v47 = vsel %vm6795_vm3, %v2263_v25, %v2267_v27 }
 0x140   : > { %v2282_v58 = vor.u32 %v2281_v34, %v8360_v7  ;;  %v2296_v42 = vor.u32 %v2295_v55, %v2292_v38  ;;  %v2321_v34 = vrot.slane %v2319_v10, 5  ;;  %v5244_v38 = vcombine.low %v2258_v6, %v2268_v47 }
 0x141   : > { %v2336_v55 = vrot.slane %v2334_v15, 4 }
 0x142   : > { %v2283_v48 = vrot.slane %v2282_v58, 4 }
 0x143   : > { %5988 = vmatmul.mubr.msk.bf16.gmra.mrb[24].mxu1 %vm663_vm2, %v6539_v5  ;;  %6152 = vmatmul.mubr.msk.bf16.gmra.mrb[8].mxu0 %vm663_vm2, %v5497_v31  ;;  %v2271_v31 = vrot.slane %v2269_v26, 4  ;;  %v5242_v5 = vcombine.low %v2214_v28, %v2224_v52  ;;  %v2313_v26 = vshrl.u32 %v6648_v32, 16  ;;  %v2297_v28 = vrot.slane %v2296_v42, 4 }
 0x144   : > { %5991 = vmatprep.mubr.msk.bf16.mxu1 %vm663_vm2, %v6540_v46  ;;  %6155 = vmatprep.mubr.msk.bf16.mxu0 %vm663_vm2, %v5498_v29  ;;  %v2305_v29 = vrot.slane %v2303_v24, 4  ;;  %v6647_v46 = vld [vmem:[%s6777_s10 + $0x88] sm:$0x1]  ;;  %v2337_v24 = vshll.u32 %v5225_v14, 16  ;;  %v2311_v52 = vrot.slane %v2309_v59, 5 }
 0x145   : > { %v2285_v18 = vshll.u32 %v6647_v46, 16  ;;  %v2272_v16 = vor.u32 %v2271_v31, %v2267_v27  ;;  %v2315_v31 = vrot.slane %v2313_v26, 4  ;;  %v2325_v27 = vrot.slane %v2323_v53, 4 }
 0x146   : > { %v2306_v8 = vor.u32 %v2305_v29, %v8363_v37  ;;  %v2339_v9 = vrot.slane %v2337_v24, 5  ;;  %v2302_v25 = vsel %vm6795_vm3, %v2297_v28, %v8363_v37  ;;  %v6654_v24 = vld [vmem:[%s6777_s10 + $0xb0] sm:$0x1] }
 0x147   : > { %v2287_v17 = vrot.slane %v2285_v18, 5  ;;  %v2273_v1 = vrot.slane %v2272_v16, 4  ;;  %v2316_v18 = vor.u32 %v2315_v31, %v2311_v52  ;;  %v2326_v16 = vor.u32 %v2325_v27, %v2321_v34 }
 0x148   : > { %v2307_v3 = vrot.slane %v2306_v8, 4  ;;  %v2340_v37 = vor.u32 %v2339_v9, %v2336_v55  ;;  %v8461_v55 = vld [vmem:[%s8538_s2] ss:$0 sm:$0xff] }
 0x149   : > { %v2288_v29 = vsel %vm6795_vm3, %v2283_v48, %v2287_v17  ;;  %v2317_v43 = vrot.slane %v2316_v18, 4  ;;  %v2327_v50 = vrot.slane %v2326_v16, 4 }
 0x14a   : > { %v2312_v46 = vsel %vm6795_vm3, %v2307_v3, %v2311_v52  ;;  %v2341_v47 = vrot.slane %v2340_v37, 4 }
 0x14b   : > { %5992 = vmatmul.mubr.msk.bf16.gmra.mrb[28].mxu1 %vm663_vm2, %v6541_v39  ;;  %6156 = vmatmul.mubr.msk.bf16.gmra.mrb[12].mxu0 %vm663_vm2, %v5499_v63  ;;  %v2347_v63 = vshrl.u32 %v6650_v60, 16  ;;  %v2278_v39 = vsel %vm6795_vm3, %v2273_v1, %v8360_v7  ;;  %v6652_v7 = vld [vmem:[%s6777_s10 + $0xa8] sm:$0xf]  ;;  %v5246_v26 = vcombine.low %v2302_v25, %v2312_v46  ;;  %v2322_v20 = vsel %vm6795_vm3, %v2317_v43, %v2321_v34 }
 0x14c   : > { %6015 = vmatprep.mubr.msk.bf16.mxu1 %vm663_vm2, %v5242_v5  ;;  %6159 = vmatprep.mubr.msk.bf16.mxu0 %vm663_vm2, %v5500_v11  ;;  %v6651_v5 = vld [vmem:[%s6777_s10 + $0x9c] sm:$0x1]  ;;  %v2353_v58 = vshll.u32 %v6652_v7, 16  ;;  %v2357_v42 = vshrl.u32 %v6652_v7, 16  ;;  %v5245_v8 = vcombine.low %v2278_v39, %v2288_v29  ;;  %v2373_v60 = vshll.u32 %v6654_v24, 16 }
 0x14d   : > { %v2349_v11 = vrot.slane %v2347_v63, 4  ;;  %v2329_v41 = vshll.u32 %v6651_v5, 16  ;;  %v2346_v36 = vsel %vm6795_vm3, %v2341_v47, %v2345_v54 }
 0x14e   : > { %v2355_v51 = vrot.slane %v2353_v58, 5  ;;  %v2359_v10 = vrot.slane %v2357_v42, 4  ;;  %v2375_v48 = vrot.slane %v2373_v60, 5 }
 0x14f   : > { %v2350_v14 = vor.u32 %v2349_v11, %v2345_v54 }
 0x151   : > { %v2351_v17 = vrot.slane %v2350_v14, 4 }
 0x153   : > { %6016 = vmatmul.mubr.msk.bf16.vlgmr.msra.gmra.mrb[16].mxu1 %vm663_vm2, %v8134_v44  ;;  %6160 = vmatmul.mubr.msk.bf16.gmra.mrb[16].mxu0 %vm663_vm2, %v5501_v23  ;;  %v6653_v44 = vld [vmem:[%s6777_s10 + $0xac] sm:$0xf]  ;;  %v2331_v23 = vrot.slane %v2329_v41, 5  ;;  %v2356_v49 = vsel %vm6795_vm3, %v2351_v17, %v2355_v51  ;;  %s4994_s10 = sshll.u32 %s6681_s13, 2 }
 0x154   : > { %6019 = vmatprep.mubr.msk.bf16.mxu1 %vm663_vm2, %v5244_v38  ;;  %v2363_v32 = vshll.u32 %v6653_v44, 16  ;;  %v2367_v59 = vshrl.u32 %v6653_v44, 16  ;;  %6163 = vmatprep.mubr.msk.bf16.mxu0 %vm663_vm2, %v5502_v13  ;;  %v2360_v13 = vor.u32 %v2359_v10, %v2355_v51  ;;  %s185_s4 = sadd.s32 %s6677_s12, %s4994_s10 }
 0x155   : > { %v2332_v0 = vsel %vm6795_vm3, %v2327_v50, %v2331_v23  ;;  %s4995_s5 = sshll.u32 %s185_s4, 5 }
 0x156   : > { %v2365_v53 = vrot.slane %v2363_v32, 5  ;;  %v2369_v6 = vrot.slane %v2367_v59, 4  ;;  %v5247_v12 = vcombine.low %v2322_v20, %v2332_v0  ;;  %v2361_v63 = vrot.slane %v2360_v13, 4  ;;  %p187_p6 = scmp.lt.s32.totalorder %s4995_s5, 255 }
 0x158   : > { %v2370_v15 = vor.u32 %v2369_v6, %v2365_v53  ;;  %v2366_v22 = vsel %vm6795_vm3, %v2361_v63, %v2365_v53  ;;  %s8630_s5 = smov (!%p187_p6, %s4995_s5), 255 }
 0x159   : > { %s4996_s12 = sshll.u32 %s8630_s5, 2 }
 0x15a   : > { %v2371_v1 = vrot.slane %v2370_v15, 4  ;;  %s8475_s7 = scalar_lea.vmem %s8539_s3, %s4996_s12 }
 0x15b   : > { %6020 = vmatmul.mubr.msk.bf16.gmra.mrb[20].mxu1 %vm663_vm2, %v5245_v8  ;;  %6164 = vmatmul.mubr.msk.bf16.gmra.mrb[20].mxu0 %vm663_vm2, %v5503_v33  ;;  %v5248_v33 = vcombine.low %v2346_v36, %v2356_v49 }
 0x15c   : > { %6023 = vmatprep.mubr.msk.bf16.mxu1 %vm663_vm2, %v5246_v26  ;;  %6167 = vmatprep.mubr.msk.bf16.mxu0 %vm663_vm2, %v5504_v19  ;;  %v2376_v61 = vsel %vm6795_vm3, %v2371_v1, %v2375_v48 }
 0x15d   : > { %v5249_v19 = vcombine.low %v2366_v22, %v2376_v61 }
 0x163   : > { %6024 = vmatmul.mubr.msk.bf16.gmra.mrb[24].mxu1 %vm663_vm2, %v5247_v12  ;;  %6168 = vmatmul.mubr.msk.bf16.gmra.mrb[24].mxu0 %vm663_vm2, %v5505_v45 }
 0x164   : > { %6027 = vmatprep.mubr.msk.bf16.mxu1 %vm663_vm2, %v5248_v33  ;;  %6171 = vmatprep.mubr.msk.bf16.mxu0 %vm663_vm2, %v5506_v21 }
 0x16b   : > { %6028 = vmatmul.mubr.msk.bf16.gmra.mrb[28].mxu1 %vm663_vm2, %v5249_v19  ;;  %6172 = vmatmul.mubr.msk.bf16.gmra.mrb[28].mxu0 %vm663_vm2, %v5507_v62 }
 0x1e6   : > { %v5965_v40 = vpop.f32.mrb[0].mxu1 }
 0x1e7   : > { %v1826_v35 = vpop.f32.mrb[1].mxu1 }
 0x1e8   : > { %v5966_v45 = vpop.f32.mrb[2].mxu1 }
 0x1e9   : > { %v1829_v28 = vpop.f32.mrb[3].mxu1 }
 0x1ee   : > { %v5969_v30 = vpop.f32.mrb[4].mxu1 }
 0x1ef   : > { %v1842_v52 = vpop.f32.mrb[5].mxu1 }
 0x1f0   : > { %v5970_v3 = vpop.f32.mrb[6].mxu1 }
 0x1f1   : > { %v1845_v56 = vpop.f32.mrb[7].mxu1 }
 0x1f6   : > { %v5973_v57 = vpop.f32.mrb[8].mxu1 }
 0x1f7   : > { %v1858_v21 = vpop.f32.mrb[9].mxu1 }
 0x1f8   : > { %v5974_v31 = vpop.f32.mrb[10].mxu1 }
 0x1f9   : > { %v1861_v34 = vpop.f32.mrb[11].mxu1 }
 0x1fe   : > { %v8449_v27 = vpop.f32.mrb[12].mxu1 }
 0x1ff   : > { %v8451_v38 = vpop.f32.mrb[13].mxu1 }
 0x200   : > { %v8453_v2 = vpop.f32.mrb[14].mxu1 }
 0x201   : > { %v8455_v4 = vpop.f32.mrb[15].mxu1 }
 0x206   : > { %v6145_v62 = vpop.f32.mrb[0].mxu0 }
 0x207   : > { %v6179_v9 = vadd.f32 %v6145_v62, %v5965_v40  ;;  %v4512_v54 = vpop.f32.mrb[1].mxu0 }
 0x208   : > { %v6180_v11 = vadd.f32 %v4512_v54, %v1826_v35  ;;  %v6146_v39 = vpop.f32.mrb[2].mxu0 }
 0x209   : > { %v4680_v29 = vadd.f32 %v6179_v9, %v8461_v55  ;;  %v6181_v5 = vadd.f32 %v6146_v39, %v5966_v45  ;;  %v4515_v41 = vpop.f32.mrb[3].mxu0 }
 0x20a   : > { %v4678_v25 = vadd.f32 %v6180_v11, %v8461_v55  ;;  %v6182_v46 = vadd.f32 %v4515_v41, %v1829_v28 }
 0x20b   : > { %6542 = vtanh.f32 %v4680_v29  ;;  %v4681_v18 = vadd.f32 %v6181_v5, %v8461_v55 }
 0x20c   : > { %6544 = vtanh.f32 %v4678_v25  ;;  %v4679_v16 = vadd.f32 %v6182_v46, %v8461_v55 }
 0x20d   : > { %6546 = vtanh.f32 %v4681_v18 }
 0x20e   : > { %6548 = vtanh.f32 %v4679_v16  ;;  %v6149_v7 = vpop.f32.mrb[4].mxu0 }
 0x20f   : > { %v6183_v58 = vadd.f32 %v6149_v7, %v5969_v30  ;;  %v4528_v42 = vpop.f32.mrb[5].mxu0 }
 0x210   : > { %v6184_v44 = vadd.f32 %v4528_v42, %v1842_v52  ;;  %v6150_v32 = vpop.f32.mrb[6].mxu0 }
 0x211   : > { %v4684_v59 = vadd.f32 %v6183_v58, %v8461_v55  ;;  %v6185_v37 = vadd.f32 %v6150_v32, %v5970_v3  ;;  %v4531_v14 = vpop.f32.mrb[7].mxu0 }
 0x212   : > { %v4682_v8 = vadd.f32 %v6184_v44, %v8461_v55  ;;  %v6186_v26 = vadd.f32 %v4531_v14, %v1845_v56 }
 0x213   : > { %6550 = vtanh.f32 %v4684_v59  ;;  %v4685_v43 = vadd.f32 %v6185_v37, %v8461_v55 }
 0x214   : > { %6552 = vtanh.f32 %v4682_v8  ;;  %v4683_v50 = vadd.f32 %v6186_v26, %v8461_v55 }
 0x215   : > { %v6543_v23 = vpop.eup %6542  ;;  %6554 = vtanh.f32 %v4685_v43 }
 0x216   : > { %v6545_v51 = vpop.eup %6544  ;;  %6556 = vtanh.f32 %v4683_v50  ;;  %v6153_v10 = vpop.f32.mrb[8].mxu0 }
 0x217   : > { %v6547_v53 = vpop.eup %6546  ;;  %v6187_v6 = vadd.f32 %v6153_v10, %v5973_v57  ;;  %v4544_v47 = vpop.f32.mrb[9].mxu0 }
 0x218   : > { %v6549_v17 = vpop.eup %6548  ;;  %v5602_v20 = vpack.c.bf16 %v6547_v53, %v6543_v23  ;;  %v6188_v0 = vadd.f32 %v4544_v47, %v1858_v21  ;;  %v6154_v13 = vpop.f32.mrb[10].mxu0 }
 0x219   : > { %v5597_v15 = vpack.c.bf16 %v6549_v17, %v6545_v51  ;;  %v4688_v24 = vadd.f32 %v6187_v6, %v8461_v55  ;;  %v6189_v60 = vadd.f32 %v6154_v13, %v5974_v31  ;;  %v4547_v36 = vpop.f32.mrb[11].mxu0 }
 0x21a   : > { %5674 = vst [vmem:[%s8475_s7 + $0x8] sm:$0xff] %v5602_v20   ;;  %v4686_v49 = vadd.f32 %v6188_v0, %v8461_v55  ;;  %v6190_v12 = vadd.f32 %v4547_v36, %v1861_v34 }
 0x21b   : > { %5598 = vst [vmem:[%s8475_s7] sm:$0xff] %v5597_v15   ;;  %6558 = vtanh.f32 %v4688_v24  ;;  %v4689_v33 = vadd.f32 %v6189_v60, %v8461_v55 }
 0x21c   : > { %6560 = vtanh.f32 %v4686_v49  ;;  %v4687_v63 = vadd.f32 %v6190_v12, %v8461_v55 }
 0x21d   : > { %v6551_v1 = vpop.eup %6550  ;;  %6562 = vtanh.f32 %v4689_v33 }
 0x21e   : > { %v6553_v48 = vpop.eup %6552  ;;  %6564 = vtanh.f32 %v4687_v63  ;;  %v6157_v22 = vpop.f32.mrb[12].mxu0 }
 0x21f   : > { %v6555_v61 = vpop.eup %6554  ;;  %v6191_v19 = vadd.f32 %v6157_v22, %v8449_v27  ;;  %v4560_v40 = vpop.f32.mrb[13].mxu0 }
 0x220   : > { %v6557_v35 = vpop.eup %6556  ;;  %v5612_v45 = vpack.c.bf16 %v6555_v61, %v6551_v1  ;;  %v6192_v28 = vadd.f32 %v4560_v40, %v8451_v38  ;;  %v6158_v30 = vpop.f32.mrb[14].mxu0 }
 0x221   : > { %v5607_v52 = vpack.c.bf16 %v6557_v35, %v6553_v48  ;;  %v4692_v3 = vadd.f32 %v6191_v19, %v8461_v55  ;;  %v6193_v56 = vadd.f32 %v6158_v30, %v8453_v2  ;;  %v4563_v57 = vpop.f32.mrb[15].mxu0 }
 0x222   : > { %5676 = vst [vmem:[%s8475_s7 + $0x18] sm:$0xff] %v5612_v45   ;;  %v4690_v21 = vadd.f32 %v6192_v28, %v8461_v55  ;;  %v6194_v31 = vadd.f32 %v4563_v57, %v8455_v4 }
 0x223   : > { %5675 = vst [vmem:[%s8475_s7 + $0x10] sm:$0xff] %v5607_v52   ;;  %6566 = vtanh.f32 %v4692_v3  ;;  %v4693_v34 = vadd.f32 %v6193_v56, %v8461_v55 }
 0x224   : > { %6568 = vtanh.f32 %v4690_v21  ;;  %v4691_v27 = vadd.f32 %v6194_v31, %v8461_v55 }
 0x225   : > { %v6559_v38 = vpop.eup %6558  ;;  %6570 = vtanh.f32 %v4693_v34 }
 0x226   : > { %v6017_v62 = vpop.f32.mrb[16].mxu1  ;;  %v6561_v9 = vpop.eup %6560  ;;  %6572 = vtanh.f32 %v4691_v27 }
 0x227   : > { %v6161_v2 = vpop.f32.mrb[16].mxu0  ;;  %v2588_v54 = vpop.f32.mrb[17].mxu1 }
 0x228   : > { %v6563_v11 = vpop.eup %6562  ;;  %v6195_v39 = vadd.f32 %v6161_v2, %v6017_v62  ;;  %v4576_v29 = vpop.f32.mrb[17].mxu0 }
 0x229   : > { %v6018_v4 = vpop.f32.mrb[18].mxu1  ;;  %v6565_v5 = vpop.eup %6564  ;;  %v5622_v41 = vpack.c.bf16 %v6563_v11, %v6559_v38  ;;  %v6196_v25 = vadd.f32 %v4576_v29, %v2588_v54 }
 0x22a   : > { %v6162_v46 = vpop.f32.mrb[18].mxu0  ;;  %v2591_v18 = vpop.f32.mrb[19].mxu1  ;;  %v5617_v16 = vpack.c.bf16 %v6565_v5, %v6561_v9  ;;  %v4696_v7 = vadd.f32 %v6195_v39, %v8461_v55 }
 0x22b   : > { %v6197_v58 = vadd.f32 %v6162_v46, %v6018_v4  ;;  %v4579_v42 = vpop.f32.mrb[19].mxu0  ;;  %5678 = vst [vmem:[%s8475_s7 + $0x28] sm:$0xff] %v5622_v41   ;;  %v4694_v44 = vadd.f32 %v6196_v25, %v8461_v55 }
 0x22c   : > { %v6198_v32 = vadd.f32 %v4579_v42, %v2591_v18  ;;  %5677 = vst [vmem:[%s8475_s7 + $0x20] sm:$0xff] %v5617_v16   ;;  %6574 = vtanh.f32 %v4696_v7 }
 0x22d   : > { %v4697_v59 = vadd.f32 %v6197_v58, %v8461_v55  ;;  %6576 = vtanh.f32 %v4694_v44  ;;  %v6567_v14 = vpop.eup %6566 }
 0x22e   : > { %v4695_v37 = vadd.f32 %v6198_v32, %v8461_v55  ;;  %v6021_v8 = vpop.f32.mrb[20].mxu1  ;;  %v6569_v26 = vpop.eup %6568 }
 0x22f   : > { %6578 = vtanh.f32 %v4697_v59  ;;  %v6165_v43 = vpop.f32.mrb[20].mxu0  ;;  %v2604_v50 = vpop.f32.mrb[21].mxu1 }
 0x230   : > { %6580 = vtanh.f32 %v4695_v37  ;;  %v6571_v23 = vpop.eup %6570  ;;  %v6199_v51 = vadd.f32 %v6165_v43, %v6021_v8  ;;  %v4592_v10 = vpop.f32.mrb[21].mxu0 }
 0x231   : > { %v6022_v53 = vpop.f32.mrb[22].mxu1  ;;  %v6573_v6 = vpop.eup %6572  ;;  %v5632_v47 = vpack.c.bf16 %v6571_v23, %v6567_v14  ;;  %v6200_v17 = vadd.f32 %v4592_v10, %v2604_v50 }
 0x232   : > { %v6166_v20 = vpop.f32.mrb[22].mxu0  ;;  %v2607_v0 = vpop.f32.mrb[23].mxu1  ;;  %v5627_v13 = vpack.c.bf16 %v6573_v6, %v6569_v26  ;;  %v4700_v15 = vadd.f32 %v6199_v51, %v8461_v55 }
 0x233   : > { %v6201_v24 = vadd.f32 %v6166_v20, %v6022_v53  ;;  %v4595_v60 = vpop.f32.mrb[23].mxu0  ;;  %5680 = vst [vmem:[%s8475_s7 + $0x38] sm:$0xff] %v5632_v47   ;;  %v4698_v36 = vadd.f32 %v6200_v17, %v8461_v55 }
 0x234   : > { %v6202_v49 = vadd.f32 %v4595_v60, %v2607_v0  ;;  %5679 = vst [vmem:[%s8475_s7 + $0x30] sm:$0xff] %v5627_v13   ;;  %6582 = vtanh.f32 %v4700_v15 }
 0x235   : > { %v4701_v12 = vadd.f32 %v6201_v24, %v8461_v55  ;;  %6584 = vtanh.f32 %v4698_v36 }
 0x236   : > { %v4699_v33 = vadd.f32 %v6202_v49, %v8461_v55  ;;  %v6575_v63 = vpop.eup %6574  ;;  %v6025_v1 = vpop.f32.mrb[24].mxu1 }
 0x237   : > { %6586 = vtanh.f32 %v4701_v12  ;;  %v6577_v48 = vpop.eup %6576  ;;  %v6169_v22 = vpop.f32.mrb[24].mxu0 }
 0x238   : > { %6588 = vtanh.f32 %v4699_v33  ;;  %v2620_v61 = vpop.f32.mrb[25].mxu1  ;;  %v6203_v40 = vadd.f32 %v6169_v22, %v6025_v1  ;;  %v4608_v35 = vpop.f32.mrb[25].mxu0 }
 0x239   : > { %v6579_v19 = vpop.eup %6578  ;;  %v6026_v45 = vpop.f32.mrb[26].mxu1  ;;  %v6204_v52 = vadd.f32 %v4608_v35, %v2620_v61 }
 0x23a   : > { %v6581_v28 = vpop.eup %6580  ;;  %v5642_v30 = vpack.c.bf16 %v6579_v19, %v6575_v63  ;;  %v6170_v3 = vpop.f32.mrb[26].mxu0  ;;  %v4704_v21 = vadd.f32 %v6203_v40, %v8461_v55 }
 0x23b   : > { %v2623_v56 = vpop.f32.mrb[27].mxu1  ;;  %v5637_v57 = vpack.c.bf16 %v6581_v28, %v6577_v48  ;;  %v6205_v31 = vadd.f32 %v6170_v3, %v6026_v45  ;;  %v4611_v34 = vpop.f32.mrb[27].mxu0  ;;  %v4702_v27 = vadd.f32 %v6204_v52, %v8461_v55 }
 0x23c   : > { %5682 = vst [vmem:[%s8475_s7 + $0x48] sm:$0xff] %v5642_v30   ;;  %v6206_v38 = vadd.f32 %v4611_v34, %v2623_v56  ;;  %6590 = vtanh.f32 %v4704_v21 }
 0x23d   : > { %5681 = vst [vmem:[%s8475_s7 + $0x40] sm:$0xff] %v5637_v57   ;;  %v4705_v62 = vadd.f32 %v6205_v31, %v8461_v55  ;;  %6592 = vtanh.f32 %v4702_v27 }
 0x23e   : > { %v4703_v9 = vadd.f32 %v6206_v38, %v8461_v55  ;;  %v6583_v2 = vpop.eup %6582  ;;  %v6029_v54 = vpop.f32.mrb[28].mxu1 }
 0x23f   : > { %6594 = vtanh.f32 %v4705_v62  ;;  %v6585_v11 = vpop.eup %6584  ;;  %v6173_v39 = vpop.f32.mrb[28].mxu0 }
 0x240   : > { %6596 = vtanh.f32 %v4703_v9  ;;  %v2636_v29 = vpop.f32.mrb[29].mxu1  ;;  %v6207_v5 = vadd.f32 %v6173_v39, %v6029_v54  ;;  %v4624_v41 = vpop.f32.mrb[29].mxu0 }
 0x241   : > { %v6587_v4 = vpop.eup %6586  ;;  %v6030_v25 = vpop.f32.mrb[30].mxu1  ;;  %v6208_v16 = vadd.f32 %v4624_v41, %v2636_v29 }
 0x242   : > { %v6589_v46 = vpop.eup %6588  ;;  %v5652_v18 = vpack.c.bf16 %v6587_v4, %v6583_v2  ;;  %v6174_v7 = vpop.f32.mrb[30].mxu0  ;;  %v4708_v44 = vadd.f32 %v6207_v5, %v8461_v55 }
 0x243   : > { %v2639_v58 = vpop.f32.mrb[31].mxu1  ;;  %v5647_v42 = vpack.c.bf16 %v6589_v46, %v6585_v11  ;;  %v6209_v32 = vadd.f32 %v6174_v7, %v6030_v25  ;;  %v4627_v59 = vpop.f32.mrb[31].mxu0  ;;  %v4706_v37 = vadd.f32 %v6208_v16, %v8461_v55 }
 0x244   : > { %5684 = vst [vmem:[%s8475_s7 + $0x58] sm:$0xff] %v5652_v18   ;;  %v6210_v14 = vadd.f32 %v4627_v59, %v2639_v58  ;;  %6598 = vtanh.f32 %v4708_v44 }
 0x245   : > { %5683 = vst [vmem:[%s8475_s7 + $0x50] sm:$0xff] %v5647_v42   ;;  %v4709_v8 = vadd.f32 %v6209_v32, %v8461_v55  ;;  %6600 = vtanh.f32 %v4706_v37 }
 0x246   : > { %v4707_v26 = vadd.f32 %v6210_v14, %v8461_v55  ;;  %v6591_v43 = vpop.eup %6590 }
 0x247   : > { %6602 = vtanh.f32 %v4709_v8  ;;  %v6593_v50 = vpop.eup %6592 }
 0x248   : > { %6604 = vtanh.f32 %v4707_v26 }
 0x249   : > { %v6595_v23 = vpop.eup %6594 }
 0x24a   : > { %v6597_v51 = vpop.eup %6596  ;;  %v5662_v10 = vpack.c.bf16 %v6595_v23, %v6591_v43 }
 0x24b   : > { %v5657_v53 = vpack.c.bf16 %v6597_v51, %v6593_v50 }
 0x24c   : > { %5686 = vst [vmem:[%s8475_s7 + $0x68] sm:$0xff] %v5662_v10  }
 0x24d   : > { %5685 = vst [vmem:[%s8475_s7 + $0x60] sm:$0xff] %v5657_v53  }
 0x24e   : > { %v6599_v6 = vpop.eup %6598 }
 0x24f   : > { %v6601_v47 = vpop.eup %6600 }
 0x251   : > { %v6603_v17 = vpop.eup %6602 }
 0x252   : > { %v6605_v20 = vpop.eup %6604  ;;  %v5672_v0 = vpack.c.bf16 %v6603_v17, %v6599_v6 }
 0x253   : > { %v5667_v13 = vpack.c.bf16 %v6605_v20, %v6601_v47 }
 0x254   : > { %5688 = vst [vmem:[%s8475_s7 + $0x78] sm:$0xff] %v5672_v0  }
 0x255   : > { %5687 = vst [vmem:[%s8475_s7 + $0x70] sm:$0xff] %v5667_v13  }
 0x256 PF: > { %s13_s16 = sadd.s32 1, %s6693_s16   ;;  %s8619_s12 = smov %s6685_s14 }
 0x257   : > { %p10_p7 = scmp.ge.s32.totalorder %s13_s16, 10   ;;  %s8620_s13 = smov %s6689_s15 }
 0x258   : > { %s8621_s14 = smov %s8624_s17  ;;  %s8622_s15 = smov %s8628_s18 }
 0x259   :  { %12 = sbr.rel (!%p10_p7) target bundleno = 3 (0x3), region = 73 }

</bundles_post_ra>
